<compile_context>
chip_gen: v7x
topology: tpu7x:2x2x1
jax: 0.10.0
libtpu: 0.0.40
codegen_flags: <defaults>
</compile_context>

<pallas_src>
import math
from functools import partial

import jax
import jax.numpy as jnp
from jax.experimental import pallas as pl
from jax.experimental.pallas import tpu as pltpu

EPS = 1e-5                 # torch.nn.LayerNorm default
_EXACT_SOFTMAX = False     # True -> exact division (strict parity w/ torch.softmax)


# --------------------------------------------------------------------------
# In-kernel helpers (all f32 element-wise math)
# --------------------------------------------------------------------------

def _ln_rows(x, w, b):
    """LayerNorm over the last dim.  x: (N, D) f32, w/b: (1, D) f32."""
    mu = jnp.mean(x, axis=-1, keepdims=True)
    var = jnp.mean(jnp.square(x - mu), axis=-1, keepdims=True)
    return (x - mu) * jax.lax.rsqrt(var + EPS) * w + b


def _softmax_rows(s):
    """Row softmax; EUP approximate reciprocal for the denominator."""
    m = jnp.max(s, axis=-1, keepdims=True)
    e = jnp.exp(s - m)
    den = jnp.sum(e, axis=-1, keepdims=True)
    if _EXACT_SOFTMAX:
        return e / den
    return e * pl.reciprocal(den, approx=True)


# --------------------------------------------------------------------------
# Fused per-direction kernel:
#   mixed-score cross-attention + residual/norm + TransformerEncoderLayer
# --------------------------------------------------------------------------

def _matnet_dir_kernel(xq_ref, xkv_ref, cost_ref,
                       wq_ref, bq_ref, wkv_ref, bkv_ref, woc_ref, boc_ref,
                       mix_ref, qn_w_ref, qn_b_ref,
                       wqkv_ref, bqkv_ref, wos_ref, bos_ref,
                       w1_ref, b1_ref, w2_ref, b2_ref,
                       n1w_ref, n1b_ref, n2w_ref, n2b_ref,
                       *rest, num_heads, ms_hidden, norm_first, transpose_cost):
    if norm_first:
        kvn_w_ref, kvn_b_ref, on_w_ref, on_b_ref, o_ref = rest
    else:
        (o_ref,) = rest

    f32, bf16 = jnp.float32, jnp.bfloat16
    x_q = xq_ref[0]                                   # (Nq, D) f32
    x_kv = xkv_ref[0]                                 # (Nk, D) f32
    cost = cost_ref[0]                                # (N_shelf, N_sku) f32
    if transpose_cost:
        cost = cost.T                                 # in-kernel XLU transpose

    D = x_q.shape[-1]
    dk = D // num_heads
    Nk = x_kv.shape[0]
    MS = ms_hidden

    # ---------------- MatNet mixed-score cross attention -------------------
    if norm_first:
        q_in = _ln_rows(x_q, qn_w_ref[...], qn_b_ref[...])
        kv_in = _ln_rows(x_kv, kvn_w_ref[...], kvn_b_ref[...])
    else:
        q_in, kv_in = x_q, x_kv

    # Fused projections, bf16 MXU + f32 accumulation.  1/sqrt(dk) is already
    # folded into Wq / bq at parameter-prep time.
    q = jnp.dot(q_in.astype(bf16), wq_ref[...], preferred_element_type=f32) + bq_ref[...]
    kv = jnp.dot(kv_in.astype(bf16), wkv_ref[...], preferred_element_type=f32) + bkv_ref[...]
    q_b = q.astype(bf16)
    k_b = kv[:, :D].astype(bf16)
    v_b = kv[:, D:].astype(bf16)

    # Per-head scores contracted on dk (no K transpose), lane-stacked into one
    # (Nq, H*Nk) tile so the mix MLP runs on fully occupied lanes.
    s_stack = jnp.concatenate(
        [jax.lax.dot_general(q_b[:, h * dk:(h + 1) * dk],
                             k_b[:, h * dk:(h + 1) * dk],
                             (((1,), (1,)), ((), ())),
                             preferred_element_type=f32)
         for h in range(num_heads)], axis=1)                       # (Nq, H*Nk)
    cost_stack = jnp.concatenate([cost] * num_heads, axis=1)        # (Nq, H*Nk)

    # Mixed-score MLP vectorised across heads (MS iterations, not H*MS).
    # mix rows: [0:MS)=w_dot, [MS:2MS)=w_cost, [2MS:3MS)=b1, [3MS:4MS)=w2, [4MS]=b2
    mix = mix_ref[...]                                              # (4*MS+1, H*Nk)
    mixed = jnp.zeros_like(s_stack)
    for j in range(MS):
        hid = jnp.maximum(s_stack * mix[j:j + 1, :]
                          + cost_stack * mix[MS + j:MS + j + 1, :]
                          + mix[2 * MS + j:2 * MS + j + 1, :], 0.0)
        mixed = mixed + hid * mix[3 * MS + j:3 * MS + j + 1, :]
    mixed = mixed + mix[4 * MS:4 * MS + 1, :]

    # Per-head softmax (over Nk) and value mix; heads concatenated lane-wise
    # into one (Nq, D) tile -> single D-deep Wo matmul.
    heads = []
    for h in range(num_heads):
        p = _softmax_rows(mixed[:, h * Nk:(h + 1) * Nk])
        heads.append(jnp.dot(p.astype(bf16), v_b[:, h * dk:(h + 1) * dk],
                             preferred_element_type=f32))
    attn = jnp.concatenate(heads, axis=1)                           # (Nq, D)
    attn = jnp.dot(attn.astype(bf16), woc_ref[...],
                   preferred_element_type=f32) + boc_ref[...]

    y = attn + x_q                                                  # residual
    if not norm_first:
        y = _ln_rows(y, qn_w_ref[...], qn_b_ref[...])               # shelf/sku post-norm

    # ------------- fused torch.nn.TransformerEncoderLayer ------------------
    def sa_block(z):
        qkv = jnp.dot(z.astype(bf16), wqkv_ref[...],
                      preferred_element_type=f32) + bqkv_ref[...]
        qm = qkv[:, :D].astype(bf16)        # 1/sqrt(dk) pre-folded into Q slice
        km = qkv[:, D:2 * D].astype(bf16)
        vm = qkv[:, 2 * D:].astype(bf16)
        outs = []
        for h in range(num_heads):
            sl = slice(h * dk, (h + 1) * dk)
            s = jax.lax.dot_general(qm[:, sl], km[:, sl],
                                    (((1,), (1,)), ((), ())),
                                    preferred_element_type=f32)
            p = _softmax_rows(s)
            outs.append(jnp.dot(p.astype(bf16), vm[:, sl],
                                preferred_element_type=f32))
        o = jnp.concatenate(outs, axis=1)                            # (Nq, D)
        return jnp.dot(o.astype(bf16), wos_ref[...],
                       preferred_element_type=f32) + bos_ref[...]

    def ff_block(z):
        h1 = jnp.maximum(
            jnp.dot(z.astype(bf16), w1_ref[...], preferred_element_type=f32)
            + b1_ref[...], 0.0)
        return jnp.dot(h1.astype(bf16), w2_ref[...],
                       preferred_element_type=f32) + b2_ref[...]

    if norm_first:
        y = y + sa_block(_ln_rows(y, n1w_ref[...], n1b_ref[...]))
        y = y + ff_block(_ln_rows(y, n2w_ref[...], n2b_ref[...]))
        y = _ln_rows(y, on_w_ref[...], on_b_ref[...])                # out-norm
    else:
        y = _ln_rows(y + sa_block(y), n1w_ref[...], n1b_ref[...])
        y = _ln_rows(y + ff_block(y), n2w_ref[...], n2b_ref[...])

    o_ref[0] = y


def _run_direction(p, x_q, x_kv, cost, *, num_heads, norm_first, transpose_cost):
    B, Nq, D = x_q.shape
    Nk = x_kv.shape[1]
    Nc0, Nc1 = cost.shape[1], cost.shape[2]
    MS = (p["mix"].shape[0] - 1) // 4

    def rep(a):
        n = a.ndim
        return pl.BlockSpec(a.shape, lambda b: (0,) * n)   # grid-resident weights

    weights = [p["Wq"], p["bq"], p["Wkv"], p["bkv"], p["Woc"], p["boc"],
               p["mix"], p["qn_w"], p["qn_b"],
               p["Wqkv"], p["bqkv"], p["Wos"], p["bos"],
               p["W1"], p["b1"], p["W2"], p["b2"],
               p["n1w"], p["n1b"], p["n2w"], p["n2b"]]
    if norm_first:
        weights += [p["kvn_w"], p["kvn_b"], p["on_w"], p["on_b"]]

    in_specs = [pl.BlockSpec((1, Nq, D), lambda b: (b, 0, 0)),
                pl.BlockSpec((1, Nk, D), lambda b: (b, 0, 0)),
                pl.BlockSpec((1, Nc0, Nc1), lambda b: (b, 0, 0))]
    in_specs += [rep(w) for w in weights]

    return pl.pallas_call(
        partial(_matnet_dir_kernel, num_heads=num_heads, ms_hidden=MS,
                norm_first=norm_first, transpose_cost=transpose_cost),
        grid=(B,),
        in_specs=in_specs,
        out_specs=pl.BlockSpec((1, Nq, D), lambda b: (b, 0, 0)),
        out_shape=jax.ShapeDtypeStruct((B, Nq, D), jnp.float32),
        compiler_params=pltpu.CompilerParams(
            dimension_semantics=("parallel",),
            vmem_limit_bytes=32 * 1024 * 1024),
    )(x_q, x_kv, cost, *weights)


# --------------------------------------------------------------------------
# MatNetEncoderLayer forward (2 fused pallas_calls: shelf-dir, sku-dir)
# --------------------------------------------------------------------------

def matnet_encoder_layer(prep, shelf_emb, sku_emb, cost_mat=None,
                         cross_mask=None, shelf_mask=None, sku_mask=None, *,
                         num_heads, norm_first=False):
    # TODO(synk): cross_mask / shelf_mask / sku_mask are not implemented.
    shelf_out = _run_direction(prep["shelf"], shelf_emb, sku_emb, cost_mat,
                               num_heads=num_heads, norm_first=norm_first,
                               transpose_cost=False)
    sku_out = _run_direction(prep["sku"], sku_emb, shelf_emb, cost_mat,
                             num_heads=num_heads, norm_first=norm_first,
                             transpose_cost=True)
    return shelf_out, sku_out


# --------------------------------------------------------------------------
# Parameters: raw ("torch-like", f32) init + one-time kernel-ready packing
# (QKV concat, scale folding, bf16 cast, lane-expanded mixing weights).
# --------------------------------------------------------------------------

def init_params(key, D, H, FF, MS):
    ks = iter(jax.random.split(key, 64))

    def nrm(shape, s=0.05):
        return jax.random.normal(next(ks), shape, dtype=jnp.float32) * s

    zeros = lambda shape: jnp.zeros(shape, jnp.float32)
    ones = lambda shape: jnp.ones(shape, jnp.float32)

    def cross_params():
        return dict(Wq=nrm((D, D)), bq=zeros((1, D)),
                    Wk=nrm((D, D)), bk=zeros((1, D)),
                    Wv=nrm((D, D)), bv=zeros((1, D)),
                    Wo=nrm((D, D)), bo=zeros((1, D)),
                    mix_w_dot=nrm((H, MS), 0.5), mix_w_cost=nrm((H, MS), 0.5),
                    mix_b1=zeros((H, MS)), mix_w2=nrm((H, MS), 0.5),
                    mix_b2=zeros((H,)))

    def encoder_params():
        return dict(Wqkv=nrm((D, 3 * D)), bqkv=zeros((1, 3 * D)),
                    Wo=nrm((D, D)), bo=zeros((1, D)),
                    W1=nrm((D, FF)), b1=zeros((1, FF)),
                    W2=nrm((FF, D)), b2=zeros((1, D)),
                    n1w=ones((1, D)), n1b=zeros((1, D)),
                    n2w=ones((1, D)), n2b=zeros((1, D)))

    return dict(
        cross_shelf=cross_params(), cross_sku=cross_params(),
        shelf_mha=encoder_params(), sku_mha=encoder_params(),
        shelf_norm_w=ones((1, D)), shelf_norm_b=zeros((1, D)),
        sku_norm_w=ones((1, D)), sku_norm_b=zeros((1, D)),
        shelf_out_norm_w=ones((1, D)), shelf_out_norm_b=zeros((1, D)),
        sku_out_norm_w=ones((1, D)), sku_out_norm_b=zeros((1, D)),
    )


def _expand_mix(c, H, MS, Nk):
    """Lane-expand per-head mixing weights to (4*MS+1, H*Nk) f32."""
    rows = [jnp.repeat(a.T, Nk, axis=1)                       # (MS, H*Nk)
            for a in (c["mix_w_dot"], c["mix_w_cost"], c["mix_b1"], c["mix_w2"])]
    rows.append(jnp.repeat(c["mix_b2"].reshape(1, H), Nk, axis=1))   # (1, H*Nk)
    return jnp.concatenate(rows, axis=0)


def _prep_direction(cross, enc, qnorm, kvnorm, out_norm, *, H, MS, Nk, D, norm_first):
    bf16 = jnp.bfloat16
    scale = 1.0 / math.sqrt(D // H)
    d = dict(
        # cross attention (scale folded into Wq / bq)
        Wq=(cross["Wq"] * scale).astype(bf16), bq=cross["bq"] * scale,
        Wkv=jnp.concatenate([cross["Wk"], cross["Wv"]], axis=1).astype(bf16),
        bkv=jnp.concatenate([cross["bk"], cross["bv"]], axis=1),
        Woc=cross["Wo"].astype(bf16), boc=cross["bo"],
        mix=_expand_mix(cross, H, MS, Nk),
        qn_w=qnorm[0], qn_b=qnorm[1],
        # TransformerEncoderLayer (scale folded into the Q slice of Wqkv/bqkv)
        Wqkv=jnp.concatenate([enc["Wqkv"][:, :D] * scale, enc["Wqkv"][:, D:]],
                             axis=1).astype(bf16),
        bqkv=jnp.concatenate([enc["bqkv"][:, :D] * scale, enc["bqkv"][:, D:]],
                             axis=1),
        Wos=enc["Wo"].astype(bf16), bos=enc["bo"],
        W1=enc["W1"].astype(bf16), b1=enc["b1"],
        W2=enc["W2"].astype(bf16), b2=enc["b2"],
        n1w=enc["n1w"], n1b=enc["n1b"], n2w=enc["n2w"], n2b=enc["n2b"],
    )
    if norm_first:
        d.update(kvn_w=kvnorm[0], kvn_b=kvnorm[1],
                 on_w=out_norm[0], on_b=out_norm[1])
    return d


def prepare_params(raw, *, num_heads, n_shelf, n_sku, norm_first):
    D = raw["cross_shelf"]["Wq"].shape[0]
    MS = raw["cross_shelf"]["mix_w_dot"].shape[1]
    shelf = _prep_direction(
        raw["cross_shelf"], raw["shelf_mha"],
        (raw["shelf_norm_w"], raw["shelf_norm_b"]),
        (raw["sku_norm_w"], raw["sku_norm_b"]),
        (raw["shelf_out_norm_w"], raw["shelf_out_norm_b"]),
        H=num_heads, MS=MS, Nk=n_sku, D=D, norm_first=norm_first)
    sku = _prep_direction(
        raw["cross_sku"], raw["sku_mha"],
        (raw["sku_norm_w"], raw["sku_norm_b"]),
        (raw["shelf_norm_w"], raw["shelf_norm_b"]),
        (raw["sku_out_norm_w"], raw["sku_out_norm_b"]),
        H=num_heads, MS=MS, Nk=n_shelf, D=D, norm_first=norm_first)
    return dict(shelf=shelf, sku=sku)


# --------------------------------------------------------------------------

if __name__ == "__main__":
    B, N_SHELF, N_SKU = 2, 8, 16
    # D kept a multiple of 128 so output stores are lane-dense (perf review #4).
    D, H, FF, MS = 128, 8, 256, 16
    NORM_FIRST = False                  # post-norm config of the PyTorch module

    key = jax.random.PRNGKey(0)
    k_params, k_shelf, k_sku, k_cost = jax.random.split(key, 4)
    raw = init_params(k_params, D, H, FF, MS)
    prep = prepare_params(raw, num_heads=H, n_shelf=N_SHELF, n_sku=N_SKU,
                          norm_first=NORM_FIRST)

    shelf_emb = jax.random.normal(k_shelf, (B, N_SHELF, D), dtype=jnp.float32)
    sku_emb = jax.random.normal(k_sku, (B, N_SKU, D), dtype=jnp.float32)
    cost_mat = jax.random.normal(k_cost, (B, N_SHELF, N_SKU), dtype=jnp.float32)

    fwd = jax.jit(partial(matnet_encoder_layer, num_heads=H,
                          norm_first=NORM_FIRST))
    shelf_out, sku_out = fwd(prep, shelf_emb, sku_emb, cost_mat)
    jax.block_until_ready((shelf_out, sku_out))

    assert shelf_out.shape == (B, N_SHELF, D)
    assert sku_out.shape == (B, N_SKU, D)
    assert bool(jnp.all(jnp.isfinite(shelf_out)))
    assert bool(jnp.all(jnp.isfinite(sku_out)))
    print("KERNEL_OK")
</pallas_src>

<mosaic_0001>
module attributes {stable_mosaic.version = 11 : i64} {
  func.func @_matnet_dir_kernel(%arg0: i32, %arg1: memref<1x8x128xf32, #tpu.memory_space<vmem>>, %arg2: memref<1x16x128xf32, #tpu.memory_space<vmem>>, %arg3: memref<1x8x16xf32, #tpu.memory_space<vmem>>, %arg4: memref<128x128xbf16, #tpu.memory_space<vmem>>, %arg5: memref<1x128xf32, #tpu.memory_space<vmem>>, %arg6: memref<128x256xbf16, #tpu.memory_space<vmem>>, %arg7: memref<1x256xf32, #tpu.memory_space<vmem>>, %arg8: memref<128x128xbf16, #tpu.memory_space<vmem>>, %arg9: memref<1x128xf32, #tpu.memory_space<vmem>>, %arg10: memref<65x128xf32, #tpu.memory_space<vmem>>, %arg11: memref<1x128xf32, #tpu.memory_space<vmem>>, %arg12: memref<1x128xf32, #tpu.memory_space<vmem>>, %arg13: memref<128x384xbf16, #tpu.memory_space<vmem>>, %arg14: memref<1x384xf32, #tpu.memory_space<vmem>>, %arg15: memref<128x128xbf16, #tpu.memory_space<vmem>>, %arg16: memref<1x128xf32, #tpu.memory_space<vmem>>, %arg17: memref<128x256xbf16, #tpu.memory_space<vmem>>, %arg18: memref<1x256xf32, #tpu.memory_space<vmem>>, %arg19: memref<256x128xbf16, #tpu.memory_space<vmem>>, %arg20: memref<1x128xf32, #tpu.memory_space<vmem>>, %arg21: memref<1x128xf32, #tpu.memory_space<vmem>>, %arg22: memref<1x128xf32, #tpu.memory_space<vmem>>, %arg23: memref<1x128xf32, #tpu.memory_space<vmem>>, %arg24: memref<1x128xf32, #tpu.memory_space<vmem>>, %arg25: memref<1x8x128xf32, #tpu.memory_space<vmem>>) attributes {dimension_semantics = [#tpu.dimension_semantics<parallel>], iteration_bounds = array<i64: 2>, scalar_prefetch = 0 : i64, scratch_operands = 0 : i64, tpu.core_type = #tpu.core_type<tc>, window_params = [{transform_indices = @transform_0, window_bounds = array<i64: 1, 8, 128>}, {transform_indices = @transform_1, window_bounds = array<i64: 1, 16, 128>}, {transform_indices = @transform_2, window_bounds = array<i64: 1, 8, 16>}, {pipeline_mode = #tpu.pipeline_mode<synchronous>, transform_indices = @transform_3, window_bounds = array<i64: 128, 128>}, {pipeline_mode = #tpu.pipeline_mode<synchronous>, transform_indices = @transform_4, window_bounds = array<i64: 1, 128>}, {pipeline_mode = #tpu.pipeline_mode<synchronous>, transform_indices = @transform_5, window_bounds = array<i64: 128, 256>}, {pipeline_mode = #tpu.pipeline_mode<synchronous>, transform_indices = @transform_6, window_bounds = array<i64: 1, 256>}, {pipeline_mode = #tpu.pipeline_mode<synchronous>, transform_indices = @transform_7, window_bounds = array<i64: 128, 128>}, {pipeline_mode = #tpu.pipeline_mode<synchronous>, transform_indices = @transform_8, window_bounds = array<i64: 1, 128>}, {pipeline_mode = #tpu.pipeline_mode<synchronous>, transform_indices = @transform_9, window_bounds = array<i64: 65, 128>}, {pipeline_mode = #tpu.pipeline_mode<synchronous>, transform_indices = @transform_10, window_bounds = array<i64: 1, 128>}, {pipeline_mode = #tpu.pipeline_mode<synchronous>, transform_indices = @transform_11, window_bounds = array<i64: 1, 128>}, {pipeline_mode = #tpu.pipeline_mode<synchronous>, transform_indices = @transform_12, window_bounds = array<i64: 128, 384>}, {pipeline_mode = #tpu.pipeline_mode<synchronous>, transform_indices = @transform_13, window_bounds = array<i64: 1, 384>}, {pipeline_mode = #tpu.pipeline_mode<synchronous>, transform_indices = @transform_14, window_bounds = array<i64: 128, 128>}, {pipeline_mode = #tpu.pipeline_mode<synchronous>, transform_indices = @transform_15, window_bounds = array<i64: 1, 128>}, {pipeline_mode = #tpu.pipeline_mode<synchronous>, transform_indices = @transform_16, window_bounds = array<i64: 128, 256>}, {pipeline_mode = #tpu.pipeline_mode<synchronous>, transform_indices = @transform_17, window_bounds = array<i64: 1, 256>}, {pipeline_mode = #tpu.pipeline_mode<synchronous>, transform_indices = @transform_18, window_bounds = array<i64: 256, 128>}, {pipeline_mode = #tpu.pipeline_mode<synchronous>, transform_indices = @transform_19, window_bounds = array<i64: 1, 128>}, {pipeline_mode = #tpu.pipeline_mode<synchronous>, transform_indices = @transform_20, window_bounds = array<i64: 1, 128>}, {pipeline_mode = #tpu.pipeline_mode<synchronous>, transform_indices = @transform_21, window_bounds = array<i64: 1, 128>}, {pipeline_mode = #tpu.pipeline_mode<synchronous>, transform_indices = @transform_22, window_bounds = array<i64: 1, 128>}, {pipeline_mode = #tpu.pipeline_mode<synchronous>, transform_indices = @transform_23, window_bounds = array<i64: 1, 128>}, {transform_indices = @transform_24, window_bounds = array<i64: 1, 8, 128>}]} {
    %c0 = arith.constant 0 : index
    %c0_0 = arith.constant 0 : index
    %c0_1 = arith.constant 0 : index
    %0 = vector.load %arg1[%c0, %c0_0, %c0_1] : memref<1x8x128xf32, #tpu.memory_space<vmem>>, vector<1x8x128xf32>
    %1 = vector.shape_cast %0 : vector<1x8x128xf32> to vector<8x128xf32>
    %c0_2 = arith.constant 0 : index
    %c0_3 = arith.constant 0 : index
    %c0_4 = arith.constant 0 : index
    %2 = vector.load %arg2[%c0_2, %c0_3, %c0_4] : memref<1x16x128xf32, #tpu.memory_space<vmem>>, vector<1x16x128xf32>
    %3 = vector.shape_cast %2 : vector<1x16x128xf32> to vector<16x128xf32>
    %c0_5 = arith.constant 0 : index
    %c0_6 = arith.constant 0 : index
    %c0_7 = arith.constant 0 : index
    %4 = vector.load %arg3[%c0_5, %c0_6, %c0_7] : memref<1x8x16xf32, #tpu.memory_space<vmem>>, vector<1x8x16xf32>
    %5 = vector.shape_cast %4 : vector<1x8x16xf32> to vector<8x16xf32>
    %6 = arith.truncf %1 : vector<8x128xf32> to vector<8x128xbf16>
    %c0_8 = arith.constant 0 : index
    %c0_9 = arith.constant 0 : index
    %7 = vector.load %arg4[%c0_8, %c0_9] : memref<128x128xbf16, #tpu.memory_space<vmem>>, vector<128x128xbf16>
    %cst = arith.constant dense<0.000000e+00> : vector<8x128xf32>
    %8 = tpu.matmul %6, %7, %cst {dimension_numbers = #tpu.dot_dimension_numbers<[1], [0], [0], [1], [0, 0, 1, 1], [], []>} : vector<8x128xbf16>, vector<128x128xbf16>, vector<8x128xf32> -> vector<8x128xf32>
    %c0_10 = arith.constant 0 : index
    %c0_11 = arith.constant 0 : index
    %9 = vector.load %arg5[%c0_10, %c0_11] : memref<1x128xf32, #tpu.memory_space<vmem>>, vector<1x128xf32>
    %10 = vector.broadcast %9 : vector<1x128xf32> to vector<8x128xf32>
    %11 = arith.addf %8, %10 : vector<8x128xf32>
    %12 = arith.truncf %3 : vector<16x128xf32> to vector<16x128xbf16>
    %c0_12 = arith.constant 0 : index
    %c0_13 = arith.constant 0 : index
    %13 = vector.load %arg6[%c0_12, %c0_13] : memref<128x256xbf16, #tpu.memory_space<vmem>>, vector<128x256xbf16>
    %cst_14 = arith.constant dense<0.000000e+00> : vector<16x256xf32>
    %14 = tpu.matmul %12, %13, %cst_14 {dimension_numbers = #tpu.dot_dimension_numbers<[1], [0], [0], [1], [0, 0, 1, 1], [], []>} : vector<16x128xbf16>, vector<128x256xbf16>, vector<16x256xf32> -> vector<16x256xf32>
    %c0_15 = arith.constant 0 : index
    %c0_16 = arith.constant 0 : index
    %15 = vector.load %arg7[%c0_15, %c0_16] : memref<1x256xf32, #tpu.memory_space<vmem>>, vector<1x256xf32>
    %16 = vector.broadcast %15 : vector<1x256xf32> to vector<16x256xf32>
    %17 = arith.addf %14, %16 : vector<16x256xf32>
    %18 = arith.truncf %11 : vector<8x128xf32> to vector<8x128xbf16>
    %19 = vector.extract_strided_slice %17 {offsets = [0, 0], sizes = [16, 128], strides = [1, 1]} : vector<16x256xf32> to vector<16x128xf32>
    %20 = arith.truncf %19 : vector<16x128xf32> to vector<16x128xbf16>
    %21 = vector.extract_strided_slice %17 {offsets = [0, 128], sizes = [16, 128], strides = [1, 1]} : vector<16x256xf32> to vector<16x128xf32>
    %22 = arith.truncf %21 : vector<16x128xf32> to vector<16x128xbf16>
    %23 = vector.extract_strided_slice %18 {offsets = [0, 0], sizes = [8, 16], strides = [1, 1]} : vector<8x128xbf16> to vector<8x16xbf16>
    %24 = vector.extract_strided_slice %20 {offsets = [0, 0], sizes = [16, 16], strides = [1, 1]} : vector<16x128xbf16> to vector<16x16xbf16>
    %cst_17 = arith.constant dense<0.000000e+00> : vector<8x16xf32>
    %25 = tpu.matmul %23, %24, %cst_17 {dimension_numbers = #tpu.dot_dimension_numbers<[1], [1], [0], [0], [0, 0, 1, 0], [], []>} : vector<8x16xbf16>, vector<16x16xbf16>, vector<8x16xf32> -> vector<8x16xf32>
    %26 = vector.extract_strided_slice %18 {offsets = [0, 16], sizes = [8, 16], strides = [1, 1]} : vector<8x128xbf16> to vector<8x16xbf16>
    %27 = vector.extract_strided_slice %20 {offsets = [0, 16], sizes = [16, 16], strides = [1, 1]} : vector<16x128xbf16> to vector<16x16xbf16>
    %cst_18 = arith.constant dense<0.000000e+00> : vector<8x16xf32>
    %28 = tpu.matmul %26, %27, %cst_18 {dimension_numbers = #tpu.dot_dimension_numbers<[1], [1], [0], [0], [0, 0, 1, 0], [], []>} : vector<8x16xbf16>, vector<16x16xbf16>, vector<8x16xf32> -> vector<8x16xf32>
    %29 = vector.extract_strided_slice %18 {offsets = [0, 32], sizes = [8, 16], strides = [1, 1]} : vector<8x128xbf16> to vector<8x16xbf16>
    %30 = vector.extract_strided_slice %20 {offsets = [0, 32], sizes = [16, 16], strides = [1, 1]} : vector<16x128xbf16> to vector<16x16xbf16>
    %cst_19 = arith.constant dense<0.000000e+00> : vector<8x16xf32>
    %31 = tpu.matmul %29, %30, %cst_19 {dimension_numbers = #tpu.dot_dimension_numbers<[1], [1], [0], [0], [0, 0, 1, 0], [], []>} : vector<8x16xbf16>, vector<16x16xbf16>, vector<8x16xf32> -> vector<8x16xf32>
    %32 = vector.extract_strided_slice %18 {offsets = [0, 48], sizes = [8, 16], strides = [1, 1]} : vector<8x128xbf16> to vector<8x16xbf16>
    %33 = vector.extract_strided_slice %20 {offsets = [0, 48], sizes = [16, 16], strides = [1, 1]} : vector<16x128xbf16> to vector<16x16xbf16>
    %cst_20 = arith.constant dense<0.000000e+00> : vector<8x16xf32>
    %34 = tpu.matmul %32, %33, %cst_20 {dimension_numbers = #tpu.dot_dimension_numbers<[1], [1], [0], [0], [0, 0, 1, 0], [], []>} : vector<8x16xbf16>, vector<16x16xbf16>, vector<8x16xf32> -> vector<8x16xf32>
    %35 = vector.extract_strided_slice %18 {offsets = [0, 64], sizes = [8, 16], strides = [1, 1]} : vector<8x128xbf16> to vector<8x16xbf16>
    %36 = vector.extract_strided_slice %20 {offsets = [0, 64], sizes = [16, 16], strides = [1, 1]} : vector<16x128xbf16> to vector<16x16xbf16>
    %cst_21 = arith.constant dense<0.000000e+00> : vector<8x16xf32>
    %37 = tpu.matmul %35, %36, %cst_21 {dimension_numbers = #tpu.dot_dimension_numbers<[1], [1], [0], [0], [0, 0, 1, 0], [], []>} : vector<8x16xbf16>, vector<16x16xbf16>, vector<8x16xf32> -> vector<8x16xf32>
    %38 = vector.extract_strided_slice %18 {offsets = [0, 80], sizes = [8, 16], strides = [1, 1]} : vector<8x128xbf16> to vector<8x16xbf16>
    %39 = vector.extract_strided_slice %20 {offsets = [0, 80], sizes = [16, 16], strides = [1, 1]} : vector<16x128xbf16> to vector<16x16xbf16>
    %cst_22 = arith.constant dense<0.000000e+00> : vector<8x16xf32>
    %40 = tpu.matmul %38, %39, %cst_22 {dimension_numbers = #tpu.dot_dimension_numbers<[1], [1], [0], [0], [0, 0, 1, 0], [], []>} : vector<8x16xbf16>, vector<16x16xbf16>, vector<8x16xf32> -> vector<8x16xf32>
    %41 = vector.extract_strided_slice %18 {offsets = [0, 96], sizes = [8, 16], strides = [1, 1]} : vector<8x128xbf16> to vector<8x16xbf16>
    %42 = vector.extract_strided_slice %20 {offsets = [0, 96], sizes = [16, 16], strides = [1, 1]} : vector<16x128xbf16> to vector<16x16xbf16>
    %cst_23 = arith.constant dense<0.000000e+00> : vector<8x16xf32>
    %43 = tpu.matmul %41, %42, %cst_23 {dimension_numbers = #tpu.dot_dimension_numbers<[1], [1], [0], [0], [0, 0, 1, 0], [], []>} : vector<8x16xbf16>, vector<16x16xbf16>, vector<8x16xf32> -> vector<8x16xf32>
    %44 = vector.extract_strided_slice %18 {offsets = [0, 112], sizes = [8, 16], strides = [1, 1]} : vector<8x128xbf16> to vector<8x16xbf16>
    %45 = vector.extract_strided_slice %20 {offsets = [0, 112], sizes = [16, 16], strides = [1, 1]} : vector<16x128xbf16> to vector<16x16xbf16>
    %cst_24 = arith.constant dense<0.000000e+00> : vector<8x16xf32>
    %46 = tpu.matmul %44, %45, %cst_24 {dimension_numbers = #tpu.dot_dimension_numbers<[1], [1], [0], [0], [0, 0, 1, 0], [], []>} : vector<8x16xbf16>, vector<16x16xbf16>, vector<8x16xf32> -> vector<8x16xf32>
    %47 = tpu.concatenate %25, %28, %31, %34, %37, %40, %43, %46 in 1 : vector<8x16xf32>, vector<8x16xf32>, vector<8x16xf32>, vector<8x16xf32>, vector<8x16xf32>, vector<8x16xf32>, vector<8x16xf32>, vector<8x16xf32> -> vector<8x128xf32>
    %48 = tpu.concatenate %5, %5, %5, %5, %5, %5, %5, %5 in 1 : vector<8x16xf32>, vector<8x16xf32>, vector<8x16xf32>, vector<8x16xf32>, vector<8x16xf32>, vector<8x16xf32>, vector<8x16xf32>, vector<8x16xf32> -> vector<8x128xf32>
    %c0_25 = arith.constant 0 : index
    %c0_26 = arith.constant 0 : index
    %49 = vector.load %arg10[%c0_25, %c0_26] : memref<65x128xf32, #tpu.memory_space<vmem>>, vector<65x128xf32>
    %cst_27 = arith.constant 0.000000e+00 : f32
    %50 = vector.broadcast %cst_27 : f32 to vector<8x128xf32>
    %51 = vector.extract_strided_slice %49 {offsets = [0, 0], sizes = [1, 128], strides = [1, 1]} : vector<65x128xf32> to vector<1x128xf32>
    %52 = vector.broadcast %51 : vector<1x128xf32> to vector<8x128xf32>
    %53 = arith.mulf %47, %52 : vector<8x128xf32>
    %54 = vector.extract_strided_slice %49 {offsets = [16, 0], sizes = [1, 128], strides = [1, 1]} : vector<65x128xf32> to vector<1x128xf32>
    %55 = vector.broadcast %54 : vector<1x128xf32> to vector<8x128xf32>
    %56 = arith.mulf %48, %55 : vector<8x128xf32>
    %57 = arith.addf %53, %56 : vector<8x128xf32>
    %58 = vector.extract_strided_slice %49 {offsets = [32, 0], sizes = [1, 128], strides = [1, 1]} : vector<65x128xf32> to vector<1x128xf32>
    %59 = vector.broadcast %58 : vector<1x128xf32> to vector<8x128xf32>
    %60 = arith.addf %57, %59 : vector<8x128xf32>
    %cst_28 = arith.constant 0.000000e+00 : f32
    %61 = vector.broadcast %cst_28 : f32 to vector<8x128xf32>
    %62 = arith.maximumf %60, %61 : vector<8x128xf32>
    %63 = vector.extract_strided_slice %49 {offsets = [48, 0], sizes = [1, 128], strides = [1, 1]} : vector<65x128xf32> to vector<1x128xf32>
    %64 = vector.broadcast %63 : vector<1x128xf32> to vector<8x128xf32>
    %65 = arith.mulf %62, %64 : vector<8x128xf32>
    %66 = arith.addf %50, %65 : vector<8x128xf32>
    %67 = vector.extract_strided_slice %49 {offsets = [1, 0], sizes = [1, 128], strides = [1, 1]} : vector<65x128xf32> to vector<1x128xf32>
    %68 = vector.broadcast %67 : vector<1x128xf32> to vector<8x128xf32>
    %69 = arith.mulf %47, %68 : vector<8x128xf32>
    %70 = vector.extract_strided_slice %49 {offsets = [17, 0], sizes = [1, 128], strides = [1, 1]} : vector<65x128xf32> to vector<1x128xf32>
    %71 = vector.broadcast %70 : vector<1x128xf32> to vector<8x128xf32>
    %72 = arith.mulf %48, %71 : vector<8x128xf32>
    %73 = arith.addf %69, %72 : vector<8x128xf32>
    %74 = vector.extract_strided_slice %49 {offsets = [33, 0], sizes = [1, 128], strides = [1, 1]} : vector<65x128xf32> to vector<1x128xf32>
    %75 = vector.broadcast %74 : vector<1x128xf32> to vector<8x128xf32>
    %76 = arith.addf %73, %75 : vector<8x128xf32>
    %cst_29 = arith.constant 0.000000e+00 : f32
    %77 = vector.broadcast %cst_29 : f32 to vector<8x128xf32>
    %78 = arith.maximumf %76, %77 : vector<8x128xf32>
    %79 = vector.extract_strided_slice %49 {offsets = [49, 0], sizes = [1, 128], strides = [1, 1]} : vector<65x128xf32> to vector<1x128xf32>
    %80 = vector.broadcast %79 : vector<1x128xf32> to vector<8x128xf32>
    %81 = arith.mulf %78, %80 : vector<8x128xf32>
    %82 = arith.addf %66, %81 : vector<8x128xf32>
    %83 = vector.extract_strided_slice %49 {offsets = [2, 0], sizes = [1, 128], strides = [1, 1]} : vector<65x128xf32> to vector<1x128xf32>
    %84 = vector.broadcast %83 : vector<1x128xf32> to vector<8x128xf32>
    %85 = arith.mulf %47, %84 : vector<8x128xf32>
    %86 = vector.extract_strided_slice %49 {offsets = [18, 0], sizes = [1, 128], strides = [1, 1]} : vector<65x128xf32> to vector<1x128xf32>
    %87 = vector.broadcast %86 : vector<1x128xf32> to vector<8x128xf32>
    %88 = arith.mulf %48, %87 : vector<8x128xf32>
    %89 = arith.addf %85, %88 : vector<8x128xf32>
    %90 = vector.extract_strided_slice %49 {offsets = [34, 0], sizes = [1, 128], strides = [1, 1]} : vector<65x128xf32> to vector<1x128xf32>
    %91 = vector.broadcast %90 : vector<1x128xf32> to vector<8x128xf32>
    %92 = arith.addf %89, %91 : vector<8x128xf32>
    %cst_30 = arith.constant 0.000000e+00 : f32
    %93 = vector.broadcast %cst_30 : f32 to vector<8x128xf32>
    %94 = arith.maximumf %92, %93 : vector<8x128xf32>
    %95 = vector.extract_strided_slice %49 {offsets = [50, 0], sizes = [1, 128], strides = [1, 1]} : vector<65x128xf32> to vector<1x128xf32>
    %96 = vector.broadcast %95 : vector<1x128xf32> to vector<8x128xf32>
    %97 = arith.mulf %94, %96 : vector<8x128xf32>
    %98 = arith.addf %82, %97 : vector<8x128xf32>
    %99 = vector.extract_strided_slice %49 {offsets = [3, 0], sizes = [1, 128], strides = [1, 1]} : vector<65x128xf32> to vector<1x128xf32>
    %100 = vector.broadcast %99 : vector<1x128xf32> to vector<8x128xf32>
    %101 = arith.mulf %47, %100 : vector<8x128xf32>
    %102 = vector.extract_strided_slice %49 {offsets = [19, 0], sizes = [1, 128], strides = [1, 1]} : vector<65x128xf32> to vector<1x128xf32>
    %103 = vector.broadcast %102 : vector<1x128xf32> to vector<8x128xf32>
    %104 = arith.mulf %48, %103 : vector<8x128xf32>
    %105 = arith.addf %101, %104 : vector<8x128xf32>
    %106 = vector.extract_strided_slice %49 {offsets = [35, 0], sizes = [1, 128], strides = [1, 1]} : vector<65x128xf32> to vector<1x128xf32>
    %107 = vector.broadcast %106 : vector<1x128xf32> to vector<8x128xf32>
    %108 = arith.addf %105, %107 : vector<8x128xf32>
    %cst_31 = arith.constant 0.000000e+00 : f32
    %109 = vector.broadcast %cst_31 : f32 to vector<8x128xf32>
    %110 = arith.maximumf %108, %109 : vector<8x128xf32>
    %111 = vector.extract_strided_slice %49 {offsets = [51, 0], sizes = [1, 128], strides = [1, 1]} : vector<65x128xf32> to vector<1x128xf32>
    %112 = vector.broadcast %111 : vector<1x128xf32> to vector<8x128xf32>
    %113 = arith.mulf %110, %112 : vector<8x128xf32>
    %114 = arith.addf %98, %113 : vector<8x128xf32>
    %115 = vector.extract_strided_slice %49 {offsets = [4, 0], sizes = [1, 128], strides = [1, 1]} : vector<65x128xf32> to vector<1x128xf32>
    %116 = vector.broadcast %115 : vector<1x128xf32> to vector<8x128xf32>
    %117 = arith.mulf %47, %116 : vector<8x128xf32>
    %118 = vector.extract_strided_slice %49 {offsets = [20, 0], sizes = [1, 128], strides = [1, 1]} : vector<65x128xf32> to vector<1x128xf32>
    %119 = vector.broadcast %118 : vector<1x128xf32> to vector<8x128xf32>
    %120 = arith.mulf %48, %119 : vector<8x128xf32>
    %121 = arith.addf %117, %120 : vector<8x128xf32>
    %122 = vector.extract_strided_slice %49 {offsets = [36, 0], sizes = [1, 128], strides = [1, 1]} : vector<65x128xf32> to vector<1x128xf32>
    %123 = vector.broadcast %122 : vector<1x128xf32> to vector<8x128xf32>
    %124 = arith.addf %121, %123 : vector<8x128xf32>
    %cst_32 = arith.constant 0.000000e+00 : f32
    %125 = vector.broadcast %cst_32 : f32 to vector<8x128xf32>
    %126 = arith.maximumf %124, %125 : vector<8x128xf32>
    %127 = vector.extract_strided_slice %49 {offsets = [52, 0], sizes = [1, 128], strides = [1, 1]} : vector<65x128xf32> to vector<1x128xf32>
    %128 = vector.broadcast %127 : vector<1x128xf32> to vector<8x128xf32>
    %129 = arith.mulf %126, %128 : vector<8x128xf32>
    %130 = arith.addf %114, %129 : vector<8x128xf32>
    %131 = vector.extract_strided_slice %49 {offsets = [5, 0], sizes = [1, 128], strides = [1, 1]} : vector<65x128xf32> to vector<1x128xf32>
    %132 = vector.broadcast %131 : vector<1x128xf32> to vector<8x128xf32>
    %133 = arith.mulf %47, %132 : vector<8x128xf32>
    %134 = vector.extract_strided_slice %49 {offsets = [21, 0], sizes = [1, 128], strides = [1, 1]} : vector<65x128xf32> to vector<1x128xf32>
    %135 = vector.broadcast %134 : vector<1x128xf32> to vector<8x128xf32>
    %136 = arith.mulf %48, %135 : vector<8x128xf32>
    %137 = arith.addf %133, %136 : vector<8x128xf32>
    %138 = vector.extract_strided_slice %49 {offsets = [37, 0], sizes = [1, 128], strides = [1, 1]} : vector<65x128xf32> to vector<1x128xf32>
    %139 = vector.broadcast %138 : vector<1x128xf32> to vector<8x128xf32>
    %140 = arith.addf %137, %139 : vector<8x128xf32>
    %cst_33 = arith.constant 0.000000e+00 : f32
    %141 = vector.broadcast %cst_33 : f32 to vector<8x128xf32>
    %142 = arith.maximumf %140, %141 : vector<8x128xf32>
    %143 = vector.extract_strided_slice %49 {offsets = [53, 0], sizes = [1, 128], strides = [1, 1]} : vector<65x128xf32> to vector<1x128xf32>
    %144 = vector.broadcast %143 : vector<1x128xf32> to vector<8x128xf32>
    %145 = arith.mulf %142, %144 : vector<8x128xf32>
    %146 = arith.addf %130, %145 : vector<8x128xf32>
    %147 = vector.extract_strided_slice %49 {offsets = [6, 0], sizes = [1, 128], strides = [1, 1]} : vector<65x128xf32> to vector<1x128xf32>
    %148 = vector.broadcast %147 : vector<1x128xf32> to vector<8x128xf32>
    %149 = arith.mulf %47, %148 : vector<8x128xf32>
    %150 = vector.extract_strided_slice %49 {offsets = [22, 0], sizes = [1, 128], strides = [1, 1]} : vector<65x128xf32> to vector<1x128xf32>
    %151 = vector.broadcast %150 : vector<1x128xf32> to vector<8x128xf32>
    %152 = arith.mulf %48, %151 : vector<8x128xf32>
    %153 = arith.addf %149, %152 : vector<8x128xf32>
    %154 = vector.extract_strided_slice %49 {offsets = [38, 0], sizes = [1, 128], strides = [1, 1]} : vector<65x128xf32> to vector<1x128xf32>
    %155 = vector.broadcast %154 : vector<1x128xf32> to vector<8x128xf32>
    %156 = arith.addf %153, %155 : vector<8x128xf32>
    %cst_34 = arith.constant 0.000000e+00 : f32
    %157 = vector.broadcast %cst_34 : f32 to vector<8x128xf32>
    %158 = arith.maximumf %156, %157 : vector<8x128xf32>
    %159 = vector.extract_strided_slice %49 {offsets = [54, 0], sizes = [1, 128], strides = [1, 1]} : vector<65x128xf32> to vector<1x128xf32>
    %160 = vector.broadcast %159 : vector<1x128xf32> to vector<8x128xf32>
    %161 = arith.mulf %158, %160 : vector<8x128xf32>
    %162 = arith.addf %146, %161 : vector<8x128xf32>
    %163 = vector.extract_strided_slice %49 {offsets = [7, 0], sizes = [1, 128], strides = [1, 1]} : vector<65x128xf32> to vector<1x128xf32>
    %164 = vector.broadcast %163 : vector<1x128xf32> to vector<8x128xf32>
    %165 = arith.mulf %47, %164 : vector<8x128xf32>
    %166 = vector.extract_strided_slice %49 {offsets = [23, 0], sizes = [1, 128], strides = [1, 1]} : vector<65x128xf32> to vector<1x128xf32>
    %167 = vector.broadcast %166 : vector<1x128xf32> to vector<8x128xf32>
    %168 = arith.mulf %48, %167 : vector<8x128xf32>
    %169 = arith.addf %165, %168 : vector<8x128xf32>
    %170 = vector.extract_strided_slice %49 {offsets = [39, 0], sizes = [1, 128], strides = [1, 1]} : vector<65x128xf32> to vector<1x128xf32>
    %171 = vector.broadcast %170 : vector<1x128xf32> to vector<8x128xf32>
    %172 = arith.addf %169, %171 : vector<8x128xf32>
    %cst_35 = arith.constant 0.000000e+00 : f32
    %173 = vector.broadcast %cst_35 : f32 to vector<8x128xf32>
    %174 = arith.maximumf %172, %173 : vector<8x128xf32>
    %175 = vector.extract_strided_slice %49 {offsets = [55, 0], sizes = [1, 128], strides = [1, 1]} : vector<65x128xf32> to vector<1x128xf32>
    %176 = vector.broadcast %175 : vector<1x128xf32> to vector<8x128xf32>
    %177 = arith.mulf %174, %176 : vector<8x128xf32>
    %178 = arith.addf %162, %177 : vector<8x128xf32>
    %179 = vector.extract_strided_slice %49 {offsets = [8, 0], sizes = [1, 128], strides = [1, 1]} : vector<65x128xf32> to vector<1x128xf32>
    %180 = vector.broadcast %179 : vector<1x128xf32> to vector<8x128xf32>
    %181 = arith.mulf %47, %180 : vector<8x128xf32>
    %182 = vector.extract_strided_slice %49 {offsets = [24, 0], sizes = [1, 128], strides = [1, 1]} : vector<65x128xf32> to vector<1x128xf32>
    %183 = vector.broadcast %182 : vector<1x128xf32> to vector<8x128xf32>
    %184 = arith.mulf %48, %183 : vector<8x128xf32>
    %185 = arith.addf %181, %184 : vector<8x128xf32>
    %186 = vector.extract_strided_slice %49 {offsets = [40, 0], sizes = [1, 128], strides = [1, 1]} : vector<65x128xf32> to vector<1x128xf32>
    %187 = vector.broadcast %186 : vector<1x128xf32> to vector<8x128xf32>
    %188 = arith.addf %185, %187 : vector<8x128xf32>
    %cst_36 = arith.constant 0.000000e+00 : f32
    %189 = vector.broadcast %cst_36 : f32 to vector<8x128xf32>
    %190 = arith.maximumf %188, %189 : vector<8x128xf32>
    %191 = vector.extract_strided_slice %49 {offsets = [56, 0], sizes = [1, 128], strides = [1, 1]} : vector<65x128xf32> to vector<1x128xf32>
    %192 = vector.broadcast %191 : vector<1x128xf32> to vector<8x128xf32>
    %193 = arith.mulf %190, %192 : vector<8x128xf32>
    %194 = arith.addf %178, %193 : vector<8x128xf32>
    %195 = vector.extract_strided_slice %49 {offsets = [9, 0], sizes = [1, 128], strides = [1, 1]} : vector<65x128xf32> to vector<1x128xf32>
    %196 = vector.broadcast %195 : vector<1x128xf32> to vector<8x128xf32>
    %197 = arith.mulf %47, %196 : vector<8x128xf32>
    %198 = vector.extract_strided_slice %49 {offsets = [25, 0], sizes = [1, 128], strides = [1, 1]} : vector<65x128xf32> to vector<1x128xf32>
    %199 = vector.broadcast %198 : vector<1x128xf32> to vector<8x128xf32>
    %200 = arith.mulf %48, %199 : vector<8x128xf32>
    %201 = arith.addf %197, %200 : vector<8x128xf32>
    %202 = vector.extract_strided_slice %49 {offsets = [41, 0], sizes = [1, 128], strides = [1, 1]} : vector<65x128xf32> to vector<1x128xf32>
    %203 = vector.broadcast %202 : vector<1x128xf32> to vector<8x128xf32>
    %204 = arith.addf %201, %203 : vector<8x128xf32>
    %cst_37 = arith.constant 0.000000e+00 : f32
    %205 = vector.broadcast %cst_37 : f32 to vector<8x128xf32>
    %206 = arith.maximumf %204, %205 : vector<8x128xf32>
    %207 = vector.extract_strided_slice %49 {offsets = [57, 0], sizes = [1, 128], strides = [1, 1]} : vector<65x128xf32> to vector<1x128xf32>
    %208 = vector.broadcast %207 : vector<1x128xf32> to vector<8x128xf32>
    %209 = arith.mulf %206, %208 : vector<8x128xf32>
    %210 = arith.addf %194, %209 : vector<8x128xf32>
    %211 = vector.extract_strided_slice %49 {offsets = [10, 0], sizes = [1, 128], strides = [1, 1]} : vector<65x128xf32> to vector<1x128xf32>
    %212 = vector.broadcast %211 : vector<1x128xf32> to vector<8x128xf32>
    %213 = arith.mulf %47, %212 : vector<8x128xf32>
    %214 = vector.extract_strided_slice %49 {offsets = [26, 0], sizes = [1, 128], strides = [1, 1]} : vector<65x128xf32> to vector<1x128xf32>
    %215 = vector.broadcast %214 : vector<1x128xf32> to vector<8x128xf32>
    %216 = arith.mulf %48, %215 : vector<8x128xf32>
    %217 = arith.addf %213, %216 : vector<8x128xf32>
    %218 = vector.extract_strided_slice %49 {offsets = [42, 0], sizes = [1, 128], strides = [1, 1]} : vector<65x128xf32> to vector<1x128xf32>
    %219 = vector.broadcast %218 : vector<1x128xf32> to vector<8x128xf32>
    %220 = arith.addf %217, %219 : vector<8x128xf32>
    %cst_38 = arith.constant 0.000000e+00 : f32
    %221 = vector.broadcast %cst_38 : f32 to vector<8x128xf32>
    %222 = arith.maximumf %220, %221 : vector<8x128xf32>
    %223 = vector.extract_strided_slice %49 {offsets = [58, 0], sizes = [1, 128], strides = [1, 1]} : vector<65x128xf32> to vector<1x128xf32>
    %224 = vector.broadcast %223 : vector<1x128xf32> to vector<8x128xf32>
    %225 = arith.mulf %222, %224 : vector<8x128xf32>
    %226 = arith.addf %210, %225 : vector<8x128xf32>
    %227 = vector.extract_strided_slice %49 {offsets = [11, 0], sizes = [1, 128], strides = [1, 1]} : vector<65x128xf32> to vector<1x128xf32>
    %228 = vector.broadcast %227 : vector<1x128xf32> to vector<8x128xf32>
    %229 = arith.mulf %47, %228 : vector<8x128xf32>
    %230 = vector.extract_strided_slice %49 {offsets = [27, 0], sizes = [1, 128], strides = [1, 1]} : vector<65x128xf32> to vector<1x128xf32>
    %231 = vector.broadcast %230 : vector<1x128xf32> to vector<8x128xf32>
    %232 = arith.mulf %48, %231 : vector<8x128xf32>
    %233 = arith.addf %229, %232 : vector<8x128xf32>
    %234 = vector.extract_strided_slice %49 {offsets = [43, 0], sizes = [1, 128], strides = [1, 1]} : vector<65x128xf32> to vector<1x128xf32>
    %235 = vector.broadcast %234 : vector<1x128xf32> to vector<8x128xf32>
    %236 = arith.addf %233, %235 : vector<8x128xf32>
    %cst_39 = arith.constant 0.000000e+00 : f32
    %237 = vector.broadcast %cst_39 : f32 to vector<8x128xf32>
    %238 = arith.maximumf %236, %237 : vector<8x128xf32>
    %239 = vector.extract_strided_slice %49 {offsets = [59, 0], sizes = [1, 128], strides = [1, 1]} : vector<65x128xf32> to vector<1x128xf32>
    %240 = vector.broadcast %239 : vector<1x128xf32> to vector<8x128xf32>
    %241 = arith.mulf %238, %240 : vector<8x128xf32>
    %242 = arith.addf %226, %241 : vector<8x128xf32>
    %243 = vector.extract_strided_slice %49 {offsets = [12, 0], sizes = [1, 128], strides = [1, 1]} : vector<65x128xf32> to vector<1x128xf32>
    %244 = vector.broadcast %243 : vector<1x128xf32> to vector<8x128xf32>
    %245 = arith.mulf %47, %244 : vector<8x128xf32>
    %246 = vector.extract_strided_slice %49 {offsets = [28, 0], sizes = [1, 128], strides = [1, 1]} : vector<65x128xf32> to vector<1x128xf32>
    %247 = vector.broadcast %246 : vector<1x128xf32> to vector<8x128xf32>
    %248 = arith.mulf %48, %247 : vector<8x128xf32>
    %249 = arith.addf %245, %248 : vector<8x128xf32>
    %250 = vector.extract_strided_slice %49 {offsets = [44, 0], sizes = [1, 128], strides = [1, 1]} : vector<65x128xf32> to vector<1x128xf32>
    %251 = vector.broadcast %250 : vector<1x128xf32> to vector<8x128xf32>
    %252 = arith.addf %249, %251 : vector<8x128xf32>
    %cst_40 = arith.constant 0.000000e+00 : f32
    %253 = vector.broadcast %cst_40 : f32 to vector<8x128xf32>
    %254 = arith.maximumf %252, %253 : vector<8x128xf32>
    %255 = vector.extract_strided_slice %49 {offsets = [60, 0], sizes = [1, 128], strides = [1, 1]} : vector<65x128xf32> to vector<1x128xf32>
    %256 = vector.broadcast %255 : vector<1x128xf32> to vector<8x128xf32>
    %257 = arith.mulf %254, %256 : vector<8x128xf32>
    %258 = arith.addf %242, %257 : vector<8x128xf32>
    %259 = vector.extract_strided_slice %49 {offsets = [13, 0], sizes = [1, 128], strides = [1, 1]} : vector<65x128xf32> to vector<1x128xf32>
    %260 = vector.broadcast %259 : vector<1x128xf32> to vector<8x128xf32>
    %261 = arith.mulf %47, %260 : vector<8x128xf32>
    %262 = vector.extract_strided_slice %49 {offsets = [29, 0], sizes = [1, 128], strides = [1, 1]} : vector<65x128xf32> to vector<1x128xf32>
    %263 = vector.broadcast %262 : vector<1x128xf32> to vector<8x128xf32>
    %264 = arith.mulf %48, %263 : vector<8x128xf32>
    %265 = arith.addf %261, %264 : vector<8x128xf32>
    %266 = vector.extract_strided_slice %49 {offsets = [45, 0], sizes = [1, 128], strides = [1, 1]} : vector<65x128xf32> to vector<1x128xf32>
    %267 = vector.broadcast %266 : vector<1x128xf32> to vector<8x128xf32>
    %268 = arith.addf %265, %267 : vector<8x128xf32>
    %cst_41 = arith.constant 0.000000e+00 : f32
    %269 = vector.broadcast %cst_41 : f32 to vector<8x128xf32>
    %270 = arith.maximumf %268, %269 : vector<8x128xf32>
    %271 = vector.extract_strided_slice %49 {offsets = [61, 0], sizes = [1, 128], strides = [1, 1]} : vector<65x128xf32> to vector<1x128xf32>
    %272 = vector.broadcast %271 : vector<1x128xf32> to vector<8x128xf32>
    %273 = arith.mulf %270, %272 : vector<8x128xf32>
    %274 = arith.addf %258, %273 : vector<8x128xf32>
    %275 = vector.extract_strided_slice %49 {offsets = [14, 0], sizes = [1, 128], strides = [1, 1]} : vector<65x128xf32> to vector<1x128xf32>
    %276 = vector.broadcast %275 : vector<1x128xf32> to vector<8x128xf32>
    %277 = arith.mulf %47, %276 : vector<8x128xf32>
    %278 = vector.extract_strided_slice %49 {offsets = [30, 0], sizes = [1, 128], strides = [1, 1]} : vector<65x128xf32> to vector<1x128xf32>
    %279 = vector.broadcast %278 : vector<1x128xf32> to vector<8x128xf32>
    %280 = arith.mulf %48, %279 : vector<8x128xf32>
    %281 = arith.addf %277, %280 : vector<8x128xf32>
    %282 = vector.extract_strided_slice %49 {offsets = [46, 0], sizes = [1, 128], strides = [1, 1]} : vector<65x128xf32> to vector<1x128xf32>
    %283 = vector.broadcast %282 : vector<1x128xf32> to vector<8x128xf32>
    %284 = arith.addf %281, %283 : vector<8x128xf32>
    %cst_42 = arith.constant 0.000000e+00 : f32
    %285 = vector.broadcast %cst_42 : f32 to vector<8x128xf32>
    %286 = arith.maximumf %284, %285 : vector<8x128xf32>
    %287 = vector.extract_strided_slice %49 {offsets = [62, 0], sizes = [1, 128], strides = [1, 1]} : vector<65x128xf32> to vector<1x128xf32>
    %288 = vector.broadcast %287 : vector<1x128xf32> to vector<8x128xf32>
    %289 = arith.mulf %286, %288 : vector<8x128xf32>
    %290 = arith.addf %274, %289 : vector<8x128xf32>
    %291 = vector.extract_strided_slice %49 {offsets = [15, 0], sizes = [1, 128], strides = [1, 1]} : vector<65x128xf32> to vector<1x128xf32>
    %292 = vector.broadcast %291 : vector<1x128xf32> to vector<8x128xf32>
    %293 = arith.mulf %47, %292 : vector<8x128xf32>
    %294 = vector.extract_strided_slice %49 {offsets = [31, 0], sizes = [1, 128], strides = [1, 1]} : vector<65x128xf32> to vector<1x128xf32>
    %295 = vector.broadcast %294 : vector<1x128xf32> to vector<8x128xf32>
    %296 = arith.mulf %48, %295 : vector<8x128xf32>
    %297 = arith.addf %293, %296 : vector<8x128xf32>
    %298 = vector.extract_strided_slice %49 {offsets = [47, 0], sizes = [1, 128], strides = [1, 1]} : vector<65x128xf32> to vector<1x128xf32>
    %299 = vector.broadcast %298 : vector<1x128xf32> to vector<8x128xf32>
    %300 = arith.addf %297, %299 : vector<8x128xf32>
    %cst_43 = arith.constant 0.000000e+00 : f32
    %301 = vector.broadcast %cst_43 : f32 to vector<8x128xf32>
    %302 = arith.maximumf %300, %301 : vector<8x128xf32>
    %303 = vector.extract_strided_slice %49 {offsets = [63, 0], sizes = [1, 128], strides = [1, 1]} : vector<65x128xf32> to vector<1x128xf32>
    %304 = vector.broadcast %303 : vector<1x128xf32> to vector<8x128xf32>
    %305 = arith.mulf %302, %304 : vector<8x128xf32>
    %306 = arith.addf %290, %305 : vector<8x128xf32>
    %307 = vector.extract_strided_slice %49 {offsets = [64, 0], sizes = [1, 128], strides = [1, 1]} : vector<65x128xf32> to vector<1x128xf32>
    %308 = vector.broadcast %307 : vector<1x128xf32> to vector<8x128xf32>
    %309 = arith.addf %306, %308 : vector<8x128xf32>
    %310 = vector.extract_strided_slice %309 {offsets = [0, 0], sizes = [8, 16], strides = [1, 1]} : vector<8x128xf32> to vector<8x16xf32>
    %cst_44 = arith.constant dense<0xFF800000> : vector<8xf32>
    %311 = vector.multi_reduction <maximumf>, %310, %cst_44 [1] : vector<8x16xf32> to vector<8xf32>
    %312 = vector.shape_cast %311 : vector<8xf32> to vector<8x1xf32>
    %313 = vector.broadcast %312 : vector<8x1xf32> to vector<8x16xf32>
    %314 = arith.subf %310, %313 : vector<8x16xf32>
    %315 = math.exp %314 : vector<8x16xf32>
    %cst_45 = arith.constant dense<0.000000e+00> : vector<8xf32>
    %316 = vector.multi_reduction <add>, %315, %cst_45 [1] : vector<8x16xf32> to vector<8xf32>
    %317 = vector.shape_cast %316 : vector<8xf32> to vector<8x1xf32>
    %318 = tpu.reciprocal %317 {approx = true} : vector<8x1xf32> -> vector<8x1xf32>
    %319 = vector.broadcast %318 : vector<8x1xf32> to vector<8x16xf32>
    %320 = arith.mulf %315, %319 : vector<8x16xf32>
    %321 = arith.truncf %320 : vector<8x16xf32> to vector<8x16xbf16>
    %322 = vector.extract_strided_slice %22 {offsets = [0, 0], sizes = [16, 16], strides = [1, 1]} : vector<16x128xbf16> to vector<16x16xbf16>
    %cst_46 = arith.constant dense<0.000000e+00> : vector<8x16xf32>
    %323 = tpu.matmul %321, %322, %cst_46 {dimension_numbers = #tpu.dot_dimension_numbers<[1], [0], [0], [1], [0, 0, 1, 1], [], []>} : vector<8x16xbf16>, vector<16x16xbf16>, vector<8x16xf32> -> vector<8x16xf32>
    %324 = vector.extract_strided_slice %309 {offsets = [0, 16], sizes = [8, 16], strides = [1, 1]} : vector<8x128xf32> to vector<8x16xf32>
    %cst_47 = arith.constant dense<0xFF800000> : vector<8xf32>
    %325 = vector.multi_reduction <maximumf>, %324, %cst_47 [1] : vector<8x16xf32> to vector<8xf32>
    %326 = vector.shape_cast %325 : vector<8xf32> to vector<8x1xf32>
    %327 = vector.broadcast %326 : vector<8x1xf32> to vector<8x16xf32>
    %328 = arith.subf %324, %327 : vector<8x16xf32>
    %329 = math.exp %328 : vector<8x16xf32>
    %cst_48 = arith.constant dense<0.000000e+00> : vector<8xf32>
    %330 = vector.multi_reduction <add>, %329, %cst_48 [1] : vector<8x16xf32> to vector<8xf32>
    %331 = vector.shape_cast %330 : vector<8xf32> to vector<8x1xf32>
    %332 = tpu.reciprocal %331 {approx = true} : vector<8x1xf32> -> vector<8x1xf32>
    %333 = vector.broadcast %332 : vector<8x1xf32> to vector<8x16xf32>
    %334 = arith.mulf %329, %333 : vector<8x16xf32>
    %335 = arith.truncf %334 : vector<8x16xf32> to vector<8x16xbf16>
    %336 = vector.extract_strided_slice %22 {offsets = [0, 16], sizes = [16, 16], strides = [1, 1]} : vector<16x128xbf16> to vector<16x16xbf16>
    %cst_49 = arith.constant dense<0.000000e+00> : vector<8x16xf32>
    %337 = tpu.matmul %335, %336, %cst_49 {dimension_numbers = #tpu.dot_dimension_numbers<[1], [0], [0], [1], [0, 0, 1, 1], [], []>} : vector<8x16xbf16>, vector<16x16xbf16>, vector<8x16xf32> -> vector<8x16xf32>
    %338 = vector.extract_strided_slice %309 {offsets = [0, 32], sizes = [8, 16], strides = [1, 1]} : vector<8x128xf32> to vector<8x16xf32>
    %cst_50 = arith.constant dense<0xFF800000> : vector<8xf32>
    %339 = vector.multi_reduction <maximumf>, %338, %cst_50 [1] : vector<8x16xf32> to vector<8xf32>
    %340 = vector.shape_cast %339 : vector<8xf32> to vector<8x1xf32>
    %341 = vector.broadcast %340 : vector<8x1xf32> to vector<8x16xf32>
    %342 = arith.subf %338, %341 : vector<8x16xf32>
    %343 = math.exp %342 : vector<8x16xf32>
    %cst_51 = arith.constant dense<0.000000e+00> : vector<8xf32>
    %344 = vector.multi_reduction <add>, %343, %cst_51 [1] : vector<8x16xf32> to vector<8xf32>
    %345 = vector.shape_cast %344 : vector<8xf32> to vector<8x1xf32>
    %346 = tpu.reciprocal %345 {approx = true} : vector<8x1xf32> -> vector<8x1xf32>
    %347 = vector.broadcast %346 : vector<8x1xf32> to vector<8x16xf32>
    %348 = arith.mulf %343, %347 : vector<8x16xf32>
    %349 = arith.truncf %348 : vector<8x16xf32> to vector<8x16xbf16>
    %350 = vector.extract_strided_slice %22 {offsets = [0, 32], sizes = [16, 16], strides = [1, 1]} : vector<16x128xbf16> to vector<16x16xbf16>
    %cst_52 = arith.constant dense<0.000000e+00> : vector<8x16xf32>
    %351 = tpu.matmul %349, %350, %cst_52 {dimension_numbers = #tpu.dot_dimension_numbers<[1], [0], [0], [1], [0, 0, 1, 1], [], []>} : vector<8x16xbf16>, vector<16x16xbf16>, vector<8x16xf32> -> vector<8x16xf32>
    %352 = vector.extract_strided_slice %309 {offsets = [0, 48], sizes = [8, 16], strides = [1, 1]} : vector<8x128xf32> to vector<8x16xf32>
    %cst_53 = arith.constant dense<0xFF800000> : vector<8xf32>
    %353 = vector.multi_reduction <maximumf>, %352, %cst_53 [1] : vector<8x16xf32> to vector<8xf32>
    %354 = vector.shape_cast %353 : vector<8xf32> to vector<8x1xf32>
    %355 = vector.broadcast %354 : vector<8x1xf32> to vector<8x16xf32>
    %356 = arith.subf %352, %355 : vector<8x16xf32>
    %357 = math.exp %356 : vector<8x16xf32>
    %cst_54 = arith.constant dense<0.000000e+00> : vector<8xf32>
    %358 = vector.multi_reduction <add>, %357, %cst_54 [1] : vector<8x16xf32> to vector<8xf32>
    %359 = vector.shape_cast %358 : vector<8xf32> to vector<8x1xf32>
    %360 = tpu.reciprocal %359 {approx = true} : vector<8x1xf32> -> vector<8x1xf32>
    %361 = vector.broadcast %360 : vector<8x1xf32> to vector<8x16xf32>
    %362 = arith.mulf %357, %361 : vector<8x16xf32>
    %363 = arith.truncf %362 : vector<8x16xf32> to vector<8x16xbf16>
    %364 = vector.extract_strided_slice %22 {offsets = [0, 48], sizes = [16, 16], strides = [1, 1]} : vector<16x128xbf16> to vector<16x16xbf16>
    %cst_55 = arith.constant dense<0.000000e+00> : vector<8x16xf32>
    %365 = tpu.matmul %363, %364, %cst_55 {dimension_numbers = #tpu.dot_dimension_numbers<[1], [0], [0], [1], [0, 0, 1, 1], [], []>} : vector<8x16xbf16>, vector<16x16xbf16>, vector<8x16xf32> -> vector<8x16xf32>
    %366 = vector.extract_strided_slice %309 {offsets = [0, 64], sizes = [8, 16], strides = [1, 1]} : vector<8x128xf32> to vector<8x16xf32>
    %cst_56 = arith.constant dense<0xFF800000> : vector<8xf32>
    %367 = vector.multi_reduction <maximumf>, %366, %cst_56 [1] : vector<8x16xf32> to vector<8xf32>
    %368 = vector.shape_cast %367 : vector<8xf32> to vector<8x1xf32>
    %369 = vector.broadcast %368 : vector<8x1xf32> to vector<8x16xf32>
    %370 = arith.subf %366, %369 : vector<8x16xf32>
    %371 = math.exp %370 : vector<8x16xf32>
    %cst_57 = arith.constant dense<0.000000e+00> : vector<8xf32>
    %372 = vector.multi_reduction <add>, %371, %cst_57 [1] : vector<8x16xf32> to vector<8xf32>
    %373 = vector.shape_cast %372 : vector<8xf32> to vector<8x1xf32>
    %374 = tpu.reciprocal %373 {approx = true} : vector<8x1xf32> -> vector<8x1xf32>
    %375 = vector.broadcast %374 : vector<8x1xf32> to vector<8x16xf32>
    %376 = arith.mulf %371, %375 : vector<8x16xf32>
    %377 = arith.truncf %376 : vector<8x16xf32> to vector<8x16xbf16>
    %378 = vector.extract_strided_slice %22 {offsets = [0, 64], sizes = [16, 16], strides = [1, 1]} : vector<16x128xbf16> to vector<16x16xbf16>
    %cst_58 = arith.constant dense<0.000000e+00> : vector<8x16xf32>
    %379 = tpu.matmul %377, %378, %cst_58 {dimension_numbers = #tpu.dot_dimension_numbers<[1], [0], [0], [1], [0, 0, 1, 1], [], []>} : vector<8x16xbf16>, vector<16x16xbf16>, vector<8x16xf32> -> vector<8x16xf32>
    %380 = vector.extract_strided_slice %309 {offsets = [0, 80], sizes = [8, 16], strides = [1, 1]} : vector<8x128xf32> to vector<8x16xf32>
    %cst_59 = arith.constant dense<0xFF800000> : vector<8xf32>
    %381 = vector.multi_reduction <maximumf>, %380, %cst_59 [1] : vector<8x16xf32> to vector<8xf32>
    %382 = vector.shape_cast %381 : vector<8xf32> to vector<8x1xf32>
    %383 = vector.broadcast %382 : vector<8x1xf32> to vector<8x16xf32>
    %384 = arith.subf %380, %383 : vector<8x16xf32>
    %385 = math.exp %384 : vector<8x16xf32>
    %cst_60 = arith.constant dense<0.000000e+00> : vector<8xf32>
    %386 = vector.multi_reduction <add>, %385, %cst_60 [1] : vector<8x16xf32> to vector<8xf32>
    %387 = vector.shape_cast %386 : vector<8xf32> to vector<8x1xf32>
    %388 = tpu.reciprocal %387 {approx = true} : vector<8x1xf32> -> vector<8x1xf32>
    %389 = vector.broadcast %388 : vector<8x1xf32> to vector<8x16xf32>
    %390 = arith.mulf %385, %389 : vector<8x16xf32>
    %391 = arith.truncf %390 : vector<8x16xf32> to vector<8x16xbf16>
    %392 = vector.extract_strided_slice %22 {offsets = [0, 80], sizes = [16, 16], strides = [1, 1]} : vector<16x128xbf16> to vector<16x16xbf16>
    %cst_61 = arith.constant dense<0.000000e+00> : vector<8x16xf32>
    %393 = tpu.matmul %391, %392, %cst_61 {dimension_numbers = #tpu.dot_dimension_numbers<[1], [0], [0], [1], [0, 0, 1, 1], [], []>} : vector<8x16xbf16>, vector<16x16xbf16>, vector<8x16xf32> -> vector<8x16xf32>
    %394 = vector.extract_strided_slice %309 {offsets = [0, 96], sizes = [8, 16], strides = [1, 1]} : vector<8x128xf32> to vector<8x16xf32>
    %cst_62 = arith.constant dense<0xFF800000> : vector<8xf32>
    %395 = vector.multi_reduction <maximumf>, %394, %cst_62 [1] : vector<8x16xf32> to vector<8xf32>
    %396 = vector.shape_cast %395 : vector<8xf32> to vector<8x1xf32>
    %397 = vector.broadcast %396 : vector<8x1xf32> to vector<8x16xf32>
    %398 = arith.subf %394, %397 : vector<8x16xf32>
    %399 = math.exp %398 : vector<8x16xf32>
    %cst_63 = arith.constant dense<0.000000e+00> : vector<8xf32>
    %400 = vector.multi_reduction <add>, %399, %cst_63 [1] : vector<8x16xf32> to vector<8xf32>
    %401 = vector.shape_cast %400 : vector<8xf32> to vector<8x1xf32>
    %402 = tpu.reciprocal %401 {approx = true} : vector<8x1xf32> -> vector<8x1xf32>
    %403 = vector.broadcast %402 : vector<8x1xf32> to vector<8x16xf32>
    %404 = arith.mulf %399, %403 : vector<8x16xf32>
    %405 = arith.truncf %404 : vector<8x16xf32> to vector<8x16xbf16>
    %406 = vector.extract_strided_slice %22 {offsets = [0, 96], sizes = [16, 16], strides = [1, 1]} : vector<16x128xbf16> to vector<16x16xbf16>
    %cst_64 = arith.constant dense<0.000000e+00> : vector<8x16xf32>
    %407 = tpu.matmul %405, %406, %cst_64 {dimension_numbers = #tpu.dot_dimension_numbers<[1], [0], [0], [1], [0, 0, 1, 1], [], []>} : vector<8x16xbf16>, vector<16x16xbf16>, vector<8x16xf32> -> vector<8x16xf32>
    %408 = vector.extract_strided_slice %309 {offsets = [0, 112], sizes = [8, 16], strides = [1, 1]} : vector<8x128xf32> to vector<8x16xf32>
    %cst_65 = arith.constant dense<0xFF800000> : vector<8xf32>
    %409 = vector.multi_reduction <maximumf>, %408, %cst_65 [1] : vector<8x16xf32> to vector<8xf32>
    %410 = vector.shape_cast %409 : vector<8xf32> to vector<8x1xf32>
    %411 = vector.broadcast %410 : vector<8x1xf32> to vector<8x16xf32>
    %412 = arith.subf %408, %411 : vector<8x16xf32>
    %413 = math.exp %412 : vector<8x16xf32>
    %cst_66 = arith.constant dense<0.000000e+00> : vector<8xf32>
    %414 = vector.multi_reduction <add>, %413, %cst_66 [1] : vector<8x16xf32> to vector<8xf32>
    %415 = vector.shape_cast %414 : vector<8xf32> to vector<8x1xf32>
    %416 = tpu.reciprocal %415 {approx = true} : vector<8x1xf32> -> vector<8x1xf32>
    %417 = vector.broadcast %416 : vector<8x1xf32> to vector<8x16xf32>
    %418 = arith.mulf %413, %417 : vector<8x16xf32>
    %419 = arith.truncf %418 : vector<8x16xf32> to vector<8x16xbf16>
    %420 = vector.extract_strided_slice %22 {offsets = [0, 112], sizes = [16, 16], strides = [1, 1]} : vector<16x128xbf16> to vector<16x16xbf16>
    %cst_67 = arith.constant dense<0.000000e+00> : vector<8x16xf32>
    %421 = tpu.matmul %419, %420, %cst_67 {dimension_numbers = #tpu.dot_dimension_numbers<[1], [0], [0], [1], [0, 0, 1, 1], [], []>} : vector<8x16xbf16>, vector<16x16xbf16>, vector<8x16xf32> -> vector<8x16xf32>
    %422 = tpu.concatenate %323, %337, %351, %365, %379, %393, %407, %421 in 1 : vector<8x16xf32>, vector<8x16xf32>, vector<8x16xf32>, vector<8x16xf32>, vector<8x16xf32>, vector<8x16xf32>, vector<8x16xf32>, vector<8x16xf32> -> vector<8x128xf32>
    %423 = arith.truncf %422 : vector<8x128xf32> to vector<8x128xbf16>
    %c0_68 = arith.constant 0 : index
    %c0_69 = arith.constant 0 : index
    %424 = vector.load %arg8[%c0_68, %c0_69] : memref<128x128xbf16, #tpu.memory_space<vmem>>, vector<128x128xbf16>
    %cst_70 = arith.constant dense<0.000000e+00> : vector<8x128xf32>
    %425 = tpu.matmul %423, %424, %cst_70 {dimension_numbers = #tpu.dot_dimension_numbers<[1], [0], [0], [1], [0, 0, 1, 1], [], []>} : vector<8x128xbf16>, vector<128x128xbf16>, vector<8x128xf32> -> vector<8x128xf32>
    %c0_71 = arith.constant 0 : index
    %c0_72 = arith.constant 0 : index
    %426 = vector.load %arg9[%c0_71, %c0_72] : memref<1x128xf32, #tpu.memory_space<vmem>>, vector<1x128xf32>
    %427 = vector.broadcast %426 : vector<1x128xf32> to vector<8x128xf32>
    %428 = arith.addf %425, %427 : vector<8x128xf32>
    %429 = arith.addf %428, %1 : vector<8x128xf32>
    %c0_73 = arith.constant 0 : index
    %c0_74 = arith.constant 0 : index
    %430 = vector.load %arg11[%c0_73, %c0_74] : memref<1x128xf32, #tpu.memory_space<vmem>>, vector<1x128xf32>
    %c0_75 = arith.constant 0 : index
    %c0_76 = arith.constant 0 : index
    %431 = vector.load %arg12[%c0_75, %c0_76] : memref<1x128xf32, #tpu.memory_space<vmem>>, vector<1x128xf32>
    %cst_77 = arith.constant dense<0.000000e+00> : vector<8xf32>
    %432 = vector.multi_reduction <add>, %429, %cst_77 [1] : vector<8x128xf32> to vector<8xf32>
    %433 = vector.shape_cast %432 : vector<8xf32> to vector<8x1xf32>
    %cst_78 = arith.constant 1.280000e+02 : f32
    %434 = vector.broadcast %cst_78 : f32 to vector<8x1xf32>
    %435 = arith.divf %433, %434 : vector<8x1xf32>
    %436 = vector.broadcast %435 : vector<8x1xf32> to vector<8x128xf32>
    %437 = arith.subf %429, %436 : vector<8x128xf32>
    %438 = arith.mulf %437, %437 : vector<8x128xf32>
    %cst_79 = arith.constant dense<0.000000e+00> : vector<8xf32>
    %439 = vector.multi_reduction <add>, %438, %cst_79 [1] : vector<8x128xf32> to vector<8xf32>
    %440 = vector.shape_cast %439 : vector<8xf32> to vector<8x1xf32>
    %cst_80 = arith.constant 1.280000e+02 : f32
    %441 = vector.broadcast %cst_80 : f32 to vector<8x1xf32>
    %442 = arith.divf %440, %441 : vector<8x1xf32>
    %443 = vector.broadcast %435 : vector<8x1xf32> to vector<8x128xf32>
    %444 = arith.subf %429, %443 : vector<8x128xf32>
    %cst_81 = arith.constant 9.99999974E-6 : f32
    %445 = vector.broadcast %cst_81 : f32 to vector<8x1xf32>
    %446 = arith.addf %442, %445 : vector<8x1xf32>
    %447 = math.rsqrt %446 : vector<8x1xf32>
    %448 = vector.broadcast %447 : vector<8x1xf32> to vector<8x128xf32>
    %449 = arith.mulf %444, %448 : vector<8x128xf32>
    %450 = vector.broadcast %430 : vector<1x128xf32> to vector<8x128xf32>
    %451 = arith.mulf %449, %450 : vector<8x128xf32>
    %452 = vector.broadcast %431 : vector<1x128xf32> to vector<8x128xf32>
    %453 = arith.addf %451, %452 : vector<8x128xf32>
    %454 = arith.truncf %453 : vector<8x128xf32> to vector<8x128xbf16>
    %c0_82 = arith.constant 0 : index
    %c0_83 = arith.constant 0 : index
    %455 = vector.load %arg13[%c0_82, %c0_83] : memref<128x384xbf16, #tpu.memory_space<vmem>>, vector<128x384xbf16>
    %cst_84 = arith.constant dense<0.000000e+00> : vector<8x384xf32>
    %456 = tpu.matmul %454, %455, %cst_84 {dimension_numbers = #tpu.dot_dimension_numbers<[1], [0], [0], [1], [0, 0, 1, 1], [], []>} : vector<8x128xbf16>, vector<128x384xbf16>, vector<8x384xf32> -> vector<8x384xf32>
    %c0_85 = arith.constant 0 : index
    %c0_86 = arith.constant 0 : index
    %457 = vector.load %arg14[%c0_85, %c0_86] : memref<1x384xf32, #tpu.memory_space<vmem>>, vector<1x384xf32>
    %458 = vector.broadcast %457 : vector<1x384xf32> to vector<8x384xf32>
    %459 = arith.addf %456, %458 : vector<8x384xf32>
    %460 = vector.extract_strided_slice %459 {offsets = [0, 0], sizes = [8, 128], strides = [1, 1]} : vector<8x384xf32> to vector<8x128xf32>
    %461 = arith.truncf %460 : vector<8x128xf32> to vector<8x128xbf16>
    %462 = vector.extract_strided_slice %459 {offsets = [0, 128], sizes = [8, 128], strides = [1, 1]} : vector<8x384xf32> to vector<8x128xf32>
    %463 = arith.truncf %462 : vector<8x128xf32> to vector<8x128xbf16>
    %464 = vector.extract_strided_slice %459 {offsets = [0, 256], sizes = [8, 128], strides = [1, 1]} : vector<8x384xf32> to vector<8x128xf32>
    %465 = arith.truncf %464 : vector<8x128xf32> to vector<8x128xbf16>
    %466 = vector.extract_strided_slice %461 {offsets = [0, 0], sizes = [8, 16], strides = [1, 1]} : vector<8x128xbf16> to vector<8x16xbf16>
    %467 = vector.extract_strided_slice %463 {offsets = [0, 0], sizes = [8, 16], strides = [1, 1]} : vector<8x128xbf16> to vector<8x16xbf16>
    %cst_87 = arith.constant dense<0.000000e+00> : vector<8x8xf32>
    %468 = tpu.matmul %466, %467, %cst_87 {dimension_numbers = #tpu.dot_dimension_numbers<[1], [1], [0], [0], [0, 0, 1, 0], [], []>} : vector<8x16xbf16>, vector<8x16xbf16>, vector<8x8xf32> -> vector<8x8xf32>
    %cst_88 = arith.constant dense<0xFF800000> : vector<8xf32>
    %469 = vector.multi_reduction <maximumf>, %468, %cst_88 [1] : vector<8x8xf32> to vector<8xf32>
    %470 = vector.shape_cast %469 : vector<8xf32> to vector<8x1xf32>
    %471 = vector.broadcast %470 : vector<8x1xf32> to vector<8x8xf32>
    %472 = arith.subf %468, %471 : vector<8x8xf32>
    %473 = math.exp %472 : vector<8x8xf32>
    %cst_89 = arith.constant dense<0.000000e+00> : vector<8xf32>
    %474 = vector.multi_reduction <add>, %473, %cst_89 [1] : vector<8x8xf32> to vector<8xf32>
    %475 = vector.shape_cast %474 : vector<8xf32> to vector<8x1xf32>
    %476 = tpu.reciprocal %475 {approx = true} : vector<8x1xf32> -> vector<8x1xf32>
    %477 = vector.broadcast %476 : vector<8x1xf32> to vector<8x8xf32>
    %478 = arith.mulf %473, %477 : vector<8x8xf32>
    %479 = arith.truncf %478 : vector<8x8xf32> to vector<8x8xbf16>
    %480 = vector.extract_strided_slice %465 {offsets = [0, 0], sizes = [8, 16], strides = [1, 1]} : vector<8x128xbf16> to vector<8x16xbf16>
    %cst_90 = arith.constant dense<0.000000e+00> : vector<8x16xf32>
    %481 = tpu.matmul %479, %480, %cst_90 {dimension_numbers = #tpu.dot_dimension_numbers<[1], [0], [0], [1], [0, 0, 1, 1], [], []>} : vector<8x8xbf16>, vector<8x16xbf16>, vector<8x16xf32> -> vector<8x16xf32>
    %482 = vector.extract_strided_slice %461 {offsets = [0, 16], sizes = [8, 16], strides = [1, 1]} : vector<8x128xbf16> to vector<8x16xbf16>
    %483 = vector.extract_strided_slice %463 {offsets = [0, 16], sizes = [8, 16], strides = [1, 1]} : vector<8x128xbf16> to vector<8x16xbf16>
    %cst_91 = arith.constant dense<0.000000e+00> : vector<8x8xf32>
    %484 = tpu.matmul %482, %483, %cst_91 {dimension_numbers = #tpu.dot_dimension_numbers<[1], [1], [0], [0], [0, 0, 1, 0], [], []>} : vector<8x16xbf16>, vector<8x16xbf16>, vector<8x8xf32> -> vector<8x8xf32>
    %cst_92 = arith.constant dense<0xFF800000> : vector<8xf32>
    %485 = vector.multi_reduction <maximumf>, %484, %cst_92 [1] : vector<8x8xf32> to vector<8xf32>
    %486 = vector.shape_cast %485 : vector<8xf32> to vector<8x1xf32>
    %487 = vector.broadcast %486 : vector<8x1xf32> to vector<8x8xf32>
    %488 = arith.subf %484, %487 : vector<8x8xf32>
    %489 = math.exp %488 : vector<8x8xf32>
    %cst_93 = arith.constant dense<0.000000e+00> : vector<8xf32>
    %490 = vector.multi_reduction <add>, %489, %cst_93 [1] : vector<8x8xf32> to vector<8xf32>
    %491 = vector.shape_cast %490 : vector<8xf32> to vector<8x1xf32>
    %492 = tpu.reciprocal %491 {approx = true} : vector<8x1xf32> -> vector<8x1xf32>
    %493 = vector.broadcast %492 : vector<8x1xf32> to vector<8x8xf32>
    %494 = arith.mulf %489, %493 : vector<8x8xf32>
    %495 = arith.truncf %494 : vector<8x8xf32> to vector<8x8xbf16>
    %496 = vector.extract_strided_slice %465 {offsets = [0, 16], sizes = [8, 16], strides = [1, 1]} : vector<8x128xbf16> to vector<8x16xbf16>
    %cst_94 = arith.constant dense<0.000000e+00> : vector<8x16xf32>
    %497 = tpu.matmul %495, %496, %cst_94 {dimension_numbers = #tpu.dot_dimension_numbers<[1], [0], [0], [1], [0, 0, 1, 1], [], []>} : vector<8x8xbf16>, vector<8x16xbf16>, vector<8x16xf32> -> vector<8x16xf32>
    %498 = vector.extract_strided_slice %461 {offsets = [0, 32], sizes = [8, 16], strides = [1, 1]} : vector<8x128xbf16> to vector<8x16xbf16>
    %499 = vector.extract_strided_slice %463 {offsets = [0, 32], sizes = [8, 16], strides = [1, 1]} : vector<8x128xbf16> to vector<8x16xbf16>
    %cst_95 = arith.constant dense<0.000000e+00> : vector<8x8xf32>
    %500 = tpu.matmul %498, %499, %cst_95 {dimension_numbers = #tpu.dot_dimension_numbers<[1], [1], [0], [0], [0, 0, 1, 0], [], []>} : vector<8x16xbf16>, vector<8x16xbf16>, vector<8x8xf32> -> vector<8x8xf32>
    %cst_96 = arith.constant dense<0xFF800000> : vector<8xf32>
    %501 = vector.multi_reduction <maximumf>, %500, %cst_96 [1] : vector<8x8xf32> to vector<8xf32>
    %502 = vector.shape_cast %501 : vector<8xf32> to vector<8x1xf32>
    %503 = vector.broadcast %502 : vector<8x1xf32> to vector<8x8xf32>
    %504 = arith.subf %500, %503 : vector<8x8xf32>
    %505 = math.exp %504 : vector<8x8xf32>
    %cst_97 = arith.constant dense<0.000000e+00> : vector<8xf32>
    %506 = vector.multi_reduction <add>, %505, %cst_97 [1] : vector<8x8xf32> to vector<8xf32>
    %507 = vector.shape_cast %506 : vector<8xf32> to vector<8x1xf32>
    %508 = tpu.reciprocal %507 {approx = true} : vector<8x1xf32> -> vector<8x1xf32>
    %509 = vector.broadcast %508 : vector<8x1xf32> to vector<8x8xf32>
    %510 = arith.mulf %505, %509 : vector<8x8xf32>
    %511 = arith.truncf %510 : vector<8x8xf32> to vector<8x8xbf16>
    %512 = vector.extract_strided_slice %465 {offsets = [0, 32], sizes = [8, 16], strides = [1, 1]} : vector<8x128xbf16> to vector<8x16xbf16>
    %cst_98 = arith.constant dense<0.000000e+00> : vector<8x16xf32>
    %513 = tpu.matmul %511, %512, %cst_98 {dimension_numbers = #tpu.dot_dimension_numbers<[1], [0], [0], [1], [0, 0, 1, 1], [], []>} : vector<8x8xbf16>, vector<8x16xbf16>, vector<8x16xf32> -> vector<8x16xf32>
    %514 = vector.extract_strided_slice %461 {offsets = [0, 48], sizes = [8, 16], strides = [1, 1]} : vector<8x128xbf16> to vector<8x16xbf16>
    %515 = vector.extract_strided_slice %463 {offsets = [0, 48], sizes = [8, 16], strides = [1, 1]} : vector<8x128xbf16> to vector<8x16xbf16>
    %cst_99 = arith.constant dense<0.000000e+00> : vector<8x8xf32>
    %516 = tpu.matmul %514, %515, %cst_99 {dimension_numbers = #tpu.dot_dimension_numbers<[1], [1], [0], [0], [0, 0, 1, 0], [], []>} : vector<8x16xbf16>, vector<8x16xbf16>, vector<8x8xf32> -> vector<8x8xf32>
    %cst_100 = arith.constant dense<0xFF800000> : vector<8xf32>
    %517 = vector.multi_reduction <maximumf>, %516, %cst_100 [1] : vector<8x8xf32> to vector<8xf32>
    %518 = vector.shape_cast %517 : vector<8xf32> to vector<8x1xf32>
    %519 = vector.broadcast %518 : vector<8x1xf32> to vector<8x8xf32>
    %520 = arith.subf %516, %519 : vector<8x8xf32>
    %521 = math.exp %520 : vector<8x8xf32>
    %cst_101 = arith.constant dense<0.000000e+00> : vector<8xf32>
    %522 = vector.multi_reduction <add>, %521, %cst_101 [1] : vector<8x8xf32> to vector<8xf32>
    %523 = vector.shape_cast %522 : vector<8xf32> to vector<8x1xf32>
    %524 = tpu.reciprocal %523 {approx = true} : vector<8x1xf32> -> vector<8x1xf32>
    %525 = vector.broadcast %524 : vector<8x1xf32> to vector<8x8xf32>
    %526 = arith.mulf %521, %525 : vector<8x8xf32>
    %527 = arith.truncf %526 : vector<8x8xf32> to vector<8x8xbf16>
    %528 = vector.extract_strided_slice %465 {offsets = [0, 48], sizes = [8, 16], strides = [1, 1]} : vector<8x128xbf16> to vector<8x16xbf16>
    %cst_102 = arith.constant dense<0.000000e+00> : vector<8x16xf32>
    %529 = tpu.matmul %527, %528, %cst_102 {dimension_numbers = #tpu.dot_dimension_numbers<[1], [0], [0], [1], [0, 0, 1, 1], [], []>} : vector<8x8xbf16>, vector<8x16xbf16>, vector<8x16xf32> -> vector<8x16xf32>
    %530 = vector.extract_strided_slice %461 {offsets = [0, 64], sizes = [8, 16], strides = [1, 1]} : vector<8x128xbf16> to vector<8x16xbf16>
    %531 = vector.extract_strided_slice %463 {offsets = [0, 64], sizes = [8, 16], strides = [1, 1]} : vector<8x128xbf16> to vector<8x16xbf16>
    %cst_103 = arith.constant dense<0.000000e+00> : vector<8x8xf32>
    %532 = tpu.matmul %530, %531, %cst_103 {dimension_numbers = #tpu.dot_dimension_numbers<[1], [1], [0], [0], [0, 0, 1, 0], [], []>} : vector<8x16xbf16>, vector<8x16xbf16>, vector<8x8xf32> -> vector<8x8xf32>
    %cst_104 = arith.constant dense<0xFF800000> : vector<8xf32>
    %533 = vector.multi_reduction <maximumf>, %532, %cst_104 [1] : vector<8x8xf32> to vector<8xf32>
    %534 = vector.shape_cast %533 : vector<8xf32> to vector<8x1xf32>
    %535 = vector.broadcast %534 : vector<8x1xf32> to vector<8x8xf32>
    %536 = arith.subf %532, %535 : vector<8x8xf32>
    %537 = math.exp %536 : vector<8x8xf32>
    %cst_105 = arith.constant dense<0.000000e+00> : vector<8xf32>
    %538 = vector.multi_reduction <add>, %537, %cst_105 [1] : vector<8x8xf32> to vector<8xf32>
    %539 = vector.shape_cast %538 : vector<8xf32> to vector<8x1xf32>
    %540 = tpu.reciprocal %539 {approx = true} : vector<8x1xf32> -> vector<8x1xf32>
    %541 = vector.broadcast %540 : vector<8x1xf32> to vector<8x8xf32>
    %542 = arith.mulf %537, %541 : vector<8x8xf32>
    %543 = arith.truncf %542 : vector<8x8xf32> to vector<8x8xbf16>
    %544 = vector.extract_strided_slice %465 {offsets = [0, 64], sizes = [8, 16], strides = [1, 1]} : vector<8x128xbf16> to vector<8x16xbf16>
    %cst_106 = arith.constant dense<0.000000e+00> : vector<8x16xf32>
    %545 = tpu.matmul %543, %544, %cst_106 {dimension_numbers = #tpu.dot_dimension_numbers<[1], [0], [0], [1], [0, 0, 1, 1], [], []>} : vector<8x8xbf16>, vector<8x16xbf16>, vector<8x16xf32> -> vector<8x16xf32>
    %546 = vector.extract_strided_slice %461 {offsets = [0, 80], sizes = [8, 16], strides = [1, 1]} : vector<8x128xbf16> to vector<8x16xbf16>
    %547 = vector.extract_strided_slice %463 {offsets = [0, 80], sizes = [8, 16], strides = [1, 1]} : vector<8x128xbf16> to vector<8x16xbf16>
    %cst_107 = arith.constant dense<0.000000e+00> : vector<8x8xf32>
    %548 = tpu.matmul %546, %547, %cst_107 {dimension_numbers = #tpu.dot_dimension_numbers<[1], [1], [0], [0], [0, 0, 1, 0], [], []>} : vector<8x16xbf16>, vector<8x16xbf16>, vector<8x8xf32> -> vector<8x8xf32>
    %cst_108 = arith.constant dense<0xFF800000> : vector<8xf32>
    %549 = vector.multi_reduction <maximumf>, %548, %cst_108 [1] : vector<8x8xf32> to vector<8xf32>
    %550 = vector.shape_cast %549 : vector<8xf32> to vector<8x1xf32>
    %551 = vector.broadcast %550 : vector<8x1xf32> to vector<8x8xf32>
    %552 = arith.subf %548, %551 : vector<8x8xf32>
    %553 = math.exp %552 : vector<8x8xf32>
    %cst_109 = arith.constant dense<0.000000e+00> : vector<8xf32>
    %554 = vector.multi_reduction <add>, %553, %cst_109 [1] : vector<8x8xf32> to vector<8xf32>
    %555 = vector.shape_cast %554 : vector<8xf32> to vector<8x1xf32>
    %556 = tpu.reciprocal %555 {approx = true} : vector<8x1xf32> -> vector<8x1xf32>
    %557 = vector.broadcast %556 : vector<8x1xf32> to vector<8x8xf32>
    %558 = arith.mulf %553, %557 : vector<8x8xf32>
    %559 = arith.truncf %558 : vector<8x8xf32> to vector<8x8xbf16>
    %560 = vector.extract_strided_slice %465 {offsets = [0, 80], sizes = [8, 16], strides = [1, 1]} : vector<8x128xbf16> to vector<8x16xbf16>
    %cst_110 = arith.constant dense<0.000000e+00> : vector<8x16xf32>
    %561 = tpu.matmul %559, %560, %cst_110 {dimension_numbers = #tpu.dot_dimension_numbers<[1], [0], [0], [1], [0, 0, 1, 1], [], []>} : vector<8x8xbf16>, vector<8x16xbf16>, vector<8x16xf32> -> vector<8x16xf32>
    %562 = vector.extract_strided_slice %461 {offsets = [0, 96], sizes = [8, 16], strides = [1, 1]} : vector<8x128xbf16> to vector<8x16xbf16>
    %563 = vector.extract_strided_slice %463 {offsets = [0, 96], sizes = [8, 16], strides = [1, 1]} : vector<8x128xbf16> to vector<8x16xbf16>
    %cst_111 = arith.constant dense<0.000000e+00> : vector<8x8xf32>
    %564 = tpu.matmul %562, %563, %cst_111 {dimension_numbers = #tpu.dot_dimension_numbers<[1], [1], [0], [0], [0, 0, 1, 0], [], []>} : vector<8x16xbf16>, vector<8x16xbf16>, vector<8x8xf32> -> vector<8x8xf32>
    %cst_112 = arith.constant dense<0xFF800000> : vector<8xf32>
    %565 = vector.multi_reduction <maximumf>, %564, %cst_112 [1] : vector<8x8xf32> to vector<8xf32>
    %566 = vector.shape_cast %565 : vector<8xf32> to vector<8x1xf32>
    %567 = vector.broadcast %566 : vector<8x1xf32> to vector<8x8xf32>
    %568 = arith.subf %564, %567 : vector<8x8xf32>
    %569 = math.exp %568 : vector<8x8xf32>
    %cst_113 = arith.constant dense<0.000000e+00> : vector<8xf32>
    %570 = vector.multi_reduction <add>, %569, %cst_113 [1] : vector<8x8xf32> to vector<8xf32>
    %571 = vector.shape_cast %570 : vector<8xf32> to vector<8x1xf32>
    %572 = tpu.reciprocal %571 {approx = true} : vector<8x1xf32> -> vector<8x1xf32>
    %573 = vector.broadcast %572 : vector<8x1xf32> to vector<8x8xf32>
    %574 = arith.mulf %569, %573 : vector<8x8xf32>
    %575 = arith.truncf %574 : vector<8x8xf32> to vector<8x8xbf16>
    %576 = vector.extract_strided_slice %465 {offsets = [0, 96], sizes = [8, 16], strides = [1, 1]} : vector<8x128xbf16> to vector<8x16xbf16>
    %cst_114 = arith.constant dense<0.000000e+00> : vector<8x16xf32>
    %577 = tpu.matmul %575, %576, %cst_114 {dimension_numbers = #tpu.dot_dimension_numbers<[1], [0], [0], [1], [0, 0, 1, 1], [], []>} : vector<8x8xbf16>, vector<8x16xbf16>, vector<8x16xf32> -> vector<8x16xf32>
    %578 = vector.extract_strided_slice %461 {offsets = [0, 112], sizes = [8, 16], strides = [1, 1]} : vector<8x128xbf16> to vector<8x16xbf16>
    %579 = vector.extract_strided_slice %463 {offsets = [0, 112], sizes = [8, 16], strides = [1, 1]} : vector<8x128xbf16> to vector<8x16xbf16>
    %cst_115 = arith.constant dense<0.000000e+00> : vector<8x8xf32>
    %580 = tpu.matmul %578, %579, %cst_115 {dimension_numbers = #tpu.dot_dimension_numbers<[1], [1], [0], [0], [0, 0, 1, 0], [], []>} : vector<8x16xbf16>, vector<8x16xbf16>, vector<8x8xf32> -> vector<8x8xf32>
    %cst_116 = arith.constant dense<0xFF800000> : vector<8xf32>
    %581 = vector.multi_reduction <maximumf>, %580, %cst_116 [1] : vector<8x8xf32> to vector<8xf32>
    %582 = vector.shape_cast %581 : vector<8xf32> to vector<8x1xf32>
    %583 = vector.broadcast %582 : vector<8x1xf32> to vector<8x8xf32>
    %584 = arith.subf %580, %583 : vector<8x8xf32>
    %585 = math.exp %584 : vector<8x8xf32>
    %cst_117 = arith.constant dense<0.000000e+00> : vector<8xf32>
    %586 = vector.multi_reduction <add>, %585, %cst_117 [1] : vector<8x8xf32> to vector<8xf32>
    %587 = vector.shape_cast %586 : vector<8xf32> to vector<8x1xf32>
    %588 = tpu.reciprocal %587 {approx = true} : vector<8x1xf32> -> vector<8x1xf32>
    %589 = vector.broadcast %588 : vector<8x1xf32> to vector<8x8xf32>
    %590 = arith.mulf %585, %589 : vector<8x8xf32>
    %591 = arith.truncf %590 : vector<8x8xf32> to vector<8x8xbf16>
    %592 = vector.extract_strided_slice %465 {offsets = [0, 112], sizes = [8, 16], strides = [1, 1]} : vector<8x128xbf16> to vector<8x16xbf16>
    %cst_118 = arith.constant dense<0.000000e+00> : vector<8x16xf32>
    %593 = tpu.matmul %591, %592, %cst_118 {dimension_numbers = #tpu.dot_dimension_numbers<[1], [0], [0], [1], [0, 0, 1, 1], [], []>} : vector<8x8xbf16>, vector<8x16xbf16>, vector<8x16xf32> -> vector<8x16xf32>
    %594 = tpu.concatenate %481, %497, %513, %529, %545, %561, %577, %593 in 1 : vector<8x16xf32>, vector<8x16xf32>, vector<8x16xf32>, vector<8x16xf32>, vector<8x16xf32>, vector<8x16xf32>, vector<8x16xf32>, vector<8x16xf32> -> vector<8x128xf32>
    %595 = arith.truncf %594 : vector<8x128xf32> to vector<8x128xbf16>
    %c0_119 = arith.constant 0 : index
    %c0_120 = arith.constant 0 : index
    %596 = vector.load %arg15[%c0_119, %c0_120] : memref<128x128xbf16, #tpu.memory_space<vmem>>, vector<128x128xbf16>
    %cst_121 = arith.constant dense<0.000000e+00> : vector<8x128xf32>
    %597 = tpu.matmul %595, %596, %cst_121 {dimension_numbers = #tpu.dot_dimension_numbers<[1], [0], [0], [1], [0, 0, 1, 1], [], []>} : vector<8x128xbf16>, vector<128x128xbf16>, vector<8x128xf32> -> vector<8x128xf32>
    %c0_122 = arith.constant 0 : index
    %c0_123 = arith.constant 0 : index
    %598 = vector.load %arg16[%c0_122, %c0_123] : memref<1x128xf32, #tpu.memory_space<vmem>>, vector<1x128xf32>
    %599 = vector.broadcast %598 : vector<1x128xf32> to vector<8x128xf32>
    %600 = arith.addf %597, %599 : vector<8x128xf32>
    %601 = arith.addf %453, %600 : vector<8x128xf32>
    %c0_124 = arith.constant 0 : index
    %c0_125 = arith.constant 0 : index
    %602 = vector.load %arg21[%c0_124, %c0_125] : memref<1x128xf32, #tpu.memory_space<vmem>>, vector<1x128xf32>
    %c0_126 = arith.constant 0 : index
    %c0_127 = arith.constant 0 : index
    %603 = vector.load %arg22[%c0_126, %c0_127] : memref<1x128xf32, #tpu.memory_space<vmem>>, vector<1x128xf32>
    %cst_128 = arith.constant dense<0.000000e+00> : vector<8xf32>
    %604 = vector.multi_reduction <add>, %601, %cst_128 [1] : vector<8x128xf32> to vector<8xf32>
    %605 = vector.shape_cast %604 : vector<8xf32> to vector<8x1xf32>
    %cst_129 = arith.constant 1.280000e+02 : f32
    %606 = vector.broadcast %cst_129 : f32 to vector<8x1xf32>
    %607 = arith.divf %605, %606 : vector<8x1xf32>
    %608 = vector.broadcast %607 : vector<8x1xf32> to vector<8x128xf32>
    %609 = arith.subf %601, %608 : vector<8x128xf32>
    %610 = arith.mulf %609, %609 : vector<8x128xf32>
    %cst_130 = arith.constant dense<0.000000e+00> : vector<8xf32>
    %611 = vector.multi_reduction <add>, %610, %cst_130 [1] : vector<8x128xf32> to vector<8xf32>
    %612 = vector.shape_cast %611 : vector<8xf32> to vector<8x1xf32>
    %cst_131 = arith.constant 1.280000e+02 : f32
    %613 = vector.broadcast %cst_131 : f32 to vector<8x1xf32>
    %614 = arith.divf %612, %613 : vector<8x1xf32>
    %615 = vector.broadcast %607 : vector<8x1xf32> to vector<8x128xf32>
    %616 = arith.subf %601, %615 : vector<8x128xf32>
    %cst_132 = arith.constant 9.99999974E-6 : f32
    %617 = vector.broadcast %cst_132 : f32 to vector<8x1xf32>
    %618 = arith.addf %614, %617 : vector<8x1xf32>
    %619 = math.rsqrt %618 : vector<8x1xf32>
    %620 = vector.broadcast %619 : vector<8x1xf32> to vector<8x128xf32>
    %621 = arith.mulf %616, %620 : vector<8x128xf32>
    %622 = vector.broadcast %602 : vector<1x128xf32> to vector<8x128xf32>
    %623 = arith.mulf %621, %622 : vector<8x128xf32>
    %624 = vector.broadcast %603 : vector<1x128xf32> to vector<8x128xf32>
    %625 = arith.addf %623, %624 : vector<8x128xf32>
    %626 = arith.truncf %625 : vector<8x128xf32> to vector<8x128xbf16>
    %c0_133 = arith.constant 0 : index
    %c0_134 = arith.constant 0 : index
    %627 = vector.load %arg17[%c0_133, %c0_134] : memref<128x256xbf16, #tpu.memory_space<vmem>>, vector<128x256xbf16>
    %cst_135 = arith.constant dense<0.000000e+00> : vector<8x256xf32>
    %628 = tpu.matmul %626, %627, %cst_135 {dimension_numbers = #tpu.dot_dimension_numbers<[1], [0], [0], [1], [0, 0, 1, 1], [], []>} : vector<8x128xbf16>, vector<128x256xbf16>, vector<8x256xf32> -> vector<8x256xf32>
    %c0_136 = arith.constant 0 : index
    %c0_137 = arith.constant 0 : index
    %629 = vector.load %arg18[%c0_136, %c0_137] : memref<1x256xf32, #tpu.memory_space<vmem>>, vector<1x256xf32>
    %630 = vector.broadcast %629 : vector<1x256xf32> to vector<8x256xf32>
    %631 = arith.addf %628, %630 : vector<8x256xf32>
    %cst_138 = arith.constant 0.000000e+00 : f32
    %632 = vector.broadcast %cst_138 : f32 to vector<8x256xf32>
    %633 = arith.maximumf %631, %632 : vector<8x256xf32>
    %634 = arith.truncf %633 : vector<8x256xf32> to vector<8x256xbf16>
    %c0_139 = arith.constant 0 : index
    %c0_140 = arith.constant 0 : index
    %635 = vector.load %arg19[%c0_139, %c0_140] : memref<256x128xbf16, #tpu.memory_space<vmem>>, vector<256x128xbf16>
    %cst_141 = arith.constant dense<0.000000e+00> : vector<8x128xf32>
    %636 = tpu.matmul %634, %635, %cst_141 {dimension_numbers = #tpu.dot_dimension_numbers<[1], [0], [0], [1], [0, 0, 1, 1], [], []>} : vector<8x256xbf16>, vector<256x128xbf16>, vector<8x128xf32> -> vector<8x128xf32>
    %c0_142 = arith.constant 0 : index
    %c0_143 = arith.constant 0 : index
    %637 = vector.load %arg20[%c0_142, %c0_143] : memref<1x128xf32, #tpu.memory_space<vmem>>, vector<1x128xf32>
    %638 = vector.broadcast %637 : vector<1x128xf32> to vector<8x128xf32>
    %639 = arith.addf %636, %638 : vector<8x128xf32>
    %640 = arith.addf %625, %639 : vector<8x128xf32>
    %c0_144 = arith.constant 0 : index
    %c0_145 = arith.constant 0 : index
    %641 = vector.load %arg23[%c0_144, %c0_145] : memref<1x128xf32, #tpu.memory_space<vmem>>, vector<1x128xf32>
    %c0_146 = arith.constant 0 : index
    %c0_147 = arith.constant 0 : index
    %642 = vector.load %arg24[%c0_146, %c0_147] : memref<1x128xf32, #tpu.memory_space<vmem>>, vector<1x128xf32>
    %cst_148 = arith.constant dense<0.000000e+00> : vector<8xf32>
    %643 = vector.multi_reduction <add>, %640, %cst_148 [1] : vector<8x128xf32> to vector<8xf32>
    %644 = vector.shape_cast %643 : vector<8xf32> to vector<8x1xf32>
    %cst_149 = arith.constant 1.280000e+02 : f32
    %645 = vector.broadcast %cst_149 : f32 to vector<8x1xf32>
    %646 = arith.divf %644, %645 : vector<8x1xf32>
    %647 = vector.broadcast %646 : vector<8x1xf32> to vector<8x128xf32>
    %648 = arith.subf %640, %647 : vector<8x128xf32>
    %649 = arith.mulf %648, %648 : vector<8x128xf32>
    %cst_150 = arith.constant dense<0.000000e+00> : vector<8xf32>
    %650 = vector.multi_reduction <add>, %649, %cst_150 [1] : vector<8x128xf32> to vector<8xf32>
    %651 = vector.shape_cast %650 : vector<8xf32> to vector<8x1xf32>
    %cst_151 = arith.constant 1.280000e+02 : f32
    %652 = vector.broadcast %cst_151 : f32 to vector<8x1xf32>
    %653 = arith.divf %651, %652 : vector<8x1xf32>
    %654 = vector.broadcast %646 : vector<8x1xf32> to vector<8x128xf32>
    %655 = arith.subf %640, %654 : vector<8x128xf32>
    %cst_152 = arith.constant 9.99999974E-6 : f32
    %656 = vector.broadcast %cst_152 : f32 to vector<8x1xf32>
    %657 = arith.addf %653, %656 : vector<8x1xf32>
    %658 = math.rsqrt %657 : vector<8x1xf32>
    %659 = vector.broadcast %658 : vector<8x1xf32> to vector<8x128xf32>
    %660 = arith.mulf %655, %659 : vector<8x128xf32>
    %661 = vector.broadcast %641 : vector<1x128xf32> to vector<8x128xf32>
    %662 = arith.mulf %660, %661 : vector<8x128xf32>
    %663 = vector.broadcast %642 : vector<1x128xf32> to vector<8x128xf32>
    %664 = arith.addf %662, %663 : vector<8x128xf32>
    %c0_153 = arith.constant 0 : index
    %c0_154 = arith.constant 0 : index
    %c0_155 = arith.constant 0 : index
    %665 = vector.load %arg25[%c0_153, %c0_154, %c0_155] : memref<1x8x128xf32, #tpu.memory_space<vmem>>, vector<1x8x128xf32>
    %666 = vector.shape_cast %665 : vector<1x8x128xf32> to vector<8x128xf32>
    %667 = vector.shape_cast %664 : vector<8x128xf32> to vector<1x8x128xf32>
    tpu.vector_store %arg25[%c0_153, %c0_154, %c0_155], %667 {strides = array<i32>} : memref<1x8x128xf32, #tpu.memory_space<vmem>>, vector<1x8x128xf32>,
    return
  }
  func.func @transform_0(%arg0: i32) -> (i32, i32, i32) {
    %c0_i32 = arith.constant 0 : i32
    %c0_i32_0 = arith.constant 0 : i32
    %c0_i32_1 = arith.constant 0 : i32
    return %arg0, %c0_i32, %c0_i32_0 : i32, i32, i32
  }
  func.func @transform_1(%arg0: i32) -> (i32, i32, i32) {
    %c0_i32 = arith.constant 0 : i32
    %c0_i32_0 = arith.constant 0 : i32
    %c0_i32_1 = arith.constant 0 : i32
    return %arg0, %c0_i32, %c0_i32_0 : i32, i32, i32
  }
  func.func @transform_2(%arg0: i32) -> (i32, i32, i32) {
    %c0_i32 = arith.constant 0 : i32
    %c0_i32_0 = arith.constant 0 : i32
    %c0_i32_1 = arith.constant 0 : i32
    return %arg0, %c0_i32, %c0_i32_0 : i32, i32, i32
  }
  func.func @transform_3(%arg0: i32) -> (i32, i32) {
    %c0_i32 = arith.constant 0 : i32
    %c0_i32_0 = arith.constant 0 : i32
    %c0_i32_1 = arith.constant 0 : i32
    return %c0_i32, %c0_i32_0 : i32, i32
  }
  func.func @transform_4(%arg0: i32) -> (i32, i32) {
    %c0_i32 = arith.constant 0 : i32
    %c0_i32_0 = arith.constant 0 : i32
    %c0_i32_1 = arith.constant 0 : i32
    return %c0_i32, %c0_i32_0 : i32, i32
  }
  func.func @transform_5(%arg0: i32) -> (i32, i32) {
    %c0_i32 = arith.constant 0 : i32
    %c0_i32_0 = arith.constant 0 : i32
    %c0_i32_1 = arith.constant 0 : i32
    return %c0_i32, %c0_i32_0 : i32, i32
  }
  func.func @transform_6(%arg0: i32) -> (i32, i32) {
    %c0_i32 = arith.constant 0 : i32
    %c0_i32_0 = arith.constant 0 : i32
    %c0_i32_1 = arith.constant 0 : i32
    return %c0_i32, %c0_i32_0 : i32, i32
  }
  func.func @transform_7(%arg0: i32) -> (i32, i32) {
    %c0_i32 = arith.constant 0 : i32
    %c0_i32_0 = arith.constant 0 : i32
    %c0_i32_1 = arith.constant 0 : i32
    return %c0_i32, %c0_i32_0 : i32, i32
  }
  func.func @transform_8(%arg0: i32) -> (i32, i32) {
    %c0_i32 = arith.constant 0 : i32
    %c0_i32_0 = arith.constant 0 : i32
    %c0_i32_1 = arith.constant 0 : i32
    return %c0_i32, %c0_i32_0 : i32, i32
  }
  func.func @transform_9(%arg0: i32) -> (i32, i32) {
    %c0_i32 = arith.constant 0 : i32
    %c0_i32_0 = arith.constant 0 : i32
    %c0_i32_1 = arith.constant 0 : i32
    return %c0_i32, %c0_i32_0 : i32, i32
  }
  func.func @transform_10(%arg0: i32) -> (i32, i32) {
    %c0_i32 = arith.constant 0 : i32
    %c0_i32_0 = arith.constant 0 : i32
    %c0_i32_1 = arith.constant 0 : i32
    return %c0_i32, %c0_i32_0 : i32, i32
  }
  func.func @transform_11(%arg0: i32) -> (i32, i32) {
    %c0_i32 = arith.constant 0 : i32
    %c0_i32_0 = arith.constant 0 : i32
    %c0_i32_1 = arith.constant 0 : i32
    return %c0_i32, %c0_i32_0 : i32, i32
  }
  func.func @transform_12(%arg0: i32) -> (i32, i32) {
    %c0_i32 = arith.constant 0 : i32
    %c0_i32_0 = arith.constant 0 : i32
    %c0_i32_1 = arith.constant 0 : i32
    return %c0_i32, %c0_i32_0 : i32, i32
  }
  func.func @transform_13(%arg0: i32) -> (i32, i32) {
    %c0_i32 = arith.constant 0 : i32
    %c0_i32_0 = arith.constant 0 : i32
    %c0_i32_1 = arith.constant 0 : i32
    return %c0_i32, %c0_i32_0 : i32, i32
  }
  func.func @transform_14(%arg0: i32) -> (i32, i32) {
    %c0_i32 = arith.constant 0 : i32
    %c0_i32_0 = arith.constant 0 : i32
    %c0_i32_1 = arith.constant 0 : i32
    return %c0_i32, %c0_i32_0 : i32, i32
  }
  func.func @transform_15(%arg0: i32) -> (i32, i32) {
    %c0_i32 = arith.constant 0 : i32
    %c0_i32_0 = arith.constant 0 : i32
    %c0_i32_1 = arith.constant 0 : i32
    return %c0_i32, %c0_i32_0 : i32, i32
  }
  func.func @transform_16(%arg0: i32) -> (i32, i32) {
    %c0_i32 = arith.constant 0 : i32
    %c0_i32_0 = arith.constant 0 : i32
    %c0_i32_1 = arith.constant 0 : i32
    return %c0_i32, %c0_i32_0 : i32, i32
  }
  func.func @transform_17(%arg0: i32) -> (i32, i32) {
    %c0_i32 = arith.constant 0 : i32
    %c0_i32_0 = arith.constant 0 : i32
    %c0_i32_1 = arith.constant 0 : i32
    return %c0_i32, %c0_i32_0 : i32, i32
  }
  func.func @transform_18(%arg0: i32) -> (i32, i32) {
    %c0_i32 = arith.constant 0 : i32
    %c0_i32_0 = arith.constant 0 : i32
    %c0_i32_1 = arith.constant 0 : i32
    return %c0_i32, %c0_i32_0 : i32, i32
  }
  func.func @transform_19(%arg0: i32) -> (i32, i32) {
    %c0_i32 = arith.constant 0 : i32
    %c0_i32_0 = arith.constant 0 : i32
    %c0_i32_1 = arith.constant 0 : i32
    return %c0_i32, %c0_i32_0 : i32, i32
  }
  func.func @transform_20(%arg0: i32) -> (i32, i32) {
    %c0_i32 = arith.constant 0 : i32
    %c0_i32_0 = arith.constant 0 : i32
    %c0_i32_1 = arith.constant 0 : i32
    return %c0_i32, %c0_i32_0 : i32, i32
  }
  func.func @transform_21(%arg0: i32) -> (i32, i32) {
    %c0_i32 = arith.constant 0 : i32
    %c0_i32_0 = arith.constant 0 : i32
    %c0_i32_1 = arith.constant 0 : i32
    return %c0_i32, %c0_i32_0 : i32, i32
  }
  func.func @transform_22(%arg0: i32) -> (i32, i32) {
    %c0_i32 = arith.constant 0 : i32
    %c0_i32_0 = arith.constant 0 : i32
    %c0_i32_1 = arith.constant 0 : i32
    return %c0_i32, %c0_i32_0 : i32, i32
  }
  func.func @transform_23(%arg0: i32) -> (i32, i32) {
    %c0_i32 = arith.constant 0 : i32
    %c0_i32_0 = arith.constant 0 : i32
    %c0_i32_1 = arith.constant 0 : i32
    return %c0_i32, %c0_i32_0 : i32, i32
  }
  func.func @transform_24(%arg0: i32) -> (i32, i32, i32) {
    %c0_i32 = arith.constant 0 : i32
    %c0_i32_0 = arith.constant 0 : i32
    %c0_i32_1 = arith.constant 0 : i32
    return %arg0, %c0_i32, %c0_i32_0 : i32, i32, i32
  }
}

module attributes {stable_mosaic.version = 11 : i64} {
  func.func @_matnet_dir_kernel(%arg0: i32, %arg1: memref<1x16x128xf32, #tpu.memory_space<vmem>>, %arg2: memref<1x8x128xf32, #tpu.memory_space<vmem>>, %arg3: memref<1x8x16xf32, #tpu.memory_space<vmem>>, %arg4: memref<128x128xbf16, #tpu.memory_space<vmem>>, %arg5: memref<1x128xf32, #tpu.memory_space<vmem>>, %arg6: memref<128x256xbf16, #tpu.memory_space<vmem>>, %arg7: memref<1x256xf32, #tpu.memory_space<vmem>>, %arg8: memref<128x128xbf16, #tpu.memory_space<vmem>>, %arg9: memref<1x128xf32, #tpu.memory_space<vmem>>, %arg10: memref<65x64xf32, #tpu.memory_space<vmem>>, %arg11: memref<1x128xf32, #tpu.memory_space<vmem>>, %arg12: memref<1x128xf32, #tpu.memory_space<vmem>>, %arg13: memref<128x384xbf16, #tpu.memory_space<vmem>>, %arg14: memref<1x384xf32, #tpu.memory_space<vmem>>, %arg15: memref<128x128xbf16, #tpu.memory_space<vmem>>, %arg16: memref<1x128xf32, #tpu.memory_space<vmem>>, %arg17: memref<128x256xbf16, #tpu.memory_space<vmem>>, %arg18: memref<1x256xf32, #tpu.memory_space<vmem>>, %arg19: memref<256x128xbf16, #tpu.memory_space<vmem>>, %arg20: memref<1x128xf32, #tpu.memory_space<vmem>>, %arg21: memref<1x128xf32, #tpu.memory_space<vmem>>, %arg22: memref<1x128xf32, #tpu.memory_space<vmem>>, %arg23: memref<1x128xf32, #tpu.memory_space<vmem>>, %arg24: memref<1x128xf32, #tpu.memory_space<vmem>>, %arg25: memref<1x16x128xf32, #tpu.memory_space<vmem>>) attributes {dimension_semantics = [#tpu.dimension_semantics<parallel>], iteration_bounds = array<i64: 2>, scalar_prefetch = 0 : i64, scratch_operands = 0 : i64, tpu.core_type = #tpu.core_type<tc>, window_params = [{transform_indices = @transform_0, window_bounds = array<i64: 1, 16, 128>}, {transform_indices = @transform_1, window_bounds = array<i64: 1, 8, 128>}, {transform_indices = @transform_2, window_bounds = array<i64: 1, 8, 16>}, {pipeline_mode = #tpu.pipeline_mode<synchronous>, transform_indices = @transform_3, window_bounds = array<i64: 128, 128>}, {pipeline_mode = #tpu.pipeline_mode<synchronous>, transform_indices = @transform_4, window_bounds = array<i64: 1, 128>}, {pipeline_mode = #tpu.pipeline_mode<synchronous>, transform_indices = @transform_5, window_bounds = array<i64: 128, 256>}, {pipeline_mode = #tpu.pipeline_mode<synchronous>, transform_indices = @transform_6, window_bounds = array<i64: 1, 256>}, {pipeline_mode = #tpu.pipeline_mode<synchronous>, transform_indices = @transform_7, window_bounds = array<i64: 128, 128>}, {pipeline_mode = #tpu.pipeline_mode<synchronous>, transform_indices = @transform_8, window_bounds = array<i64: 1, 128>}, {pipeline_mode = #tpu.pipeline_mode<synchronous>, transform_indices = @transform_9, window_bounds = array<i64: 65, 64>}, {pipeline_mode = #tpu.pipeline_mode<synchronous>, transform_indices = @transform_10, window_bounds = array<i64: 1, 128>}, {pipeline_mode = #tpu.pipeline_mode<synchronous>, transform_indices = @transform_11, window_bounds = array<i64: 1, 128>}, {pipeline_mode = #tpu.pipeline_mode<synchronous>, transform_indices = @transform_12, window_bounds = array<i64: 128, 384>}, {pipeline_mode = #tpu.pipeline_mode<synchronous>, transform_indices = @transform_13, window_bounds = array<i64: 1, 384>}, {pipeline_mode = #tpu.pipeline_mode<synchronous>, transform_indices = @transform_14, window_bounds = array<i64: 128, 128>}, {pipeline_mode = #tpu.pipeline_mode<synchronous>, transform_indices = @transform_15, window_bounds = array<i64: 1, 128>}, {pipeline_mode = #tpu.pipeline_mode<synchronous>, transform_indices = @transform_16, window_bounds = array<i64: 128, 256>}, {pipeline_mode = #tpu.pipeline_mode<synchronous>, transform_indices = @transform_17, window_bounds = array<i64: 1, 256>}, {pipeline_mode = #tpu.pipeline_mode<synchronous>, transform_indices = @transform_18, window_bounds = array<i64: 256, 128>}, {pipeline_mode = #tpu.pipeline_mode<synchronous>, transform_indices = @transform_19, window_bounds = array<i64: 1, 128>}, {pipeline_mode = #tpu.pipeline_mode<synchronous>, transform_indices = @transform_20, window_bounds = array<i64: 1, 128>}, {pipeline_mode = #tpu.pipeline_mode<synchronous>, transform_indices = @transform_21, window_bounds = array<i64: 1, 128>}, {pipeline_mode = #tpu.pipeline_mode<synchronous>, transform_indices = @transform_22, window_bounds = array<i64: 1, 128>}, {pipeline_mode = #tpu.pipeline_mode<synchronous>, transform_indices = @transform_23, window_bounds = array<i64: 1, 128>}, {transform_indices = @transform_24, window_bounds = array<i64: 1, 16, 128>}]} {
    %c0 = arith.constant 0 : index
    %c0_0 = arith.constant 0 : index
    %c0_1 = arith.constant 0 : index
    %0 = vector.load %arg1[%c0, %c0_0, %c0_1] : memref<1x16x128xf32, #tpu.memory_space<vmem>>, vector<1x16x128xf32>
    %1 = vector.shape_cast %0 : vector<1x16x128xf32> to vector<16x128xf32>
    %c0_2 = arith.constant 0 : index
    %c0_3 = arith.constant 0 : index
    %c0_4 = arith.constant 0 : index
    %2 = vector.load %arg2[%c0_2, %c0_3, %c0_4] : memref<1x8x128xf32, #tpu.memory_space<vmem>>, vector<1x8x128xf32>
    %3 = vector.shape_cast %2 : vector<1x8x128xf32> to vector<8x128xf32>
    %c0_5 = arith.constant 0 : index
    %c0_6 = arith.constant 0 : index
    %c0_7 = arith.constant 0 : index
    %4 = vector.load %arg3[%c0_5, %c0_6, %c0_7] : memref<1x8x16xf32, #tpu.memory_space<vmem>>, vector<1x8x16xf32>
    %5 = vector.shape_cast %4 : vector<1x8x16xf32> to vector<8x16xf32>
    %6 = tpu.transpose %5, [1, 0] : vector<8x16xf32> -> vector<16x8xf32>
    %7 = arith.truncf %1 : vector<16x128xf32> to vector<16x128xbf16>
    %c0_8 = arith.constant 0 : index
    %c0_9 = arith.constant 0 : index
    %8 = vector.load %arg4[%c0_8, %c0_9] : memref<128x128xbf16, #tpu.memory_space<vmem>>, vector<128x128xbf16>
    %cst = arith.constant dense<0.000000e+00> : vector<16x128xf32>
    %9 = tpu.matmul %7, %8, %cst {dimension_numbers = #tpu.dot_dimension_numbers<[1], [0], [0], [1], [0, 0, 1, 1], [], []>} : vector<16x128xbf16>, vector<128x128xbf16>, vector<16x128xf32> -> vector<16x128xf32>
    %c0_10 = arith.constant 0 : index
    %c0_11 = arith.constant 0 : index
    %10 = vector.load %arg5[%c0_10, %c0_11] : memref<1x128xf32, #tpu.memory_space<vmem>>, vector<1x128xf32>
    %11 = vector.broadcast %10 : vector<1x128xf32> to vector<16x128xf32>
    %12 = arith.addf %9, %11 : vector<16x128xf32>
    %13 = arith.truncf %3 : vector<8x128xf32> to vector<8x128xbf16>
    %c0_12 = arith.constant 0 : index
    %c0_13 = arith.constant 0 : index
    %14 = vector.load %arg6[%c0_12, %c0_13] : memref<128x256xbf16, #tpu.memory_space<vmem>>, vector<128x256xbf16>
    %cst_14 = arith.constant dense<0.000000e+00> : vector<8x256xf32>
    %15 = tpu.matmul %13, %14, %cst_14 {dimension_numbers = #tpu.dot_dimension_numbers<[1], [0], [0], [1], [0, 0, 1, 1], [], []>} : vector<8x128xbf16>, vector<128x256xbf16>, vector<8x256xf32> -> vector<8x256xf32>
    %c0_15 = arith.constant 0 : index
    %c0_16 = arith.constant 0 : index
    %16 = vector.load %arg7[%c0_15, %c0_16] : memref<1x256xf32, #tpu.memory_space<vmem>>, vector<1x256xf32>
    %17 = vector.broadcast %16 : vector<1x256xf32> to vector<8x256xf32>
    %18 = arith.addf %15, %17 : vector<8x256xf32>
    %19 = arith.truncf %12 : vector<16x128xf32> to vector<16x128xbf16>
    %20 = vector.extract_strided_slice %18 {offsets = [0, 0], sizes = [8, 128], strides = [1, 1]} : vector<8x256xf32> to vector<8x128xf32>
    %21 = arith.truncf %20 : vector<8x128xf32> to vector<8x128xbf16>
    %22 = vector.extract_strided_slice %18 {offsets = [0, 128], sizes = [8, 128], strides = [1, 1]} : vector<8x256xf32> to vector<8x128xf32>
    %23 = arith.truncf %22 : vector<8x128xf32> to vector<8x128xbf16>
    %24 = vector.extract_strided_slice %19 {offsets = [0, 0], sizes = [16, 16], strides = [1, 1]} : vector<16x128xbf16> to vector<16x16xbf16>
    %25 = vector.extract_strided_slice %21 {offsets = [0, 0], sizes = [8, 16], strides = [1, 1]} : vector<8x128xbf16> to vector<8x16xbf16>
    %cst_17 = arith.constant dense<0.000000e+00> : vector<16x8xf32>
    %26 = tpu.matmul %24, %25, %cst_17 {dimension_numbers = #tpu.dot_dimension_numbers<[1], [1], [0], [0], [0, 0, 1, 0], [], []>} : vector<16x16xbf16>, vector<8x16xbf16>, vector<16x8xf32> -> vector<16x8xf32>
    %27 = vector.extract_strided_slice %19 {offsets = [0, 16], sizes = [16, 16], strides = [1, 1]} : vector<16x128xbf16> to vector<16x16xbf16>
    %28 = vector.extract_strided_slice %21 {offsets = [0, 16], sizes = [8, 16], strides = [1, 1]} : vector<8x128xbf16> to vector<8x16xbf16>
    %cst_18 = arith.constant dense<0.000000e+00> : vector<16x8xf32>
    %29 = tpu.matmul %27, %28, %cst_18 {dimension_numbers = #tpu.dot_dimension_numbers<[1], [1], [0], [0], [0, 0, 1, 0], [], []>} : vector<16x16xbf16>, vector<8x16xbf16>, vector<16x8xf32> -> vector<16x8xf32>
    %30 = vector.extract_strided_slice %19 {offsets = [0, 32], sizes = [16, 16], strides = [1, 1]} : vector<16x128xbf16> to vector<16x16xbf16>
    %31 = vector.extract_strided_slice %21 {offsets = [0, 32], sizes = [8, 16], strides = [1, 1]} : vector<8x128xbf16> to vector<8x16xbf16>
    %cst_19 = arith.constant dense<0.000000e+00> : vector<16x8xf32>
    %32 = tpu.matmul %30, %31, %cst_19 {dimension_numbers = #tpu.dot_dimension_numbers<[1], [1], [0], [0], [0, 0, 1, 0], [], []>} : vector<16x16xbf16>, vector<8x16xbf16>, vector<16x8xf32> -> vector<16x8xf32>
    %33 = vector.extract_strided_slice %19 {offsets = [0, 48], sizes = [16, 16], strides = [1, 1]} : vector<16x128xbf16> to vector<16x16xbf16>
    %34 = vector.extract_strided_slice %21 {offsets = [0, 48], sizes = [8, 16], strides = [1, 1]} : vector<8x128xbf16> to vector<8x16xbf16>
    %cst_20 = arith.constant dense<0.000000e+00> : vector<16x8xf32>
    %35 = tpu.matmul %33, %34, %cst_20 {dimension_numbers = #tpu.dot_dimension_numbers<[1], [1], [0], [0], [0, 0, 1, 0], [], []>} : vector<16x16xbf16>, vector<8x16xbf16>, vector<16x8xf32> -> vector<16x8xf32>
    %36 = vector.extract_strided_slice %19 {offsets = [0, 64], sizes = [16, 16], strides = [1, 1]} : vector<16x128xbf16> to vector<16x16xbf16>
    %37 = vector.extract_strided_slice %21 {offsets = [0, 64], sizes = [8, 16], strides = [1, 1]} : vector<8x128xbf16> to vector<8x16xbf16>
    %cst_21 = arith.constant dense<0.000000e+00> : vector<16x8xf32>
    %38 = tpu.matmul %36, %37, %cst_21 {dimension_numbers = #tpu.dot_dimension_numbers<[1], [1], [0], [0], [0, 0, 1, 0], [], []>} : vector<16x16xbf16>, vector<8x16xbf16>, vector<16x8xf32> -> vector<16x8xf32>
    %39 = vector.extract_strided_slice %19 {offsets = [0, 80], sizes = [16, 16], strides = [1, 1]} : vector<16x128xbf16> to vector<16x16xbf16>
    %40 = vector.extract_strided_slice %21 {offsets = [0, 80], sizes = [8, 16], strides = [1, 1]} : vector<8x128xbf16> to vector<8x16xbf16>
    %cst_22 = arith.constant dense<0.000000e+00> : vector<16x8xf32>
    %41 = tpu.matmul %39, %40, %cst_22 {dimension_numbers = #tpu.dot_dimension_numbers<[1], [1], [0], [0], [0, 0, 1, 0], [], []>} : vector<16x16xbf16>, vector<8x16xbf16>, vector<16x8xf32> -> vector<16x8xf32>
    %42 = vector.extract_strided_slice %19 {offsets = [0, 96], sizes = [16, 16], strides = [1, 1]} : vector<16x128xbf16> to vector<16x16xbf16>
    %43 = vector.extract_strided_slice %21 {offsets = [0, 96], sizes = [8, 16], strides = [1, 1]} : vector<8x128xbf16> to vector<8x16xbf16>
    %cst_23 = arith.constant dense<0.000000e+00> : vector<16x8xf32>
    %44 = tpu.matmul %42, %43, %cst_23 {dimension_numbers = #tpu.dot_dimension_numbers<[1], [1], [0], [0], [0, 0, 1, 0], [], []>} : vector<16x16xbf16>, vector<8x16xbf16>, vector<16x8xf32> -> vector<16x8xf32>
    %45 = vector.extract_strided_slice %19 {offsets = [0, 112], sizes = [16, 16], strides = [1, 1]} : vector<16x128xbf16> to vector<16x16xbf16>
    %46 = vector.extract_strided_slice %21 {offsets = [0, 112], sizes = [8, 16], strides = [1, 1]} : vector<8x128xbf16> to vector<8x16xbf16>
    %cst_24 = arith.constant dense<0.000000e+00> : vector<16x8xf32>
    %47 = tpu.matmul %45, %46, %cst_24 {dimension_numbers = #tpu.dot_dimension_numbers<[1], [1], [0], [0], [0, 0, 1, 0], [], []>} : vector<16x16xbf16>, vector<8x16xbf16>, vector<16x8xf32> -> vector<16x8xf32>
    %48 = tpu.concatenate %26, %29, %32, %35, %38, %41, %44, %47 in 1 : vector<16x8xf32>, vector<16x8xf32>, vector<16x8xf32>, vector<16x8xf32>, vector<16x8xf32>, vector<16x8xf32>, vector<16x8xf32>, vector<16x8xf32> -> vector<16x64xf32>
    %49 = tpu.concatenate %6, %6, %6, %6, %6, %6, %6, %6 in 1 : vector<16x8xf32>, vector<16x8xf32>, vector<16x8xf32>, vector<16x8xf32>, vector<16x8xf32>, vector<16x8xf32>, vector<16x8xf32>, vector<16x8xf32> -> vector<16x64xf32>
    %c0_25 = arith.constant 0 : index
    %c0_26 = arith.constant 0 : index
    %50 = vector.load %arg10[%c0_25, %c0_26] : memref<65x64xf32, #tpu.memory_space<vmem>>, vector<65x64xf32>
    %cst_27 = arith.constant 0.000000e+00 : f32
    %51 = vector.broadcast %cst_27 : f32 to vector<16x64xf32>
    %52 = vector.extract_strided_slice %50 {offsets = [0, 0], sizes = [1, 64], strides = [1, 1]} : vector<65x64xf32> to vector<1x64xf32>
    %53 = vector.broadcast %52 : vector<1x64xf32> to vector<16x64xf32>
    %54 = arith.mulf %48, %53 : vector<16x64xf32>
    %55 = vector.extract_strided_slice %50 {offsets = [16, 0], sizes = [1, 64], strides = [1, 1]} : vector<65x64xf32> to vector<1x64xf32>
    %56 = vector.broadcast %55 : vector<1x64xf32> to vector<16x64xf32>
    %57 = arith.mulf %49, %56 : vector<16x64xf32>
    %58 = arith.addf %54, %57 : vector<16x64xf32>
    %59 = vector.extract_strided_slice %50 {offsets = [32, 0], sizes = [1, 64], strides = [1, 1]} : vector<65x64xf32> to vector<1x64xf32>
    %60 = vector.broadcast %59 : vector<1x64xf32> to vector<16x64xf32>
    %61 = arith.addf %58, %60 : vector<16x64xf32>
    %cst_28 = arith.constant 0.000000e+00 : f32
    %62 = vector.broadcast %cst_28 : f32 to vector<16x64xf32>
    %63 = arith.maximumf %61, %62 : vector<16x64xf32>
    %64 = vector.extract_strided_slice %50 {offsets = [48, 0], sizes = [1, 64], strides = [1, 1]} : vector<65x64xf32> to vector<1x64xf32>
    %65 = vector.broadcast %64 : vector<1x64xf32> to vector<16x64xf32>
    %66 = arith.mulf %63, %65 : vector<16x64xf32>
    %67 = arith.addf %51, %66 : vector<16x64xf32>
    %68 = vector.extract_strided_slice %50 {offsets = [1, 0], sizes = [1, 64], strides = [1, 1]} : vector<65x64xf32> to vector<1x64xf32>
    %69 = vector.broadcast %68 : vector<1x64xf32> to vector<16x64xf32>
    %70 = arith.mulf %48, %69 : vector<16x64xf32>
    %71 = vector.extract_strided_slice %50 {offsets = [17, 0], sizes = [1, 64], strides = [1, 1]} : vector<65x64xf32> to vector<1x64xf32>
    %72 = vector.broadcast %71 : vector<1x64xf32> to vector<16x64xf32>
    %73 = arith.mulf %49, %72 : vector<16x64xf32>
    %74 = arith.addf %70, %73 : vector<16x64xf32>
    %75 = vector.extract_strided_slice %50 {offsets = [33, 0], sizes = [1, 64], strides = [1, 1]} : vector<65x64xf32> to vector<1x64xf32>
    %76 = vector.broadcast %75 : vector<1x64xf32> to vector<16x64xf32>
    %77 = arith.addf %74, %76 : vector<16x64xf32>
    %cst_29 = arith.constant 0.000000e+00 : f32
    %78 = vector.broadcast %cst_29 : f32 to vector<16x64xf32>
    %79 = arith.maximumf %77, %78 : vector<16x64xf32>
    %80 = vector.extract_strided_slice %50 {offsets = [49, 0], sizes = [1, 64], strides = [1, 1]} : vector<65x64xf32> to vector<1x64xf32>
    %81 = vector.broadcast %80 : vector<1x64xf32> to vector<16x64xf32>
    %82 = arith.mulf %79, %81 : vector<16x64xf32>
    %83 = arith.addf %67, %82 : vector<16x64xf32>
    %84 = vector.extract_strided_slice %50 {offsets = [2, 0], sizes = [1, 64], strides = [1, 1]} : vector<65x64xf32> to vector<1x64xf32>
    %85 = vector.broadcast %84 : vector<1x64xf32> to vector<16x64xf32>
    %86 = arith.mulf %48, %85 : vector<16x64xf32>
    %87 = vector.extract_strided_slice %50 {offsets = [18, 0], sizes = [1, 64], strides = [1, 1]} : vector<65x64xf32> to vector<1x64xf32>
    %88 = vector.broadcast %87 : vector<1x64xf32> to vector<16x64xf32>
    %89 = arith.mulf %49, %88 : vector<16x64xf32>
    %90 = arith.addf %86, %89 : vector<16x64xf32>
    %91 = vector.extract_strided_slice %50 {offsets = [34, 0], sizes = [1, 64], strides = [1, 1]} : vector<65x64xf32> to vector<1x64xf32>
    %92 = vector.broadcast %91 : vector<1x64xf32> to vector<16x64xf32>
    %93 = arith.addf %90, %92 : vector<16x64xf32>
    %cst_30 = arith.constant 0.000000e+00 : f32
    %94 = vector.broadcast %cst_30 : f32 to vector<16x64xf32>
    %95 = arith.maximumf %93, %94 : vector<16x64xf32>
    %96 = vector.extract_strided_slice %50 {offsets = [50, 0], sizes = [1, 64], strides = [1, 1]} : vector<65x64xf32> to vector<1x64xf32>
    %97 = vector.broadcast %96 : vector<1x64xf32> to vector<16x64xf32>
    %98 = arith.mulf %95, %97 : vector<16x64xf32>
    %99 = arith.addf %83, %98 : vector<16x64xf32>
    %100 = vector.extract_strided_slice %50 {offsets = [3, 0], sizes = [1, 64], strides = [1, 1]} : vector<65x64xf32> to vector<1x64xf32>
    %101 = vector.broadcast %100 : vector<1x64xf32> to vector<16x64xf32>
    %102 = arith.mulf %48, %101 : vector<16x64xf32>
    %103 = vector.extract_strided_slice %50 {offsets = [19, 0], sizes = [1, 64], strides = [1, 1]} : vector<65x64xf32> to vector<1x64xf32>
    %104 = vector.broadcast %103 : vector<1x64xf32> to vector<16x64xf32>
    %105 = arith.mulf %49, %104 : vector<16x64xf32>
    %106 = arith.addf %102, %105 : vector<16x64xf32>
    %107 = vector.extract_strided_slice %50 {offsets = [35, 0], sizes = [1, 64], strides = [1, 1]} : vector<65x64xf32> to vector<1x64xf32>
    %108 = vector.broadcast %107 : vector<1x64xf32> to vector<16x64xf32>
    %109 = arith.addf %106, %108 : vector<16x64xf32>
    %cst_31 = arith.constant 0.000000e+00 : f32
    %110 = vector.broadcast %cst_31 : f32 to vector<16x64xf32>
    %111 = arith.maximumf %109, %110 : vector<16x64xf32>
    %112 = vector.extract_strided_slice %50 {offsets = [51, 0], sizes = [1, 64], strides = [1, 1]} : vector<65x64xf32> to vector<1x64xf32>
    %113 = vector.broadcast %112 : vector<1x64xf32> to vector<16x64xf32>
    %114 = arith.mulf %111, %113 : vector<16x64xf32>
    %115 = arith.addf %99, %114 : vector<16x64xf32>
    %116 = vector.extract_strided_slice %50 {offsets = [4, 0], sizes = [1, 64], strides = [1, 1]} : vector<65x64xf32> to vector<1x64xf32>
    %117 = vector.broadcast %116 : vector<1x64xf32> to vector<16x64xf32>
    %118 = arith.mulf %48, %117 : vector<16x64xf32>
    %119 = vector.extract_strided_slice %50 {offsets = [20, 0], sizes = [1, 64], strides = [1, 1]} : vector<65x64xf32> to vector<1x64xf32>
    %120 = vector.broadcast %119 : vector<1x64xf32> to vector<16x64xf32>
    %121 = arith.mulf %49, %120 : vector<16x64xf32>
    %122 = arith.addf %118, %121 : vector<16x64xf32>
    %123 = vector.extract_strided_slice %50 {offsets = [36, 0], sizes = [1, 64], strides = [1, 1]} : vector<65x64xf32> to vector<1x64xf32>
    %124 = vector.broadcast %123 : vector<1x64xf32> to vector<16x64xf32>
    %125 = arith.addf %122, %124 : vector<16x64xf32>
    %cst_32 = arith.constant 0.000000e+00 : f32
    %126 = vector.broadcast %cst_32 : f32 to vector<16x64xf32>
    %127 = arith.maximumf %125, %126 : vector<16x64xf32>
    %128 = vector.extract_strided_slice %50 {offsets = [52, 0], sizes = [1, 64], strides = [1, 1]} : vector<65x64xf32> to vector<1x64xf32>
    %129 = vector.broadcast %128 : vector<1x64xf32> to vector<16x64xf32>
    %130 = arith.mulf %127, %129 : vector<16x64xf32>
    %131 = arith.addf %115, %130 : vector<16x64xf32>
    %132 = vector.extract_strided_slice %50 {offsets = [5, 0], sizes = [1, 64], strides = [1, 1]} : vector<65x64xf32> to vector<1x64xf32>
    %133 = vector.broadcast %132 : vector<1x64xf32> to vector<16x64xf32>
    %134 = arith.mulf %48, %133 : vector<16x64xf32>
    %135 = vector.extract_strided_slice %50 {offsets = [21, 0], sizes = [1, 64], strides = [1, 1]} : vector<65x64xf32> to vector<1x64xf32>
    %136 = vector.broadcast %135 : vector<1x64xf32> to vector<16x64xf32>
    %137 = arith.mulf %49, %136 : vector<16x64xf32>
    %138 = arith.addf %134, %137 : vector<16x64xf32>
    %139 = vector.extract_strided_slice %50 {offsets = [37, 0], sizes = [1, 64], strides = [1, 1]} : vector<65x64xf32> to vector<1x64xf32>
    %140 = vector.broadcast %139 : vector<1x64xf32> to vector<16x64xf32>
    %141 = arith.addf %138, %140 : vector<16x64xf32>
    %cst_33 = arith.constant 0.000000e+00 : f32
    %142 = vector.broadcast %cst_33 : f32 to vector<16x64xf32>
    %143 = arith.maximumf %141, %142 : vector<16x64xf32>
    %144 = vector.extract_strided_slice %50 {offsets = [53, 0], sizes = [1, 64], strides = [1, 1]} : vector<65x64xf32> to vector<1x64xf32>
    %145 = vector.broadcast %144 : vector<1x64xf32> to vector<16x64xf32>
    %146 = arith.mulf %143, %145 : vector<16x64xf32>
    %147 = arith.addf %131, %146 : vector<16x64xf32>
    %148 = vector.extract_strided_slice %50 {offsets = [6, 0], sizes = [1, 64], strides = [1, 1]} : vector<65x64xf32> to vector<1x64xf32>
    %149 = vector.broadcast %148 : vector<1x64xf32> to vector<16x64xf32>
    %150 = arith.mulf %48, %149 : vector<16x64xf32>
    %151 = vector.extract_strided_slice %50 {offsets = [22, 0], sizes = [1, 64], strides = [1, 1]} : vector<65x64xf32> to vector<1x64xf32>
    %152 = vector.broadcast %151 : vector<1x64xf32> to vector<16x64xf32>
    %153 = arith.mulf %49, %152 : vector<16x64xf32>
    %154 = arith.addf %150, %153 : vector<16x64xf32>
    %155 = vector.extract_strided_slice %50 {offsets = [38, 0], sizes = [1, 64], strides = [1, 1]} : vector<65x64xf32> to vector<1x64xf32>
    %156 = vector.broadcast %155 : vector<1x64xf32> to vector<16x64xf32>
    %157 = arith.addf %154, %156 : vector<16x64xf32>
    %cst_34 = arith.constant 0.000000e+00 : f32
    %158 = vector.broadcast %cst_34 : f32 to vector<16x64xf32>
    %159 = arith.maximumf %157, %158 : vector<16x64xf32>
    %160 = vector.extract_strided_slice %50 {offsets = [54, 0], sizes = [1, 64], strides = [1, 1]} : vector<65x64xf32> to vector<1x64xf32>
    %161 = vector.broadcast %160 : vector<1x64xf32> to vector<16x64xf32>
    %162 = arith.mulf %159, %161 : vector<16x64xf32>
    %163 = arith.addf %147, %162 : vector<16x64xf32>
    %164 = vector.extract_strided_slice %50 {offsets = [7, 0], sizes = [1, 64], strides = [1, 1]} : vector<65x64xf32> to vector<1x64xf32>
    %165 = vector.broadcast %164 : vector<1x64xf32> to vector<16x64xf32>
    %166 = arith.mulf %48, %165 : vector<16x64xf32>
    %167 = vector.extract_strided_slice %50 {offsets = [23, 0], sizes = [1, 64], strides = [1, 1]} : vector<65x64xf32> to vector<1x64xf32>
    %168 = vector.broadcast %167 : vector<1x64xf32> to vector<16x64xf32>
    %169 = arith.mulf %49, %168 : vector<16x64xf32>
    %170 = arith.addf %166, %169 : vector<16x64xf32>
    %171 = vector.extract_strided_slice %50 {offsets = [39, 0], sizes = [1, 64], strides = [1, 1]} : vector<65x64xf32> to vector<1x64xf32>
    %172 = vector.broadcast %171 : vector<1x64xf32> to vector<16x64xf32>
    %173 = arith.addf %170, %172 : vector<16x64xf32>
    %cst_35 = arith.constant 0.000000e+00 : f32
    %174 = vector.broadcast %cst_35 : f32 to vector<16x64xf32>
    %175 = arith.maximumf %173, %174 : vector<16x64xf32>
    %176 = vector.extract_strided_slice %50 {offsets = [55, 0], sizes = [1, 64], strides = [1, 1]} : vector<65x64xf32> to vector<1x64xf32>
    %177 = vector.broadcast %176 : vector<1x64xf32> to vector<16x64xf32>
    %178 = arith.mulf %175, %177 : vector<16x64xf32>
    %179 = arith.addf %163, %178 : vector<16x64xf32>
    %180 = vector.extract_strided_slice %50 {offsets = [8, 0], sizes = [1, 64], strides = [1, 1]} : vector<65x64xf32> to vector<1x64xf32>
    %181 = vector.broadcast %180 : vector<1x64xf32> to vector<16x64xf32>
    %182 = arith.mulf %48, %181 : vector<16x64xf32>
    %183 = vector.extract_strided_slice %50 {offsets = [24, 0], sizes = [1, 64], strides = [1, 1]} : vector<65x64xf32> to vector<1x64xf32>
    %184 = vector.broadcast %183 : vector<1x64xf32> to vector<16x64xf32>
    %185 = arith.mulf %49, %184 : vector<16x64xf32>
    %186 = arith.addf %182, %185 : vector<16x64xf32>
    %187 = vector.extract_strided_slice %50 {offsets = [40, 0], sizes = [1, 64], strides = [1, 1]} : vector<65x64xf32> to vector<1x64xf32>
    %188 = vector.broadcast %187 : vector<1x64xf32> to vector<16x64xf32>
    %189 = arith.addf %186, %188 : vector<16x64xf32>
    %cst_36 = arith.constant 0.000000e+00 : f32
    %190 = vector.broadcast %cst_36 : f32 to vector<16x64xf32>
    %191 = arith.maximumf %189, %190 : vector<16x64xf32>
    %192 = vector.extract_strided_slice %50 {offsets = [56, 0], sizes = [1, 64], strides = [1, 1]} : vector<65x64xf32> to vector<1x64xf32>
    %193 = vector.broadcast %192 : vector<1x64xf32> to vector<16x64xf32>
    %194 = arith.mulf %191, %193 : vector<16x64xf32>
    %195 = arith.addf %179, %194 : vector<16x64xf32>
    %196 = vector.extract_strided_slice %50 {offsets = [9, 0], sizes = [1, 64], strides = [1, 1]} : vector<65x64xf32> to vector<1x64xf32>
    %197 = vector.broadcast %196 : vector<1x64xf32> to vector<16x64xf32>
    %198 = arith.mulf %48, %197 : vector<16x64xf32>
    %199 = vector.extract_strided_slice %50 {offsets = [25, 0], sizes = [1, 64], strides = [1, 1]} : vector<65x64xf32> to vector<1x64xf32>
    %200 = vector.broadcast %199 : vector<1x64xf32> to vector<16x64xf32>
    %201 = arith.mulf %49, %200 : vector<16x64xf32>
    %202 = arith.addf %198, %201 : vector<16x64xf32>
    %203 = vector.extract_strided_slice %50 {offsets = [41, 0], sizes = [1, 64], strides = [1, 1]} : vector<65x64xf32> to vector<1x64xf32>
    %204 = vector.broadcast %203 : vector<1x64xf32> to vector<16x64xf32>
    %205 = arith.addf %202, %204 : vector<16x64xf32>
    %cst_37 = arith.constant 0.000000e+00 : f32
    %206 = vector.broadcast %cst_37 : f32 to vector<16x64xf32>
    %207 = arith.maximumf %205, %206 : vector<16x64xf32>
    %208 = vector.extract_strided_slice %50 {offsets = [57, 0], sizes = [1, 64], strides = [1, 1]} : vector<65x64xf32> to vector<1x64xf32>
    %209 = vector.broadcast %208 : vector<1x64xf32> to vector<16x64xf32>
    %210 = arith.mulf %207, %209 : vector<16x64xf32>
    %211 = arith.addf %195, %210 : vector<16x64xf32>
    %212 = vector.extract_strided_slice %50 {offsets = [10, 0], sizes = [1, 64], strides = [1, 1]} : vector<65x64xf32> to vector<1x64xf32>
    %213 = vector.broadcast %212 : vector<1x64xf32> to vector<16x64xf32>
    %214 = arith.mulf %48, %213 : vector<16x64xf32>
    %215 = vector.extract_strided_slice %50 {offsets = [26, 0], sizes = [1, 64], strides = [1, 1]} : vector<65x64xf32> to vector<1x64xf32>
    %216 = vector.broadcast %215 : vector<1x64xf32> to vector<16x64xf32>
    %217 = arith.mulf %49, %216 : vector<16x64xf32>
    %218 = arith.addf %214, %217 : vector<16x64xf32>
    %219 = vector.extract_strided_slice %50 {offsets = [42, 0], sizes = [1, 64], strides = [1, 1]} : vector<65x64xf32> to vector<1x64xf32>
    %220 = vector.broadcast %219 : vector<1x64xf32> to vector<16x64xf32>
    %221 = arith.addf %218, %220 : vector<16x64xf32>
    %cst_38 = arith.constant 0.000000e+00 : f32
    %222 = vector.broadcast %cst_38 : f32 to vector<16x64xf32>
    %223 = arith.maximumf %221, %222 : vector<16x64xf32>
    %224 = vector.extract_strided_slice %50 {offsets = [58, 0], sizes = [1, 64], strides = [1, 1]} : vector<65x64xf32> to vector<1x64xf32>
    %225 = vector.broadcast %224 : vector<1x64xf32> to vector<16x64xf32>
    %226 = arith.mulf %223, %225 : vector<16x64xf32>
    %227 = arith.addf %211, %226 : vector<16x64xf32>
    %228 = vector.extract_strided_slice %50 {offsets = [11, 0], sizes = [1, 64], strides = [1, 1]} : vector<65x64xf32> to vector<1x64xf32>
    %229 = vector.broadcast %228 : vector<1x64xf32> to vector<16x64xf32>
    %230 = arith.mulf %48, %229 : vector<16x64xf32>
    %231 = vector.extract_strided_slice %50 {offsets = [27, 0], sizes = [1, 64], strides = [1, 1]} : vector<65x64xf32> to vector<1x64xf32>
    %232 = vector.broadcast %231 : vector<1x64xf32> to vector<16x64xf32>
    %233 = arith.mulf %49, %232 : vector<16x64xf32>
    %234 = arith.addf %230, %233 : vector<16x64xf32>
    %235 = vector.extract_strided_slice %50 {offsets = [43, 0], sizes = [1, 64], strides = [1, 1]} : vector<65x64xf32> to vector<1x64xf32>
    %236 = vector.broadcast %235 : vector<1x64xf32> to vector<16x64xf32>
    %237 = arith.addf %234, %236 : vector<16x64xf32>
    %cst_39 = arith.constant 0.000000e+00 : f32
    %238 = vector.broadcast %cst_39 : f32 to vector<16x64xf32>
    %239 = arith.maximumf %237, %238 : vector<16x64xf32>
    %240 = vector.extract_strided_slice %50 {offsets = [59, 0], sizes = [1, 64], strides = [1, 1]} : vector<65x64xf32> to vector<1x64xf32>
    %241 = vector.broadcast %240 : vector<1x64xf32> to vector<16x64xf32>
    %242 = arith.mulf %239, %241 : vector<16x64xf32>
    %243 = arith.addf %227, %242 : vector<16x64xf32>
    %244 = vector.extract_strided_slice %50 {offsets = [12, 0], sizes = [1, 64], strides = [1, 1]} : vector<65x64xf32> to vector<1x64xf32>
    %245 = vector.broadcast %244 : vector<1x64xf32> to vector<16x64xf32>
    %246 = arith.mulf %48, %245 : vector<16x64xf32>
    %247 = vector.extract_strided_slice %50 {offsets = [28, 0], sizes = [1, 64], strides = [1, 1]} : vector<65x64xf32> to vector<1x64xf32>
    %248 = vector.broadcast %247 : vector<1x64xf32> to vector<16x64xf32>
    %249 = arith.mulf %49, %248 : vector<16x64xf32>
    %250 = arith.addf %246, %249 : vector<16x64xf32>
    %251 = vector.extract_strided_slice %50 {offsets = [44, 0], sizes = [1, 64], strides = [1, 1]} : vector<65x64xf32> to vector<1x64xf32>
    %252 = vector.broadcast %251 : vector<1x64xf32> to vector<16x64xf32>
    %253 = arith.addf %250, %252 : vector<16x64xf32>
    %cst_40 = arith.constant 0.000000e+00 : f32
    %254 = vector.broadcast %cst_40 : f32 to vector<16x64xf32>
    %255 = arith.maximumf %253, %254 : vector<16x64xf32>
    %256 = vector.extract_strided_slice %50 {offsets = [60, 0], sizes = [1, 64], strides = [1, 1]} : vector<65x64xf32> to vector<1x64xf32>
    %257 = vector.broadcast %256 : vector<1x64xf32> to vector<16x64xf32>
    %258 = arith.mulf %255, %257 : vector<16x64xf32>
    %259 = arith.addf %243, %258 : vector<16x64xf32>
    %260 = vector.extract_strided_slice %50 {offsets = [13, 0], sizes = [1, 64], strides = [1, 1]} : vector<65x64xf32> to vector<1x64xf32>
    %261 = vector.broadcast %260 : vector<1x64xf32> to vector<16x64xf32>
    %262 = arith.mulf %48, %261 : vector<16x64xf32>
    %263 = vector.extract_strided_slice %50 {offsets = [29, 0], sizes = [1, 64], strides = [1, 1]} : vector<65x64xf32> to vector<1x64xf32>
    %264 = vector.broadcast %263 : vector<1x64xf32> to vector<16x64xf32>
    %265 = arith.mulf %49, %264 : vector<16x64xf32>
    %266 = arith.addf %262, %265 : vector<16x64xf32>
    %267 = vector.extract_strided_slice %50 {offsets = [45, 0], sizes = [1, 64], strides = [1, 1]} : vector<65x64xf32> to vector<1x64xf32>
    %268 = vector.broadcast %267 : vector<1x64xf32> to vector<16x64xf32>
    %269 = arith.addf %266, %268 : vector<16x64xf32>
    %cst_41 = arith.constant 0.000000e+00 : f32
    %270 = vector.broadcast %cst_41 : f32 to vector<16x64xf32>
    %271 = arith.maximumf %269, %270 : vector<16x64xf32>
    %272 = vector.extract_strided_slice %50 {offsets = [61, 0], sizes = [1, 64], strides = [1, 1]} : vector<65x64xf32> to vector<1x64xf32>
    %273 = vector.broadcast %272 : vector<1x64xf32> to vector<16x64xf32>
    %274 = arith.mulf %271, %273 : vector<16x64xf32>
    %275 = arith.addf %259, %274 : vector<16x64xf32>
    %276 = vector.extract_strided_slice %50 {offsets = [14, 0], sizes = [1, 64], strides = [1, 1]} : vector<65x64xf32> to vector<1x64xf32>
    %277 = vector.broadcast %276 : vector<1x64xf32> to vector<16x64xf32>
    %278 = arith.mulf %48, %277 : vector<16x64xf32>
    %279 = vector.extract_strided_slice %50 {offsets = [30, 0], sizes = [1, 64], strides = [1, 1]} : vector<65x64xf32> to vector<1x64xf32>
    %280 = vector.broadcast %279 : vector<1x64xf32> to vector<16x64xf32>
    %281 = arith.mulf %49, %280 : vector<16x64xf32>
    %282 = arith.addf %278, %281 : vector<16x64xf32>
    %283 = vector.extract_strided_slice %50 {offsets = [46, 0], sizes = [1, 64], strides = [1, 1]} : vector<65x64xf32> to vector<1x64xf32>
    %284 = vector.broadcast %283 : vector<1x64xf32> to vector<16x64xf32>
    %285 = arith.addf %282, %284 : vector<16x64xf32>
    %cst_42 = arith.constant 0.000000e+00 : f32
    %286 = vector.broadcast %cst_42 : f32 to vector<16x64xf32>
    %287 = arith.maximumf %285, %286 : vector<16x64xf32>
    %288 = vector.extract_strided_slice %50 {offsets = [62, 0], sizes = [1, 64], strides = [1, 1]} : vector<65x64xf32> to vector<1x64xf32>
    %289 = vector.broadcast %288 : vector<1x64xf32> to vector<16x64xf32>
    %290 = arith.mulf %287, %289 : vector<16x64xf32>
    %291 = arith.addf %275, %290 : vector<16x64xf32>
    %292 = vector.extract_strided_slice %50 {offsets = [15, 0], sizes = [1, 64], strides = [1, 1]} : vector<65x64xf32> to vector<1x64xf32>
    %293 = vector.broadcast %292 : vector<1x64xf32> to vector<16x64xf32>
    %294 = arith.mulf %48, %293 : vector<16x64xf32>
    %295 = vector.extract_strided_slice %50 {offsets = [31, 0], sizes = [1, 64], strides = [1, 1]} : vector<65x64xf32> to vector<1x64xf32>
    %296 = vector.broadcast %295 : vector<1x64xf32> to vector<16x64xf32>
    %297 = arith.mulf %49, %296 : vector<16x64xf32>
    %298 = arith.addf %294, %297 : vector<16x64xf32>
    %299 = vector.extract_strided_slice %50 {offsets = [47, 0], sizes = [1, 64], strides = [1, 1]} : vector<65x64xf32> to vector<1x64xf32>
    %300 = vector.broadcast %299 : vector<1x64xf32> to vector<16x64xf32>
    %301 = arith.addf %298, %300 : vector<16x64xf32>
    %cst_43 = arith.constant 0.000000e+00 : f32
    %302 = vector.broadcast %cst_43 : f32 to vector<16x64xf32>
    %303 = arith.maximumf %301, %302 : vector<16x64xf32>
    %304 = vector.extract_strided_slice %50 {offsets = [63, 0], sizes = [1, 64], strides = [1, 1]} : vector<65x64xf32> to vector<1x64xf32>
    %305 = vector.broadcast %304 : vector<1x64xf32> to vector<16x64xf32>
    %306 = arith.mulf %303, %305 : vector<16x64xf32>
    %307 = arith.addf %291, %306 : vector<16x64xf32>
    %308 = vector.extract_strided_slice %50 {offsets = [64, 0], sizes = [1, 64], strides = [1, 1]} : vector<65x64xf32> to vector<1x64xf32>
    %309 = vector.broadcast %308 : vector<1x64xf32> to vector<16x64xf32>
    %310 = arith.addf %307, %309 : vector<16x64xf32>
    %311 = vector.extract_strided_slice %310 {offsets = [0, 0], sizes = [16, 8], strides = [1, 1]} : vector<16x64xf32> to vector<16x8xf32>
    %cst_44 = arith.constant dense<0xFF800000> : vector<16xf32>
    %312 = vector.multi_reduction <maximumf>, %311, %cst_44 [1] : vector<16x8xf32> to vector<16xf32>
    %313 = vector.shape_cast %312 : vector<16xf32> to vector<16x1xf32>
    %314 = vector.broadcast %313 : vector<16x1xf32> to vector<16x8xf32>
    %315 = arith.subf %311, %314 : vector<16x8xf32>
    %316 = math.exp %315 : vector<16x8xf32>
    %cst_45 = arith.constant dense<0.000000e+00> : vector<16xf32>
    %317 = vector.multi_reduction <add>, %316, %cst_45 [1] : vector<16x8xf32> to vector<16xf32>
    %318 = vector.shape_cast %317 : vector<16xf32> to vector<16x1xf32>
    %319 = tpu.reciprocal %318 {approx = true} : vector<16x1xf32> -> vector<16x1xf32>
    %320 = vector.broadcast %319 : vector<16x1xf32> to vector<16x8xf32>
    %321 = arith.mulf %316, %320 : vector<16x8xf32>
    %322 = arith.truncf %321 : vector<16x8xf32> to vector<16x8xbf16>
    %323 = vector.extract_strided_slice %23 {offsets = [0, 0], sizes = [8, 16], strides = [1, 1]} : vector<8x128xbf16> to vector<8x16xbf16>
    %cst_46 = arith.constant dense<0.000000e+00> : vector<16x16xf32>
    %324 = tpu.matmul %322, %323, %cst_46 {dimension_numbers = #tpu.dot_dimension_numbers<[1], [0], [0], [1], [0, 0, 1, 1], [], []>} : vector<16x8xbf16>, vector<8x16xbf16>, vector<16x16xf32> -> vector<16x16xf32>
    %325 = vector.extract_strided_slice %310 {offsets = [0, 8], sizes = [16, 8], strides = [1, 1]} : vector<16x64xf32> to vector<16x8xf32>
    %cst_47 = arith.constant dense<0xFF800000> : vector<16xf32>
    %326 = vector.multi_reduction <maximumf>, %325, %cst_47 [1] : vector<16x8xf32> to vector<16xf32>
    %327 = vector.shape_cast %326 : vector<16xf32> to vector<16x1xf32>
    %328 = vector.broadcast %327 : vector<16x1xf32> to vector<16x8xf32>
    %329 = arith.subf %325, %328 : vector<16x8xf32>
    %330 = math.exp %329 : vector<16x8xf32>
    %cst_48 = arith.constant dense<0.000000e+00> : vector<16xf32>
    %331 = vector.multi_reduction <add>, %330, %cst_48 [1] : vector<16x8xf32> to vector<16xf32>
    %332 = vector.shape_cast %331 : vector<16xf32> to vector<16x1xf32>
    %333 = tpu.reciprocal %332 {approx = true} : vector<16x1xf32> -> vector<16x1xf32>
    %334 = vector.broadcast %333 : vector<16x1xf32> to vector<16x8xf32>
    %335 = arith.mulf %330, %334 : vector<16x8xf32>
    %336 = arith.truncf %335 : vector<16x8xf32> to vector<16x8xbf16>
    %337 = vector.extract_strided_slice %23 {offsets = [0, 16], sizes = [8, 16], strides = [1, 1]} : vector<8x128xbf16> to vector<8x16xbf16>
    %cst_49 = arith.constant dense<0.000000e+00> : vector<16x16xf32>
    %338 = tpu.matmul %336, %337, %cst_49 {dimension_numbers = #tpu.dot_dimension_numbers<[1], [0], [0], [1], [0, 0, 1, 1], [], []>} : vector<16x8xbf16>, vector<8x16xbf16>, vector<16x16xf32> -> vector<16x16xf32>
    %339 = vector.extract_strided_slice %310 {offsets = [0, 16], sizes = [16, 8], strides = [1, 1]} : vector<16x64xf32> to vector<16x8xf32>
    %cst_50 = arith.constant dense<0xFF800000> : vector<16xf32>
    %340 = vector.multi_reduction <maximumf>, %339, %cst_50 [1] : vector<16x8xf32> to vector<16xf32>
    %341 = vector.shape_cast %340 : vector<16xf32> to vector<16x1xf32>
    %342 = vector.broadcast %341 : vector<16x1xf32> to vector<16x8xf32>
    %343 = arith.subf %339, %342 : vector<16x8xf32>
    %344 = math.exp %343 : vector<16x8xf32>
    %cst_51 = arith.constant dense<0.000000e+00> : vector<16xf32>
    %345 = vector.multi_reduction <add>, %344, %cst_51 [1] : vector<16x8xf32> to vector<16xf32>
    %346 = vector.shape_cast %345 : vector<16xf32> to vector<16x1xf32>
    %347 = tpu.reciprocal %346 {approx = true} : vector<16x1xf32> -> vector<16x1xf32>
    %348 = vector.broadcast %347 : vector<16x1xf32> to vector<16x8xf32>
    %349 = arith.mulf %344, %348 : vector<16x8xf32>
    %350 = arith.truncf %349 : vector<16x8xf32> to vector<16x8xbf16>
    %351 = vector.extract_strided_slice %23 {offsets = [0, 32], sizes = [8, 16], strides = [1, 1]} : vector<8x128xbf16> to vector<8x16xbf16>
    %cst_52 = arith.constant dense<0.000000e+00> : vector<16x16xf32>
    %352 = tpu.matmul %350, %351, %cst_52 {dimension_numbers = #tpu.dot_dimension_numbers<[1], [0], [0], [1], [0, 0, 1, 1], [], []>} : vector<16x8xbf16>, vector<8x16xbf16>, vector<16x16xf32> -> vector<16x16xf32>
    %353 = vector.extract_strided_slice %310 {offsets = [0, 24], sizes = [16, 8], strides = [1, 1]} : vector<16x64xf32> to vector<16x8xf32>
    %cst_53 = arith.constant dense<0xFF800000> : vector<16xf32>
    %354 = vector.multi_reduction <maximumf>, %353, %cst_53 [1] : vector<16x8xf32> to vector<16xf32>
    %355 = vector.shape_cast %354 : vector<16xf32> to vector<16x1xf32>
    %356 = vector.broadcast %355 : vector<16x1xf32> to vector<16x8xf32>
    %357 = arith.subf %353, %356 : vector<16x8xf32>
    %358 = math.exp %357 : vector<16x8xf32>
    %cst_54 = arith.constant dense<0.000000e+00> : vector<16xf32>
    %359 = vector.multi_reduction <add>, %358, %cst_54 [1] : vector<16x8xf32> to vector<16xf32>
    %360 = vector.shape_cast %359 : vector<16xf32> to vector<16x1xf32>
    %361 = tpu.reciprocal %360 {approx = true} : vector<16x1xf32> -> vector<16x1xf32>
    %362 = vector.broadcast %361 : vector<16x1xf32> to vector<16x8xf32>
    %363 = arith.mulf %358, %362 : vector<16x8xf32>
    %364 = arith.truncf %363 : vector<16x8xf32> to vector<16x8xbf16>
    %365 = vector.extract_strided_slice %23 {offsets = [0, 48], sizes = [8, 16], strides = [1, 1]} : vector<8x128xbf16> to vector<8x16xbf16>
    %cst_55 = arith.constant dense<0.000000e+00> : vector<16x16xf32>
    %366 = tpu.matmul %364, %365, %cst_55 {dimension_numbers = #tpu.dot_dimension_numbers<[1], [0], [0], [1], [0, 0, 1, 1], [], []>} : vector<16x8xbf16>, vector<8x16xbf16>, vector<16x16xf32> -> vector<16x16xf32>
    %367 = vector.extract_strided_slice %310 {offsets = [0, 32], sizes = [16, 8], strides = [1, 1]} : vector<16x64xf32> to vector<16x8xf32>
    %cst_56 = arith.constant dense<0xFF800000> : vector<16xf32>
    %368 = vector.multi_reduction <maximumf>, %367, %cst_56 [1] : vector<16x8xf32> to vector<16xf32>
    %369 = vector.shape_cast %368 : vector<16xf32> to vector<16x1xf32>
    %370 = vector.broadcast %369 : vector<16x1xf32> to vector<16x8xf32>
    %371 = arith.subf %367, %370 : vector<16x8xf32>
    %372 = math.exp %371 : vector<16x8xf32>
    %cst_57 = arith.constant dense<0.000000e+00> : vector<16xf32>
    %373 = vector.multi_reduction <add>, %372, %cst_57 [1] : vector<16x8xf32> to vector<16xf32>
    %374 = vector.shape_cast %373 : vector<16xf32> to vector<16x1xf32>
    %375 = tpu.reciprocal %374 {approx = true} : vector<16x1xf32> -> vector<16x1xf32>
    %376 = vector.broadcast %375 : vector<16x1xf32> to vector<16x8xf32>
    %377 = arith.mulf %372, %376 : vector<16x8xf32>
    %378 = arith.truncf %377 : vector<16x8xf32> to vector<16x8xbf16>
    %379 = vector.extract_strided_slice %23 {offsets = [0, 64], sizes = [8, 16], strides = [1, 1]} : vector<8x128xbf16> to vector<8x16xbf16>
    %cst_58 = arith.constant dense<0.000000e+00> : vector<16x16xf32>
    %380 = tpu.matmul %378, %379, %cst_58 {dimension_numbers = #tpu.dot_dimension_numbers<[1], [0], [0], [1], [0, 0, 1, 1], [], []>} : vector<16x8xbf16>, vector<8x16xbf16>, vector<16x16xf32> -> vector<16x16xf32>
    %381 = vector.extract_strided_slice %310 {offsets = [0, 40], sizes = [16, 8], strides = [1, 1]} : vector<16x64xf32> to vector<16x8xf32>
    %cst_59 = arith.constant dense<0xFF800000> : vector<16xf32>
    %382 = vector.multi_reduction <maximumf>, %381, %cst_59 [1] : vector<16x8xf32> to vector<16xf32>
    %383 = vector.shape_cast %382 : vector<16xf32> to vector<16x1xf32>
    %384 = vector.broadcast %383 : vector<16x1xf32> to vector<16x8xf32>
    %385 = arith.subf %381, %384 : vector<16x8xf32>
    %386 = math.exp %385 : vector<16x8xf32>
    %cst_60 = arith.constant dense<0.000000e+00> : vector<16xf32>
    %387 = vector.multi_reduction <add>, %386, %cst_60 [1] : vector<16x8xf32> to vector<16xf32>
    %388 = vector.shape_cast %387 : vector<16xf32> to vector<16x1xf32>
    %389 = tpu.reciprocal %388 {approx = true} : vector<16x1xf32> -> vector<16x1xf32>
    %390 = vector.broadcast %389 : vector<16x1xf32> to vector<16x8xf32>
    %391 = arith.mulf %386, %390 : vector<16x8xf32>
    %392 = arith.truncf %391 : vector<16x8xf32> to vector<16x8xbf16>
    %393 = vector.extract_strided_slice %23 {offsets = [0, 80], sizes = [8, 16], strides = [1, 1]} : vector<8x128xbf16> to vector<8x16xbf16>
    %cst_61 = arith.constant dense<0.000000e+00> : vector<16x16xf32>
    %394 = tpu.matmul %392, %393, %cst_61 {dimension_numbers = #tpu.dot_dimension_numbers<[1], [0], [0], [1], [0, 0, 1, 1], [], []>} : vector<16x8xbf16>, vector<8x16xbf16>, vector<16x16xf32> -> vector<16x16xf32>
    %395 = vector.extract_strided_slice %310 {offsets = [0, 48], sizes = [16, 8], strides = [1, 1]} : vector<16x64xf32> to vector<16x8xf32>
    %cst_62 = arith.constant dense<0xFF800000> : vector<16xf32>
    %396 = vector.multi_reduction <maximumf>, %395, %cst_62 [1] : vector<16x8xf32> to vector<16xf32>
    %397 = vector.shape_cast %396 : vector<16xf32> to vector<16x1xf32>
    %398 = vector.broadcast %397 : vector<16x1xf32> to vector<16x8xf32>
    %399 = arith.subf %395, %398 : vector<16x8xf32>
    %400 = math.exp %399 : vector<16x8xf32>
    %cst_63 = arith.constant dense<0.000000e+00> : vector<16xf32>
    %401 = vector.multi_reduction <add>, %400, %cst_63 [1] : vector<16x8xf32> to vector<16xf32>
    %402 = vector.shape_cast %401 : vector<16xf32> to vector<16x1xf32>
    %403 = tpu.reciprocal %402 {approx = true} : vector<16x1xf32> -> vector<16x1xf32>
    %404 = vector.broadcast %403 : vector<16x1xf32> to vector<16x8xf32>
    %405 = arith.mulf %400, %404 : vector<16x8xf32>
    %406 = arith.truncf %405 : vector<16x8xf32> to vector<16x8xbf16>
    %407 = vector.extract_strided_slice %23 {offsets = [0, 96], sizes = [8, 16], strides = [1, 1]} : vector<8x128xbf16> to vector<8x16xbf16>
    %cst_64 = arith.constant dense<0.000000e+00> : vector<16x16xf32>
    %408 = tpu.matmul %406, %407, %cst_64 {dimension_numbers = #tpu.dot_dimension_numbers<[1], [0], [0], [1], [0, 0, 1, 1], [], []>} : vector<16x8xbf16>, vector<8x16xbf16>, vector<16x16xf32> -> vector<16x16xf32>
    %409 = vector.extract_strided_slice %310 {offsets = [0, 56], sizes = [16, 8], strides = [1, 1]} : vector<16x64xf32> to vector<16x8xf32>
    %cst_65 = arith.constant dense<0xFF800000> : vector<16xf32>
    %410 = vector.multi_reduction <maximumf>, %409, %cst_65 [1] : vector<16x8xf32> to vector<16xf32>
    %411 = vector.shape_cast %410 : vector<16xf32> to vector<16x1xf32>
    %412 = vector.broadcast %411 : vector<16x1xf32> to vector<16x8xf32>
    %413 = arith.subf %409, %412 : vector<16x8xf32>
    %414 = math.exp %413 : vector<16x8xf32>
    %cst_66 = arith.constant dense<0.000000e+00> : vector<16xf32>
    %415 = vector.multi_reduction <add>, %414, %cst_66 [1] : vector<16x8xf32> to vector<16xf32>
    %416 = vector.shape_cast %415 : vector<16xf32> to vector<16x1xf32>
    %417 = tpu.reciprocal %416 {approx = true} : vector<16x1xf32> -> vector<16x1xf32>
    %418 = vector.broadcast %417 : vector<16x1xf32> to vector<16x8xf32>
    %419 = arith.mulf %414, %418 : vector<16x8xf32>
    %420 = arith.truncf %419 : vector<16x8xf32> to vector<16x8xbf16>
    %421 = vector.extract_strided_slice %23 {offsets = [0, 112], sizes = [8, 16], strides = [1, 1]} : vector<8x128xbf16> to vector<8x16xbf16>
    %cst_67 = arith.constant dense<0.000000e+00> : vector<16x16xf32>
    %422 = tpu.matmul %420, %421, %cst_67 {dimension_numbers = #tpu.dot_dimension_numbers<[1], [0], [0], [1], [0, 0, 1, 1], [], []>} : vector<16x8xbf16>, vector<8x16xbf16>, vector<16x16xf32> -> vector<16x16xf32>
    %423 = tpu.concatenate %324, %338, %352, %366, %380, %394, %408, %422 in 1 : vector<16x16xf32>, vector<16x16xf32>, vector<16x16xf32>, vector<16x16xf32>, vector<16x16xf32>, vector<16x16xf32>, vector<16x16xf32>, vector<16x16xf32> -> vector<16x128xf32>
    %424 = arith.truncf %423 : vector<16x128xf32> to vector<16x128xbf16>
    %c0_68 = arith.constant 0 : index
    %c0_69 = arith.constant 0 : index
    %425 = vector.load %arg8[%c0_68, %c0_69] : memref<128x128xbf16, #tpu.memory_space<vmem>>, vector<128x128xbf16>
    %cst_70 = arith.constant dense<0.000000e+00> : vector<16x128xf32>
    %426 = tpu.matmul %424, %425, %cst_70 {dimension_numbers = #tpu.dot_dimension_numbers<[1], [0], [0], [1], [0, 0, 1, 1], [], []>} : vector<16x128xbf16>, vector<128x128xbf16>, vector<16x128xf32> -> vector<16x128xf32>
    %c0_71 = arith.constant 0 : index
    %c0_72 = arith.constant 0 : index
    %427 = vector.load %arg9[%c0_71, %c0_72] : memref<1x128xf32, #tpu.memory_space<vmem>>, vector<1x128xf32>
    %428 = vector.broadcast %427 : vector<1x128xf32> to vector<16x128xf32>
    %429 = arith.addf %426, %428 : vector<16x128xf32>
    %430 = arith.addf %429, %1 : vector<16x128xf32>
    %c0_73 = arith.constant 0 : index
    %c0_74 = arith.constant 0 : index
    %431 = vector.load %arg11[%c0_73, %c0_74] : memref<1x128xf32, #tpu.memory_space<vmem>>, vector<1x128xf32>
    %c0_75 = arith.constant 0 : index
    %c0_76 = arith.constant 0 : index
    %432 = vector.load %arg12[%c0_75, %c0_76] : memref<1x128xf32, #tpu.memory_space<vmem>>, vector<1x128xf32>
    %cst_77 = arith.constant dense<0.000000e+00> : vector<16xf32>
    %433 = vector.multi_reduction <add>, %430, %cst_77 [1] : vector<16x128xf32> to vector<16xf32>
    %434 = vector.shape_cast %433 : vector<16xf32> to vector<16x1xf32>
    %cst_78 = arith.constant 1.280000e+02 : f32
    %435 = vector.broadcast %cst_78 : f32 to vector<16x1xf32>
    %436 = arith.divf %434, %435 : vector<16x1xf32>
    %437 = vector.broadcast %436 : vector<16x1xf32> to vector<16x128xf32>
    %438 = arith.subf %430, %437 : vector<16x128xf32>
    %439 = arith.mulf %438, %438 : vector<16x128xf32>
    %cst_79 = arith.constant dense<0.000000e+00> : vector<16xf32>
    %440 = vector.multi_reduction <add>, %439, %cst_79 [1] : vector<16x128xf32> to vector<16xf32>
    %441 = vector.shape_cast %440 : vector<16xf32> to vector<16x1xf32>
    %cst_80 = arith.constant 1.280000e+02 : f32
    %442 = vector.broadcast %cst_80 : f32 to vector<16x1xf32>
    %443 = arith.divf %441, %442 : vector<16x1xf32>
    %444 = vector.broadcast %436 : vector<16x1xf32> to vector<16x128xf32>
    %445 = arith.subf %430, %444 : vector<16x128xf32>
    %cst_81 = arith.constant 9.99999974E-6 : f32
    %446 = vector.broadcast %cst_81 : f32 to vector<16x1xf32>
    %447 = arith.addf %443, %446 : vector<16x1xf32>
    %448 = math.rsqrt %447 : vector<16x1xf32>
    %449 = vector.broadcast %448 : vector<16x1xf32> to vector<16x128xf32>
    %450 = arith.mulf %445, %449 : vector<16x128xf32>
    %451 = vector.broadcast %431 : vector<1x128xf32> to vector<16x128xf32>
    %452 = arith.mulf %450, %451 : vector<16x128xf32>
    %453 = vector.broadcast %432 : vector<1x128xf32> to vector<16x128xf32>
    %454 = arith.addf %452, %453 : vector<16x128xf32>
    %455 = arith.truncf %454 : vector<16x128xf32> to vector<16x128xbf16>
    %c0_82 = arith.constant 0 : index
    %c0_83 = arith.constant 0 : index
    %456 = vector.load %arg13[%c0_82, %c0_83] : memref<128x384xbf16, #tpu.memory_space<vmem>>, vector<128x384xbf16>
    %cst_84 = arith.constant dense<0.000000e+00> : vector<16x384xf32>
    %457 = tpu.matmul %455, %456, %cst_84 {dimension_numbers = #tpu.dot_dimension_numbers<[1], [0], [0], [1], [0, 0, 1, 1], [], []>} : vector<16x128xbf16>, vector<128x384xbf16>, vector<16x384xf32> -> vector<16x384xf32>
    %c0_85 = arith.constant 0 : index
    %c0_86 = arith.constant 0 : index
    %458 = vector.load %arg14[%c0_85, %c0_86] : memref<1x384xf32, #tpu.memory_space<vmem>>, vector<1x384xf32>
    %459 = vector.broadcast %458 : vector<1x384xf32> to vector<16x384xf32>
    %460 = arith.addf %457, %459 : vector<16x384xf32>
    %461 = vector.extract_strided_slice %460 {offsets = [0, 0], sizes = [16, 128], strides = [1, 1]} : vector<16x384xf32> to vector<16x128xf32>
    %462 = arith.truncf %461 : vector<16x128xf32> to vector<16x128xbf16>
    %463 = vector.extract_strided_slice %460 {offsets = [0, 128], sizes = [16, 128], strides = [1, 1]} : vector<16x384xf32> to vector<16x128xf32>
    %464 = arith.truncf %463 : vector<16x128xf32> to vector<16x128xbf16>
    %465 = vector.extract_strided_slice %460 {offsets = [0, 256], sizes = [16, 128], strides = [1, 1]} : vector<16x384xf32> to vector<16x128xf32>
    %466 = arith.truncf %465 : vector<16x128xf32> to vector<16x128xbf16>
    %467 = vector.extract_strided_slice %462 {offsets = [0, 0], sizes = [16, 16], strides = [1, 1]} : vector<16x128xbf16> to vector<16x16xbf16>
    %468 = vector.extract_strided_slice %464 {offsets = [0, 0], sizes = [16, 16], strides = [1, 1]} : vector<16x128xbf16> to vector<16x16xbf16>
    %cst_87 = arith.constant dense<0.000000e+00> : vector<16x16xf32>
    %469 = tpu.matmul %467, %468, %cst_87 {dimension_numbers = #tpu.dot_dimension_numbers<[1], [1], [0], [0], [0, 0, 1, 0], [], []>} : vector<16x16xbf16>, vector<16x16xbf16>, vector<16x16xf32> -> vector<16x16xf32>
    %cst_88 = arith.constant dense<0xFF800000> : vector<16xf32>
    %470 = vector.multi_reduction <maximumf>, %469, %cst_88 [1] : vector<16x16xf32> to vector<16xf32>
    %471 = vector.shape_cast %470 : vector<16xf32> to vector<16x1xf32>
    %472 = vector.broadcast %471 : vector<16x1xf32> to vector<16x16xf32>
    %473 = arith.subf %469, %472 : vector<16x16xf32>
    %474 = math.exp %473 : vector<16x16xf32>
    %cst_89 = arith.constant dense<0.000000e+00> : vector<16xf32>
    %475 = vector.multi_reduction <add>, %474, %cst_89 [1] : vector<16x16xf32> to vector<16xf32>
    %476 = vector.shape_cast %475 : vector<16xf32> to vector<16x1xf32>
    %477 = tpu.reciprocal %476 {approx = true} : vector<16x1xf32> -> vector<16x1xf32>
    %478 = vector.broadcast %477 : vector<16x1xf32> to vector<16x16xf32>
    %479 = arith.mulf %474, %478 : vector<16x16xf32>
    %480 = arith.truncf %479 : vector<16x16xf32> to vector<16x16xbf16>
    %481 = vector.extract_strided_slice %466 {offsets = [0, 0], sizes = [16, 16], strides = [1, 1]} : vector<16x128xbf16> to vector<16x16xbf16>
    %cst_90 = arith.constant dense<0.000000e+00> : vector<16x16xf32>
    %482 = tpu.matmul %480, %481, %cst_90 {dimension_numbers = #tpu.dot_dimension_numbers<[1], [0], [0], [1], [0, 0, 1, 1], [], []>} : vector<16x16xbf16>, vector<16x16xbf16>, vector<16x16xf32> -> vector<16x16xf32>
    %483 = vector.extract_strided_slice %462 {offsets = [0, 16], sizes = [16, 16], strides = [1, 1]} : vector<16x128xbf16> to vector<16x16xbf16>
    %484 = vector.extract_strided_slice %464 {offsets = [0, 16], sizes = [16, 16], strides = [1, 1]} : vector<16x128xbf16> to vector<16x16xbf16>
    %cst_91 = arith.constant dense<0.000000e+00> : vector<16x16xf32>
    %485 = tpu.matmul %483, %484, %cst_91 {dimension_numbers = #tpu.dot_dimension_numbers<[1], [1], [0], [0], [0, 0, 1, 0], [], []>} : vector<16x16xbf16>, vector<16x16xbf16>, vector<16x16xf32> -> vector<16x16xf32>
    %cst_92 = arith.constant dense<0xFF800000> : vector<16xf32>
    %486 = vector.multi_reduction <maximumf>, %485, %cst_92 [1] : vector<16x16xf32> to vector<16xf32>
    %487 = vector.shape_cast %486 : vector<16xf32> to vector<16x1xf32>
    %488 = vector.broadcast %487 : vector<16x1xf32> to vector<16x16xf32>
    %489 = arith.subf %485, %488 : vector<16x16xf32>
    %490 = math.exp %489 : vector<16x16xf32>
    %cst_93 = arith.constant dense<0.000000e+00> : vector<16xf32>
    %491 = vector.multi_reduction <add>, %490, %cst_93 [1] : vector<16x16xf32> to vector<16xf32>
    %492 = vector.shape_cast %491 : vector<16xf32> to vector<16x1xf32>
    %493 = tpu.reciprocal %492 {approx = true} : vector<16x1xf32> -> vector<16x1xf32>
    %494 = vector.broadcast %493 : vector<16x1xf32> to vector<16x16xf32>
    %495 = arith.mulf %490, %494 : vector<16x16xf32>
    %496 = arith.truncf %495 : vector<16x16xf32> to vector<16x16xbf16>
    %497 = vector.extract_strided_slice %466 {offsets = [0, 16], sizes = [16, 16], strides = [1, 1]} : vector<16x128xbf16> to vector<16x16xbf16>
    %cst_94 = arith.constant dense<0.000000e+00> : vector<16x16xf32>
    %498 = tpu.matmul %496, %497, %cst_94 {dimension_numbers = #tpu.dot_dimension_numbers<[1], [0], [0], [1], [0, 0, 1, 1], [], []>} : vector<16x16xbf16>, vector<16x16xbf16>, vector<16x16xf32> -> vector<16x16xf32>
    %499 = vector.extract_strided_slice %462 {offsets = [0, 32], sizes = [16, 16], strides = [1, 1]} : vector<16x128xbf16> to vector<16x16xbf16>
    %500 = vector.extract_strided_slice %464 {offsets = [0, 32], sizes = [16, 16], strides = [1, 1]} : vector<16x128xbf16> to vector<16x16xbf16>
    %cst_95 = arith.constant dense<0.000000e+00> : vector<16x16xf32>
    %501 = tpu.matmul %499, %500, %cst_95 {dimension_numbers = #tpu.dot_dimension_numbers<[1], [1], [0], [0], [0, 0, 1, 0], [], []>} : vector<16x16xbf16>, vector<16x16xbf16>, vector<16x16xf32> -> vector<16x16xf32>
    %cst_96 = arith.constant dense<0xFF800000> : vector<16xf32>
    %502 = vector.multi_reduction <maximumf>, %501, %cst_96 [1] : vector<16x16xf32> to vector<16xf32>
    %503 = vector.shape_cast %502 : vector<16xf32> to vector<16x1xf32>
    %504 = vector.broadcast %503 : vector<16x1xf32> to vector<16x16xf32>
    %505 = arith.subf %501, %504 : vector<16x16xf32>
    %506 = math.exp %505 : vector<16x16xf32>
    %cst_97 = arith.constant dense<0.000000e+00> : vector<16xf32>
    %507 = vector.multi_reduction <add>, %506, %cst_97 [1] : vector<16x16xf32> to vector<16xf32>
    %508 = vector.shape_cast %507 : vector<16xf32> to vector<16x1xf32>
    %509 = tpu.reciprocal %508 {approx = true} : vector<16x1xf32> -> vector<16x1xf32>
    %510 = vector.broadcast %509 : vector<16x1xf32> to vector<16x16xf32>
    %511 = arith.mulf %506, %510 : vector<16x16xf32>
    %512 = arith.truncf %511 : vector<16x16xf32> to vector<16x16xbf16>
    %513 = vector.extract_strided_slice %466 {offsets = [0, 32], sizes = [16, 16], strides = [1, 1]} : vector<16x128xbf16> to vector<16x16xbf16>
    %cst_98 = arith.constant dense<0.000000e+00> : vector<16x16xf32>
    %514 = tpu.matmul %512, %513, %cst_98 {dimension_numbers = #tpu.dot_dimension_numbers<[1], [0], [0], [1], [0, 0, 1, 1], [], []>} : vector<16x16xbf16>, vector<16x16xbf16>, vector<16x16xf32> -> vector<16x16xf32>
    %515 = vector.extract_strided_slice %462 {offsets = [0, 48], sizes = [16, 16], strides = [1, 1]} : vector<16x128xbf16> to vector<16x16xbf16>
    %516 = vector.extract_strided_slice %464 {offsets = [0, 48], sizes = [16, 16], strides = [1, 1]} : vector<16x128xbf16> to vector<16x16xbf16>
    %cst_99 = arith.constant dense<0.000000e+00> : vector<16x16xf32>
    %517 = tpu.matmul %515, %516, %cst_99 {dimension_numbers = #tpu.dot_dimension_numbers<[1], [1], [0], [0], [0, 0, 1, 0], [], []>} : vector<16x16xbf16>, vector<16x16xbf16>, vector<16x16xf32> -> vector<16x16xf32>
    %cst_100 = arith.constant dense<0xFF800000> : vector<16xf32>
    %518 = vector.multi_reduction <maximumf>, %517, %cst_100 [1] : vector<16x16xf32> to vector<16xf32>
    %519 = vector.shape_cast %518 : vector<16xf32> to vector<16x1xf32>
    %520 = vector.broadcast %519 : vector<16x1xf32> to vector<16x16xf32>
    %521 = arith.subf %517, %520 : vector<16x16xf32>
    %522 = math.exp %521 : vector<16x16xf32>
    %cst_101 = arith.constant dense<0.000000e+00> : vector<16xf32>
    %523 = vector.multi_reduction <add>, %522, %cst_101 [1] : vector<16x16xf32> to vector<16xf32>
    %524 = vector.shape_cast %523 : vector<16xf32> to vector<16x1xf32>
    %525 = tpu.reciprocal %524 {approx = true} : vector<16x1xf32> -> vector<16x1xf32>
    %526 = vector.broadcast %525 : vector<16x1xf32> to vector<16x16xf32>
    %527 = arith.mulf %522, %526 : vector<16x16xf32>
    %528 = arith.truncf %527 : vector<16x16xf32> to vector<16x16xbf16>
    %529 = vector.extract_strided_slice %466 {offsets = [0, 48], sizes = [16, 16], strides = [1, 1]} : vector<16x128xbf16> to vector<16x16xbf16>
    %cst_102 = arith.constant dense<0.000000e+00> : vector<16x16xf32>
    %530 = tpu.matmul %528, %529, %cst_102 {dimension_numbers = #tpu.dot_dimension_numbers<[1], [0], [0], [1], [0, 0, 1, 1], [], []>} : vector<16x16xbf16>, vector<16x16xbf16>, vector<16x16xf32> -> vector<16x16xf32>
    %531 = vector.extract_strided_slice %462 {offsets = [0, 64], sizes = [16, 16], strides = [1, 1]} : vector<16x128xbf16> to vector<16x16xbf16>
    %532 = vector.extract_strided_slice %464 {offsets = [0, 64], sizes = [16, 16], strides = [1, 1]} : vector<16x128xbf16> to vector<16x16xbf16>
    %cst_103 = arith.constant dense<0.000000e+00> : vector<16x16xf32>
    %533 = tpu.matmul %531, %532, %cst_103 {dimension_numbers = #tpu.dot_dimension_numbers<[1], [1], [0], [0], [0, 0, 1, 0], [], []>} : vector<16x16xbf16>, vector<16x16xbf16>, vector<16x16xf32> -> vector<16x16xf32>
    %cst_104 = arith.constant dense<0xFF800000> : vector<16xf32>
    %534 = vector.multi_reduction <maximumf>, %533, %cst_104 [1] : vector<16x16xf32> to vector<16xf32>
    %535 = vector.shape_cast %534 : vector<16xf32> to vector<16x1xf32>
    %536 = vector.broadcast %535 : vector<16x1xf32> to vector<16x16xf32>
    %537 = arith.subf %533, %536 : vector<16x16xf32>
    %538 = math.exp %537 : vector<16x16xf32>
    %cst_105 = arith.constant dense<0.000000e+00> : vector<16xf32>
    %539 = vector.multi_reduction <add>, %538, %cst_105 [1] : vector<16x16xf32> to vector<16xf32>
    %540 = vector.shape_cast %539 : vector<16xf32> to vector<16x1xf32>
    %541 = tpu.reciprocal %540 {approx = true} : vector<16x1xf32> -> vector<16x1xf32>
    %542 = vector.broadcast %541 : vector<16x1xf32> to vector<16x16xf32>
    %543 = arith.mulf %538, %542 : vector<16x16xf32>
    %544 = arith.truncf %543 : vector<16x16xf32> to vector<16x16xbf16>
    %545 = vector.extract_strided_slice %466 {offsets = [0, 64], sizes = [16, 16], strides = [1, 1]} : vector<16x128xbf16> to vector<16x16xbf16>
    %cst_106 = arith.constant dense<0.000000e+00> : vector<16x16xf32>
    %546 = tpu.matmul %544, %545, %cst_106 {dimension_numbers = #tpu.dot_dimension_numbers<[1], [0], [0], [1], [0, 0, 1, 1], [], []>} : vector<16x16xbf16>, vector<16x16xbf16>, vector<16x16xf32> -> vector<16x16xf32>
    %547 = vector.extract_strided_slice %462 {offsets = [0, 80], sizes = [16, 16], strides = [1, 1]} : vector<16x128xbf16> to vector<16x16xbf16>
    %548 = vector.extract_strided_slice %464 {offsets = [0, 80], sizes = [16, 16], strides = [1, 1]} : vector<16x128xbf16> to vector<16x16xbf16>
    %cst_107 = arith.constant dense<0.000000e+00> : vector<16x16xf32>
    %549 = tpu.matmul %547, %548, %cst_107 {dimension_numbers = #tpu.dot_dimension_numbers<[1], [1], [0], [0], [0, 0, 1, 0], [], []>} : vector<16x16xbf16>, vector<16x16xbf16>, vector<16x16xf32> -> vector<16x16xf32>
    %cst_108 = arith.constant dense<0xFF800000> : vector<16xf32>
    %550 = vector.multi_reduction <maximumf>, %549, %cst_108 [1] : vector<16x16xf32> to vector<16xf32>
    %551 = vector.shape_cast %550 : vector<16xf32> to vector<16x1xf32>
    %552 = vector.broadcast %551 : vector<16x1xf32> to vector<16x16xf32>
    %553 = arith.subf %549, %552 : vector<16x16xf32>
    %554 = math.exp %553 : vector<16x16xf32>
    %cst_109 = arith.constant dense<0.000000e+00> : vector<16xf32>
    %555 = vector.multi_reduction <add>, %554, %cst_109 [1] : vector<16x16xf32> to vector<16xf32>
    %556 = vector.shape_cast %555 : vector<16xf32> to vector<16x1xf32>
    %557 = tpu.reciprocal %556 {approx = true} : vector<16x1xf32> -> vector<16x1xf32>
    %558 = vector.broadcast %557 : vector<16x1xf32> to vector<16x16xf32>
    %559 = arith.mulf %554, %558 : vector<16x16xf32>
    %560 = arith.truncf %559 : vector<16x16xf32> to vector<16x16xbf16>
    %561 = vector.extract_strided_slice %466 {offsets = [0, 80], sizes = [16, 16], strides = [1, 1]} : vector<16x128xbf16> to vector<16x16xbf16>
    %cst_110 = arith.constant dense<0.000000e+00> : vector<16x16xf32>
    %562 = tpu.matmul %560, %561, %cst_110 {dimension_numbers = #tpu.dot_dimension_numbers<[1], [0], [0], [1], [0, 0, 1, 1], [], []>} : vector<16x16xbf16>, vector<16x16xbf16>, vector<16x16xf32> -> vector<16x16xf32>
    %563 = vector.extract_strided_slice %462 {offsets = [0, 96], sizes = [16, 16], strides = [1, 1]} : vector<16x128xbf16> to vector<16x16xbf16>
    %564 = vector.extract_strided_slice %464 {offsets = [0, 96], sizes = [16, 16], strides = [1, 1]} : vector<16x128xbf16> to vector<16x16xbf16>
    %cst_111 = arith.constant dense<0.000000e+00> : vector<16x16xf32>
    %565 = tpu.matmul %563, %564, %cst_111 {dimension_numbers = #tpu.dot_dimension_numbers<[1], [1], [0], [0], [0, 0, 1, 0], [], []>} : vector<16x16xbf16>, vector<16x16xbf16>, vector<16x16xf32> -> vector<16x16xf32>
    %cst_112 = arith.constant dense<0xFF800000> : vector<16xf32>
    %566 = vector.multi_reduction <maximumf>, %565, %cst_112 [1] : vector<16x16xf32> to vector<16xf32>
    %567 = vector.shape_cast %566 : vector<16xf32> to vector<16x1xf32>
    %568 = vector.broadcast %567 : vector<16x1xf32> to vector<16x16xf32>
    %569 = arith.subf %565, %568 : vector<16x16xf32>
    %570 = math.exp %569 : vector<16x16xf32>
    %cst_113 = arith.constant dense<0.000000e+00> : vector<16xf32>
    %571 = vector.multi_reduction <add>, %570, %cst_113 [1] : vector<16x16xf32> to vector<16xf32>
    %572 = vector.shape_cast %571 : vector<16xf32> to vector<16x1xf32>
    %573 = tpu.reciprocal %572 {approx = true} : vector<16x1xf32> -> vector<16x1xf32>
    %574 = vector.broadcast %573 : vector<16x1xf32> to vector<16x16xf32>
    %575 = arith.mulf %570, %574 : vector<16x16xf32>
    %576 = arith.truncf %575 : vector<16x16xf32> to vector<16x16xbf16>
    %577 = vector.extract_strided_slice %466 {offsets = [0, 96], sizes = [16, 16], strides = [1, 1]} : vector<16x128xbf16> to vector<16x16xbf16>
    %cst_114 = arith.constant dense<0.000000e+00> : vector<16x16xf32>
    %578 = tpu.matmul %576, %577, %cst_114 {dimension_numbers = #tpu.dot_dimension_numbers<[1], [0], [0], [1], [0, 0, 1, 1], [], []>} : vector<16x16xbf16>, vector<16x16xbf16>, vector<16x16xf32> -> vector<16x16xf32>
    %579 = vector.extract_strided_slice %462 {offsets = [0, 112], sizes = [16, 16], strides = [1, 1]} : vector<16x128xbf16> to vector<16x16xbf16>
    %580 = vector.extract_strided_slice %464 {offsets = [0, 112], sizes = [16, 16], strides = [1, 1]} : vector<16x128xbf16> to vector<16x16xbf16>
    %cst_115 = arith.constant dense<0.000000e+00> : vector<16x16xf32>
    %581 = tpu.matmul %579, %580, %cst_115 {dimension_numbers = #tpu.dot_dimension_numbers<[1], [1], [0], [0], [0, 0, 1, 0], [], []>} : vector<16x16xbf16>, vector<16x16xbf16>, vector<16x16xf32> -> vector<16x16xf32>
    %cst_116 = arith.constant dense<0xFF800000> : vector<16xf32>
    %582 = vector.multi_reduction <maximumf>, %581, %cst_116 [1] : vector<16x16xf32> to vector<16xf32>
    %583 = vector.shape_cast %582 : vector<16xf32> to vector<16x1xf32>
    %584 = vector.broadcast %583 : vector<16x1xf32> to vector<16x16xf32>
    %585 = arith.subf %581, %584 : vector<16x16xf32>
    %586 = math.exp %585 : vector<16x16xf32>
    %cst_117 = arith.constant dense<0.000000e+00> : vector<16xf32>
    %587 = vector.multi_reduction <add>, %586, %cst_117 [1] : vector<16x16xf32> to vector<16xf32>
    %588 = vector.shape_cast %587 : vector<16xf32> to vector<16x1xf32>
    %589 = tpu.reciprocal %588 {approx = true} : vector<16x1xf32> -> vector<16x1xf32>
    %590 = vector.broadcast %589 : vector<16x1xf32> to vector<16x16xf32>
    %591 = arith.mulf %586, %590 : vector<16x16xf32>
    %592 = arith.truncf %591 : vector<16x16xf32> to vector<16x16xbf16>
    %593 = vector.extract_strided_slice %466 {offsets = [0, 112], sizes = [16, 16], strides = [1, 1]} : vector<16x128xbf16> to vector<16x16xbf16>
    %cst_118 = arith.constant dense<0.000000e+00> : vector<16x16xf32>
    %594 = tpu.matmul %592, %593, %cst_118 {dimension_numbers = #tpu.dot_dimension_numbers<[1], [0], [0], [1], [0, 0, 1, 1], [], []>} : vector<16x16xbf16>, vector<16x16xbf16>, vector<16x16xf32> -> vector<16x16xf32>
    %595 = tpu.concatenate %482, %498, %514, %530, %546, %562, %578, %594 in 1 : vector<16x16xf32>, vector<16x16xf32>, vector<16x16xf32>, vector<16x16xf32>, vector<16x16xf32>, vector<16x16xf32>, vector<16x16xf32>, vector<16x16xf32> -> vector<16x128xf32>
    %596 = arith.truncf %595 : vector<16x128xf32> to vector<16x128xbf16>
    %c0_119 = arith.constant 0 : index
    %c0_120 = arith.constant 0 : index
    %597 = vector.load %arg15[%c0_119, %c0_120] : memref<128x128xbf16, #tpu.memory_space<vmem>>, vector<128x128xbf16>
    %cst_121 = arith.constant dense<0.000000e+00> : vector<16x128xf32>
    %598 = tpu.matmul %596, %597, %cst_121 {dimension_numbers = #tpu.dot_dimension_numbers<[1], [0], [0], [1], [0, 0, 1, 1], [], []>} : vector<16x128xbf16>, vector<128x128xbf16>, vector<16x128xf32> -> vector<16x128xf32>
    %c0_122 = arith.constant 0 : index
    %c0_123 = arith.constant 0 : index
    %599 = vector.load %arg16[%c0_122, %c0_123] : memref<1x128xf32, #tpu.memory_space<vmem>>, vector<1x128xf32>
    %600 = vector.broadcast %599 : vector<1x128xf32> to vector<16x128xf32>
    %601 = arith.addf %598, %600 : vector<16x128xf32>
    %602 = arith.addf %454, %601 : vector<16x128xf32>
    %c0_124 = arith.constant 0 : index
    %c0_125 = arith.constant 0 : index
    %603 = vector.load %arg21[%c0_124, %c0_125] : memref<1x128xf32, #tpu.memory_space<vmem>>, vector<1x128xf32>
    %c0_126 = arith.constant 0 : index
    %c0_127 = arith.constant 0 : index
    %604 = vector.load %arg22[%c0_126, %c0_127] : memref<1x128xf32, #tpu.memory_space<vmem>>, vector<1x128xf32>
    %cst_128 = arith.constant dense<0.000000e+00> : vector<16xf32>
    %605 = vector.multi_reduction <add>, %602, %cst_128 [1] : vector<16x128xf32> to vector<16xf32>
    %606 = vector.shape_cast %605 : vector<16xf32> to vector<16x1xf32>
    %cst_129 = arith.constant 1.280000e+02 : f32
    %607 = vector.broadcast %cst_129 : f32 to vector<16x1xf32>
    %608 = arith.divf %606, %607 : vector<16x1xf32>
    %609 = vector.broadcast %608 : vector<16x1xf32> to vector<16x128xf32>
    %610 = arith.subf %602, %609 : vector<16x128xf32>
    %611 = arith.mulf %610, %610 : vector<16x128xf32>
    %cst_130 = arith.constant dense<0.000000e+00> : vector<16xf32>
    %612 = vector.multi_reduction <add>, %611, %cst_130 [1] : vector<16x128xf32> to vector<16xf32>
    %613 = vector.shape_cast %612 : vector<16xf32> to vector<16x1xf32>
    %cst_131 = arith.constant 1.280000e+02 : f32
    %614 = vector.broadcast %cst_131 : f32 to vector<16x1xf32>
    %615 = arith.divf %613, %614 : vector<16x1xf32>
    %616 = vector.broadcast %608 : vector<16x1xf32> to vector<16x128xf32>
    %617 = arith.subf %602, %616 : vector<16x128xf32>
    %cst_132 = arith.constant 9.99999974E-6 : f32
    %618 = vector.broadcast %cst_132 : f32 to vector<16x1xf32>
    %619 = arith.addf %615, %618 : vector<16x1xf32>
    %620 = math.rsqrt %619 : vector<16x1xf32>
    %621 = vector.broadcast %620 : vector<16x1xf32> to vector<16x128xf32>
    %622 = arith.mulf %617, %621 : vector<16x128xf32>
    %623 = vector.broadcast %603 : vector<1x128xf32> to vector<16x128xf32>
    %624 = arith.mulf %622, %623 : vector<16x128xf32>
    %625 = vector.broadcast %604 : vector<1x128xf32> to vector<16x128xf32>
    %626 = arith.addf %624, %625 : vector<16x128xf32>
    %627 = arith.truncf %626 : vector<16x128xf32> to vector<16x128xbf16>
    %c0_133 = arith.constant 0 : index
    %c0_134 = arith.constant 0 : index
    %628 = vector.load %arg17[%c0_133, %c0_134] : memref<128x256xbf16, #tpu.memory_space<vmem>>, vector<128x256xbf16>
    %cst_135 = arith.constant dense<0.000000e+00> : vector<16x256xf32>
    %629 = tpu.matmul %627, %628, %cst_135 {dimension_numbers = #tpu.dot_dimension_numbers<[1], [0], [0], [1], [0, 0, 1, 1], [], []>} : vector<16x128xbf16>, vector<128x256xbf16>, vector<16x256xf32> -> vector<16x256xf32>
    %c0_136 = arith.constant 0 : index
    %c0_137 = arith.constant 0 : index
    %630 = vector.load %arg18[%c0_136, %c0_137] : memref<1x256xf32, #tpu.memory_space<vmem>>, vector<1x256xf32>
    %631 = vector.broadcast %630 : vector<1x256xf32> to vector<16x256xf32>
    %632 = arith.addf %629, %631 : vector<16x256xf32>
    %cst_138 = arith.constant 0.000000e+00 : f32
    %633 = vector.broadcast %cst_138 : f32 to vector<16x256xf32>
    %634 = arith.maximumf %632, %633 : vector<16x256xf32>
    %635 = arith.truncf %634 : vector<16x256xf32> to vector<16x256xbf16>
    %c0_139 = arith.constant 0 : index
    %c0_140 = arith.constant 0 : index
    %636 = vector.load %arg19[%c0_139, %c0_140] : memref<256x128xbf16, #tpu.memory_space<vmem>>, vector<256x128xbf16>
    %cst_141 = arith.constant dense<0.000000e+00> : vector<16x128xf32>
    %637 = tpu.matmul %635, %636, %cst_141 {dimension_numbers = #tpu.dot_dimension_numbers<[1], [0], [0], [1], [0, 0, 1, 1], [], []>} : vector<16x256xbf16>, vector<256x128xbf16>, vector<16x128xf32> -> vector<16x128xf32>
    %c0_142 = arith.constant 0 : index
    %c0_143 = arith.constant 0 : index
    %638 = vector.load %arg20[%c0_142, %c0_143] : memref<1x128xf32, #tpu.memory_space<vmem>>, vector<1x128xf32>
    %639 = vector.broadcast %638 : vector<1x128xf32> to vector<16x128xf32>
    %640 = arith.addf %637, %639 : vector<16x128xf32>
    %641 = arith.addf %626, %640 : vector<16x128xf32>
    %c0_144 = arith.constant 0 : index
    %c0_145 = arith.constant 0 : index
    %642 = vector.load %arg23[%c0_144, %c0_145] : memref<1x128xf32, #tpu.memory_space<vmem>>, vector<1x128xf32>
    %c0_146 = arith.constant 0 : index
    %c0_147 = arith.constant 0 : index
    %643 = vector.load %arg24[%c0_146, %c0_147] : memref<1x128xf32, #tpu.memory_space<vmem>>, vector<1x128xf32>
    %cst_148 = arith.constant dense<0.000000e+00> : vector<16xf32>
    %644 = vector.multi_reduction <add>, %641, %cst_148 [1] : vector<16x128xf32> to vector<16xf32>
    %645 = vector.shape_cast %644 : vector<16xf32> to vector<16x1xf32>
    %cst_149 = arith.constant 1.280000e+02 : f32
    %646 = vector.broadcast %cst_149 : f32 to vector<16x1xf32>
    %647 = arith.divf %645, %646 : vector<16x1xf32>
    %648 = vector.broadcast %647 : vector<16x1xf32> to vector<16x128xf32>
    %649 = arith.subf %641, %648 : vector<16x128xf32>
    %650 = arith.mulf %649, %649 : vector<16x128xf32>
    %cst_150 = arith.constant dense<0.000000e+00> : vector<16xf32>
    %651 = vector.multi_reduction <add>, %650, %cst_150 [1] : vector<16x128xf32> to vector<16xf32>
    %652 = vector.shape_cast %651 : vector<16xf32> to vector<16x1xf32>
    %cst_151 = arith.constant 1.280000e+02 : f32
    %653 = vector.broadcast %cst_151 : f32 to vector<16x1xf32>
    %654 = arith.divf %652, %653 : vector<16x1xf32>
    %655 = vector.broadcast %647 : vector<16x1xf32> to vector<16x128xf32>
    %656 = arith.subf %641, %655 : vector<16x128xf32>
    %cst_152 = arith.constant 9.99999974E-6 : f32
    %657 = vector.broadcast %cst_152 : f32 to vector<16x1xf32>
    %658 = arith.addf %654, %657 : vector<16x1xf32>
    %659 = math.rsqrt %658 : vector<16x1xf32>
    %660 = vector.broadcast %659 : vector<16x1xf32> to vector<16x128xf32>
    %661 = arith.mulf %656, %660 : vector<16x128xf32>
    %662 = vector.broadcast %642 : vector<1x128xf32> to vector<16x128xf32>
    %663 = arith.mulf %661, %662 : vector<16x128xf32>
    %664 = vector.broadcast %643 : vector<1x128xf32> to vector<16x128xf32>
    %665 = arith.addf %663, %664 : vector<16x128xf32>
    %c0_153 = arith.constant 0 : index
    %c0_154 = arith.constant 0 : index
    %c0_155 = arith.constant 0 : index
    %666 = vector.load %arg25[%c0_153, %c0_154, %c0_155] : memref<1x16x128xf32, #tpu.memory_space<vmem>>, vector<1x16x128xf32>
    %667 = vector.shape_cast %666 : vector<1x16x128xf32> to vector<16x128xf32>
    %668 = vector.shape_cast %665 : vector<16x128xf32> to vector<1x16x128xf32>
    tpu.vector_store %arg25[%c0_153, %c0_154, %c0_155], %668 {strides = array<i32>} : memref<1x16x128xf32, #tpu.memory_space<vmem>>, vector<1x16x128xf32>,
    return
  }
  func.func @transform_0(%arg0: i32) -> (i32, i32, i32) {
    %c0_i32 = arith.constant 0 : i32
    %c0_i32_0 = arith.constant 0 : i32
    %c0_i32_1 = arith.constant 0 : i32
    return %arg0, %c0_i32, %c0_i32_0 : i32, i32, i32
  }
  func.func @transform_1(%arg0: i32) -> (i32, i32, i32) {
    %c0_i32 = arith.constant 0 : i32
    %c0_i32_0 = arith.constant 0 : i32
    %c0_i32_1 = arith.constant 0 : i32
    return %arg0, %c0_i32, %c0_i32_0 : i32, i32, i32
  }
  func.func @transform_2(%arg0: i32) -> (i32, i32, i32) {
    %c0_i32 = arith.constant 0 : i32
    %c0_i32_0 = arith.constant 0 : i32
    %c0_i32_1 = arith.constant 0 : i32
    return %arg0, %c0_i32, %c0_i32_0 : i32, i32, i32
  }
  func.func @transform_3(%arg0: i32) -> (i32, i32) {
    %c0_i32 = arith.constant 0 : i32
    %c0_i32_0 = arith.constant 0 : i32
    %c0_i32_1 = arith.constant 0 : i32
    return %c0_i32, %c0_i32_0 : i32, i32
  }
  func.func @transform_4(%arg0: i32) -> (i32, i32) {
    %c0_i32 = arith.constant 0 : i32
    %c0_i32_0 = arith.constant 0 : i32
    %c0_i32_1 = arith.constant 0 : i32
    return %c0_i32, %c0_i32_0 : i32, i32
  }
  func.func @transform_5(%arg0: i32) -> (i32, i32) {
    %c0_i32 = arith.constant 0 : i32
    %c0_i32_0 = arith.constant 0 : i32
    %c0_i32_1 = arith.constant 0 : i32
    return %c0_i32, %c0_i32_0 : i32, i32
  }
  func.func @transform_6(%arg0: i32) -> (i32, i32) {
    %c0_i32 = arith.constant 0 : i32
    %c0_i32_0 = arith.constant 0 : i32
    %c0_i32_1 = arith.constant 0 : i32
    return %c0_i32, %c0_i32_0 : i32, i32
  }
  func.func @transform_7(%arg0: i32) -> (i32, i32) {
    %c0_i32 = arith.constant 0 : i32
    %c0_i32_0 = arith.constant 0 : i32
    %c0_i32_1 = arith.constant 0 : i32
    return %c0_i32, %c0_i32_0 : i32, i32
  }
  func.func @transform_8(%arg0: i32) -> (i32, i32) {
    %c0_i32 = arith.constant 0 : i32
    %c0_i32_0 = arith.constant 0 : i32
    %c0_i32_1 = arith.constant 0 : i32
    return %c0_i32, %c0_i32_0 : i32, i32
  }
  func.func @transform_9(%arg0: i32) -> (i32, i32) {
    %c0_i32 = arith.constant 0 : i32
    %c0_i32_0 = arith.constant 0 : i32
    %c0_i32_1 = arith.constant 0 : i32
    return %c0_i32, %c0_i32_0 : i32, i32
  }
  func.func @transform_10(%arg0: i32) -> (i32, i32) {
    %c0_i32 = arith.constant 0 : i32
    %c0_i32_0 = arith.constant 0 : i32
    %c0_i32_1 = arith.constant 0 : i32
    return %c0_i32, %c0_i32_0 : i32, i32
  }
  func.func @transform_11(%arg0: i32) -> (i32, i32) {
    %c0_i32 = arith.constant 0 : i32
    %c0_i32_0 = arith.constant 0 : i32
    %c0_i32_1 = arith.constant 0 : i32
    return %c0_i32, %c0_i32_0 : i32, i32
  }
  func.func @transform_12(%arg0: i32) -> (i32, i32) {
    %c0_i32 = arith.constant 0 : i32
    %c0_i32_0 = arith.constant 0 : i32
    %c0_i32_1 = arith.constant 0 : i32
    return %c0_i32, %c0_i32_0 : i32, i32
  }
  func.func @transform_13(%arg0: i32) -> (i32, i32) {
    %c0_i32 = arith.constant 0 : i32
    %c0_i32_0 = arith.constant 0 : i32
    %c0_i32_1 = arith.constant 0 : i32
    return %c0_i32, %c0_i32_0 : i32, i32
  }
  func.func @transform_14(%arg0: i32) -> (i32, i32) {
    %c0_i32 = arith.constant 0 : i32
    %c0_i32_0 = arith.constant 0 : i32
    %c0_i32_1 = arith.constant 0 : i32
    return %c0_i32, %c0_i32_0 : i32, i32
  }
  func.func @transform_15(%arg0: i32) -> (i32, i32) {
    %c0_i32 = arith.constant 0 : i32
    %c0_i32_0 = arith.constant 0 : i32
    %c0_i32_1 = arith.constant 0 : i32
    return %c0_i32, %c0_i32_0 : i32, i32
  }
  func.func @transform_16(%arg0: i32) -> (i32, i32) {
    %c0_i32 = arith.constant 0 : i32
    %c0_i32_0 = arith.constant 0 : i32
    %c0_i32_1 = arith.constant 0 : i32
    return %c0_i32, %c0_i32_0 : i32, i32
  }
  func.func @transform_17(%arg0: i32) -> (i32, i32) {
    %c0_i32 = arith.constant 0 : i32
    %c0_i32_0 = arith.constant 0 : i32
    %c0_i32_1 = arith.constant 0 : i32
    return %c0_i32, %c0_i32_0 : i32, i32
  }
  func.func @transform_18(%arg0: i32) -> (i32, i32) {
    %c0_i32 = arith.constant 0 : i32
    %c0_i32_0 = arith.constant 0 : i32
    %c0_i32_1 = arith.constant 0 : i32
    return %c0_i32, %c0_i32_0 : i32, i32
  }
  func.func @transform_19(%arg0: i32) -> (i32, i32) {
    %c0_i32 = arith.constant 0 : i32
    %c0_i32_0 = arith.constant 0 : i32
    %c0_i32_1 = arith.constant 0 : i32
    return %c0_i32, %c0_i32_0 : i32, i32
  }
  func.func @transform_20(%arg0: i32) -> (i32, i32) {
    %c0_i32 = arith.constant 0 : i32
    %c0_i32_0 = arith.constant 0 : i32
    %c0_i32_1 = arith.constant 0 : i32
    return %c0_i32, %c0_i32_0 : i32, i32
  }
  func.func @transform_21(%arg0: i32) -> (i32, i32) {
    %c0_i32 = arith.constant 0 : i32
    %c0_i32_0 = arith.constant 0 : i32
    %c0_i32_1 = arith.constant 0 : i32
    return %c0_i32, %c0_i32_0 : i32, i32
  }
  func.func @transform_22(%arg0: i32) -> (i32, i32) {
    %c0_i32 = arith.constant 0 : i32
    %c0_i32_0 = arith.constant 0 : i32
    %c0_i32_1 = arith.constant 0 : i32
    return %c0_i32, %c0_i32_0 : i32, i32
  }
  func.func @transform_23(%arg0: i32) -> (i32, i32) {
    %c0_i32 = arith.constant 0 : i32
    %c0_i32_0 = arith.constant 0 : i32
    %c0_i32_1 = arith.constant 0 : i32
    return %c0_i32, %c0_i32_0 : i32, i32
  }
  func.func @transform_24(%arg0: i32) -> (i32, i32, i32) {
    %c0_i32 = arith.constant 0 : i32
    %c0_i32_0 = arith.constant 0 : i32
    %c0_i32_1 = arith.constant 0 : i32
    return %arg0, %c0_i32, %c0_i32_0 : i32, i32, i32
  }
}

</mosaic_0001>

<bundles_post_ra>
// kernel: matnet_encoder_layer.2
= control target key start
LH: loop header
LB: loop body
LE: loop exit
PB: predicated region body
PF: predicated region fallthrough
CT: control target
= control target key end

     0   :  { %s6497_s0 = inlined_call_operand.vmem [shape: f32[2,8,128], index: 0, kind: input, shape index: {}]   ;;  %s6498_s1 = inlined_call_operand.vmem [shape: f32[2,16,128], index: 1, kind: input, shape index: {}]   ;;  %s6499_s2 = inlined_call_operand.vmem [shape: f32[2,8,16], index: 2, kind: input, shape index: {}]   ;;  %s6500_s3 = inlined_call_operand.vmem [shape: bf16[128,128], index: 3, kind: input, shape index: {}]   ;;  %s6501_s4 = inlined_call_operand.vmem [shape: f32[1,128], index: 4, kind: input, shape index: {}]   ;;  %s6502_s5 = inlined_call_operand.vmem [shape: bf16[128,256], index: 5, kind: input, shape index: {}]   ;;  %s6503_s6 = inlined_call_operand.vmem [shape: f32[1,256], index: 6, kind: input, shape index: {}]   ;;  %s6504_s7 = inlined_call_operand.vmem [shape: bf16[128,128], index: 7, kind: input, shape index: {}]   ;;  %s6505_s8 = inlined_call_operand.vmem [shape: f32[1,128], index: 8, kind: input, shape index: {}]   ;;  %s6506_s9 = inlined_call_operand.vmem [shape: f32[65,128], index: 9, kind: input, shape index: {}]   ;;  %s6507_s10 = inlined_call_operand.vmem [shape: f32[1,128], index: 10, kind: input, shape index: {}]   ;;  %s6508_s11 = inlined_call_operand.vmem [shape: f32[1,128], index: 11, kind: input, shape index: {}]   ;;  %s6509_s12 = inlined_call_operand.vmem [shape: bf16[128,384], index: 12, kind: input, shape index: {}]   ;;  %s6510_s13 = inlined_call_operand.vmem [shape: f32[1,384], index: 13, kind: input, shape index: {}]   ;;  %s6511_s14 = inlined_call_operand.vmem [shape: bf16[128,128], index: 14, kind: input, shape index: {}]   ;;  %s6512_s15 = inlined_call_operand.vmem [shape: f32[1,128], index: 15, kind: input, shape index: {}]   ;;  %s6513_s16 = inlined_call_operand.vmem [shape: bf16[128,256], index: 16, kind: input, shape index: {}]   ;;  %s6514_s17 = inlined_call_operand.vmem [shape: f32[1,256], index: 17, kind: input, shape index: {}]   ;;  %s6515_s18 = inlined_call_operand.vmem [shape: bf16[256,128], index: 18, kind: input, shape index: {}]   ;;  %s6516_s19 = inlined_call_operand.vmem [shape: f32[1,128], index: 19, kind: input, shape index: {}]   ;;  %s6517_s20 = inlined_call_operand.vmem [shape: f32[1,128], index: 20, kind: input, shape index: {}]   ;;  %s6518_s21 = inlined_call_operand.vmem [shape: f32[1,128], index: 21, kind: input, shape index: {}]   ;;  %s6519_s22 = inlined_call_operand.vmem [shape: f32[1,128], index: 22, kind: input, shape index: {}]   ;;  %s6520_s23 = inlined_call_operand.vmem [shape: f32[1,128], index: 23, kind: input, shape index: {}]   ;;  %s6521_s24 = inlined_call_operand.hbm [shape: f32[2,8,128], index: 24, kind: output, shape index: {}]  }
   0x1   :  { %6552 = sst [smem:[#allocation13_spill]] %s6497_s0 }
   0x2   :  { %6553 = sst [smem:[#allocation14_spill]] %s6498_s1 }
   0x3   :  { %6554 = sst [smem:[#allocation15_spill]] %s6499_s2 }
   0x4   :  { %6555 = sst [smem:[#allocation16_spill]] %s6500_s3 }
   0x5   :  { %6556 = sst [smem:[#allocation17_spill]] %s6501_s4 }
   0x6   :  { %6557 = sst [smem:[#allocation18_spill]] %s6502_s5 }
   0x7   :  { %6558 = sst [smem:[#allocation19_spill]] %s6503_s6 }
   0x8   :  { %6559 = sst [smem:[#allocation20_spill]] %s6504_s7 }
   0x9   :  { %6560 = sst [smem:[#allocation21_spill]] %s6505_s8 }
   0xa   :  { %6561 = sst [smem:[#allocation22_spill]] %s6519_s22 }
   0xb   :  { %6562 = sst [smem:[#allocation23_spill]] %s6520_s23 }
   0xc   :  { %6563 = sst [smem:[#allocation24_spill]] %s6521_s24 }
   0xd   :  { %29 = vsyncpa [#allocation3], 0 }
   0xe   :  { %31 = vsyncpa [#allocation3 + $0x1], 0  ;;  %s5345_s5 = smov 0   ;;  %s5347_s26 = smov 0  }
   0xf   :  { %s5349_s27 = smov 0   ;;  %s5351_s28 = smov 0  }
  0x10 LB: > { %6564 = sst [smem:[#allocation5_spill]] %s5195_s5  ;;  %s5366_s6 = sadd.s32 4294967295, %s5207_s28   ;;  %s5207_s28 = sphi %s5351_s28, %s6600_s28   ;;  %s5203_s27 = sphi %s5349_s27, %s6605_s27   ;;  %s5199_s26 = sphi %s5347_s26, %s6604_s26   ;;  %s5195_s5 = sphi %s5345_s5, %s6603_s5  }
  0x11   : > { %6565 = sst [smem:[#allocation6_spill]] %s5203_s27  ;;  %s4358_s2 = sadd.s32 4294967294, %s5207_s28  }
  0x12   : > { %6566 = sst [smem:[#allocation7_spill]] %s5207_s28  ;;  %s5370_s29 = sadd.s32 1, %s5207_s28  }
  0x13   : > { %6567 = sst [smem:[#allocation8_spill]] %s5366_s6  ;;  %s563_s0 = sadd.s32 1, %s5203_s27 }
  0x14   : > { %6568 = sst [smem:[#allocation9_spill]] %s5370_s29  ;;  %s560_s7 = ssub.s32 %s5207_s28, %s5370_s29 }
  0x15   : > { %p573_p0 = scmp.ne.s32.totalorder %s5203_s27, %s5199_s26  ;;  %p561_p1 = scmp.eq.s32.totalorder %s560_s7, 0 }
  0x16   : > { %p574_p2 = scmp.eq.s32.totalorder %s5366_s6, 1  ;;  %p579_p3 = scmp.ne.s32.totalorder %s5199_s26, %s5195_s5 }
  0x17   : > { %p580_p4 = scmp.eq.s32.totalorder %s4358_s2, 1  ;;  %p4361_p7 = scmp.ge.s32.totalorder %s5207_s28, 1 }
  0x18   : > { %s5381_s30 = scalar_select %p561_p1, %s5203_s27, %s563_s0  }
  0x19   : > { %p5383_p5 = por %p574_p2, %p573_p0  ;;  %p5387_p6 = por %p580_p4, %p579_p3 }
  0x1a   : > { %6569 = sst [smem:[#allocation10_spill]] %s5381_s30  ;;  %p683_p8 = scmp.lt.s32.totalorder %s5207_s28, 3 }
  0x1b   : > { %s6570_s3 = scalar_select %p5383_p5, 1, 0 }
  0x1c   : > { %s6572_s25 = scalar_select %p5387_p6, 1, 0 }
  0x1d   : > { %6571 = sst [smem:[#allocation11_spill]] %s6570_s3  ;;  %p684_p9 = pnand %p4361_p7, %p683_p8 }
  0x1e   : > { %6573 = sst [smem:[#allocation12_spill]] %s6572_s25  ;;  %s6574_s1 = sld [smem:[#allocation18_spill]] (!%p684_p9)  ;;  %v6537_v2 = vmov (!%p684_p9), 0.0   ;;  %v6535_v3 = vmov (!%p684_p9), 0   ;;  %vm5211_vm0 = vmmov (!%p684_p9), 0   ;;  %v906_v31 = vlaneseq (!%p684_p9) }
  0x1f   : > { %687 = sbr.rel (%p684_p9) target bundleno = 5234 (0x1472), region = 116  ;;  %4633 = vmatprep.subr.bf16.mxu0 (!%p684_p9), %v6537_v2  ;;  %1028 = vmatprep.mubr.bf16.mxu1 (!%p684_p9), %v6535_v3  ;;  %s6575_s7 = sld [smem:[#allocation16_spill]] (!%p684_p9)  ;;  %vm1042_vm1 = vcmask (!%p684_p9), 130048   ;;  %vm1470_vm2 = vcmask (!%p684_p9), 261120   ;;  %vm1472_vm3 = vcmask (!%p684_p9), 392192   ;;  %vm1474_vm4 = vcmask (!%p684_p9), 523264  }
  0x20   : > { %4649 = vmatprep.mubr.msk.bf16.mxu0 (!%p684_p9), %vm5211_vm0, %v6537_v2  ;;  %p757_p10 = scmp.lt.s32.totalorder (!%p684_p9), %s5366_s6, 1  ;;  %s6576_s23 = sld [smem:[#allocation14_spill]] (!%p684_p9)  ;;  %v5499_v32 = vshrl.u32 (!%p684_p9), %v906_v31, 7  ;;  %vm1476_vm5 = vcmask (!%p684_p9), 654336   ;;  %vm1478_vm6 = vcmask (!%p684_p9), 785408   ;;  %vm1480_vm7 = vcmask (!%p684_p9), 916480  }
  0x21   : > { %s6577_s8 = sld [smem:[#allocation13_spill]] (!%p684_p9)  ;;  %s6578_s5 = sld [smem:[#allocation19_spill]] (!%p684_p9)  ;;  %vm2015_vm8 = vcmask (!%p684_p9), 392448   ;;  %vm1948_vm9 = vcmask (!%p684_p9), 261248   ;;  %vm2213_vm10 = vcmask (!%p684_p9), 786048   ;;  %vm2081_vm11 = vcmask (!%p684_p9), 523648  }
  0x22   : > { %v5502_v33 = vsub.s32 (!%p684_p9), 0, %v5499_v32  ;;  %v5508_v35 = vsub.s32 (!%p684_p9), 1, %v5499_v32  ;;  %s6579_s27 = sld [smem:[#allocation17_spill]] (!%p684_p9)  ;;  %s6539_s24 = smov (!%p684_p9), 96   ;;  %vm2345_vm12 = vcmask (!%p684_p9), 1048448   ;;  %vm2147_vm13 = vcmask (!%p684_p9), 654848  }
  0x23   : > { %s5214_s4 = smov (!%p684_p9), 64   ;;  %s5215_s25 = smov (!%p684_p9), 80   ;;  %vm2279_vm14 = vcmask (!%p684_p9), 917248   ;;  %vm2911_vm15 = vcmask (!%p684_p9), 1043456  }
  0x24   : > { %v4954_v0 = vld [vmem:[%s6574_s1 + $0x4] ss:$8 sps:$4 sm:$0xff] (!%p684_p9)   ;;  %v4956_v1 = vld [vmem:[%s6574_s1] ss:$8 sps:$4 sm:$0xff] (!%p684_p9)   ;;  %v4957_v4 = vld [vmem:[%s6574_s1 + $0x14] ss:$8 sps:$4 sm:$0xff] (!%p684_p9)  }
  0x25   : > { %996 = vmatprep.subr.bf16.mxu1 (!%p684_p9), %v4954_v0  ;;  %v4959_v5 = vld [vmem:[%s6574_s1 + $0x10] ss:$8 sps:$4 sm:$0xff] (!%p684_p9)   ;;  %v4960_v6 = vld [vmem:[%s6575_s7] sm:$0xff] (!%p684_p9)   ;;  %v4964_v8 = vld [vmem:[%s6575_s7 + $0x8] sm:$0xff] (!%p684_p9)   ;;  %s6580_s2 = sld [smem:[#allocation15_spill]] (!%p684_p9) }
  0x26   : > { %997 = vmatpush1.bf16.msra.mxu1 %v4956_v1  ;;  %v4961_v7 = vld [vmem:[%s6574_s1 + $0x24] ss:$8 sps:$4 sm:$0xff]   ;;  %4634 = vmatpush3.bf16.msra.mxu0 %v4960_v6  ;;  %v4963_v9 = vld [vmem:[%s6574_s1 + $0x20] ss:$8 sps:$4 sm:$0xff]   ;;  %v4965_v10 = vld [vmem:[%s6574_s1 + $0x34] ss:$8 sps:$4 sm:$0xff]  }
  0x27   : > { %998 = vmatprep.subr.bf16.mxu1 %v4957_v4  ;;  %4635 = vmatprep.subr.bf16.mxu0 %v6537_v2  ;;  %v4968_v11 = vld [vmem:[%s6575_s7 + $0x10] sm:$0xff]   ;;  %v4969_v13 = vld [vmem:[%s6574_s1 + $0x44] ss:$8 sps:$4 sm:$0xff]   ;;  %v4972_v14 = vld [vmem:[%s6575_s7 + $0x18] sm:$0xff]   ;;  %s5444_s30 = scalar_select %p757_p10, %s5366_s6, 1 }
  0x28   : > { %v4967_v12 = vld [vmem:[%s6574_s1 + $0x30] ss:$8 sps:$4 sm:$0xff]   ;;  %v4971_v15 = vld [vmem:[%s6574_s1 + $0x40] ss:$8 sps:$4 sm:$0xff]   ;;  %v4973_v16 = vld [vmem:[%s6574_s1 + $0x54] ss:$8 sps:$4 sm:$0xff]  }
  0x29   : > { %v4976_v17 = vld [vmem:[%s6575_s7 + $0x20] sm:$0xff]   ;;  %v4975_v18 = vld [vmem:[%s6574_s1 + $0x50] ss:$8 sps:$4 sm:$0xff]   ;;  %s4510_s28 = sshll.u32 %s5444_s30, 4  ;;  %v4980_v20 = vld [vmem:[%s6575_s7 + $0x28] sm:$0xff]   ;;  %s4363_s29 = sshll.u32 %s5444_s30, 3 }
  0x2a   : > { %999 = vmatpush1.bf16.msra.mxu1 %v4959_v5  ;;  %4636 = vmatpush3.bf16.msra.mxu0 %v4964_v8  ;;  %v4977_v19 = vld [vmem:[%s6574_s1 + $0x64] ss:$8 sps:$4 sm:$0xff]   ;;  %v4979_v21 = vld [vmem:[%s6574_s1 + $0x60] ss:$8 sps:$4 sm:$0xff]   ;;  %v4981_v22 = vld [vmem:[%s6574_s1 + $0x74] ss:$8 sps:$4 sm:$0xff]   ;;  %s765_s22 = scalar_lea.vmem %s6576_s23, %s4510_s28  ;;  %s5482_s6 = scalar_lea.vmem %s6577_s8, %s4363_s29 }
  0x2b   : > { %1000 = vmatprep.subr.bf16.mxu1 %v4961_v7  ;;  %4637 = vmatprep.subr.bf16.mxu0 %v6537_v2  ;;  %v4984_v23 = vld [vmem:[%s6575_s7 + $0x30] sm:$0xff]   ;;  %v772_v25 = vld [vmem:[%s765_s22] sm:$0xff]  ;;  %v773_v26 = vld [vmem:[%s765_s22 + $0x8] sm:$0xff]  ;;  %s6541_s8 = smov 112   ;;  %s6547_s23 = smov 48  }
  0x2c   : > { %v4983_v24 = vld [vmem:[%s6574_s1 + $0x70] ss:$8 sps:$4 sm:$0xff]   ;;  %v771_v28 = vld [vmem:[%s5482_s6] sm:$0xff]  ;;  %v887_v29 = vpack.c.bf16 %v773_v26, %v772_v25  ;;  %s6545_s28 = smov 32   ;;  %s6543_s22 = smov 16  }
  0x2d   : > { %v4985_v27 = vld [vmem:[%s6575_s7 + $0x38] sm:$0xff]   ;;  %v775_v30 = vpack.c.bf16 %v771_v28, %v771_v28  ;;  %v904_v34 = vld [vmem:[%s6578_s5] sm:$0x3]  ;;  %s769_s0 = scalar_lea.vmem %s6580_s2, %s4363_s29  ;;  %s6586_s5 = smov 112  }
  0x2e   : > { %1001 = vmatpush1.bf16.msra.mxu1 %v4963_v9  ;;  %4638 = vmatpush3.bf16.msra.mxu0 %v4968_v11  ;;  %v909_v36 = vrot.slane %v904_v34, %v5502_v33  ;;  %v913_v38 = vrot.slane %v904_v34, %v5508_v35  ;;  %v4367_v39 = vld [vmem:[%s6579_s27] ss:$0 sm:$0xff]  ;;  %s6587_s2 = smov 96   ;;  %s6588_s27 = sld [smem:[#allocation21_spill]] }
  0x2f   : > { %1002 = vmatprep.subr.bf16.mxu1 %v4965_v10  ;;  %4639 = vmatprep.subr.bf16.mxu0 %v6537_v2  ;;  %v5541_v56 = vld [vmem:[%s769_s0] sm:$0xff]  ;;  %s6585_s0 = sld [smem:[#allocation20_spill]]  ;;  %s6591_s30 = smov 16  }
  0x30   : > { %s6596_s1 = sld [smem:[#allocation24_spill]] }
  0x32   : > { %1003 = vmatpush1.bf16.msra.mxu1 %v4967_v12  ;;  %4640 = vmatpush3.bf16.msra.mxu0 %v4972_v14 }
  0x33   : > { %1004 = vmatprep.subr.bf16.mxu1 %v4969_v13  ;;  %4641 = vmatprep.subr.bf16.mxu0 %v6537_v2 }
  0x36   : > { %1005 = vmatpush1.bf16.msra.mxu1 %v4971_v15  ;;  %4642 = vmatpush3.bf16.msra.mxu0 %v4976_v17 }
  0x37   : > { %1006 = vmatprep.subr.bf16.mxu1 %v4973_v16  ;;  %4643 = vmatprep.subr.bf16.mxu0 %v6537_v2 }
  0x3a   : > { %1007 = vmatpush1.bf16.msra.mxu1 %v4975_v18  ;;  %4644 = vmatpush3.bf16.msra.mxu0 %v4980_v20 }
  0x3b   : > { %1008 = vmatprep.subr.bf16.mxu1 %v4977_v19  ;;  %4645 = vmatprep.subr.bf16.mxu0 %v6537_v2 }
  0x3e   : > { %1009 = vmatpush1.bf16.msra.mxu1 %v4979_v21  ;;  %4646 = vmatpush3.bf16.msra.mxu0 %v4984_v23 }
  0x3f   : > { %1010 = vmatprep.subr.bf16.mxu1 %v4981_v22  ;;  %4647 = vmatprep.subr.bf16.mxu0 %v6537_v2 }
  0x42   : > { %1011 = vmatpush1.bf16.msra.mxu1 %v4983_v24  ;;  %4648 = vmatpush3.bf16.msra.mxu0 %v4985_v27 }
  0x43   : > { %4653 = vmatprep.subr.bf16.mxu1 %v6537_v2  ;;  %4677 = vmatprep.subr.bf16.mxu0 %v6537_v2 }
  0x45   : > { %1029 = vmatmul.mubr.bf16.vlgmr.msra.gmra.mrb[0].mxu1 %v887_v29  ;;  %4650 = vmatmul.mubr.bf16.vlgmr.msra.gmra.mrb[0].mxu0 %v775_v30 }
  0x46   : > { %4655 = vmatprep.mubr.msk.bf16.mxu1 %vm5211_vm0, %v6537_v2  ;;  %4679 = vmatprep.mubr.msk.bf16.mxu0 %vm5211_vm0, %v6537_v2 }
 0x118   : > { %v1030_v37 = vpop.f32.mrb[0].mxu1  ;;  %v881_v42 = vpop.f32.mrb[0].mxu0 }
 0x119   : > { %v1032_v40 = vpop.f32.mrb[1].mxu1  ;;  %v1031_v43 = vadd.f32 %v1030_v37, %v909_v36  ;;  %v882_v46 = vadd.f32 %v4367_v39, %v881_v42  ;;  %v4651_v47 = vpop.f32.mrb[1].mxu0 }
 0x11a   : > { %v1034_v41 = vpop.f32.mrb[2].mxu1  ;;  %v1033_v48 = vadd.f32 %v1032_v40, %v913_v38  ;;  %v884_v50 = vpop.f32.mrb[2].mxu0 }
 0x11b   : > { %v1035_v44 = vadd.f32 %v1034_v41, %v909_v36  ;;  %v1036_v45 = vpop.f32.mrb[3].mxu1  ;;  %v4652_v52 = vpop.f32.mrb[3].mxu0  ;;  %v1039_v54 = vpack.c.bf16 %v882_v46, %v882_v46 }
 0x11c   : > { %v1037_v49 = vadd.f32 %v1036_v45, %v913_v38 }
 0x11d   : > { %v1040_v51 = vpack.c.bf16 %v1035_v44, %v1031_v43 }
 0x11e   : > { %v5515_v53 = vpack.c.bf16 %v1037_v49, %v1033_v48 }
 0x11f   : > { %1143 = vrot.lane.b32.xlu1 %v1040_v51, %s6539_s24  ;;  %1093 = vrot.lane.b32.xlu0 %v1040_v51, %s6541_s8  ;;  %v1047_v55 = vsel %vm1042_vm1, %v1040_v51, 0 }
 0x120   : > { %4654 = vmatpush3.bf16.xpose.msra.mxu1 %v1047_v55 }
 0x121   : > { %4659 = vmatprep.subr.bf16.mxu1 %v6537_v2 }
 0x123   : > { %1141 = vrot.lane.b32.xlu1 %v1039_v54, %s6539_s24  ;;  %1090 = vrot.lane.b32.xlu0 %v1039_v54, %s6541_s8 }
 0x127   : > { %1243 = vrot.lane.b32.xlu1 %v1040_v51, %s5214_s4  ;;  %1193 = vrot.lane.b32.xlu0 %v1040_v51, %s5215_s25 }
 0x128   : > { %4656 = vmatmul.mubr.msk.bf16.vlgmr.msra.gmra.mrb[4].mxu1 %vm1042_vm1, %v1039_v54 }
 0x129   : > { %4661 = vmatprep.mubr.msk.bf16.mxu1 %vm5211_vm0, %v6537_v2 }
 0x12b   : > { %1293 = vrot.lane.b32.xlu1 %v1040_v51, %s6547_s23  ;;  %1191 = vrot.lane.b32.xlu0 %v1039_v54, %s5215_s25 }
 0x12f   : > { %1343 = vrot.lane.b32.xlu1 %v1040_v51, %s6545_s28  ;;  %1241 = vrot.lane.b32.xlu0 %v1039_v54, %s5214_s4 }
 0x133   : > { %1393 = vrot.lane.b32.xlu1 %v1040_v51, %s6543_s22  ;;  %1291 = vrot.lane.b32.xlu0 %v1039_v54, %s6547_s23 }
 0x137   : > { %1391 = vrot.lane.b32.xlu1 %v1039_v54, %s6543_s22  ;;  %1341 = vrot.lane.b32.xlu0 %v1039_v54, %s6545_s28 }
 0x13b   : > { %1483 = vrot.lane.b32.xlu1 %v5541_v56, %s6543_s22 }
 0x13f   : > { %1486 = vrot.lane.b32.xlu1 %v5541_v56, %s6545_s28 }
 0x143   : > { %1489 = vrot.lane.b32.xlu1 %v5541_v56, %s6547_s23 }
 0x147   : > { %1492 = vrot.lane.b32.xlu1 %v5541_v56, %s5214_s4 }
 0x14b   : > { %1495 = vrot.lane.b32.xlu1 %v5541_v56, %s5215_s25 }
 0x14f   : > { %1498 = vrot.lane.b32.xlu1 %v5541_v56, %s6539_s24 }
 0x153   : > { %1501 = vrot.lane.b32.xlu1 %v5541_v56, %s6541_s8 }
 0x191   : > { %v1144_v57 = vpop.permute.xlu1 %1143  ;;  %v1094_v58 = vpop.permute.xlu0 %1093 }
 0x192   : > { %v1099_v59 = vsel %vm1042_vm1, %v1094_v58, 0  ;;  %v1149_v0 = vsel %vm1042_vm1, %v1144_v57, 0 }
 0x193   : > { %4660 = vmatpush3.bf16.xpose.msra.mxu1 %v1099_v59 }
 0x194   : > { %4665 = vmatprep.subr.bf16.mxu1 %v6537_v2 }
 0x195   : > { %v1142_v60 = vpop.permute.xlu1 %1141  ;;  %v1091_v61 = vpop.permute.xlu0 %1090 }
 0x199   : > { %v1244_v62 = vpop.permute.xlu1 %1243  ;;  %v1194_v63 = vpop.permute.xlu0 %1193 }
 0x19a   : > { %v1249_v1 = vsel %vm1042_vm1, %v1244_v62, 0  ;;  %4662 = vmatmul.mubr.msk.bf16.vlgmr.msra.gmra.mrb[8].mxu1 %vm1042_vm1, %v1091_v61  ;;  %v1199_v8 = vsel %vm1042_vm1, %v1194_v63, 0 }
 0x19b   : > { %4666 = vmatpush3.bf16.xpose.msra.mxu1 %v1149_v0  ;;  %4678 = vmatpush3.bf16.xpose.msra.mxu0 %v1249_v1 }
 0x19c   : > { %4667 = vmatprep.mubr.msk.bf16.mxu1 %vm5211_vm0, %v6537_v2  ;;  %4671 = vmatprep.subr.bf16.mxu1 %v6537_v2 }
 0x19d   : > { %v1294_v4 = vpop.permute.xlu1 %1293  ;;  %v1192_v5 = vpop.permute.xlu0 %1191  ;;  %4689 = vmatprep.subr.bf16.mxu0 %v6537_v2 }
 0x19e   : > { %v1299_v12 = vsel %vm1042_vm1, %v1294_v4, 0 }
 0x1a1   : > { %v1344_v6 = vpop.permute.xlu1 %1343  ;;  %v1242_v7 = vpop.permute.xlu0 %1241 }
 0x1a2   : > { %v1349_v9 = vsel %vm1042_vm1, %v1344_v6, 0  ;;  %4668 = vmatmul.mubr.msk.bf16.vlgmr.msra.gmra.mrb[12].mxu1 %vm1042_vm1, %v1142_v60  ;;  %4680 = vmatmul.mubr.msk.bf16.vlgmr.msra.gmra.mrb[4].mxu0 %vm1042_vm1, %v1242_v7  ;;  %v5616_v6 = vsub.s32 3, %v5499_v32  ;;  %v5619_v7 = vsub.s32 4, %v5499_v32 }
 0x1a3   : > { %4672 = vmatpush3.bf16.xpose.msra.mxu1 %v1199_v8  ;;  %4690 = vmatpush3.bf16.xpose.msra.mxu0 %v1349_v9  ;;  %v5622_v8 = vsub.s32 5, %v5499_v32 }
 0x1a4   : > { %4691 = vmatprep.mubr.msk.bf16.mxu0 %vm5211_vm0, %v6537_v2  ;;  %4673 = vmatprep.mubr.msk.bf16.mxu1 %vm5211_vm0, %v6537_v2 }
 0x1a5   : > { %v1292_v10 = vpop.permute.xlu0 %1291  ;;  %4683 = vmatprep.subr.bf16.mxu1 %v6537_v2  ;;  %4701 = vmatprep.subr.bf16.mxu0 %v6537_v2  ;;  %v1394_v13 = vpop.permute.xlu1 %1393 }
 0x1a6   : > { %v1399_v14 = vsel %vm1042_vm1, %v1394_v13, 0  ;;  %v5636_v13 = vsub.s32 7, %v5499_v32 }
 0x1a9   : > { %v1342_v11 = vpop.permute.xlu0 %1341  ;;  %v1392_v15 = vpop.permute.xlu1 %1391 }
 0x1aa   : > { %4674 = vmatmul.mubr.msk.bf16.vlgmr.msra.gmra.mrb[16].mxu1 %vm1042_vm1, %v1192_v5  ;;  %4692 = vmatmul.mubr.msk.bf16.vlgmr.msra.gmra.mrb[8].mxu0 %vm1042_vm1, %v1342_v11  ;;  %v5613_v5 = vsub.s32 2, %v5499_v32  ;;  %v5630_v11 = vld [vmem:[%s6506_s9 + $0x18] sm:$0xff] }
 0x1ab   : > { %4684 = vmatpush3.bf16.xpose.msra.mxu1 %v1299_v12  ;;  %4702 = vmatpush3.bf16.msra.mxu0 %v5515_v53  ;;  %v5633_v12 = vsub.s32 6, %v5499_v32  ;;  %v1735_v32 = vrot.slane %v5630_v11, %v5508_v35 }
 0x1ac   : > { %4685 = vmatprep.mubr.msk.bf16.mxu1 %vm5211_vm0, %v6537_v2  ;;  %4695 = vmatprep.subr.bf16.mxu1 %v6537_v2 }
 0x1ad   : > { %4703 = vmatprep.mubr.msk.bf16.mxu0 %vm5211_vm0, %v6537_v2  ;;  %4713 = vmatprep.subr.bf16.mxu0 %v6537_v2  ;;  %v1484_v51 = vpop.permute.xlu1 %1483 }
 0x1ae   : > { %v1504_v57 = vsel %vm1042_vm1, %v5541_v56, %v1484_v51  ;;  %v1513_v56 = vld [vmem:[%s6506_s9 + $0x10] sm:$0xff] }
 0x1b1   : > { %v1487_v52 = vpop.permute.xlu1 %1486 }
 0x1b2   : > { %4686 = vmatmul.mubr.msk.bf16.vlgmr.msra.gmra.mrb[20].mxu1 %vm1042_vm1, %v1292_v10  ;;  %v1505_v59 = vsel %vm1470_vm2, %v1504_v57, %v1487_v52 }
 0x1b3   : > { %4696 = vmatpush3.bf16.xpose.msra.mxu1 %v1399_v14  ;;  %4697 = vmatprep.mubr.msk.bf16.mxu1 %vm5211_vm0, %v6537_v2 }
 0x1b4   : > { %4707 = vmatprep.subr.bf16.mxu1 %v6537_v2 }
 0x1b5   : > { %v1490_v54 = vpop.permute.xlu1 %1489 }
 0x1b6   : > { %v1506_v61 = vsel %vm1472_vm3, %v1505_v59, %v1490_v54 }
 0x1b9   : > { %v1493_v55 = vpop.permute.xlu1 %1492 }
 0x1ba   : > { %4698 = vmatmul.mubr.msk.bf16.vlgmr.msra.gmra.mrb[24].mxu1 %vm1042_vm1, %v1392_v15  ;;  %v1507_v63 = vsel %vm1474_vm4, %v1506_v61, %v1493_v55  ;;  %v1528_v15 = vrot.slane %v1513_v56, %v5502_v33 }
 0x1bb   : > { %4709 = vmatprep.mubr.msk.bf16.mxu1 %vm5211_vm0, %v6537_v2 }
 0x1bd   : > { %v1496_v60 = vpop.permute.xlu1 %1495 }
 0x1be   : > { %v1508_v4 = vsel %vm1476_vm5, %v1507_v63, %v1496_v60 }
 0x1c1   : > { %v1499_v0 = vpop.permute.xlu1 %1498 }
 0x1c2   : > { %v1509_v10 = vsel %vm1478_vm6, %v1508_v4, %v1499_v0 }
 0x1c5   : > { %v1502_v14 = vpop.permute.xlu1 %1501 }
 0x1fb   : > { %v5594_v16 = vpop.f32.mrb[4].mxu1 }
 0x1fc   : > { %v4657_v17 = vpop.f32.mrb[5].mxu1 }
 0x1fd   : > { %v1086_v18 = vpop.f32.mrb[6].mxu1  ;;  %v1551_v17 = vrot.slane %v1513_v56, %v5508_v35 }
 0x1fe   : > { %v4658_v19 = vpop.f32.mrb[7].mxu1  ;;  %v1574_v18 = vrot.slane %v1513_v56, %v5613_v5 }
 0x1ff   : > { %v1597_v19 = vrot.slane %v1513_v56, %v5616_v6 }
 0x26d   : > { %v1135_v20 = vpop.f32.mrb[8].mxu1 }
 0x26e   : > { %1442 = vrot.lane.b32.xlu0 %v1135_v20, %s6543_s22  ;;  %v4663_v21 = vpop.f32.mrb[9].mxu1  ;;  %v1620_v20 = vrot.slane %v1513_v56, %v5619_v7 }
 0x26f   : > { %v1138_v22 = vpop.f32.mrb[10].mxu1  ;;  %v1643_v21 = vrot.slane %v1513_v56, %v5622_v8 }
 0x270   : > { %v4664_v23 = vpop.f32.mrb[11].mxu1  ;;  %v1712_v22 = vrot.slane %v5630_v11, %v5502_v33 }
 0x271   : > { %v5649_v23 = vsel %vm1480_vm7, %v1509_v10, %v1502_v14 }
 0x275   : > { %v1185_v24 = vpop.f32.mrb[12].mxu1  ;;  %v1285_v25 = vpop.f32.mrb[4].mxu0 }
 0x276   : > { %v4669_v26 = vpop.f32.mrb[13].mxu1  ;;  %1454 = vrot.lane.b32.xlu0 %v1285_v25, %s5214_s4  ;;  %v4681_v27 = vpop.f32.mrb[5].mxu0  ;;  %v1666_v25 = vrot.slane %v1513_v56, %v5633_v12 }
 0x277   : > { %v1188_v28 = vpop.f32.mrb[14].mxu1  ;;  %v1288_v29 = vpop.f32.mrb[6].mxu0  ;;  %v1689_v26 = vrot.slane %v1513_v56, %v5636_v13  ;;  %v1758_v27 = vrot.slane %v5630_v11, %v5613_v5 }
 0x278   : > { %v4670_v30 = vpop.f32.mrb[15].mxu1  ;;  %v4682_v31 = vpop.f32.mrb[7].mxu0  ;;  %v1781_v28 = vrot.slane %v5630_v11, %v5616_v6  ;;  %v1804_v29 = vrot.slane %v5630_v11, %v5619_v7 }
 0x279   : > { %v1827_v30 = vrot.slane %v5630_v11, %v5622_v8  ;;  %v1850_v31 = vrot.slane %v5630_v11, %v5633_v12  ;;  %v5701_v51 = vmul.f32 %v1758_v27, %v5649_v23 }
 0x27a   : > { %1446 = vrot.lane.b32.xlu0 %v1185_v24, %s6545_s28  ;;  %v5704_v52 = vmul.f32 %v1781_v28, %v5649_v23  ;;  %v5707_v54 = vmul.f32 %v1804_v29, %v5649_v23 }
 0x27b   : > { %v5710_v57 = vmul.f32 %v1827_v30, %v5649_v23 }
 0x27d   : > { %v1235_v34 = vpop.f32.mrb[16].mxu1  ;;  %v1385_v36 = vpop.f32.mrb[8].mxu0 }
 0x27e   : > { %v4675_v37 = vpop.f32.mrb[17].mxu1  ;;  %1462 = vrot.lane.b32.xlu0 %v1385_v36, %s6539_s24  ;;  %v4693_v38 = vpop.f32.mrb[9].mxu0 }
 0x27f   : > { %v1238_v39 = vpop.f32.mrb[18].mxu1  ;;  %v1388_v40 = vpop.f32.mrb[10].mxu0  ;;  %v1529_v37 = vmul.f32 %v1528_v15, %v5649_v23  ;;  %v1552_v38 = vmul.f32 %v1551_v17, %v5649_v23 }
 0x280   : > { %v4676_v41 = vpop.f32.mrb[19].mxu1  ;;  %v4694_v42 = vpop.f32.mrb[11].mxu0  ;;  %v1575_v39 = vmul.f32 %v1574_v18, %v5649_v23 }
 0x281   : > { %v1598_v41 = vmul.f32 %v1597_v19, %v5649_v23  ;;  %v1621_v42 = vmul.f32 %v1620_v20, %v5649_v23 }
 0x282   : > { %1450 = vrot.lane.b32.xlu0 %v1235_v34, %s6547_s23 }
 0x285   : > { %v1335_v43 = vpop.f32.mrb[20].mxu1 }
 0x286   : > { %v4687_v44 = vpop.f32.mrb[21].mxu1  ;;  %1458 = vrot.lane.b32.xlu0 %v1335_v43, %s5215_s25  ;;  %v1644_v43 = vmul.f32 %v1643_v21, %v5649_v23 }
 0x287   : > { %v1338_v45 = vpop.f32.mrb[22].mxu1  ;;  %v1511_v44 = vld [vmem:[%s6506_s9] sm:$0xff] }
 0x288   : > { %v4688_v46 = vpop.f32.mrb[23].mxu1  ;;  %v5683_v45 = vmul.f32 %v1666_v25, %v5649_v23  ;;  %v1523_v59 = vrot.slane %v1511_v44, %v5502_v33  ;;  %v1546_v0 = vrot.slane %v1511_v44, %v5508_v35  ;;  %v1569_v10 = vrot.slane %v1511_v44, %v5613_v5 }
 0x289   : > { %v5686_v46 = vmul.f32 %v1689_v26, %v5649_v23  ;;  %v1592_v15 = vrot.slane %v1511_v44, %v5616_v6  ;;  %v1615_v19 = vrot.slane %v1511_v44, %v5619_v7  ;;  %v1638_v21 = vrot.slane %v1511_v44, %v5622_v8 }
 0x28a   : > { %v1684_v30 = vrot.slane %v1511_v44, %v5636_v13 }
 0x28d   : > { %v1435_v47 = vpop.f32.mrb[24].mxu1 }
 0x28e   : > { %v4699_v48 = vpop.f32.mrb[25].mxu1  ;;  %1466 = vrot.lane.b32.xlu0 %v1435_v47, %s6541_s8  ;;  %v5689_v47 = vmul.f32 %v1712_v22, %v5649_v23  ;;  %v1661_v22 = vrot.slane %v1511_v44, %v5633_v12 }
 0x28f   : > { %v1438_v49 = vpop.f32.mrb[26].mxu1 }
 0x290   : > { %v4700_v50 = vpop.f32.mrb[27].mxu1  ;;  %v5695_v49 = vld [vmem:[%s6506_s9 + $0x30] sm:$0xff] }
 0x291   : > { %v5698_v50 = vmul.f32 %v1735_v32, %v5649_v23  ;;  %v1540_v63 = vrot.slane %v5695_v49, %v5502_v33  ;;  %v1563_v56 = vrot.slane %v5695_v49, %v5508_v35  ;;  %v1609_v18 = vrot.slane %v5695_v49, %v5616_v6 }
 0x292   : > { %v1655_v26 = vrot.slane %v5695_v49, %v5622_v8 }
 0x2e0   : > { %v1443_v58 = vpop.permute.xlu0 %1442 }
 0x2e1   : > { %v1469_v36 = vsel %vm1042_vm1, %v5594_v16, %v1443_v58  ;;  %v5680_v16 = vld [vmem:[%s6506_s9 + $0x20] sm:$0xff]  ;;  %v5713_v58 = vmul.f32 %v1850_v31, %v5649_v23 }
 0x2e2   : > { %v1534_v60 = vrot.slane %v5680_v16, %v5502_v33  ;;  %v1580_v14 = vrot.slane %v5680_v16, %v5613_v5  ;;  %v1603_v17 = vrot.slane %v5680_v16, %v5616_v6  ;;  %v1626_v20 = vrot.slane %v5680_v16, %v5619_v7 }
 0x2e3   : > { %v1649_v25 = vrot.slane %v5680_v16, %v5622_v8  ;;  %v1672_v28 = vrot.slane %v5680_v16, %v5633_v12 }
 0x2e8   : > { %v1455_v62 = vpop.permute.xlu0 %1454 }
 0x2ec   : > { %v1447_v1 = vpop.permute.xlu0 %1446 }
 0x2ed   : > { %v1471_v40 = vsel %vm1470_vm2, %v1469_v36, %v1447_v1  ;;  %v1557_v1 = vrot.slane %v5680_v16, %v5508_v35 }
 0x2f0   : > { %v5624_v9 = vpop.permute.xlu0 %1462 }
 0x2f4   : > { %v1451_v24 = vpop.permute.xlu0 %1450 }
 0x2f5   : > { %v1473_v48 = vsel %vm1472_vm3, %v1471_v40, %v1451_v24  ;;  %v1632_v24 = vrot.slane %v5695_v49, %v5619_v7 }
 0x2f6   : > { %v1475_v61 = vsel %vm1474_vm4, %v1473_v48, %v1455_v62  ;;  %v1586_v62 = vrot.slane %v5695_v49, %v5613_v5 }
 0x2f8   : > { %v1459_v55 = vpop.permute.xlu0 %1458 }
 0x2f9   : > { %v1477_v4 = vsel %vm1476_vm5, %v1475_v61, %v1459_v55  ;;  %v1695_v55 = vrot.slane %v5680_v16, %v5636_v13 }
 0x2fa   : > { %v1479_v32 = vsel %vm1478_vm6, %v1477_v4, %v5624_v9 }
 0x300   : > { %v1467_v27 = vpop.permute.xlu0 %1466 }
 0x301   : > { %v5756_v9 = vsel %vm1480_vm7, %v1479_v32, %v1467_v27  ;;  %v5770_v32 = vld [vmem:[%s6506_s9 + $0x8] sm:$0xff] }
 0x302   : > { %v1524_v31 = vmul.f32 %v1523_v59, %v5756_v9  ;;  %v1547_v36 = vmul.f32 %v1546_v0, %v5756_v9  ;;  %v1570_v40 = vmul.f32 %v1569_v10, %v5756_v9  ;;  %v1593_v48 = vmul.f32 %v1592_v15, %v5756_v9 }
 0x303   : > { %v1616_v61 = vmul.f32 %v1615_v19, %v5756_v9  ;;  %v1639_v4 = vmul.f32 %v1638_v21, %v5756_v9  ;;  %v1662_v44 = vmul.f32 %v1661_v22, %v5756_v9  ;;  %v1701_v15 = vrot.slane %v5695_v49, %v5636_v13  ;;  %v5778_v21 = vld [vmem:[%s6506_s9 + $0x28] sm:$0xff] }
 0x304   : > { %v1530_v59 = vadd.f32 %v1529_v37, %v1524_v31  ;;  %v1553_v0 = vadd.f32 %v1552_v38, %v1547_v36  ;;  %v1576_v27 = vadd.f32 %v1575_v39, %v1570_v40  ;;  %v1599_v10 = vadd.f32 %v1598_v41, %v1593_v48 }
 0x305   : > { %v1622_v3 = vadd.f32 %v1621_v42, %v1616_v61  ;;  %v1645_v16 = vadd.f32 %v1644_v43, %v1639_v4  ;;  %v1685_v19 = vmul.f32 %v1684_v30, %v5756_v9  ;;  %v1707_v37 = vrot.slane %v5770_v32, %v5502_v33 }
 0x306   : > { %v1535_v22 = vadd.f32 %v1534_v60, %v1530_v59  ;;  %v1558_v2 = vadd.f32 %v1557_v1, %v1553_v0  ;;  %v1581_v34 = vadd.f32 %v1580_v14, %v1576_v27  ;;  %v1604_v29 = vadd.f32 %v1603_v17, %v1599_v10 }
 0x307   : > { %v1730_v38 = vrot.slane %v5770_v32, %v5508_v35  ;;  %v1627_v39 = vadd.f32 %v1626_v20, %v1622_v3  ;;  %v1668_v41 = vadd.f32 %v5683_v45, %v1662_v44  ;;  %v1753_v42 = vrot.slane %v5770_v32, %v5613_v5 }
 0x308   : > { %v1536_v43 = vmax.f32 %v1535_v22, 0.0  ;;  %v1559_v30 = vmax.f32 %v1558_v2, 0.0  ;;  %v1582_v31 = vmax.f32 %v1581_v34, 0.0  ;;  %v1718_v60 = vrot.slane %v5778_v21, %v5502_v33 }
 0x309   : > { %v1605_v1 = vmax.f32 %v1604_v29, 0.0  ;;  %v1650_v14 = vadd.f32 %v1649_v25, %v1645_v16  ;;  %v1691_v17 = vadd.f32 %v5686_v46, %v1685_v19  ;;  %v1741_v36 = vrot.slane %v5778_v21, %v5508_v35 }
 0x30a   : > { %v1776_v3 = vrot.slane %v5770_v32, %v5616_v6  ;;  %v1541_v45 = vmul.f32 %v1540_v63, %v1536_v43  ;;  %v1564_v20 = vmul.f32 %v1563_v56, %v1559_v30  ;;  %v1799_v40 = vrot.slane %v5770_v32, %v5619_v7 }
 0x30b   : > { %v1587_v2 = vmul.f32 %v1586_v62, %v1582_v31  ;;  %v1628_v34 = vmax.f32 %v1627_v39, 0.0  ;;  %v1673_v48 = vadd.f32 %v1672_v28, %v1668_v41  ;;  %v1708_v29 = vmul.f32 %v1707_v37, %v5756_v9 }
 0x30c   : > { %v1565_v61 = vadd.f32 %v1564_v20, %v1541_v45  ;;  %v1731_v25 = vmul.f32 %v1730_v38, %v5756_v9  ;;  %v1754_v46 = vmul.f32 %v1753_v42, %v5756_v9  ;;  %v1822_v4 = vrot.slane %v5770_v32, %v5622_v8 }
 0x30d   : > { %v1610_v44 = vmul.f32 %v1609_v18, %v1605_v1  ;;  %v1651_v59 = vmax.f32 %v1650_v14, 0.0  ;;  %v1696_v63 = vadd.f32 %v1695_v55, %v1691_v17  ;;  %v1714_v0 = vadd.f32 %v5689_v47, %v1708_v29  ;;  %v5814_v55 = vld [vmem:[%s6506_s9 + $0x38] sm:$0xff] }
 0x30e   : > { %v1588_v56 = vadd.f32 %v1587_v2, %v1565_v61  ;;  %v1737_v62 = vadd.f32 %v5698_v50, %v1731_v25  ;;  %v1777_v28 = vmul.f32 %v1776_v3, %v5756_v9  ;;  %v1764_v27 = vrot.slane %v5778_v21, %v5613_v5 }
 0x30f   : > { %v1845_v10 = vrot.slane %v5770_v32, %v5633_v12  ;;  %v1633_v16 = vmul.f32 %v1632_v24, %v1628_v34  ;;  %v1674_v18 = vmax.f32 %v1673_v48, 0.0  ;;  %v1719_v50 = vadd.f32 %v1718_v60, %v1714_v0 }
 0x310   : > { %v1611_v47 = vadd.f32 %v1610_v44, %v1588_v56  ;;  %v1760_v19 = vadd.f32 %v5701_v51, %v1754_v46  ;;  %v1800_v22 = vmul.f32 %v1799_v40, %v5756_v9  ;;  %v1787_v37 = vrot.slane %v5778_v21, %v5616_v6 }
 0x311   : > { %v1868_v38 = vrot.slane %v5770_v32, %v5636_v13  ;;  %v1697_v39 = vmax.f32 %v1696_v63, 0.0  ;;  %v1823_v24 = vmul.f32 %v1822_v4, %v5756_v9  ;;  %v1656_v42 = vmul.f32 %v1655_v26, %v1651_v59 }
 0x312   : > { %v1634_v41 = vadd.f32 %v1633_v16, %v1611_v47  ;;  %v1742_v43 = vadd.f32 %v1741_v36, %v1737_v62  ;;  %v1783_v30 = vadd.f32 %v5704_v52, %v1777_v28  ;;  %v1724_v51 = vrot.slane %v5814_v55, %v5502_v33 }
 0x313   : > { %v1810_v31 = vrot.slane %v5778_v21, %v5619_v7  ;;  %v6581_v32 = vrot.slane %v5695_v49, %v5633_v12  ;;  %v1846_v1 = vmul.f32 %v1845_v10, %v5756_v9  ;;  %v1720_v17 = vmax.f32 %v1719_v50, 0.0 }
 0x314   : > { %v1657_v14 = vadd.f32 %v1656_v42, %v1634_v41  ;;  %v1765_v3 = vadd.f32 %v1764_v27, %v1760_v19  ;;  %v1806_v26 = vadd.f32 %v5707_v54, %v1800_v22  ;;  %v1747_v52 = vrot.slane %v5814_v55, %v5508_v35 }
 0x315   : > { %v1679_v60 = vmul.f32 %v6581_v32, %v1674_v18  ;;  %v1833_v36 = vrot.slane %v5778_v21, %v5622_v8  ;;  %v1702_v45 = vmul.f32 %v1701_v15, %v1697_v39  ;;  %v1829_v20 = vadd.f32 %v5710_v57, %v1823_v24 }
 0x316   : > { %v1743_v2 = vmax.f32 %v1742_v43, 0.0  ;;  %v1788_v34 = vadd.f32 %v1787_v37, %v1783_v30  ;;  %v1869_v48 = vmul.f32 %v1868_v38, %v5756_v9  ;;  %v6582_v54 = vrot.slane %v5630_v11, %v5636_v13  ;;  %v4400_v43 = vld [vmem:[%s6506_s9 + $0x40] ss:$0 sm:$0xff] }
 0x317   : > { %v1680_v40 = vadd.f32 %v1679_v60, %v1657_v14  ;;  %v1770_v29 = vrot.slane %v5814_v55, %v5613_v5  ;;  %v1856_v25 = vrot.slane %v5778_v21, %v5633_v12  ;;  %v1852_v49 = vadd.f32 %v5713_v58, %v1846_v1 }
 0x318   : > { %v1874_v61 = vmul.f32 %v6582_v54, %v5649_v23  ;;  %v1725_v57 = vmul.f32 %v1724_v51, %v1720_v17  ;;  %v1766_v46 = vmax.f32 %v1765_v3, 0.0  ;;  %v1811_v4 = vadd.f32 %v1810_v31, %v1806_v26 }
 0x319   : > { %v1703_v15 = vadd.f32 %v1702_v45, %v1680_v40  ;;  %v1793_v9 = vrot.slane %v5814_v55, %v5616_v6  ;;  %v1879_v44 = vrot.slane %v5778_v21, %v5636_v13  ;;  %v1834_v11 = vadd.f32 %v1833_v36, %v1829_v20 }
 0x31a   : > { %v1748_v59 = vmul.f32 %v1747_v52, %v1743_v2  ;;  %v1789_v63 = vmax.f32 %v1788_v34, 0.0  ;;  %v1875_v56 = vadd.f32 %v1874_v61, %v1869_v48  ;;  %v1816_v0 = vrot.slane %v5814_v55, %v5619_v7 }
 0x31b   : > { %v1726_v23 = vadd.f32 %v1725_v57, %v1703_v15  ;;  %v1771_v58 = vmul.f32 %v1770_v29, %v1766_v46  ;;  %v1812_v28 = vmax.f32 %v1811_v4, 0.0  ;;  %v1857_v27 = vadd.f32 %v1856_v25, %v1852_v49 }
 0x31c   : > { %v1839_v10 = vrot.slane %v5814_v55, %v5622_v8  ;;  %v1794_v6 = vmul.f32 %v1793_v9, %v1789_v63  ;;  %v1835_v18 = vmax.f32 %v1834_v11, 0.0  ;;  %v1880_v47 = vadd.f32 %v1879_v44, %v1875_v56 }
 0x31d   : > { %v1749_v62 = vadd.f32 %v1748_v59, %v1726_v23  ;;  %v1862_v21 = vrot.slane %v5814_v55, %v5633_v12  ;;  %v1817_v19 = vmul.f32 %v1816_v0, %v1812_v28  ;;  %v1858_v22 = vmax.f32 %v1857_v27, 0.0 }
 0x31e   : > { %v1885_v7 = vrot.slane %v5814_v55, %v5636_v13  ;;  %v1840_v38 = vmul.f32 %v1839_v10, %v1835_v18  ;;  %v1881_v39 = vmax.f32 %v1880_v47, 0.0 }
 0x31f   : > { %v1772_v16 = vadd.f32 %v1771_v58, %v1749_v62  ;;  %v1863_v41 = vmul.f32 %v1862_v21, %v1858_v22 }
 0x320   : > { %v1886_v8 = vmul.f32 %v1885_v7, %v1881_v39 }
 0x321   : > { %v1795_v50 = vadd.f32 %v1794_v6, %v1772_v16 }
 0x323   : > { %v1818_v37 = vadd.f32 %v1817_v19, %v1795_v50 }
 0x325   : > { %v1841_v24 = vadd.f32 %v1840_v38, %v1818_v37 }
 0x327   : > { %v1864_v42 = vadd.f32 %v1863_v41, %v1841_v24 }
 0x329   : > { %v1887_v30 = vadd.f32 %v1886_v8, %v1864_v42 }
 0x32b   : > { %v5869_v12 = vadd.f32 %v4400_v43, %v1887_v30 }
 0x32d   : > { %v2016_v51 = vsel %vm2015_vm8, %v5869_v12, -inf  ;;  %v1949_v13 = vsel %vm1948_vm9, %v5869_v12, -inf  ;;  %v2214_v55 = vsel %vm2213_vm10, %v5869_v12, -inf  ;;  %v2082_v31 = vsel %vm2081_vm11, %v5869_v12, -inf }
 0x32e   : > { %2017 = vmax.xlane.f32.xlu1 %v2016_v51  ;;  %1950 = vmax.xlane.f32.xlu0 %v1949_v13  ;;  %v2346_v32 = vsel %vm2345_vm12, %v5869_v12, -inf  ;;  %v2148_v60 = vsel %vm2147_vm13, %v5869_v12, -inf  ;;  %v2280_v1 = vsel %vm2279_vm14, %v5869_v12, -inf  ;;  %v1893_v0 = vsel %vm1042_vm1, %v5869_v12, -inf }
 0x32f   : > { %vm2895_vm8 = vcmask 64512  }
 0x332   : > { %2215 = vmax.xlane.f32.xlu1 %v2214_v55  ;;  %2083 = vmax.xlane.f32.xlu0 %v2082_v31 }
 0x336   : > { %2347 = vmax.xlane.f32.xlu1 %v2346_v32  ;;  %2149 = vmax.xlane.f32.xlu0 %v2148_v60 }
 0x33a   : > { %2281 = vmax.xlane.f32.xlu0 %v2280_v1 }
 0x3bb   : > { %v2018_v14 = vpop.xlane.xlu1 %2017  ;;  %v1951_v17 = vpop.xlane.xlu0 %1950 }
 0x3bc   : > { %v2019_v3 = vsub.f32 %v5869_v12, %v2018_v14  ;;  %v1952_v26 = vsub.f32 %v5869_v12, %v1951_v17 }
 0x3be   : > { %v2020_v52 = vmul.f32 1.442695, %v2019_v3  ;;  %v1953_v36 = vmul.f32 1.442695, %v1952_v26 }
 0x3bf   : > { %v2216_v45 = vpop.xlane.xlu1 %2215  ;;  %v2084_v20 = vpop.xlane.xlu0 %2083 }
 0x3c0   : > { %5074 = vpow2.f32 %v2020_v52  ;;  %v2217_v40 = vsub.f32 %v5869_v12, %v2216_v45  ;;  %v2085_v2 = vsub.f32 %v5869_v12, %v2084_v20  ;;  %v6583_v52 = vmov 0.0  }
 0x3c1   : > { %5076 = vpow2.f32 %v1953_v36 }
 0x3c2   : > { %v2086_v34 = vmul.f32 1.442695, %v2085_v2  ;;  %v2218_v61 = vmul.f32 1.442695, %v2217_v40 }
 0x3c3   : > { %v2348_v48 = vpop.xlane.xlu1 %2347  ;;  %v2150_v54 = vpop.xlane.xlu0 %2149 }
 0x3c4   : > { %v2151_v29 = vsub.f32 %v5869_v12, %v2150_v54  ;;  %5078 = vpow2.f32 %v2086_v34  ;;  %v2349_v25 = vsub.f32 %v5869_v12, %v2348_v48 }
 0x3c5   : > { %5080 = vpow2.f32 %v2218_v61 }
 0x3c6   : > { %v2152_v49 = vmul.f32 1.442695, %v2151_v29  ;;  %v2350_v46 = vmul.f32 1.442695, %v2349_v25 }
 0x3c7   : > { %v2282_v15 = vpop.xlane.xlu0 %2281 }
 0x3c8   : > { %v2283_v57 = vsub.f32 %v5869_v12, %v2282_v15  ;;  %5082 = vpow2.f32 %v2152_v49 }
 0x3ca   : > { %v5885_v4 = vpop.eup %5074  ;;  %v2284_v9 = vmul.f32 1.442695, %v2283_v57 }
 0x3cb   : > { %v5077_v44 = vpop.eup %5076  ;;  %2023 = vrot.lane.b32.xlu1 %v5885_v4, %s6539_s24 }
 0x3cc   : > { %5084 = vpow2.f32 %v2284_v9  ;;  %1956 = vrot.lane.b32.xlu0 %v5077_v44, %s6541_s8 }
 0x3cd   : > { %5086 = vpow2.f32 %v2350_v46 }
 0x3ce   : > { %v5079_v11 = vpop.eup %5078 }
 0x3cf   : > { %2089 = vrot.lane.b32.xlu1 %v5079_v11, %s5215_s25  ;;  %v5891_v23 = vpop.eup %5080 }
 0x3d2   : > { %v5893_v59 = vpop.eup %5082 }
 0x3d3   : > { %2221 = vrot.lane.b32.xlu1 %v5891_v23, %s6547_s23  ;;  %2155 = vrot.lane.b32.xlu0 %v5893_v59, %s5214_s4 }
 0x3d6   : > { %v5899_v63 = vpop.eup %5084 }
 0x3d7   : > { %v5901_v56 = vpop.eup %5086  ;;  %2287 = vrot.lane.b32.xlu0 %v5899_v63, %s6545_s28 }
 0x3d8   : > { %2353 = vrot.lane.b32.xlu1 %v5901_v56, %s6543_s22 }
 0x3f6   : > { %1894 = vmax.xlane.f32.xlu0 %v1893_v0 }
 0x43d   : > { %v2024_v62 = vpop.permute.xlu1 %2023 }
 0x43e   : > { %v1957_v58 = vpop.permute.xlu0 %1956  ;;  %v2026_v28 = vsel %vm1042_vm1, %v2024_v62, 0.0 }
 0x43f   : > { %v1959_v27 = vsel %vm1042_vm1, %v1957_v58, 0.0  ;;  %2027 = vadd.xlane.f32.xlu0 %v2026_v28 }
 0x440   : > { %1960 = vadd.xlane.f32.xlu1 %v1959_v27 }
 0x441   : > { %v2090_v10 = vpop.permute.xlu1 %2089 }
 0x442   : > { %v2092_v16 = vsel %vm1042_vm1, %v2090_v10, 0.0 }
 0x443   : > { %2093 = vadd.xlane.f32.xlu0 %v2092_v16  ;;  %v6584_v16 = vmov 0  }
 0x445   : > { %v2222_v6 = vpop.permute.xlu1 %2221  ;;  %v2156_v18 = vpop.permute.xlu0 %2155 }
 0x446   : > { %v2158_v47 = vsel %vm1042_vm1, %v2156_v18, 0.0  ;;  %v2224_v21 = vsel %vm1042_vm1, %v2222_v6, 0.0  ;;  %v4986_v6 = vld [vmem:[%s6585_s0] sm:$0xff]  }
 0x447   : > { %2159 = vadd.xlane.f32.xlu1 %v2158_v47  ;;  %2225 = vadd.xlane.f32.xlu0 %v2224_v21 }
 0x449   : > { %v2288_v19 = vpop.permute.xlu0 %2287 }
 0x44a   : > { %v2354_v50 = vpop.permute.xlu1 %2353  ;;  %v2290_v22 = vsel %vm1042_vm1, %v2288_v19, 0.0  ;;  %v4987_v19 = vld [vmem:[%s6585_s0 + $0x8] sm:$0xff]  }
 0x44b   : > { %v2356_v7 = vsel %vm1042_vm1, %v2354_v50, 0.0  ;;  %2291 = vadd.xlane.f32.xlu1 %v2290_v22  ;;  %v4988_v22 = vld [vmem:[%s6585_s0 + $0x10] sm:$0xff]  }
 0x44c   : > { %2357 = vadd.xlane.f32.xlu0 %v2356_v7  ;;  %v4989_v7 = vld [vmem:[%s6585_s0 + $0x18] sm:$0xff]  }
 0x462   : > { %1969 = vrot.lane.b32.xlu0 %v5515_v53, %s6541_s8 }
 0x466   : > { %2101 = vrot.lane.b32.xlu0 %v5515_v53, %s5215_s25 }
 0x483   : > { %v1895_v37 = vpop.xlane.xlu0 %1894 }
 0x484   : > { %v1896_v38 = vsub.f32 %v5869_v12, %v1895_v37  ;;  %v4990_v37 = vld [vmem:[%s6585_s0 + $0x20] sm:$0xff]  }
 0x486   : > { %v1897_v39 = vmul.f32 1.442695, %v1896_v38 }
 0x488   : > { %5088 = vpow2.f32 %v1897_v39 }
 0x492   : > { %v5089_v24 = vpop.eup %5088 }
 0x493   : > { %v1899_v41 = vsel %vm1042_vm1, %v5089_v24, 0.0 }
 0x494   : > { %1900 = vadd.xlane.f32.xlu1 %v1899_v41 }
 0x4cc   : > { %v2028_v42 = vpop.xlane.xlu0 %2027 }
 0x4cd   : > { %v1961_v8 = vpop.xlane.xlu1 %1960 }
 0x4ce   : > { %5090 = vrcp.f32 %v1961_v8  ;;  %v4992_v8 = vld [vmem:[%s6585_s0 + $0x30] sm:$0xff]  }
 0x4cf   : > { %5092 = vrcp.f32 %v2028_v42  ;;  %v4991_v42 = vld [vmem:[%s6585_s0 + $0x28] sm:$0xff]  }
 0x4d0   : > { %v2094_v43 = vpop.xlane.xlu0 %2093 }
 0x4d1   : > { %5094 = vrcp.f32 %v2094_v43 }
 0x4d4   : > { %v2226_v30 = vpop.xlane.xlu0 %2225  ;;  %v2160_v51 = vpop.xlane.xlu1 %2159 }
 0x4d5   : > { %5096 = vrcp.f32 %v2226_v30 }
 0x4d6   : > { %5098 = vrcp.f32 %v2160_v51 }
 0x4d8   : > { %v5091_v13 = vpop.eup %5090  ;;  %v2292_v17 = vpop.xlane.xlu1 %2291 }
 0x4d9   : > { %v2358_v55 = vpop.xlane.xlu0 %2357  ;;  %v1963_v31 = vmul.f32 %v5091_v13, %v5077_v44  ;;  %v5093_v12 = vpop.eup %5092 }
 0x4da   : > { %5100 = vrcp.f32 %v2358_v55  ;;  %v2030_v26 = vmul.f32 %v5093_v12, %v5885_v4 }
 0x4db   : > { %v1964_v32 = vpack.c.bf16 %v1963_v31, %v1963_v31  ;;  %v5095_v60 = vpop.eup %5094  ;;  %5102 = vrcp.f32 %v2292_v17 }
 0x4dc   : > { %v2096_v14 = vmul.f32 %v5095_v60, %v5079_v11  ;;  %v2031_v45 = vpack.c.bf16 %v2030_v26, %v2030_v26  ;;  %v4993_v60 = vld [vmem:[%s6585_s0 + $0x38] sm:$0xff]  }
 0x4dd   : > { %1966 = vrot.lane.b32.xlu1 %v1964_v32, %s6541_s8  ;;  %v1970_v1 = vpop.permute.xlu0 %1969  ;;  %s6590_s8 = smov 32  }
 0x4de   : > { %4708 = vmatpush3.bf16.msra.mxu1 %v1970_v1  ;;  %v2097_v3 = vpack.c.bf16 %v2096_v14, %v2096_v14 }
 0x4df   : > { %4719 = vmatprep.subr.bf16.mxu1 %v6583_v52  ;;  %v5097_v36 = vpop.eup %5096 }
 0x4e0   : > { %2099 = vrot.lane.b32.xlu0 %v2097_v3, %s5215_s25  ;;  %v2228_v20 = vmul.f32 %v5097_v36, %v5891_v23  ;;  %v5099_v40 = vpop.eup %5098 }
 0x4e1   : > { %2035 = vrot.lane.b32.xlu1 %v5515_v53, %s6539_s24  ;;  %v2162_v34 = vmul.f32 %v5099_v40, %v5893_v59  ;;  %v2102_v44 = vpop.permute.xlu0 %2101 }
 0x4e2   : > { %v2229_v2 = vpack.c.bf16 %v2228_v20, %v2228_v20 }
 0x4e3   : > { %v2163_v54 = vpack.c.bf16 %v2162_v34, %v2162_v34 }
 0x4e4   : > { %2233 = vrot.lane.b32.xlu0 %v5515_v53, %s6547_s23  ;;  %v5101_v48 = vpop.eup %5100 }
 0x4e5   : > { %2033 = vrot.lane.b32.xlu1 %v2031_v45, %s6539_s24  ;;  %v2360_v61 = vmul.f32 %v5101_v48, %v5901_v56  ;;  %v5103_v29 = vpop.eup %5102  ;;  %s6595_s24 = sld [smem:[#allocation23_spill]] }
 0x4e6   : > { %v2294_v49 = vmul.f32 %v5103_v29, %v5899_v63 }
 0x4e7   : > { %v2361_v25 = vpack.c.bf16 %v2360_v61, %v2360_v61 }
 0x4e8   : > { %2231 = vrot.lane.b32.xlu0 %v2229_v2, %s6547_s23  ;;  %v2295_v15 = vpack.c.bf16 %v2294_v49, %v2294_v49 }
 0x4e9   : > { %2167 = vrot.lane.b32.xlu1 %v5515_v53, %s5214_s4 }
 0x4ec   : > { %2365 = vrot.lane.b32.xlu0 %v5515_v53, %s6543_s22 }
 0x4ed   : > { %2165 = vrot.lane.b32.xlu1 %v2163_v54, %s5214_s4 }
 0x4f0   : > { %2363 = vrot.lane.b32.xlu0 %v2361_v25, %s6543_s22 }
 0x4f1   : > { %2299 = vrot.lane.b32.xlu1 %v5515_v53, %s6545_s28 }
 0x4f5   : > { %2297 = vrot.lane.b32.xlu1 %v2295_v15, %s6545_s28 }
 0x521   : > { %v1901_v57 = vpop.xlane.xlu1 %1900 }
 0x522   : > { %5104 = vrcp.f32 %v1901_v57 }
 0x52c   : > { %v5105_v46 = vpop.eup %5104 }
 0x52d   : > { %v1903_v4 = vmul.f32 %v5105_v46, %v5089_v24 }
 0x52f   : > { %v1904_v9 = vpack.c.bf16 %v1903_v4, %v1903_v4 }
 0x531   : > { %4704 = vmatmul.mubr.msk.bf16.vlgmr.msra.gmra.mrb[12].mxu0 %vm1042_vm1, %v1904_v9 }
 0x532   : > { %4715 = vmatprep.mubr.msk.bf16.mxu0 %vm5211_vm0, %v6583_v52 }
 0x54f   : > { %v1967_v11 = vpop.permute.xlu1 %1966 }
 0x550   : > { %4710 = vmatmul.mubr.msk.bf16.vlgmr.msra.gmra.mrb[28].mxu1 %vm1042_vm1, %v1967_v11 }
 0x551   : > { %4720 = vmatpush3.bf16.msra.mxu1 %v2102_v44  ;;  %4721 = vmatprep.mubr.msk.bf16.mxu1 %vm5211_vm0, %v6583_v52 }
 0x552   : > { %4731 = vmatprep.subr.bf16.mxu1 %v6583_v52  ;;  %v2100_v23 = vpop.permute.xlu0 %2099 }
 0x553   : > { %v2036_v53 = vpop.permute.xlu1 %2035 }
 0x554   : > { %4714 = vmatpush3.bf16.msra.mxu0 %v2036_v53 }
 0x555   : > { %4725 = vmatprep.subr.bf16.mxu0 %v6583_v52 }
 0x556   : > { %v2234_v63 = vpop.permute.xlu0 %2233 }
 0x557   : > { %v2034_v59 = vpop.permute.xlu1 %2033 }
 0x558   : > { %4716 = vmatmul.mubr.msk.bf16.vlgmr.msra.gmra.mrb[16].mxu0 %vm1042_vm1, %v2034_v59  ;;  %4722 = vmatmul.mubr.msk.bf16.vlgmr.msra.gmra.mrb[32].mxu1 %vm1042_vm1, %v2100_v23 }
 0x559   : > { %4732 = vmatpush3.bf16.msra.mxu1 %v2234_v63  ;;  %4727 = vmatprep.mubr.msk.bf16.mxu0 %vm5211_vm0, %v6583_v52 }
 0x55a   : > { %4733 = vmatprep.mubr.msk.bf16.mxu1 %vm5211_vm0, %v6583_v52  ;;  %4743 = vmatprep.subr.bf16.mxu1 %v6583_v52  ;;  %v2232_v0 = vpop.permute.xlu0 %2231 }
 0x55b   : > { %v2168_v56 = vpop.permute.xlu1 %2167 }
 0x55c   : > { %4726 = vmatpush3.bf16.msra.mxu0 %v2168_v56 }
 0x55d   : > { %4737 = vmatprep.subr.bf16.mxu0 %v6583_v52 }
 0x55e   : > { %v2366_v58 = vpop.permute.xlu0 %2365 }
 0x55f   : > { %v2166_v62 = vpop.permute.xlu1 %2165 }
 0x560   : > { %4728 = vmatmul.mubr.msk.bf16.vlgmr.msra.gmra.mrb[20].mxu0 %vm1042_vm1, %v2166_v62  ;;  %4734 = vmatmul.mubr.msk.bf16.vlgmr.msra.gmra.mrb[36].mxu1 %vm1042_vm1, %v2232_v0 }
 0x561   : > { %4744 = vmatpush3.bf16.msra.mxu1 %v2366_v58  ;;  %4739 = vmatprep.mubr.msk.bf16.mxu0 %vm5211_vm0, %v6583_v52  ;;  %v4409_v58 = vld [vmem:[%s6588_s27] ss:$0 sm:$0xff]  ;;  %s6594_s27 = sld [smem:[#allocation22_spill]] }
 0x562   : > { %4745 = vmatprep.mubr.msk.bf16.mxu1 %vm5211_vm0, %v6583_v52  ;;  %v2364_v27 = vpop.permute.xlu0 %2363 }
 0x563   : > { %v2300_v28 = vpop.permute.xlu1 %2299 }
 0x564   : > { %4738 = vmatpush3.bf16.msra.mxu0 %v2300_v28 }
 0x565   : > { %4749 = vmatprep.subr.bf16.mxu0 %v6583_v52 }
 0x567   : > { %v2298_v10 = vpop.permute.xlu1 %2297 }
 0x568   : > { %4740 = vmatmul.mubr.msk.bf16.vlgmr.msra.gmra.mrb[24].mxu0 %vm1042_vm1, %v2298_v10  ;;  %4746 = vmatmul.mubr.msk.bf16.vlgmr.msra.gmra.mrb[40].mxu1 %vm1042_vm1, %v2364_v27 }
 0x569   : > { %4765 = vmatprep.mubr.msk.bf16.mxu0 %vm5211_vm0, %v6583_v52  ;;  %2797 = vmatprep.mubr.bf16.mxu1 %v6584_v16 }
 0x56a   : > { %4750 = vmatpush3.bf16.msra.mxu0 %v4986_v6 }
 0x56b   : > { %4751 = vmatprep.subr.bf16.mxu0 %v6583_v52 }
 0x56e   : > { %4752 = vmatpush3.bf16.msra.mxu0 %v4987_v19  ;;  %v4996_v19 = vld [vmem:[%s6509_s12 + $0x4] ss:$12 sps:$4 sm:$0xff]  }
 0x56f   : > { %4753 = vmatprep.subr.bf16.mxu0 %v6583_v52  ;;  %2765 = vmatprep.subr.bf16.mxu1 %v4996_v19 }
 0x572   : > { %4754 = vmatpush3.bf16.msra.mxu0 %v4988_v22  ;;  %v4997_v22 = vld [vmem:[%s6509_s12 + $0x8] ss:$12 sps:$4 sm:$0xff]  }
 0x573   : > { %4755 = vmatprep.subr.bf16.mxu0 %v6583_v52 }
 0x576   : > { %4756 = vmatpush3.bf16.msra.mxu0 %v4989_v7  ;;  %v5000_v7 = vld [vmem:[%s6509_s12 + $0x1c] ss:$12 sps:$4 sm:$0xff]  }
 0x577   : > { %4757 = vmatprep.subr.bf16.mxu0 %v6583_v52 }
 0x57a   : > { %4758 = vmatpush3.bf16.msra.mxu0 %v4990_v37  ;;  %v5001_v37 = vld [vmem:[%s6509_s12 + $0x20] ss:$12 sps:$4 sm:$0xff]  }
 0x57b   : > { %4759 = vmatprep.subr.bf16.mxu0 %v6583_v52 }
 0x57e   : > { %4760 = vmatpush3.bf16.msra.mxu0 %v4991_v42 }
 0x57f   : > { %4761 = vmatprep.subr.bf16.mxu0 %v6583_v52 }
 0x582   : > { %4762 = vmatpush3.bf16.msra.mxu0 %v4992_v8 }
 0x583   : > { %4763 = vmatprep.subr.bf16.mxu0 %v6583_v52 }
 0x586   : > { %4764 = vmatpush3.bf16.msra.mxu0 %v4993_v60  ;;  %v5013_v60 = vld [vmem:[%s6509_s12 + $0x68] ss:$12 sps:$4 sm:$0xff]  }
 0x587   : > { %4769 = vmatprep.subr.bf16.mxu0 %v6583_v52 }
 0x604   : > { %v5977_v18 = vpop.f32.mrb[12].mxu0 }
 0x605   : > { %v4705_v47 = vpop.f32.mrb[13].mxu0 }
 0x606   : > { %v1945_v21 = vpop.f32.mrb[14].mxu0  ;;  %v5144_v47 = vld [vmem:[%s5482_s6] sm:$0xff] }
 0x607   : > { %v4706_v50 = vpop.f32.mrb[15].mxu0 }
 0x608   : > { %v4994_v50 = vld [vmem:[%s6509_s12] ss:$12 sps:$4 sm:$0xff]  }
 0x609   : > { %2766 = vmatpush1.bf16.msra.mxu1 %v4994_v50 }
 0x60a   : > { %2767 = vmatprep.subr.bf16.mxu1 %v5000_v7 }
 0x623   : > { %v2009_v38 = vpop.f32.mrb[28].mxu1 }
 0x624   : > { %2412 = vrot.lane.b32.xlu1 %v2009_v38, %s6543_s22  ;;  %v4711_v39 = vpop.f32.mrb[29].mxu1  ;;  %v4998_v38 = vld [vmem:[%s6509_s12 + $0x18] ss:$12 sps:$4 sm:$0xff]   ;;  %s6589_s22 = smov 48  }
 0x625   : > { %v2012_v24 = vpop.f32.mrb[30].mxu1  ;;  %v5004_v39 = vld [vmem:[%s6509_s12 + $0x34] ss:$12 sps:$4 sm:$0xff]   ;;  %2768 = vmatpush1.bf16.msra.mxu1 %v4998_v38 }
 0x626   : > { %v4712_v41 = vpop.f32.mrb[31].mxu1  ;;  %v5002_v24 = vld [vmem:[%s6509_s12 + $0x30] ss:$12 sps:$4 sm:$0xff]   ;;  %2769 = vmatprep.subr.bf16.mxu1 %v5004_v39 }
 0x629   : > { %2770 = vmatpush1.bf16.msra.mxu1 %v5002_v24 }
 0x62b   : > { %v2075_v43 = vpop.f32.mrb[16].mxu0  ;;  %v2141_v30 = vpop.f32.mrb[32].mxu1 }
 0x62c   : > { %2420 = vrot.lane.b32.xlu1 %v2141_v30, %s6547_s23  ;;  %v4723_v51 = vpop.f32.mrb[33].mxu1  ;;  %2416 = vrot.lane.b32.xlu0 %v2075_v43, %s6545_s28  ;;  %v4717_v13 = vpop.f32.mrb[17].mxu0  ;;  %v5005_v30 = vld [vmem:[%s6509_s12 + $0x38] ss:$12 sps:$4 sm:$0xff]   ;;  %s6592_s28 = sld [smem:[#allocation8_spill]] }
 0x62d   : > { %v2078_v55 = vpop.f32.mrb[18].mxu0  ;;  %v2144_v31 = vpop.f32.mrb[34].mxu1  ;;  %v5006_v51 = vld [vmem:[%s6509_s12 + $0x48] ss:$12 sps:$4 sm:$0xff]   ;;  %v5008_v13 = vld [vmem:[%s6509_s12 + $0x4c] ss:$12 sps:$4 sm:$0xff]  }
 0x62e   : > { %v4718_v12 = vpop.f32.mrb[19].mxu0  ;;  %v4724_v32 = vpop.f32.mrb[35].mxu1  ;;  %v5012_v55 = vld [vmem:[%s6509_s12 + $0x64] ss:$12 sps:$4 sm:$0xff]   ;;  %2771 = vmatprep.subr.bf16.mxu1 %v5008_v13 }
 0x62f   : > { %v5009_v31 = vld [vmem:[%s6509_s12 + $0x50] ss:$12 sps:$4 sm:$0xff]   ;;  %2772 = vmatpush1.bf16.msra.mxu1 %v5006_v51  ;;  %v5010_v12 = vld [vmem:[%s6509_s12 + $0x60] ss:$12 sps:$4 sm:$0xff]  }
 0x630   : > { %2773 = vmatprep.subr.bf16.mxu1 %v5012_v55  ;;  %v5016_v32 = vld [vmem:[%s6509_s12 + $0x7c] ss:$12 sps:$4 sm:$0xff]  }
 0x633   : > { %v2207_v1 = vpop.f32.mrb[20].mxu0  ;;  %v2273_v14 = vpop.f32.mrb[36].mxu1  ;;  %2774 = vmatpush1.bf16.msra.mxu1 %v5010_v12 }
 0x634   : > { %2428 = vrot.lane.b32.xlu1 %v2273_v14, %s5215_s25  ;;  %v4735_v17 = vpop.f32.mrb[37].mxu1  ;;  %2424 = vrot.lane.b32.xlu0 %v2207_v1, %s5214_s4  ;;  %v4729_v3 = vpop.f32.mrb[21].mxu0  ;;  %v5014_v1 = vld [vmem:[%s6509_s12 + $0x78] ss:$12 sps:$4 sm:$0xff]   ;;  %v5020_v14 = vld [vmem:[%s6509_s12 + $0x94] ss:$12 sps:$4 sm:$0xff]  }
 0x635   : > { %v2210_v26 = vpop.f32.mrb[22].mxu0  ;;  %v2276_v36 = vpop.f32.mrb[38].mxu1  ;;  %2775 = vmatprep.subr.bf16.mxu1 %v5016_v32  ;;  %v5017_v17 = vld [vmem:[%s6509_s12 + $0x80] ss:$12 sps:$4 sm:$0xff]   ;;  %v5018_v3 = vld [vmem:[%s6509_s12 + $0x90] ss:$12 sps:$4 sm:$0xff]  }
 0x636   : > { %v4730_v45 = vpop.f32.mrb[23].mxu0  ;;  %v4736_v20 = vpop.f32.mrb[39].mxu1  ;;  %v5024_v26 = vld [vmem:[%s6509_s12 + $0xac] ss:$12 sps:$4 sm:$0xff]  }
 0x637   : > { %2776 = vmatpush1.bf16.msra.mxu1 %v5014_v1  ;;  %v5021_v36 = vld [vmem:[%s6509_s12 + $0x98] ss:$12 sps:$4 sm:$0xff]   ;;  %v5022_v45 = vld [vmem:[%s6509_s12 + $0xa8] ss:$12 sps:$4 sm:$0xff]   ;;  %v5025_v20 = vld [vmem:[%s6509_s12 + $0xb0] ss:$12 sps:$4 sm:$0xff]  }
 0x638   : > { %2777 = vmatprep.subr.bf16.mxu1 %v5020_v14 }
 0x63b   : > { %v2339_v40 = vpop.f32.mrb[24].mxu0  ;;  %v2405_v2 = vpop.f32.mrb[40].mxu1  ;;  %2778 = vmatpush1.bf16.msra.mxu1 %v5018_v3 }
 0x63c   : > { %2436 = vrot.lane.b32.xlu1 %v2405_v2, %s6586_s5  ;;  %v4747_v34 = vpop.f32.mrb[41].mxu1  ;;  %2432 = vrot.lane.b32.xlu0 %v2339_v40, %s6587_s2  ;;  %v4741_v48 = vpop.f32.mrb[25].mxu0 }
 0x63d   : > { %v2342_v54 = vpop.f32.mrb[26].mxu0  ;;  %v2408_v61 = vpop.f32.mrb[42].mxu1  ;;  %2779 = vmatprep.subr.bf16.mxu1 %v5024_v26 }
 0x63e   : > { %v4742_v29 = vpop.f32.mrb[27].mxu0  ;;  %v4748_v25 = vpop.f32.mrb[43].mxu1  ;;  %v4418_v54 = vld [vmem:[%s6507_s10] ss:$0 sm:$0xff] }
 0x63f   : > { %2780 = vmatpush1.bf16.msra.mxu1 %v5022_v45  ;;  %v4419_v29 = vld [vmem:[%s6508_s11] ss:$0 sm:$0xff] }
 0x640   : > { %4789 = vmatprep.subr.bf16.mxu1 %v6583_v52 }
 0x696   : > { %v2413_v49 = vpop.permute.xlu1 %2412 }
 0x697   : > { %v2439_v57 = vsel %vm1042_vm1, %v5977_v18, %v2413_v49 }
 0x69e   : > { %v2417_v15 = vpop.permute.xlu0 %2416  ;;  %v2421_v46 = vpop.permute.xlu1 %2420 }
 0x69f   : > { %v2440_v4 = vsel %vm1470_vm2, %v2439_v57, %v2417_v15  ;;  %v2620_v57 = vld [vmem:[%s6510_s13] sm:$0x7] }
 0x6a0   : > { %v2441_v11 = vsel %vm1472_vm3, %v2440_v4, %v2421_v46  ;;  %v2629_v46 = vrot.slane %v2620_v57, %v5508_v35 }
 0x6a6   : > { %v2425_v9 = vpop.permute.xlu0 %2424  ;;  %v2429_v44 = vpop.permute.xlu1 %2428 }
 0x6a7   : > { %v2442_v53 = vsel %vm1474_vm4, %v2441_v11, %v2425_v9 }
 0x6a8   : > { %v2443_v59 = vsel %vm1476_vm5, %v2442_v53, %v2429_v44  ;;  %v2633_v53 = vrot.slane %v2620_v57, %v5613_v5 }
 0x6ae   : > { %v2437_v23 = vpop.permute.xlu1 %2436  ;;  %v2433_v63 = vpop.permute.xlu0 %2432 }
 0x6af   : > { %v2444_v56 = vsel %vm1478_vm6, %v2443_v59, %v2433_v63 }
 0x6b0   : > { %v2445_v0 = vsel %vm1480_vm7, %v2444_v56, %v2437_v23 }
 0x6b1   : > { %v2446_v62 = vpack.c.bf16 %v2445_v0, %v2445_v0 }
 0x6b3   : > { %4766 = vmatmul.mubr.bf16.vlgmr.msra.gmra.mrb[28].mxu0 %v2446_v62  ;;  %v2625_v62 = vrot.slane %v2620_v57, %v5502_v33 }
 0x6b4   : > { %4785 = vmatprep.mubr.msk.bf16.mxu0 %vm5211_vm0, %v6583_v52  ;;  %4770 = vmatpush3.bf16.msra.mxu0 %v4997_v22 }
 0x6b5   : > { %4771 = vmatprep.subr.bf16.mxu0 %v6583_v52 }
 0x6b8   : > { %4772 = vmatpush3.bf16.msra.mxu0 %v5001_v37 }
 0x6b9   : > { %4773 = vmatprep.subr.bf16.mxu0 %v6583_v52 }
 0x6bc   : > { %4774 = vmatpush3.bf16.msra.mxu0 %v5005_v30 }
 0x6bd   : > { %4775 = vmatprep.subr.bf16.mxu0 %v6583_v52 }
 0x6c0   : > { %4776 = vmatpush3.bf16.msra.mxu0 %v5009_v31 }
 0x6c1   : > { %4777 = vmatprep.subr.bf16.mxu0 %v6583_v52 }
 0x6c4   : > { %4778 = vmatpush3.bf16.msra.mxu0 %v5013_v60 }
 0x6c5   : > { %4779 = vmatprep.subr.bf16.mxu0 %v6583_v52 }
 0x6c8   : > { %4780 = vmatpush3.bf16.msra.mxu0 %v5017_v17 }
 0x6c9   : > { %4781 = vmatprep.subr.bf16.mxu0 %v6583_v52 }
 0x6cc   : > { %4782 = vmatpush3.bf16.msra.mxu0 %v5021_v36 }
 0x6cd   : > { %4783 = vmatprep.subr.bf16.mxu0 %v6583_v52 }
 0x6d0   : > { %4784 = vmatpush3.bf16.msra.mxu0 %v5025_v20 }
 0x6d1   : > { %4813 = vmatprep.subr.bf16.mxu0 %v6583_v52 }
 0x786   : > { %v2552_v28 = vpop.f32.mrb[28].mxu0 }
 0x787   : > { %v2553_v27 = vadd.f32 %v4409_v58, %v2552_v28  ;;  %v4767_v10 = vpop.f32.mrb[29].mxu0 }
 0x788   : > { %v2555_v6 = vpop.f32.mrb[30].mxu0 }
 0x789   : > { %v4768_v18 = vpop.f32.mrb[31].mxu0  ;;  %v2558_v21 = vadd.f32 %v5144_v47, %v2553_v27 }
 0x78b   : > { %2561 = vadd.xlane.f32.xlu0 %v2558_v21 }
 0x818   : > { %v2562_v41 = vpop.xlane.xlu0 %2561 }
 0x819   : > { %v2564_v42 = vmul.f32 0.0078125, %v2562_v41 }
 0x81b   : > { %v2565_v8 = vsub.f32 %v2558_v21, %v2564_v42 }
 0x81d   : > { %v2566_v43 = vmul.f32 %v2565_v8, %v2565_v8 }
 0x81f   : > { %2567 = vadd.xlane.f32.xlu1 %v2566_v43 }
 0x8ac   : > { %v2568_v40 = vpop.xlane.xlu1 %2567 }
 0x8ad   : > { %v2569_v2 = vmul.f32 0.0078125, %v2568_v40 }
 0x8af   : > { %v2570_v34 = vadd.f32 1e-05, %v2569_v2 }
 0x8b1   : > { %5106 = vrsqrt.f32 %v2570_v34 }
 0x8bb   : > { %v5107_v48 = vpop.eup %5106 }
 0x8bc   : > { %v2572_v61 = vmul.f32 %v5107_v48, %v2565_v8 }
 0x8be   : > { %v2579_v25 = vmul.f32 %v4418_v54, %v2572_v61 }
 0x8c0   : > { %v6115_v49 = vadd.f32 %v4419_v29, %v2579_v25 }
 0x8c2   : > { %v2587_v15 = vpack.c.bf16 %v6115_v49, %v6115_v49 }
 0x8c4   : > { %2798 = vmatmul.mubr.bf16.vlgmr.msra.gmra.mrb[44].mxu1 %v2587_v15  ;;  %4786 = vmatmul.mubr.bf16.vlgmr.msra.gmra.mrb[32].mxu0 %v2587_v15 }
 0x8c5   : > { %4791 = vmatprep.mubr.msk.bf16.mxu1 %vm5211_vm0, %v6583_v52  ;;  %4815 = vmatprep.mubr.msk.bf16.mxu0 %vm5211_vm0, %v6583_v52 }
 0x997   : > { %v2799_v4 = vpop.f32.mrb[44].mxu1  ;;  %v2840_v9 = vpop.f32.mrb[32].mxu0 }
 0x998   : > { %v2801_v44 = vpop.f32.mrb[45].mxu1  ;;  %v4787_v11 = vpop.f32.mrb[33].mxu0  ;;  %v2841_v28 = vadd.f32 %v2840_v9, %v2633_v53  ;;  %v2800_v10 = vadd.f32 %v2799_v4, %v2625_v62 }
 0x999   : > { %v2802_v23 = vadd.f32 %v2801_v44, %v2629_v46  ;;  %v2803_v59 = vpop.f32.mrb[46].mxu1  ;;  %v2843_v63 = vpop.f32.mrb[34].mxu0 }
 0x99a   : > { %v2804_v56 = vpop.f32.mrb[47].mxu1  ;;  %v4788_v0 = vpop.f32.mrb[35].mxu0  ;;  %v6132_v6 = vpack.c.bf16 %v2841_v28, %v2841_v28  ;;  %v2846_v5 = vpack.c.bf16 %v2800_v10, %v2800_v10 }
 0x99b   : > { %v2847_v58 = vpack.c.bf16 %v2802_v23, %v2802_v23 }
 0x99c   : > { %v2913_v18 = vsel %vm2911_vm15, %v6132_v6, 0 }
 0x99d   : > { %2959 = vrot.lane.b32.xlu1 %v2847_v58, %s6586_s5  ;;  %v2853_v27 = vsel %vm1042_vm1, %v2847_v58, 0 }
 0x99e   : > { %4790 = vmatpush3.bf16.xpose.msra.mxu1 %v2853_v27 }
 0x99f   : > { %4795 = vmatprep.subr.bf16.mxu1 %v6583_v52 }
 0x9a1   : > { %3070 = vrot.lane.b32.xlu1 %v2847_v58, %s6587_s2 }
 0x9a5   : > { %3068 = vrot.lane.b32.xlu1 %v2846_v5, %s6587_s2  ;;  %4792 = vmatmul.mubr.msk.bf16.vlgmr.msra.gmra.mrb[48].mxu1 %vm1042_vm1, %v2846_v5 }
 0x9a6   : > { %4796 = vmatpush3.bf16.msra.mxu1 %v2913_v18  ;;  %4797 = vmatprep.mubr.msk.bf16.mxu1 %vm5211_vm0, %v6583_v52 }
 0x9a7   : > { %4801 = vmatprep.subr.bf16.mxu1 %v6583_v52 }
 0x9a9   : > { %3178 = vrot.lane.b32.xlu1 %v2846_v5, %s5215_s25 }
 0x9ad   : > { %3288 = vrot.lane.b32.xlu1 %v2846_v5, %s5214_s4 }
 0x9b1   : > { %3398 = vrot.lane.b32.xlu1 %v2846_v5, %s6589_s22 }
 0x9b5   : > { %3508 = vrot.lane.b32.xlu1 %v2846_v5, %s6590_s8 }
 0x9b9   : > { %3618 = vrot.lane.b32.xlu1 %v2846_v5, %s6591_s30 }
 0xa0f   : > { %v2960_v47 = vpop.permute.xlu1 %2959 }
 0xa10   : > { %v2965_v36 = vsel %vm1042_vm1, %v2960_v47, 0 }
 0xa13   : > { %v3071_v21 = vpop.permute.xlu1 %3070 }
 0xa14   : > { %v3076_v50 = vsel %vm1042_vm1, %v3071_v21, 0 }
 0xa15   : > { %4814 = vmatpush3.bf16.xpose.msra.mxu0 %v3076_v50 }
 0xa16   : > { %4825 = vmatprep.subr.bf16.mxu0 %v6583_v52 }
 0xa17   : > { %v3069_v19 = vpop.permute.xlu1 %3068 }
 0xa1b   : > { %v3179_v45 = vpop.permute.xlu1 %3178 }
 0xa1c   : > { %4816 = vmatmul.mubr.msk.bf16.vlgmr.msra.gmra.mrb[36].mxu0 %vm1042_vm1, %v3069_v19 }
 0xa1d   : > { %4827 = vmatprep.mubr.msk.bf16.mxu0 %vm5211_vm0, %v6583_v52 }
 0xa1f   : > { %v3289_v2 = vpop.permute.xlu1 %3288 }
 0xa23   : > { %v3399_v54 = vpop.permute.xlu1 %3398 }
 0xa27   : > { %v3509_v25 = vpop.permute.xlu1 %3508 }
 0xa2b   : > { %v3619_v57 = vpop.permute.xlu1 %3618 }
 0xa78   : > { %v2889_v22 = vpop.f32.mrb[48].mxu1 }
 0xa79   : > { %v4793_v7 = vpop.f32.mrb[49].mxu1  ;;  %v2896_v37 = vsel %vm2895_vm8, %v2889_v22, -inf }
 0xa7a   : > { %2897 = vmax.xlane.f32.xlu0 %v2896_v37  ;;  %v2892_v38 = vpop.f32.mrb[50].mxu1 }
 0xa7b   : > { %v4794_v39 = vpop.f32.mrb[51].mxu1 }
 0xaef   : > { %v6153_v24 = vpop.f32.mrb[36].mxu0 }
 0xaf0   : > { %v4817_v41 = vpop.f32.mrb[37].mxu0  ;;  %v3118_v42 = vsel %vm2895_vm8, %v6153_v24, -inf }
 0xaf1   : > { %3119 = vmax.xlane.f32.xlu1 %v3118_v42  ;;  %v3115_v8 = vpop.f32.mrb[38].mxu0 }
 0xaf2   : > { %v4818_v43 = vpop.f32.mrb[39].mxu0 }
 0xb07   : > { %v2898_v30 = vpop.xlane.xlu0 %2897 }
 0xb08   : > { %v2899_v51 = vsub.f32 %v2889_v22, %v2898_v30 }
 0xb0a   : > { %v2900_v13 = vmul.f32 1.442695, %v2899_v51 }
 0xb0c   : > { %5108 = vpow2.f32 %v2900_v13 }
 0xb16   : > { %v5109_v55 = vpop.eup %5108 }
 0xb17   : > { %v2902_v31 = vsel %vm2895_vm8, %v5109_v55, 0.0 }
 0xb18   : > { %2903 = vadd.xlane.f32.xlu0 %v2902_v31 }
 0xb2e   : > { %2956 = vrot.lane.b32.xlu0 %v2846_v5, %s6586_s5 }
 0xb32   : > { %3180 = vrot.lane.b32.xlu0 %v2847_v58, %s5215_s25 }
 0xb36   : > { %3290 = vrot.lane.b32.xlu0 %v2847_v58, %s5214_s4 }
 0xb3a   : > { %3400 = vrot.lane.b32.xlu0 %v2847_v58, %s6589_s22 }
 0xb3e   : > { %3510 = vrot.lane.b32.xlu0 %v2847_v58, %s6590_s8 }
 0xb42   : > { %3620 = vrot.lane.b32.xlu0 %v2847_v58, %s6591_s30 }
 0xb7e   : > { %v3120_v47 = vpop.xlane.xlu1 %3119 }
 0xb7f   : > { %v3121_v21 = vsub.f32 %v6153_v24, %v3120_v47 }
 0xb81   : > { %v3122_v39 = vmul.f32 1.442695, %v3121_v21 }
 0xba5   : > { %v2904_v12 = vpop.xlane.xlu0 %2903 }
 0xba6   : > { %5110 = vrcp.f32 %v2904_v12 }
 0xba7   : > { %5112 = vpow2.f32 %v3122_v39 }
 0xba9   : > { %v2957_v32 = vpop.permute.xlu0 %2956 }
 0xbad   : > { %v3181_v60 = vpop.permute.xlu0 %3180 }
 0xbae   : > { %v3186_v1 = vsel %vm1042_vm1, %v3181_v60, 0 }
 0xbaf   : > { %4826 = vmatpush3.bf16.xpose.msra.mxu0 %v3186_v1 }
 0xbb0   : > { %v5111_v14 = vpop.eup %5110  ;;  %4837 = vmatprep.subr.bf16.mxu0 %v6583_v52 }
 0xbb1   : > { %v2906_v17 = vmul.f32 %v5111_v14, %v5109_v55  ;;  %v3291_v3 = vpop.permute.xlu0 %3290  ;;  %v6206_v55 = vpop.eup %5112 }
 0xbb2   : > { %v3296_v20 = vsel %vm1042_vm1, %v3291_v3, 0 }
 0xbb3   : > { %v2907_v26 = vpack.c.bf16 %v2906_v17, %v2906_v17 }
 0xbb5   : > { %4798 = vmatmul.mubr.msk.bf16.vlgmr.msra.gmra.mrb[52].mxu1 %vm2895_vm8, %v2907_v26  ;;  %v3401_v40 = vpop.permute.xlu0 %3400 }
 0xbb6   : > { %4802 = vmatpush3.bf16.xpose.msra.mxu1 %v2965_v36  ;;  %4828 = vmatmul.mubr.msk.bf16.vlgmr.msra.gmra.mrb[40].mxu0 %vm1042_vm1, %v3179_v45  ;;  %v3406_v34 = vsel %vm1042_vm1, %v3401_v40, 0 }
 0xbb7   : > { %4838 = vmatpush3.bf16.xpose.msra.mxu0 %v3296_v20  ;;  %4803 = vmatprep.mubr.msk.bf16.mxu1 %vm5211_vm0, %v6583_v52 }
 0xbb8   : > { %4839 = vmatprep.mubr.msk.bf16.mxu0 %vm5211_vm0, %v6583_v52  ;;  %4849 = vmatprep.subr.bf16.mxu0 %v6583_v52 }
 0xbb9   : > { %4807 = vmatprep.subr.bf16.mxu1 %v6583_v52  ;;  %v3511_v48 = vpop.permute.xlu0 %3510 }
 0xbba   : > { %v3516_v61 = vsel %vm1042_vm1, %v3511_v48, 0 }
 0xbbd   : > { %4804 = vmatmul.mubr.msk.bf16.vlgmr.msra.gmra.mrb[56].mxu1 %vm1042_vm1, %v2957_v32  ;;  %v3621_v29 = vpop.permute.xlu0 %3620  ;;  %v3124_v32 = vsel %vm2895_vm8, %v6206_v55, 0.0 }
 0xbbe   : > { %4840 = vmatmul.mubr.msk.bf16.vlgmr.msra.gmra.mrb[44].mxu0 %vm1042_vm1, %v3289_v2  ;;  %4809 = vmatprep.mubr.msk.bf16.mxu1 %vm5211_vm0, %v6583_v52  ;;  %v3626_v15 = vsel %vm1042_vm1, %v3621_v29, 0 }
 0xbbf   : > { %4850 = vmatpush3.bf16.xpose.msra.mxu0 %v3406_v34  ;;  %4851 = vmatprep.mubr.msk.bf16.mxu0 %vm5211_vm0, %v6583_v52 }
 0xbc0   : > { %4861 = vmatprep.subr.bf16.mxu0 %v6583_v52 }
 0xbc6   : > { %4852 = vmatmul.mubr.msk.bf16.vlgmr.msra.gmra.mrb[48].mxu0 %vm1042_vm1, %v3399_v54 }
 0xbc7   : > { %4862 = vmatpush3.bf16.xpose.msra.mxu0 %v3516_v61  ;;  %4863 = vmatprep.mubr.msk.bf16.mxu0 %vm5211_vm0, %v6583_v52 }
 0xbc8   : > { %4873 = vmatprep.subr.bf16.mxu0 %v6583_v52 }
 0xbce   : > { %4864 = vmatmul.mubr.msk.bf16.vlgmr.msra.gmra.mrb[52].mxu0 %vm1042_vm1, %v3509_v25 }
 0xbcf   : > { %4874 = vmatpush3.bf16.xpose.msra.mxu0 %v3626_v15  ;;  %4875 = vmatprep.mubr.msk.bf16.mxu0 %vm5211_vm0, %v6583_v52 }
 0xbd0   : > { %4885 = vmatprep.subr.bf16.mxu0 %v6583_v52 }
 0xbd6   : > { %4876 = vmatmul.mubr.msk.bf16.vlgmr.msra.gmra.mrb[56].mxu0 %vm1042_vm1, %v3619_v57 }
 0xbd7   : > { %4901 = vmatprep.mubr.msk.bf16.mxu0 %vm5211_vm0, %v6583_v52 }
 0xc88   : > { %v6197_v46 = vpop.f32.mrb[52].mxu1 }
 0xc89   : > { %v4799_v4 = vpop.f32.mrb[53].mxu1  ;;  %v3222_v9 = vpop.f32.mrb[40].mxu0 }
 0xc8a   : > { %v2952_v44 = vpop.f32.mrb[54].mxu1  ;;  %v4829_v11 = vpop.f32.mrb[41].mxu0  ;;  %v3228_v18 = vsel %vm2895_vm8, %v3222_v9, -inf }
 0xc8b   : > { %v4800_v53 = vpop.f32.mrb[55].mxu1  ;;  %v3225_v23 = vpop.f32.mrb[42].mxu0 }
 0xc8c   : > { %v4830_v59 = vpop.f32.mrb[43].mxu0 }
 0xc90   : > { %v3001_v63 = vpop.f32.mrb[56].mxu1 }
 0xc91   : > { %v4805_v56 = vpop.f32.mrb[57].mxu1  ;;  %v3332_v0 = vpop.f32.mrb[44].mxu0  ;;  %v3007_v62 = vsel %vm2895_vm8, %v3001_v63, -inf }
 0xc92   : > { %3008 = vmax.xlane.f32.xlu0 %v3007_v62  ;;  %v3004_v58 = vpop.f32.mrb[58].mxu1  ;;  %v4841_v28 = vpop.f32.mrb[45].mxu0  ;;  %v3338_v19 = vsel %vm2895_vm8, %v3332_v0, -inf }
 0xc93   : > { %v4806_v27 = vpop.f32.mrb[59].mxu1  ;;  %v3335_v10 = vpop.f32.mrb[46].mxu0 }
 0xc94   : > { %v4842_v5 = vpop.f32.mrb[47].mxu0 }
 0xc96   : > { %3229 = vmax.xlane.f32.xlu0 %v3228_v18 }
 0xc99   : > { %v3442_v50 = vpop.f32.mrb[48].mxu0 }
 0xc9a   : > { %3339 = vmax.xlane.f32.xlu0 %v3338_v19  ;;  %v4853_v22 = vpop.f32.mrb[49].mxu0  ;;  %v3448_v7 = vsel %vm2895_vm8, %v3442_v50, -inf }
 0xc9b   : > { %3449 = vmax.xlane.f32.xlu1 %v3448_v7  ;;  %v3445_v37 = vpop.f32.mrb[50].mxu0 }
 0xc9c   : > { %v4854_v38 = vpop.f32.mrb[51].mxu0 }
 0xca1   : > { %v3552_v41 = vpop.f32.mrb[52].mxu0 }
 0xca2   : > { %v4865_v42 = vpop.f32.mrb[53].mxu0  ;;  %v3558_v8 = vsel %vm2895_vm8, %v3552_v41, -inf }
 0xca3   : > { %3559 = vmax.xlane.f32.xlu0 %v3558_v8  ;;  %v3555_v43 = vpop.f32.mrb[54].mxu0 }
 0xca4   : > { %v4866_v30 = vpop.f32.mrb[55].mxu0 }
 0xca9   : > { %v3662_v24 = vpop.f32.mrb[56].mxu0 }
 0xcaa   : > { %v4877_v51 = vpop.f32.mrb[57].mxu0  ;;  %v3668_v13 = vsel %vm2895_vm8, %v3662_v24, -inf }
 0xcab   : > { %3669 = vmax.xlane.f32.xlu1 %v3668_v13  ;;  %v3665_v31 = vpop.f32.mrb[58].mxu0 }
 0xcac   : > { %v4878_v12 = vpop.f32.mrb[59].mxu0 }
 0xcaf   : > { %3125 = vadd.xlane.f32.xlu1 %v3124_v32 }
 0xd1f   : > { %v3009_v60 = vpop.xlane.xlu0 %3008 }
 0xd20   : > { %v3010_v1 = vsub.f32 %v3001_v63, %v3009_v60 }
 0xd22   : > { %v3011_v3 = vmul.f32 1.442695, %v3010_v1 }
 0xd23   : > { %v3230_v14 = vpop.xlane.xlu0 %3229 }
 0xd24   : > { %v3231_v17 = vsub.f32 %v3222_v9, %v3230_v14 }
 0xd26   : > { %v3232_v26 = vmul.f32 1.442695, %v3231_v17 }
 0xd27   : > { %v3340_v36 = vpop.xlane.xlu0 %3339 }
 0xd28   : > { %5114 = vpow2.f32 %v3232_v26  ;;  %v3341_v45 = vsub.f32 %v3332_v0, %v3340_v36  ;;  %v3450_v20 = vpop.xlane.xlu1 %3449 }
 0xd29   : > { %v3451_v40 = vsub.f32 %v3442_v50, %v3450_v20  ;;  %5116 = vpow2.f32 %v3011_v3 }
 0xd2a   : > { %v3342_v2 = vmul.f32 1.442695, %v3341_v45 }
 0xd2b   : > { %v3452_v34 = vmul.f32 1.442695, %v3451_v40 }
 0xd2c   : > { %5118 = vpow2.f32 %v3342_v2 }
 0xd2d   : > { %5120 = vpow2.f32 %v3452_v34 }
 0xd30   : > { %v3560_v9 = vpop.xlane.xlu0 %3559 }
 0xd31   : > { %v3561_v44 = vsub.f32 %v3552_v41, %v3560_v9 }
 0xd32   : > { %v6210_v48 = vpop.eup %5114 }
 0xd33   : > { %v3234_v54 = vsel %vm2895_vm8, %v6210_v48, 0.0  ;;  %v5117_v61 = vpop.eup %5116  ;;  %v3562_v11 = vmul.f32 1.442695, %v3561_v44 }
 0xd34   : > { %3235 = vadd.xlane.f32.xlu0 %v3234_v54  ;;  %v3013_v25 = vsel %vm2895_vm8, %v5117_v61, 0.0 }
 0xd35   : > { %5122 = vpow2.f32 %v3562_v11 }
 0xd36   : > { %v6214_v29 = vpop.eup %5118 }
 0xd37   : > { %v3344_v15 = vsel %vm2895_vm8, %v6214_v29, 0.0  ;;  %v6219_v57 = vpop.eup %5120 }
 0xd38   : > { %3014 = vadd.xlane.f32.xlu0 %v3013_v25  ;;  %3345 = vadd.xlane.f32.xlu1 %v3344_v15  ;;  %v3454_v4 = vsel %vm2895_vm8, %v6219_v57, 0.0  ;;  %v3670_v53 = vpop.xlane.xlu1 %3669 }
 0xd39   : > { %v3671_v23 = vsub.f32 %v3662_v24, %v3670_v53 }
 0xd3b   : > { %v3672_v59 = vmul.f32 1.442695, %v3671_v23 }
 0xd3c   : > { %3455 = vadd.xlane.f32.xlu1 %v3454_v4  ;;  %v3126_v28 = vpop.xlane.xlu1 %3125 }
 0xd3d   : > { %5124 = vpow2.f32 %v3672_v59 }
 0xd3f   : > { %v6229_v63 = vpop.eup %5122 }
 0xd40   : > { %v3564_v56 = vsel %vm2895_vm8, %v6229_v63, 0.0 }
 0xd47   : > { %v6233_v0 = vpop.eup %5124 }
 0xd48   : > { %v3674_v62 = vsel %vm2895_vm8, %v6233_v0, 0.0 }
 0xd4d   : > { %3130 = vrot.lane.b32.xlu1 %v6132_v6, %s6587_s2 }
 0xd4e   : > { %3020 = vrot.lane.b32.xlu0 %v6132_v6, %s6586_s5 }
 0xd51   : > { %3240 = vrot.lane.b32.xlu1 %v6132_v6, %s5215_s25 }
 0xd6d   : > { %3565 = vadd.xlane.f32.xlu0 %v3564_v56  ;;  %v5028_v56 = vld [vmem:[%s6511_s14 + $0x10] sm:$0xff]  }
 0xd75   : > { %3675 = vadd.xlane.f32.xlu1 %v3674_v62  ;;  %v5030_v62 = vld [vmem:[%s6511_s14 + $0x20] sm:$0xff]  }
 0xd83   : > { %3350 = vrot.lane.b32.xlu0 %v6132_v6, %s5214_s4 }
 0xd86   : > { %3460 = vrot.lane.b32.xlu1 %v6132_v6, %s6589_s22 }
 0xd87   : > { %3570 = vrot.lane.b32.xlu0 %v6132_v6, %s6590_s8 }
 0xd8b   : > { %3680 = vrot.lane.b32.xlu0 %v6132_v6, %s6591_s30 }
 0xdc1   : > { %v3236_v58 = vpop.xlane.xlu0 %3235 }
 0xdc5   : > { %v3015_v27 = vpop.xlane.xlu0 %3014  ;;  %v3346_v10 = vpop.xlane.xlu1 %3345 }
 0xdc6   : > { %5126 = vrcp.f32 %v3015_v27 }
 0xdc7   : > { %5128 = vrcp.f32 %v3126_v28 }
 0xdc8   : > { %5130 = vrcp.f32 %v3236_v58 }
 0xdc9   : > { %v3021_v5 = vpop.permute.xlu0 %3020  ;;  %v3456_v47 = vpop.xlane.xlu1 %3455  ;;  %5132 = vrcp.f32 %v3346_v10 }
 0xdca   : > { %v3026_v18 = vsel %vm2911_vm15, %v3021_v5, 0  ;;  %5134 = vrcp.f32 %v3456_v47  ;;  %v5031_v5 = vld [vmem:[%s6511_s14 + $0x28] sm:$0xff]  }
 0xdcb   : > { %4808 = vmatpush3.bf16.msra.mxu1 %v3026_v18  ;;  %v5032_v18 = vld [vmem:[%s6511_s14 + $0x30] sm:$0xff]  }
 0xdcc   : > { %4819 = vmatprep.subr.bf16.mxu1 %v6583_v52 }
 0xdcd   : > { %v3131_v19 = vpop.permute.xlu1 %3130 }
 0xdce   : > { %v3136_v6 = vsel %vm2911_vm15, %v3131_v19, 0 }
 0xdd0   : > { %v5127_v21 = vpop.eup %5126 }
 0xdd1   : > { %v3017_v50 = vmul.f32 %v5127_v21, %v5117_v61  ;;  %v5129_v7 = vpop.eup %5128  ;;  %v3241_v38 = vpop.permute.xlu1 %3240 }
 0xdd2   : > { %v3128_v37 = vmul.f32 %v5129_v7, %v6206_v55  ;;  %v5131_v41 = vpop.eup %5130  ;;  %v3246_v42 = vsel %vm2911_vm15, %v3241_v38, 0 }
 0xdd3   : > { %v3018_v22 = vpack.c.bf16 %v3017_v50, %v3017_v50  ;;  %v3238_v8 = vmul.f32 %v5131_v41, %v6210_v48  ;;  %v5133_v30 = vpop.eup %5132 }
 0xdd4   : > { %v3129_v39 = vpack.c.bf16 %v3128_v37, %v3128_v37  ;;  %v3348_v51 = vmul.f32 %v5133_v30, %v6214_v29  ;;  %v5135_v12 = vpop.eup %5134 }
 0xdd5   : > { %4810 = vmatmul.mubr.msk.bf16.vlgmr.msra.gmra.mrb[60].mxu1 %vm2895_vm8, %v3018_v22  ;;  %v3239_v43 = vpack.c.bf16 %v3238_v8, %v3238_v8  ;;  %v3458_v60 = vmul.f32 %v5135_v12, %v6219_v57  ;;  %v5026_v57 = vld [vmem:[%s6511_s14] sm:$0xff]   ;;  %v5033_v22 = vld [vmem:[%s6511_s14 + $0x38] sm:$0xff]  }
 0xdd6   : > { %4820 = vmatpush3.bf16.msra.mxu1 %v3136_v6  ;;  %4821 = vmatprep.mubr.msk.bf16.mxu1 %vm5211_vm0, %v6583_v52  ;;  %v3349_v31 = vpack.c.bf16 %v3348_v51, %v3348_v51 }
 0xdd7   : > { %4831 = vmatprep.subr.bf16.mxu1 %v6583_v52  ;;  %v3459_v3 = vpack.c.bf16 %v3458_v60, %v3458_v60  ;;  %4886 = vmatpush3.bf16.msra.mxu0 %v5026_v57 }
 0xdd8   : > { %4887 = vmatprep.subr.bf16.mxu0 %v6583_v52 }
 0xddd   : > { %4822 = vmatmul.mubr.msk.bf16.vlgmr.msra.gmra.mrb[64].mxu1 %vm2895_vm8, %v3129_v39 }
 0xdde   : > { %4832 = vmatpush3.bf16.msra.mxu1 %v3246_v42  ;;  %4833 = vmatprep.mubr.msk.bf16.mxu1 %vm5211_vm0, %v6583_v52 }
 0xddf   : > { %4843 = vmatprep.subr.bf16.mxu1 %v6583_v52 }
 0xde5   : > { %4834 = vmatmul.mubr.msk.bf16.vlgmr.msra.gmra.mrb[68].mxu1 %vm2895_vm8, %v3239_v43 }
 0xde6   : > { %4845 = vmatprep.mubr.msk.bf16.mxu1 %vm5211_vm0, %v6583_v52 }
 0xdfa   : > { %v3566_v24 = vpop.xlane.xlu0 %3565 }
 0xdfb   : > { %5136 = vrcp.f32 %v3566_v24 }
 0xdfe   : > { %v3351_v13 = vpop.permute.xlu0 %3350 }
 0xdff   : > { %v3356_v55 = vsel %vm2911_vm15, %v3351_v13, 0 }
 0xe00   : > { %4844 = vmatpush3.bf16.msra.mxu1 %v3356_v55 }
 0xe01   : > { %4855 = vmatprep.subr.bf16.mxu1 %v6583_v52 }
 0xe02   : > { %v3676_v32 = vpop.xlane.xlu1 %3675  ;;  %v3571_v17 = vpop.permute.xlu0 %3570 }
 0xe03   : > { %4846 = vmatmul.mubr.msk.bf16.vlgmr.msra.gmra.mrb[72].mxu1 %vm2895_vm8, %v3349_v31  ;;  %5138 = vrcp.f32 %v3676_v32  ;;  %v3576_v36 = vsel %vm2911_vm15, %v3571_v17, 0 }
 0xe04   : > { %4857 = vmatprep.mubr.msk.bf16.mxu1 %vm5211_vm0, %v6583_v52 }
 0xe05   : > { %v5137_v26 = vpop.eup %5136 }
 0xe06   : > { %v3461_v1 = vpop.permute.xlu1 %3460  ;;  %v3568_v45 = vmul.f32 %v5137_v26, %v6229_v63  ;;  %v3681_v20 = vpop.permute.xlu0 %3680  ;;  %v5027_v63 = vld [vmem:[%s6511_s14 + $0x8] sm:$0xff]  }
 0xe07   : > { %v3466_v14 = vsel %vm2911_vm15, %v3461_v1, 0  ;;  %v3686_v34 = vsel %vm2911_vm15, %v3681_v20, 0  ;;  %4888 = vmatpush3.bf16.msra.mxu0 %v5027_v63  ;;  %v5058_v63 = vld [vmem:[%s6515_s18 + $0x40] sm:$0xff]  }
 0xe08   : > { %4856 = vmatpush3.bf16.msra.mxu1 %v3466_v14  ;;  %v3569_v40 = vpack.c.bf16 %v3568_v45, %v3568_v45  ;;  %4889 = vmatprep.subr.bf16.mxu0 %v6583_v52 }
 0xe09   : > { %4867 = vmatprep.subr.bf16.mxu1 %v6583_v52 }
 0xe0b   : > { %4858 = vmatmul.mubr.msk.bf16.vlgmr.msra.gmra.mrb[76].mxu1 %vm2895_vm8, %v3459_v3  ;;  %4890 = vmatpush3.bf16.msra.mxu0 %v5028_v56  ;;  %v5059_v56 = vld [vmem:[%s6515_s18] sm:$0xff]  }
 0xe0c   : > { %4868 = vmatpush3.bf16.msra.mxu1 %v3576_v36  ;;  %4869 = vmatprep.mubr.msk.bf16.mxu1 %vm5211_vm0, %v6583_v52 }
 0xe0d   : > { %4879 = vmatprep.subr.bf16.mxu1 %v6583_v52  ;;  %v5139_v2 = vpop.eup %5138  ;;  %4891 = vmatprep.subr.bf16.mxu0 %v6583_v52 }
 0xe0e   : > { %v3678_v48 = vmul.f32 %v5139_v2, %v6233_v0  ;;  %v5029_v0 = vld [vmem:[%s6511_s14 + $0x18] sm:$0xff]  }
 0xe0f   : > { %4892 = vmatpush3.bf16.msra.mxu0 %v5029_v0  ;;  %v5060_v0 = vld [vmem:[%s6515_s18 + $0x48] sm:$0xff]  }
 0xe10   : > { %v3679_v54 = vpack.c.bf16 %v3678_v48, %v3678_v48  ;;  %4893 = vmatprep.subr.bf16.mxu0 %v6583_v52  ;;  %v5036_v48 = vld [vmem:[%s6513_s16 + $0x4] ss:$8 sps:$4 sm:$0xff]  }
 0xe13   : > { %4870 = vmatmul.mubr.msk.bf16.vlgmr.msra.gmra.mrb[80].mxu1 %vm2895_vm8, %v3569_v40  ;;  %4894 = vmatpush3.bf16.msra.mxu0 %v5030_v62  ;;  %v5052_v62 = vld [vmem:[%s6513_s16 + $0x60] ss:$8 sps:$4 sm:$0xff]  }
 0xe14   : > { %4880 = vmatpush3.bf16.msra.mxu1 %v3686_v34  ;;  %4881 = vmatprep.mubr.msk.bf16.mxu1 %vm5211_vm0, %v6583_v52  ;;  %v5034_v34 = vld [vmem:[%s6513_s16] ss:$8 sps:$4 sm:$0xff]  }
 0xe15   : > { %4895 = vmatprep.subr.bf16.mxu0 %v6583_v52  ;;  %4012 = vmatprep.subr.bf16.mxu1 %v5036_v48 }
 0xe17   : > { %4896 = vmatpush3.bf16.msra.mxu0 %v5031_v5  ;;  %v5063_v5 = vld [vmem:[%s6515_s18 + $0x10] sm:$0xff]  }
 0xe18   : > { %4897 = vmatprep.subr.bf16.mxu0 %v6583_v52 }
 0xe1b   : > { %4882 = vmatmul.mubr.msk.bf16.vlgmr.msra.gmra.mrb[84].mxu1 %vm2895_vm8, %v3679_v54  ;;  %4898 = vmatpush3.bf16.msra.mxu0 %v5032_v18  ;;  %v5039_v54 = vld [vmem:[%s6513_s16 + $0x14] ss:$8 sps:$4 sm:$0xff]  }
 0xe1c   : > { %4044 = vmatprep.mubr.bf16.mxu1 %v6584_v16  ;;  %4899 = vmatprep.subr.bf16.mxu0 %v6583_v52  ;;  %v5064_v18 = vld [vmem:[%s6515_s18 + $0x58] sm:$0xff]  }
 0xe1d   : > { %4013 = vmatpush1.bf16.msra.mxu1 %v5034_v34 }
 0xe1e   : > { %4014 = vmatprep.subr.bf16.mxu1 %v5039_v54 }
 0xe1f   : > { %4900 = vmatpush3.bf16.msra.mxu0 %v5033_v22  ;;  %v5069_v22 = vld [vmem:[%s6515_s18 + $0x28] sm:$0xff]  }
 0xe20   : > { %4611 = vmatprep.subr.bf16.mxu0 %v5058_v63 }
 0xea8   : > { %v3062_v61 = vpop.f32.mrb[60].mxu1 }
 0xea9   : > { %v4811_v29 = vpop.f32.mrb[61].mxu1  ;;  %3729 = vrot.lane.b32.xlu1 %v3062_v61, %s6591_s30  ;;  %v5042_v61 = vld [vmem:[%s6513_s16 + $0x24] ss:$8 sps:$4 sm:$0xff]  }
 0xeaa   : > { %v3065_v25 = vpop.f32.mrb[62].mxu1  ;;  %v5040_v29 = vld [vmem:[%s6513_s16 + $0x20] ss:$8 sps:$4 sm:$0xff]  }
 0xeab   : > { %v4812_v15 = vpop.f32.mrb[63].mxu1 }
 0xeb0   : > { %v3172_v4 = vpop.f32.mrb[64].mxu1 }
 0xeb1   : > { %3733 = vrot.lane.b32.xlu0 %v3172_v4, %s6590_s8  ;;  %v4823_v9 = vpop.f32.mrb[65].mxu1  ;;  %s754_s8 = sand.u32 1, %s5199_s26  }
 0xeb2   : > { %v3175_v44 = vpop.f32.mrb[66].mxu1  ;;  %v5043_v9 = vld [vmem:[%s6513_s16 + $0x30] ss:$8 sps:$4 sm:$0xff]   ;;  %s4262_s29 = scalar_lea.sflag [#allocation3], %s754_s8 }
 0xeb3   : > { %v4824_v11 = vpop.f32.mrb[67].mxu1  ;;  %v5045_v44 = vld [vmem:[%s6513_s16 + $0x34] ss:$8 sps:$4 sm:$0xff]  }
 0xeb4   : > { %v5048_v11 = vld [vmem:[%s6513_s16 + $0x44] ss:$8 sps:$4 sm:$0xff]  }
 0xeb8   : > { %v3282_v16 = vpop.f32.mrb[68].mxu1 }
 0xeb9   : > { %3737 = vrot.lane.b32.xlu1 %v3282_v16, %s6589_s22  ;;  %v4835_v53 = vpop.f32.mrb[69].mxu1  ;;  %v5046_v16 = vld [vmem:[%s6513_s16 + $0x40] ss:$8 sps:$4 sm:$0xff]   ;;  %s4362_s22 = sshll.u32 %s754_s8, 3 }
 0xeba   : > { %v3285_v23 = vpop.f32.mrb[70].mxu1  ;;  %v5051_v53 = vld [vmem:[%s6513_s16 + $0x54] ss:$8 sps:$4 sm:$0xff]  }
 0xebb   : > { %v4836_v59 = vpop.f32.mrb[71].mxu1  ;;  %v5049_v23 = vld [vmem:[%s6513_s16 + $0x50] ss:$8 sps:$4 sm:$0xff]  }
 0xebc   : > { %v5054_v59 = vld [vmem:[%s6513_s16 + $0x64] ss:$8 sps:$4 sm:$0xff]  }
 0xed6   : > { %v3392_v58 = vpop.f32.mrb[72].mxu1 }
 0xed7   : > { %3741 = vrot.lane.b32.xlu0 %v3392_v58, %s5214_s4  ;;  %v4847_v28 = vpop.f32.mrb[73].mxu1  ;;  %v5061_v58 = vld [vmem:[%s6515_s18 + $0x8] sm:$0xff]  }
 0xed8   : > { %v3395_v27 = vpop.f32.mrb[74].mxu1  ;;  %v5057_v28 = vld [vmem:[%s6513_s16 + $0x74] ss:$8 sps:$4 sm:$0xff]  }
 0xed9   : > { %v4848_v10 = vpop.f32.mrb[75].mxu1  ;;  %v5062_v27 = vld [vmem:[%s6515_s18 + $0x50] sm:$0xff]  }
 0xeda   : > { %v5055_v10 = vld [vmem:[%s6513_s16 + $0x70] ss:$8 sps:$4 sm:$0xff]  }
 0xede   : > { %v3502_v47 = vpop.f32.mrb[76].mxu1 }
 0xedf   : > { %3745 = vrot.lane.b32.xlu1 %v3502_v47, %s5215_s25  ;;  %v4859_v21 = vpop.f32.mrb[77].mxu1  ;;  %v5065_v47 = vld [vmem:[%s6515_s18 + $0x18] sm:$0xff]   ;;  %s4507_s25 = sshll.u32 %s6592_s28, 7  ;;  %s5219_s28 = smov [#allocation2]  }
 0xee0   : > { %v3505_v50 = vpop.f32.mrb[78].mxu1  ;;  %v5066_v21 = vld [vmem:[%s6515_s18 + $0x60] sm:$0xff]   ;;  %s6455_s7 = scalar_lea.hbm %s6596_s1, %s4507_s25 }
 0xee1   : > { %v4860_v19 = vpop.f32.mrb[79].mxu1  ;;  %v5067_v50 = vld [vmem:[%s6515_s18 + $0x20] sm:$0xff]  }
 0xee2   : > { %v5068_v19 = vld [vmem:[%s6515_s18 + $0x68] sm:$0xff]  }
 0xee6   : > { %v3612_v7 = vpop.f32.mrb[80].mxu1 }
 0xee7   : > { %3749 = vrot.lane.b32.xlu0 %v3612_v7, %s6587_s2  ;;  %v4871_v6 = vpop.f32.mrb[81].mxu1 }
 0xee8   : > { %v3615_v37 = vpop.f32.mrb[82].mxu1 }
 0xee9   : > { %v4872_v38 = vpop.f32.mrb[83].mxu1 }
 0xeee   : > { %v3722_v39 = vpop.f32.mrb[84].mxu1 }
 0xeef   : > { %3753 = vrot.lane.b32.xlu1 %v3722_v39, %s6586_s5  ;;  %v4883_v41 = vpop.f32.mrb[85].mxu1  ;;  %v4469_v39 = vld [vmem:[%s6517_s20] ss:$0 sm:$0xff]  ;;  %s756_s5 = scalar_lea.vmem [#allocation2], %s4362_s22  ;;  %s5149_s22 = sshll.u32 %s5219_s28, 4  ;;  %s5150_s22 = int_to_ptr.vmem [resolvable:$false] %s5149_s22 }
 0xef0   : > { %v3725_v42 = vpop.f32.mrb[86].mxu1  ;;  %s4275_s2 = sshll.u32 %s756_s5, 4  ;;  %s6457_s2 = int_to_ptr.vmem [resolvable:$true] %s4275_s2 }
 0xef1   : > { %v4884_v8 = vpop.f32.mrb[87].mxu1  ;;  %v4470_v42 = vld [vmem:[%s6518_s21] ss:$0 sm:$0xff]  ;;  %s5145_s6 = scalar_lea.vmem %s6457_s2, 128  ;;  %p5152_p0 = scmp.lt.s32.totalorder %s6457_s2, %s5150_s22 }
 0xef2   : > { %p5146_p11 = scmp.ne.s32.totalorder %s6457_s2, %s5145_s6 }
 0xef4   : > { %p5147_p12 = pnand %p5146_p11, %p5383_p5 }
 0xef6   : > { %p5148_p13 = pneg %p5147_p12 }
 0xf1b   : > { %v3730_v43 = vpop.permute.xlu1 %3729 }
 0xf1c   : > { %v3756_v51 = vsel %vm1042_vm1, %v6197_v46, %v3730_v43  ;;  %v4460_v46 = vld [vmem:[%s6512_s15] ss:$0 sm:$0xff] }
 0xf23   : > { %v3734_v30 = vpop.permute.xlu0 %3733 }
 0xf24   : > { %v3757_v13 = vsel %vm1470_vm2, %v3756_v51, %v3734_v30  ;;  %v5072_v51 = vld [vmem:[%s6515_s18 + $0x78] sm:$0xff]  }
 0xf2b   : > { %v3738_v52 = vpop.permute.xlu1 %3737 }
 0xf2c   : > { %v3758_v31 = vsel %vm1472_vm3, %v3757_v13, %v3738_v52  ;;  %v5070_v52 = vld [vmem:[%s6515_s18 + $0x70] sm:$0xff]   ;;  %v5073_v13 = vld [vmem:[%s6515_s18 + $0x38] sm:$0xff]  }
 0xf49   : > { %v3742_v24 = vpop.permute.xlu0 %3741 }
 0xf4a   : > { %v3759_v32 = vsel %vm1474_vm4, %v3758_v31, %v3742_v24  ;;  %v5071_v24 = vld [vmem:[%s6515_s18 + $0x30] sm:$0xff]  }
 0xf51   : > { %v3746_v55 = vpop.permute.xlu1 %3745 }
 0xf52   : > { %v3760_v60 = vsel %vm1476_vm5, %v3759_v32, %v3746_v55  ;;  %v3920_v55 = vld [vmem:[%s6514_s17] sm:$0x3] }
 0xf53   : > { %v3925_v31 = vrot.slane %v3920_v55, %v5502_v33 }
 0xf59   : > { %v3750_v12 = vpop.permute.xlu0 %3749 }
 0xf5a   : > { %v3761_v1 = vsel %vm1478_vm6, %v3760_v60, %v3750_v12  ;;  %v3929_v12 = vrot.slane %v3920_v55, %v5508_v35 }
 0xf61   : > { %v3754_v14 = vpop.permute.xlu1 %3753 }
 0xf62   : > { %v3762_v17 = vsel %vm1480_vm7, %v3761_v1, %v3754_v14 }
 0xf63   : > { %v3763_v3 = vpack.c.bf16 %v3762_v17, %v3762_v17 }
 0xf65   : > { %4902 = vmatmul.mubr.bf16.vlgmr.msra.gmra.mrb[60].mxu0 %v3763_v3 }
 0xf66   : > { %4612 = vmatpush3.bf16.msra.mxu0 %v5059_v56 }
 0xf67   : > { %4613 = vmatprep.subr.bf16.mxu0 %v5060_v0 }
 0xf6a   : > { %4614 = vmatpush3.bf16.msra.mxu0 %v5061_v58 }
 0xf6b   : > { %4615 = vmatprep.subr.bf16.mxu0 %v5062_v27 }
 0xf6e   : > { %4616 = vmatpush3.bf16.msra.mxu0 %v5063_v5 }
 0xf6f   : > { %4617 = vmatprep.subr.bf16.mxu0 %v5064_v18 }
 0xf72   : > { %4618 = vmatpush3.bf16.msra.mxu0 %v5065_v47 }
 0xf73   : > { %4619 = vmatprep.subr.bf16.mxu0 %v5066_v21 }
 0xf76   : > { %4620 = vmatpush3.bf16.msra.mxu0 %v5067_v50 }
 0xf77   : > { %4621 = vmatprep.subr.bf16.mxu0 %v5068_v19 }
 0xf7a   : > { %4622 = vmatpush3.bf16.msra.mxu0 %v5069_v22 }
 0xf7b   : > { %4623 = vmatprep.subr.bf16.mxu0 %v5070_v52 }
 0xf7e   : > { %4624 = vmatpush3.bf16.msra.mxu0 %v5071_v24 }
 0xf7f   : > { %4625 = vmatprep.subr.bf16.mxu0 %v5072_v51 }
 0xf82   : > { %4626 = vmatpush3.bf16.msra.mxu0 %v5073_v13 }
0x1038   : > { %v3869_v26 = vpop.f32.mrb[60].mxu0 }
0x1039   : > { %v3870_v36 = vadd.f32 %v4460_v46, %v3869_v26  ;;  %v4903_v45 = vpop.f32.mrb[61].mxu0 }
0x103a   : > { %v3872_v20 = vpop.f32.mrb[62].mxu0 }
0x103b   : > { %v3875_v40 = vadd.f32 %v3870_v36, %v6115_v49  ;;  %v4904_v2 = vpop.f32.mrb[63].mxu0  ;;  %v5037_v49 = vld [vmem:[%s6513_s16 + $0x10] ss:$8 sps:$4 sm:$0xff]  }
0x103c   : > { %4015 = vmatpush1.bf16.msra.mxu1 %v5037_v49 }
0x103d   : > { %3878 = vadd.xlane.f32.xlu0 %v3875_v40  ;;  %4016 = vmatprep.subr.bf16.mxu1 %v5042_v61 }
0x1040   : > { %4017 = vmatpush1.bf16.msra.mxu1 %v5040_v29 }
0x1041   : > { %4018 = vmatprep.subr.bf16.mxu1 %v5045_v44  ;;  %v4504_v44 = vld [vmem:[%s6594_s27] ss:$0 sm:$0xff]  ;;  %s5151_s27 = scalar_lea.vmem %s5150_s22, 256 }
0x1042   : > { %p5153_p1 = scmp.lt.s32.totalorder %s5151_s27, %s5145_s6 }
0x1044   : > { %4019 = vmatpush1.bf16.msra.mxu1 %v5043_v9  ;;  %p5154_p2 = por %p5153_p1, %p5152_p0 }
0x1045   : > { %4020 = vmatprep.subr.bf16.mxu1 %v5048_v11 }
0x1046   : > { %p5155_p3 = pnand %p5154_p2, %p5148_p13 }
0x1048   : > { %4021 = vmatpush1.bf16.msra.mxu1 %v5046_v16  ;;  %v4505_v16 = vld [vmem:[%s6595_s24] ss:$0 sm:$0xff] }
0x1049   : > { %4022 = vmatprep.subr.bf16.mxu1 %v5051_v53 }
0x104c   : > { %4023 = vmatpush1.bf16.msra.mxu1 %v5049_v23 }
0x104d   : > { %4024 = vmatprep.subr.bf16.mxu1 %v5054_v59 }
0x1050   : > { %4025 = vmatpush1.bf16.msra.mxu1 %v5052_v62 }
0x1051   : > { %4026 = vmatprep.subr.bf16.mxu1 %v5057_v28 }
0x1054   : > { %4027 = vmatpush1.bf16.msra.mxu1 %v5055_v10 }
0x10ca   : > { %v3879_v25 = vpop.xlane.xlu0 %3878 }
0x10cb   : > { %v3880_v15 = vmul.f32 0.0078125, %v3879_v25 }
0x10cd   : > { %v3881_v57 = vsub.f32 %v3875_v40, %v3880_v15  ;;  %v4487_v40 = vld [vmem:[%s6516_s19] ss:$0 sm:$0xff] }
0x10cf   : > { %v3882_v4 = vmul.f32 %v3881_v57, %v3881_v57 }
0x10d1   : > { %3883 = vadd.xlane.f32.xlu1 %v3882_v4 }
0x115e   : > { %v3884_v7 = vpop.xlane.xlu1 %3883 }
0x115f   : > { %v3885_v6 = vmul.f32 0.0078125, %v3884_v7 }
0x1161   : > { %v3886_v37 = vadd.f32 1e-05, %v3885_v6 }
0x1163   : > { %5140 = vrsqrt.f32 %v3886_v37 }
0x116d   : > { %v5141_v38 = vpop.eup %5140 }
0x116e   : > { %v3888_v41 = vmul.f32 %v5141_v38, %v3881_v57 }
0x1170   : > { %v3895_v8 = vmul.f32 %v4469_v39, %v3888_v41 }
0x1172   : > { %v3902_v43 = vadd.f32 %v4470_v42, %v3895_v8 }
0x1174   : > { %v3903_v30 = vpack.c.bf16 %v3902_v43, %v3902_v43 }
0x1176   : > { %4045 = vmatmul.mubr.bf16.vlgmr.msra.gmra.mrb[88].mxu1 %v3903_v30 }
0x1249   : > { %v4046_v32 = vpop.f32.mrb[88].mxu1 }
0x124a   : > { %v4047_v60 = vadd.f32 %v4046_v32, %v3925_v31  ;;  %v4048_v1 = vpop.f32.mrb[89].mxu1 }
0x124b   : > { %v4049_v14 = vadd.f32 %v4048_v1, %v3929_v12  ;;  %v4050_v17 = vpop.f32.mrb[90].mxu1 }
0x124c   : > { %v4053_v3 = vmax.f32 %v4047_v60, 0.0  ;;  %v4051_v46 = vpop.f32.mrb[91].mxu1 }
0x124d   : > { %v4054_v26 = vmax.f32 %v4049_v14, 0.0 }
0x124e   : > { %v4055_v45 = vpack.c.bf16 %v4053_v3, %v4053_v3 }
0x124f   : > { %v4056_v36 = vpack.c.bf16 %v4054_v26, %v4054_v26 }
0x1251   : > { %4224 = vmatprep.mubr.bf16.mxu0 %v4056_v36 }
0x1252   : > { %4225 = vmatmul.mubr.bf16.vlgmr.msra.gmra.mrb[64].mxu0 %v4055_v45 }
0x1325   : > { %v4627_v20 = vpop.f32.mrb[64].mxu0 }
0x1326   : > { %v4628_v33 = vpop.f32.mrb[65].mxu0 }
0x1327   : > { %v4629_v35 = vadd.f32 %v4628_v33, %v4627_v20  ;;  %v4630_v2 = vpop.f32.mrb[66].mxu0 }
0x1328   : > { %v4631_v34 = vpop.f32.mrb[67].mxu0 }
0x1329   : > { %v4227_v48 = vadd.f32 %v4629_v35, %v4487_v40 }
0x132b   : > { %v4232_v54 = vadd.f32 %v4227_v48, %v3902_v43 }
0x132d   : > { %4235 = vadd.xlane.f32.xlu0 %v4232_v54 }
0x13ba   : > { %v4236_v49 = vpop.xlane.xlu0 %4235 }
0x13bb   : > { %v4237_v61 = vmul.f32 0.0078125, %v4236_v49 }
0x13bd   : > { %v4238_v29 = vsub.f32 %v4232_v54, %v4237_v61 }
0x13bf   : > { %v4239_v25 = vmul.f32 %v4238_v29, %v4238_v29 }
0x13c1   : > { %4240 = vadd.xlane.f32.xlu0 %v4239_v25 }
0x144e   : > { %v4241_v15 = vpop.xlane.xlu0 %4240 }
0x144f   : > { %v4242_v57 = vmul.f32 0.0078125, %v4241_v15 }
0x1451   : > { %v4243_v4 = vadd.f32 1e-05, %v4242_v57 }
0x1453   : > { %5142 = vrsqrt.f32 %v4243_v4 }
0x145d   : > { %v5143_v9 = vpop.eup %5142 }
0x145e   : > { %v4245_v11 = vmul.f32 %v5143_v9, %v4238_v29 }
0x1460   : > { %v4252_v53 = vmul.f32 %v4504_v44, %v4245_v11 }
0x1462   : > { %v4259_v23 = vadd.f32 %v4505_v16, %v4252_v53 }
0x1464   : > { %4260 = vst [vmem:[%s756_s5] sm:$0xff] %v4259_v23 }
0x1465   : > { %5158 = shalt.err (!%p5155_p3)
}
0x1466   : > { %s5159_s0 = scalar_lea.hbm %s6455_s7, 128  ;;  %s5163_s4 = scalar_lea.hbm %s6596_s1, 256 }
0x1467   : > { %p5160_p4 = scmp.ne.s32.totalorder %s6455_s7, %s5159_s0  ;;  %p5164_p9 = scmp.lt.u32.totalorder %s6455_s7, %s6596_s1 }
0x1468   : > { %p5165_p10 = scmp.lt.u32.totalorder %s5163_s4, %s5159_s0  ;;  %p5167_p12 = scmp.lt.u32.totalorder %s5159_s0, %s6455_s7 }
0x1469   : > { %p5161_p7 = pnand %p5160_p4, %p5383_p5 }
0x146a   : > { %p5166_p11 = por %p5165_p10, %p5164_p9 }
0x146b   : > { %p5162_p8 = pneg %p5161_p7 }
0x146c   : > { %p5168_p13 = por %p5167_p12, %p5166_p11 }
0x146e   : > { %p5169_p0 = pnand %p5168_p13, %p5162_p8 }
0x1470   : > { %5172 = shalt.err (!%p5169_p0)
}
0x1471   : > { %4905 = dma.vmem_to_hbm [thread:$0]  (%p5383_p5), %s6457_s2, 128, %s6455_s7, %s4262_s29  }
0x1472 PF: > { %s6597_s5 = sld [smem:[#allocation7_spill]]  ;;  %s6598_s23 = sld [smem:[#allocation5_spill]] }
0x1478   : > { %p4911_p1 = scmp.ge.s32.totalorder %s6597_s5, 2  ;;  %s4287_s28 = sand.u32 1, %s6598_s23  }
0x1479   : > { %s4288_s22 = scalar_lea.sflag [#allocation3], %s4287_s28 }
0x147a   : > { %p4908_p2 = pnand %p4911_p1, %p5387_p6 }
0x147c   : > { %5190 = dma.done.wait (!%p4908_p2), %s4288_s22, 128  }
0x147d   : > { %5192 = vsyncadd (!%p4908_p2), %s4288_s22, 4294967168  ;;  %s6600_s28 = sld [smem:[#allocation9_spill]]  ;;  %s6601_s27 = sld [smem:[#allocation6_spill]] }
0x147e   : > { %s6602_s0 = sld [smem:[#allocation10_spill]]  ;;  %s6603_s5 = smov %s5199_s26 }
0x1483   : > { %p34_p3 = scmp.ge.s32.totalorder %s6600_s28, 4   ;;  %s6604_s26 = smov %s6601_s27 }
0x1484   : > { %s6605_s27 = smov %s6602_s0 }
0x1485   :  { %36 = sbr.rel (!%p34_p3) target bundleno = 16 (0x10), region = 157 }
0x148c   :  { %4293 = vsyncpa [#allocation3], 1 }
0x148d   :  { %4295 = vsyncpa [#allocation3 + $0x1], 1 }

// kernel: matnet_encoder_layer.3
= control target key start
LH: loop header
LB: loop body
LE: loop exit
PB: predicated region body
PF: predicated region fallthrough
CT: control target
= control target key end

     0   :  { %s8132_s0 = inlined_call_operand.vmem [shape: f32[2,16,128], index: 0, kind: input, shape index: {}]   ;;  %s8133_s1 = inlined_call_operand.vmem [shape: f32[2,8,128], index: 1, kind: input, shape index: {}]   ;;  %s8134_s2 = inlined_call_operand.vmem [shape: f32[2,8,16], index: 2, kind: input, shape index: {}]   ;;  %s8135_s3 = inlined_call_operand.hbm [shape: bf16[128,128], index: 3, kind: input, shape index: {}]   ;;  %s8136_s4 = inlined_call_operand.vmem [shape: f32[1,128], index: 4, kind: input, shape index: {}]   ;;  %s8137_s5 = inlined_call_operand.hbm [shape: bf16[128,256], index: 5, kind: input, shape index: {}]   ;;  %s8138_s6 = inlined_call_operand.vmem [shape: f32[1,256], index: 6, kind: input, shape index: {}]   ;;  %s8139_s7 = inlined_call_operand.hbm [shape: bf16[128,128], index: 7, kind: input, shape index: {}]   ;;  %s8140_s8 = inlined_call_operand.vmem [shape: f32[1,128], index: 8, kind: input, shape index: {}]   ;;  %s8141_s9 = inlined_call_operand.vmem [shape: f32[65,64], index: 9, kind: input, shape index: {}]   ;;  %s8142_s10 = inlined_call_operand.vmem [shape: f32[1,128], index: 10, kind: input, shape index: {}]   ;;  %s8143_s11 = inlined_call_operand.vmem [shape: f32[1,128], index: 11, kind: input, shape index: {}]   ;;  %s8144_s12 = inlined_call_operand.vmem [shape: bf16[128,384], index: 12, kind: input, shape index: {}]   ;;  %s8145_s13 = inlined_call_operand.vmem [shape: f32[1,384], index: 13, kind: input, shape index: {}]   ;;  %s8146_s14 = inlined_call_operand.hbm [shape: bf16[128,128], index: 14, kind: input, shape index: {}]   ;;  %s8147_s15 = inlined_call_operand.vmem [shape: f32[1,128], index: 15, kind: input, shape index: {}]   ;;  %s8148_s16 = inlined_call_operand.hbm [shape: bf16[128,256], index: 16, kind: input, shape index: {}]   ;;  %s8149_s17 = inlined_call_operand.vmem [shape: f32[1,256], index: 17, kind: input, shape index: {}]   ;;  %s8150_s18 = inlined_call_operand.hbm [shape: bf16[256,128], index: 18, kind: input, shape index: {}]   ;;  %s8151_s19 = inlined_call_operand.vmem [shape: f32[1,128], index: 19, kind: input, shape index: {}]   ;;  %s8152_s20 = inlined_call_operand.vmem [shape: f32[1,128], index: 20, kind: input, shape index: {}]   ;;  %s8153_s21 = inlined_call_operand.vmem [shape: f32[1,128], index: 21, kind: input, shape index: {}]   ;;  %s8154_s22 = inlined_call_operand.vmem [shape: f32[1,128], index: 22, kind: input, shape index: {}]   ;;  %s8155_s23 = inlined_call_operand.hbm [shape: f32[1,128], index: 23, kind: input, shape index: {}]   ;;  %s8156_s24 = inlined_call_operand.hbm [shape: f32[2,16,128], index: 24, kind: output, shape index: {}]  }
   0x1   :  { %8238 = sst [smem:[#allocation84_spill]] %s8132_s0 }
   0x2   :  { %8239 = sst [smem:[#allocation85_spill]] %s8133_s1 }
   0x3   :  { %8240 = sst [smem:[#allocation86_spill]] %s8134_s2 }
   0x4   :  { %8241 = sst [smem:[#allocation87_spill]] %s8135_s3 }
   0x5   :  { %8242 = sst [smem:[#allocation88_spill]] %s8136_s4 }
   0x6   :  { %8243 = sst [smem:[#allocation89_spill]] %s8137_s5 }
   0x7   :  { %8244 = sst [smem:[#allocation90_spill]] %s8138_s6 }
   0x8   :  { %8245 = sst [smem:[#allocation91_spill]] %s8139_s7 }
   0x9   :  { %8246 = sst [smem:[#allocation92_spill]] %s8140_s8 }
   0xa   :  { %8247 = sst [smem:[#allocation93_spill]] %s8146_s14 }
   0xb   :  { %8248 = sst [smem:[#allocation94_spill]] %s8149_s17 }
   0xc   :  { %8249 = sst [smem:[#allocation95_spill]] %s8151_s19 }
   0xd   :  { %8250 = sst [smem:[#allocation96_spill]] %s8153_s21 }
   0xe   :  { %8251 = sst [smem:[#allocation97_spill]] %s8154_s22 }
   0xf   :  { %8252 = sst [smem:[#allocation98_spill]] %s8156_s24 }
  0x10   :  { %29 = vsyncpa [#allocation3], 0 }
  0x11   :  { %30 = vsyncpa [#allocation6], 0 }
  0x12   :  { %31 = vsyncpa [#allocation9], 0 }
  0x13   :  { %32 = vsyncpa [#allocation12], 0 }
  0x14   :  { %33 = vsyncpa [#allocation4], 0 }
  0x15   :  { %35 = vsyncpa [#allocation4 + $0x1], 0  ;;  %s6560_s5 = smov 0   ;;  %s6562_s26 = smov 0  }
  0x16   :  { %s6564_s27 = smov 0   ;;  %s6566_s28 = smov 0  }
  0x17 LB: > { %8253 = sst [smem:[#allocation20_spill]] %s6390_s5  ;;  %s6581_s6 = sadd.s32 4294967295, %s6402_s28   ;;  %s6402_s28 = sphi %s6566_s28, %s8418_s28   ;;  %s6398_s27 = sphi %s6564_s27, %s8421_s27   ;;  %s6394_s26 = sphi %s6562_s26, %s8420_s26   ;;  %s6390_s5 = sphi %s6560_s5, %s8419_s5  }
  0x18   : > { %8254 = sst [smem:[#allocation21_spill]] %s6394_s26  ;;  %s5100_s2 = sadd.s32 4294967294, %s6402_s28  }
  0x19   : > { %8255 = sst [smem:[#allocation22_spill]] %s6398_s27  ;;  %s6585_s29 = sadd.s32 1, %s6402_s28  }
  0x1a   : > { %8256 = sst [smem:[#allocation23_spill]] %s6402_s28  ;;  %s567_s0 = sadd.s32 1, %s6398_s27 }
  0x1b   : > { %8257 = sst [smem:[#allocation24_spill]] %s6585_s29  ;;  %s564_s7 = ssub.s32 %s6402_s28, %s6585_s29 }
  0x1c   : > { %p577_p0 = scmp.ne.s32.totalorder %s6398_s27, %s6394_s26  ;;  %p565_p1 = scmp.eq.s32.totalorder %s564_s7, 0 }
  0x1d   : > { %p578_p2 = scmp.eq.s32.totalorder %s6581_s6, 1  ;;  %p583_p3 = scmp.ne.s32.totalorder %s6394_s26, %s6390_s5 }
  0x1e   : > { %p584_p4 = scmp.eq.s32.totalorder %s5100_s2, 1  ;;  %p5101_p7 = scmp.ge.s32.totalorder %s6402_s28, 1 }
  0x1f   : > { %s6596_s30 = scalar_select %p565_p1, %s6398_s27, %s567_s0  }
  0x20   : > { %p6598_p5 = por %p578_p2, %p577_p0  ;;  %p6602_p6 = por %p584_p4, %p583_p3 }
  0x21   : > { %8258 = sst [smem:[#allocation25_spill]] %s6596_s30  ;;  %p591_p8 = scmp.lt.s32.totalorder %s6402_s28, 3 }
  0x22   : > { %s8259_s3 = scalar_select %p6598_p5, 1, 0 }
  0x23   : > { %s8261_s25 = scalar_select %p6602_p6, 1, 0 }
  0x24   : > { %8260 = sst [smem:[#allocation26_spill]] %s8259_s3  ;;  %p8169_p9 = scmp.eq.s32.totalorder %s6581_s6, 0 }
  0x25   : > { %8262 = sst [smem:[#allocation27_spill]] %s8261_s25  ;;  %p6609_p10 = pnand %p5101_p7, %p591_p8 }
  0x26   : > { %s6404_s4 = smov [#allocation5]   ;;  %s6405_s0 = smov [#allocation8]  }
  0x27   : > { %s8263_s8 = scalar_select %p6609_p10, 1, 0 }
  0x28   : > { %s619_s1 = sshll.u32 %s6404_s4, 4  ;;  %p5693_p11 = pneg %p6609_p10  ;;  %s620_s1 = int_to_ptr.vmem [resolvable:$true] %s619_s1 }
  0x29   : > { %s666_s7 = sshll.u32 %s6405_s0, 4  ;;  %s8265_s29 = sld [smem:[#allocation89_spill]]  ;;  %s667_s7 = int_to_ptr.vmem [resolvable:$true] %s666_s7 }
  0x2a   : > { %p6617_p12 = pnand %p8169_p9, %p5693_p11 }
  0x2c   : > { %p6629_p0 = pneg %p6617_p12 }
  0x2f   : > { %s6128_s25 = scalar_lea.hbm %s8265_s29, 2048 }
  0x30   : > { %p6129_p13 = scmp.ne.s32.totalorder %s8265_s29, %s6128_s25  ;;  %p6135_p3 = scmp.lt.u32.totalorder %s6128_s25, %s8265_s29 }
  0x32   : > { %p6131_p1 = pnand %p6629_p0, %p6129_p13 }
  0x34   : > { %p6132_p2 = pneg %p6131_p1 }
  0x36   : > { %p6137_p4 = pnand %p6135_p3, %p6132_p2 }
  0x38   : > { %6140 = shalt.err (!%p6137_p4)
}
  0x39   : > { %s6141_s27 = scalar_lea.vmem %s620_s1, 2048  ;;  %p6149_p9 = scmp.lt.s32.totalorder %s620_s1, %s620_s1 }
  0x3a   : > { %p6142_p7 = scmp.ne.s32.totalorder %s620_s1, %s6141_s27  ;;  %p6150_p6 = scmp.lt.s32.totalorder %s6141_s27, %s6141_s27 }
  0x3c   : > { %p6144_p8 = pnand %p6142_p7, %p6629_p0  ;;  %p6151_p5 = por %p6150_p6, %p6149_p9 }
  0x3e   : > { %p6145_p11 = pneg %p6144_p8 }
  0x40   : > { %p6152_p10 = pnand %p6151_p5, %p6145_p11 }
  0x42   : > { %6155 = shalt.err (!%p6152_p10)
}
  0x43   : > { %s8173_s5 = smov 128   ;;  %s8174_s28 = smov 8  }
  0x44   : > { %5699 = dma.hbm_to_vmem [thread:$0]  (!%p6617_p12), %s8265_s29, 2048, %s620_s1, [#allocation6], %s8173_s5, %s8173_s5, %s8174_s28  }
  0x45   : > { %s6408_s3 = smov [#allocation11]   ;;  %s8267_s14 = sld [smem:[#allocation93_spill]] }
  0x46   : > { %s698_s25 = sshll.u32 %s6408_s3, 4  ;;  %s699_s25 = int_to_ptr.vmem [resolvable:$true] %s698_s25 }
  0x4b   : > { %s6156_s22 = scalar_lea.hbm %s8267_s14, 1024 }
  0x4c   : > { %p6157_p5 = scmp.ne.s32.totalorder %s8267_s14, %s6156_s22  ;;  %p6163_p10 = scmp.lt.u32.totalorder %s6156_s22, %s8267_s14 }
  0x4e   : > { %p6159_p6 = pnand %p6157_p5, %p6629_p0 }
  0x50   : > { %p6160_p9 = pneg %p6159_p6 }
  0x52   : > { %p6165_p13 = pnand %p6163_p10, %p6160_p9 }
  0x54   : > { %6168 = shalt.err (!%p6165_p13)
}
  0x55   : > { %s6169_s1 = scalar_lea.vmem %s667_s7, 1024  ;;  %p6177_p4 = scmp.lt.s32.totalorder %s667_s7, %s667_s7 }
  0x56   : > { %p6170_p1 = scmp.ne.s32.totalorder %s667_s7, %s6169_s1  ;;  %p6178_p7 = scmp.lt.s32.totalorder %s6169_s1, %s6169_s1 }
  0x58   : > { %p6172_p2 = pnand %p6170_p1, %p6629_p0  ;;  %p6179_p8 = por %p6178_p7, %p6177_p4 }
  0x5a   : > { %p6173_p3 = pneg %p6172_p2 }
  0x5c   : > { %p6180_p11 = pnand %p6179_p8, %p6173_p3 }
  0x5e   : > { %6183 = shalt.err (!%p6180_p11)
}
  0x5f   : > { %s6409_s19 = smov 64   ;;  %s6410_s26 = smov 4  }
  0x60   : > { %5705 = dma.hbm_to_vmem [thread:$0]  (!%p6617_p12), %s8267_s14, 1024, %s667_s7, [#allocation9], %s6409_s19, %s6409_s19, %s6410_s26  }
  0x61   : > { %s6184_s30 = scalar_lea.hbm %s8150_s18, 2048 }
  0x62   : > { %p6185_p5 = scmp.ne.s32.totalorder %s8150_s18, %s6184_s30  ;;  %p6191_p10 = scmp.lt.u32.totalorder %s6184_s30, %s8150_s18 }
  0x64   : > { %p6187_p6 = pnand %p6185_p5, %p6629_p0 }
  0x66   : > { %p6188_p9 = pneg %p6187_p6 }
  0x68   : > { %p6193_p13 = pnand %p6191_p10, %p6188_p9 }
  0x6a   : > { %6196 = shalt.err (!%p6193_p13)
}
  0x6b   : > { %s6197_s17 = scalar_lea.vmem %s699_s25, 2048  ;;  %p6205_p4 = scmp.lt.s32.totalorder %s699_s25, %s699_s25 }
  0x6c   : > { %p6198_p1 = scmp.ne.s32.totalorder %s699_s25, %s6197_s17  ;;  %p6206_p7 = scmp.lt.s32.totalorder %s6197_s17, %s6197_s17 }
  0x6e   : > { %p6200_p2 = pnand %p6198_p1, %p6629_p0  ;;  %p6207_p8 = por %p6206_p7, %p6205_p4 }
  0x70   : > { %p6201_p3 = pneg %p6200_p2 }
  0x72   : > { %p6208_p11 = pnand %p6207_p8, %p6201_p3 }
  0x74   : > { %6211 = shalt.err (!%p6208_p11)
}
  0x75   : > { %5711 = dma.hbm_to_vmem [thread:$0]  (!%p6617_p12), %s8150_s18, 2048, %s699_s25, [#allocation12], %s6409_s19, %s6409_s19, %s6410_s26  }
  0x76   : > { %s6411_s22 = smov [#allocation2]   ;;  %s6412_s30 = smov [#allocation7]  }
  0x77   : > { %s603_s24 = sshll.u32 %s6411_s22, 4  ;;  %s635_s3 = sshll.u32 %s6412_s30, 4  ;;  %s604_s24 = int_to_ptr.vmem [resolvable:$true] %s603_s24  ;;  %s636_s3 = int_to_ptr.vmem [resolvable:$true] %s635_s3 }
  0x78   : > { %s8268_s1 = sld [smem:[#allocation87_spill]] }
  0x7e   : > { %s6212_s17 = scalar_lea.hbm %s8268_s1, 1024 }
  0x7f   : > { %p6213_p5 = scmp.ne.s32.totalorder %s8268_s1, %s6212_s17  ;;  %p6219_p10 = scmp.lt.u32.totalorder %s6212_s17, %s8268_s1 }
  0x81   : > { %p6215_p6 = pnand %p6213_p5, %p6629_p0 }
  0x83   : > { %p6216_p9 = pneg %p6215_p6 }
  0x85   : > { %p6221_p13 = pnand %p6219_p10, %p6216_p9 }
  0x87   : > { %6224 = shalt.err (!%p6221_p13)
}
  0x88   : > { %s6225_s25 = scalar_lea.vmem %s604_s24, 1024  ;;  %p6233_p4 = scmp.lt.s32.totalorder %s604_s24, %s604_s24 }
  0x89   : > { %p6226_p1 = scmp.ne.s32.totalorder %s604_s24, %s6225_s25  ;;  %p6234_p7 = scmp.lt.s32.totalorder %s6225_s25, %s6225_s25 }
  0x8b   : > { %p6228_p2 = pnand %p6226_p1, %p6629_p0  ;;  %p6235_p8 = por %p6234_p7, %p6233_p4 }
  0x8d   : > { %p6229_p3 = pneg %p6228_p2 }
  0x8f   : > { %p6236_p11 = pnand %p6235_p8, %p6229_p3 }
  0x91   : > { %6239 = shalt.err (!%p6236_p11)
}
  0x92   : > { %5696 = dma.hbm_to_vmem [thread:$0]  (!%p6617_p12), %s8268_s1, 1024, %s604_s24, [#allocation3], %s6409_s19, %s6409_s19, %s6410_s26  }
  0x93   : > { %s8269_s22 = sld [smem:[#allocation91_spill]] }
  0x99   : > { %s6240_s30 = scalar_lea.hbm %s8269_s22, 1024 }
  0x9a   : > { %p6241_p5 = scmp.ne.s32.totalorder %s8269_s22, %s6240_s30  ;;  %p6247_p10 = scmp.lt.u32.totalorder %s6240_s30, %s8269_s22 }
  0x9c   : > { %p6243_p6 = pnand %p6241_p5, %p6629_p0 }
  0x9e   : > { %p6244_p9 = pneg %p6243_p6 }
  0xa0   : > { %p6249_p13 = pnand %p6247_p10, %p6244_p9 }
  0xa2   : > { %6252 = shalt.err (!%p6249_p13)
}
  0xa3   : > { %s6253_s25 = scalar_lea.vmem %s636_s3, 1024  ;;  %p6261_p4 = scmp.lt.s32.totalorder %s636_s3, %s636_s3 }
  0xa4   : > { %p6254_p1 = scmp.ne.s32.totalorder %s636_s3, %s6253_s25  ;;  %p6262_p7 = scmp.lt.s32.totalorder %s6253_s25, %s6253_s25 }
  0xa6   : > { %p6256_p2 = pnand %p6254_p1, %p6629_p0  ;;  %p6263_p8 = por %p6262_p7, %p6261_p4 }
  0xa8   : > { %p6257_p3 = pneg %p6256_p2 }
  0xaa   : > { %p6264_p11 = pnand %p6263_p8, %p6257_p3 }
  0xac   : > { %6267 = shalt.err (!%p6264_p11)
}
  0xad   : > { %5702 = dma.hbm_to_vmem [thread:$0]  (!%p6617_p12), %s8269_s22, 1024, %s636_s3, [#allocation6], %s6409_s19, %s6409_s19, %s6410_s26  }
  0xae   : > { %s6413_s5 = smov [#allocation10]   ;;  %s6414_s21 = smov [#allocation13]  }
  0xaf   : > { %s682_s28 = sshll.u32 %s6413_s5, 4  ;;  %s724_s30 = sshll.u32 %s6414_s21, 4  ;;  %s683_s28 = int_to_ptr.vmem [resolvable:$true] %s682_s28  ;;  %s725_s30 = int_to_ptr.vmem [resolvable:$true] %s724_s30 }
  0xb0   : > { %s6268_s17 = scalar_lea.hbm %s8148_s16, 2048 }
  0xb1   : > { %p6269_p5 = scmp.ne.s32.totalorder %s8148_s16, %s6268_s17  ;;  %p6275_p10 = scmp.lt.u32.totalorder %s6268_s17, %s8148_s16 }
  0xb3   : > { %p6271_p6 = pnand %p6269_p5, %p6629_p0 }
  0xb5   : > { %p6272_p9 = pneg %p6271_p6 }
  0xb7   : > { %p6277_p13 = pnand %p6275_p10, %p6272_p9 }
  0xb9   : > { %6280 = shalt.err (!%p6277_p13)
}
  0xba   : > { %s6281_s19 = scalar_lea.vmem %s683_s28, 2048  ;;  %p6289_p4 = scmp.lt.s32.totalorder %s683_s28, %s683_s28 }
  0xbb   : > { %p6282_p1 = scmp.ne.s32.totalorder %s683_s28, %s6281_s19  ;;  %p6290_p7 = scmp.lt.s32.totalorder %s6281_s19, %s6281_s19 }
  0xbd   : > { %p6284_p2 = pnand %p6282_p1, %p6629_p0  ;;  %p6291_p8 = por %p6290_p7, %p6289_p4 }
  0xbf   : > { %p6285_p3 = pneg %p6284_p2 }
  0xc1   : > { %p6292_p11 = pnand %p6291_p8, %p6285_p3 }
  0xc3   : > { %6295 = shalt.err (!%p6292_p11)
}
  0xc4   : > { %s8270_s26 = smov 8   ;;  %s8271_s3 = smov 128  }
  0xc5   : > { %5708 = dma.hbm_to_vmem [thread:$0]  (!%p6617_p12), %s8148_s16, 2048, %s683_s28, [#allocation9], %s8271_s3, %s8271_s3, %s8270_s26  }
  0xc6   : > { %s6296_s0 = scalar_lea.hbm %s8155_s23, 16 }
  0xc7   : > { %p6297_p5 = scmp.ne.s32.totalorder %s8155_s23, %s6296_s0  ;;  %p6303_p10 = scmp.lt.u32.totalorder %s6296_s0, %s8155_s23 }
  0xc9   : > { %p6299_p6 = pnand %p6297_p5, %p6629_p0 }
  0xcb   : > { %p6300_p9 = pneg %p6299_p6 }
  0xcd   : > { %p6305_p13 = pnand %p6303_p10, %p6300_p9 }
  0xcf   : > { %6308 = shalt.err (!%p6305_p13)
}
  0xd0   : > { %s6309_s24 = scalar_lea.vmem %s725_s30, 16  ;;  %s6316_s28 = scalar_lea.vmem %s725_s30, 32 }
  0xd1   : > { %p6310_p1 = scmp.ne.s32.totalorder %s725_s30, %s6309_s24  ;;  %p6317_p4 = scmp.lt.s32.totalorder %s725_s30, %s725_s30 }
  0xd2   : > { %p6318_p7 = scmp.lt.s32.totalorder %s6316_s28, %s6309_s24 }
  0xd3   : > { %p6312_p2 = pnand %p6310_p1, %p6629_p0 }
  0xd4   : > { %p6319_p8 = por %p6318_p7, %p6317_p4 }
  0xd5   : > { %p6313_p3 = pneg %p6312_p2 }
  0xd7   : > { %p6320_p11 = pnand %p6319_p8, %p6313_p3 }
  0xd9   : > { %6323 = shalt.err (!%p6320_p11)
}
  0xda   : > { %5714 = dma.hbm_to_vmem [thread:$0]  (!%p6617_p12), %s8155_s23, 16, %s725_s30, [#allocation12]  }
  0xdb   : > { %p8272_p5 = scmp.ne.s32.totalorder %s8263_s8, 0 }
  0xdd   : > { %759 = sbr.rel (%p8272_p5) target bundleno = 5536 (0x15a0), region = 116 }
  0xe4   : > { %p8273_p6 = scmp.eq.s32.totalorder %s6581_s6, 0 }
  0xe6   : > { %6369 = dma.done.wait (%p8273_p6), [#allocation3], 1024   ;;  %p8274_p0 = pmov %p8273_p6 }
  0xe8   : > { %6371 = vsyncadd (%p8274_p0), [#allocation3], 4294966272  ;;  %p8275_p9 = pmov %p8274_p0 }
  0xe9   : > { %p8276_p10 = pmov %p8274_p0 }
  0xea   : > { %6373 = dma.done.wait (%p8275_p9), [#allocation6], 3072  }
  0xeb   : > { %6375 = vsyncadd (%p8276_p10), [#allocation6], 4294964224  ;;  %p8277_p13 = pmov %p8274_p0 }
  0xec   : > { %p8278_p12 = pmov %p8274_p0 }
  0xed   : > { %6377 = dma.done.wait (%p8277_p13), [#allocation9], 3072  }
  0xee   : > { %6379 = vsyncadd (%p8278_p12), [#allocation9], 4294964224  ;;  %p8279_p1 = pmov %p8274_p0 }
  0xef   : > { %p8280_p2 = pmov %p8274_p0 }
  0xf0   : > { %6381 = dma.done.wait (%p8279_p1), [#allocation12], 2064  }
  0xf1   : > { %6383 = vsyncadd (%p8280_p2), [#allocation12], 4294965232  ;;  %v8178_v0 = vmov 0.0   ;;  %vm6416_vm0 = vmmov 0   ;;  %v8176_v1 = vmov 0   ;;  %v5866_v2 = vld [vmem:[#allocation2] sm:$0xff]   ;;  %v1039_v31 = vlaneseq }
  0xf2   : > { %5391 = vmatprep.subr.bf16.mxu0 %v8178_v0  ;;  %5407 = vmatprep.mubr.msk.bf16.mxu0 %vm6416_vm0, %v8178_v0  ;;  %v5867_v3 = vld [vmem:[#allocation5 + $0x4] ss:$8 sps:$4 sm:$0xff]   ;;  %v5869_v4 = vld [vmem:[#allocation5] ss:$8 sps:$4 sm:$0xff]   ;;  %v5871_v6 = vld [vmem:[#allocation5 + $0x14] ss:$8 sps:$4 sm:$0xff]  }
  0xf3   : > { %1161 = vmatprep.mubr.bf16.mxu1 %v8176_v1  ;;  %5392 = vmatpush3.bf16.msra.mxu0 %v5866_v2  ;;  %v5870_v5 = vld [vmem:[#allocation2 + $0x8] sm:$0xff]   ;;  %v5873_v7 = vld [vmem:[#allocation5 + $0x10] ss:$8 sps:$4 sm:$0xff]   ;;  %v5879_v11 = vld [vmem:[#allocation5 + $0x34] ss:$8 sps:$4 sm:$0xff]   ;;  %p857_p3 = scmp.lt.s32.totalorder %s6581_s6, 1 }
  0xf4   : > { %1129 = vmatprep.subr.bf16.mxu1 %v5867_v3  ;;  %5393 = vmatprep.subr.bf16.mxu0 %v8178_v0  ;;  %v5874_v8 = vld [vmem:[#allocation2 + $0x10] sm:$0xff]   ;;  %v5875_v9 = vld [vmem:[#allocation5 + $0x24] ss:$8 sps:$4 sm:$0xff]   ;;  %v5877_v10 = vld [vmem:[#allocation5 + $0x20] ss:$8 sps:$4 sm:$0xff]   ;;  %s8281_s1 = sld [smem:[#allocation84_spill]] }
  0xf5   : > { %1130 = vmatpush1.bf16.msra.mxu1 %v5869_v4  ;;  %v5878_v12 = vld [vmem:[#allocation2 + $0x18] sm:$0xff]   ;;  %v5883_v14 = vld [vmem:[#allocation5 + $0x44] ss:$8 sps:$4 sm:$0xff]   ;;  %s6798_s8 = scalar_select %p857_p3, %s6581_s6, 1  ;;  %v5885_v16 = vld [vmem:[#allocation5 + $0x40] ss:$8 sps:$4 sm:$0xff]  }
  0xf6   : > { %1131 = vmatprep.subr.bf16.mxu1 %v5871_v6  ;;  %v5881_v13 = vld [vmem:[#allocation5 + $0x30] ss:$8 sps:$4 sm:$0xff]   ;;  %v5882_v15 = vld [vmem:[#allocation2 + $0x20] sm:$0xff]   ;;  %v5887_v17 = vld [vmem:[#allocation5 + $0x54] ss:$8 sps:$4 sm:$0xff]   ;;  %s8282_s0 = sld [smem:[#allocation85_spill]] }
  0xf7   : > { %5394 = vmatpush3.bf16.msra.mxu0 %v5870_v5  ;;  %v5886_v18 = vld [vmem:[#allocation2 + $0x28] sm:$0xff]   ;;  %s5267_s2 = sshll.u32 %s6798_s8, 4  ;;  %v5889_v19 = vld [vmem:[#allocation5 + $0x50] ss:$8 sps:$4 sm:$0xff]   ;;  %s5121_s4 = sshll.u32 %s6798_s8, 3  ;;  %v6824_v32 = vshrl.u32 %v1039_v31, 7 }
  0xf8   : > { %5395 = vmatprep.subr.bf16.mxu0 %v8178_v0  ;;  %v5891_v20 = vld [vmem:[#allocation5 + $0x64] ss:$8 sps:$4 sm:$0xff]   ;;  %v5890_v21 = vld [vmem:[#allocation2 + $0x30] sm:$0xff]   ;;  %v5893_v22 = vld [vmem:[#allocation5 + $0x60] ss:$8 sps:$4 sm:$0xff]   ;;  %s8284_s25 = sld [smem:[#allocation90_spill]] }
  0xf9   : > { %1132 = vmatpush1.bf16.msra.mxu1 %v5873_v7  ;;  %v5895_v23 = vld [vmem:[#allocation5 + $0x74] ss:$8 sps:$4 sm:$0xff]   ;;  %v5897_v27 = vld [vmem:[#allocation5 + $0x70] ss:$8 sps:$4 sm:$0xff]   ;;  %v6827_v33 = vsub.s32 0, %v6824_v32  ;;  %v6833_v35 = vsub.s32 1, %v6824_v32 }
  0xfa   : > { %1133 = vmatprep.subr.bf16.mxu1 %v5875_v9  ;;  %s6807_s14 = scalar_lea.vmem %s8281_s1, %s5267_s2  ;;  %v5894_v24 = vld [vmem:[#allocation2 + $0x38] sm:$0xff]   ;;  %s8286_s19 = sld [smem:[#allocation88_spill]]  ;;  %vm1173_vm1 = vcmask 130048   ;;  %vm2235_vm2 = vcmask 1043456   ;;  %vm1636_vm3 = vcmask 64512   ;;  %vm1641_vm4 = vcmask 195584  }
  0xfb   : > { %5396 = vmatpush3.bf16.msra.mxu0 %v5874_v8  ;;  %v871_v25 = vld [vmem:[%s6807_s14] sm:$0xff]  ;;  %v872_v26 = vld [vmem:[%s6807_s14 + $0x8] sm:$0xff]  ;;  %8283 = vst [vmem:[#allocation28_spill] sm:$0xff] %v6827_v33  ;;  %8285 = vst [vmem:[#allocation29_spill] sm:$0xff] %v6833_v35  ;;  %s6418_s26 = smov 96   ;;  %s6419_s2 = smov 112  }
  0xfc   : > { %5397 = vmatprep.subr.bf16.mxu0 %v8178_v0  ;;  %s865_s27 = scalar_lea.vmem %s8282_s0, %s5121_s4  ;;  %v907_v29 = vpack.c.bf16 %v872_v26, %v871_v25  ;;  %s6420_s30 = smov 64   ;;  %vm1644_vm5 = vcmask 261120   ;;  %vm1647_vm6 = vcmask 326656   ;;  %vm1650_vm7 = vcmask 392192  }
  0xfd   : > { %1134 = vmatpush1.bf16.msra.mxu1 %v5877_v10  ;;  %v873_v28 = vld [vmem:[%s865_s27] sm:$0xff]  ;;  %s6421_s3 = smov 80   ;;  %s6422_s1 = smov 48   ;;  %vm1653_vm8 = vcmask 457728   ;;  %vm2280_vm9 = vcmask 130112   ;;  %vm2365_vm10 = vcmask 195712  }
  0xfe   : > { %1135 = vmatprep.subr.bf16.mxu1 %v5879_v11  ;;  %v1020_v30 = vpack.c.bf16 %v873_v28, %v873_v28  ;;  %v1037_v34 = vld [vmem:[%s8284_s25] sm:$0x3]  ;;  %s6423_s5 = smov 32   ;;  %s6424_s21 = smov 16   ;;  %vm2449_vm11 = vcmask 261312   ;;  %vm2533_vm12 = vcmask 326912  }
  0xff   : > { %5398 = vmatpush3.bf16.msra.mxu0 %v5878_v12  ;;  %v1042_v37 = vrot.slane %v1037_v34, %v6827_v33  ;;  %v1046_v39 = vrot.slane %v1037_v34, %v6833_v35  ;;  %s8287_s17 = sld [smem:[#allocation86_spill]]  ;;  %s6425_s8 = smov 8   ;;  %vm2617_vm13 = vcmask 392512   ;;  %vm2701_vm14 = vcmask 458112  }
 0x100   : > { %5399 = vmatprep.subr.bf16.mxu0 %v8178_v0  ;;  %v5123_v36 = vld [vmem:[%s8286_s19] ss:$0 sm:$0xff]  ;;  %s6427_s25 = smov 40   ;;  %s6428_s24 = smov 56   ;;  %vm2785_vm15 = vcmask 523712  }
 0x101   : > { %1136 = vmatpush1.bf16.msra.mxu1 %v5881_v13  ;;  %s6429_s28 = smov 120   ;;  %s6430_s19 = smov 104  }
 0x102   : > { %1137 = vmatprep.subr.bf16.mxu1 %v5883_v14  ;;  %s6431_s0 = smov 88   ;;  %s6432_s27 = smov 72  }
 0x103   : > { %5400 = vmatpush3.bf16.msra.mxu0 %v5882_v15 }
 0x104   : > { %5401 = vmatprep.subr.bf16.mxu0 %v8178_v0 }
 0x105   : > { %1138 = vmatpush1.bf16.msra.mxu1 %v5885_v16  ;;  %s869_s7 = scalar_lea.vmem %s8287_s17, %s5121_s4  ;;  %s6426_s4 = smov 24  }
 0x106   : > { %1139 = vmatprep.subr.bf16.mxu1 %v5887_v17  ;;  %v874_v54 = vld [vmem:[%s869_s7] sm:$0xff]  ;;  %s8406_s17 = sld [smem:[#allocation94_spill]] }
 0x107   : > { %5402 = vmatpush3.bf16.msra.mxu0 %v5886_v18 }
 0x108   : > { %5403 = vmatprep.subr.bf16.mxu0 %v8178_v0 }
 0x109   : > { %1140 = vmatpush1.bf16.msra.mxu1 %v5889_v19 }
 0x10a   : > { %1141 = vmatprep.subr.bf16.mxu1 %v5891_v20 }
 0x10b   : > { %5404 = vmatpush3.bf16.msra.mxu0 %v5890_v21 }
 0x10c   : > { %5405 = vmatprep.subr.bf16.mxu0 %v8178_v0 }
 0x10d   : > { %1142 = vmatpush1.bf16.msra.mxu1 %v5893_v22 }
 0x10e   : > { %1143 = vmatprep.subr.bf16.mxu1 %v5895_v23 }
 0x10f   : > { %5406 = vmatpush3.bf16.msra.mxu0 %v5894_v24 }
 0x110   : > { %5435 = vmatprep.subr.bf16.mxu0 %v8178_v0 }
 0x111   : > { %1144 = vmatpush1.bf16.msra.mxu1 %v5897_v27 }
 0x112   : > { %5408 = vmatmul.mubr.bf16.vlgmr.msra.gmra.mrb[0].mxu0 %v907_v29  ;;  %5411 = vmatprep.subr.bf16.mxu1 %v8178_v0 }
 0x113   : > { %5437 = vmatprep.mubr.msk.bf16.mxu0 %vm6416_vm0, %v8178_v0 }
 0x114   : > { %1162 = vmatmul.mubr.bf16.vlgmr.msra.gmra.mrb[0].mxu1 %v1020_v30 }
 0x115   : > { %5413 = vmatprep.mubr.msk.bf16.mxu1 %vm6416_vm0, %v8178_v0 }
 0x1e5   : > { %v1013_v38 = vpop.f32.mrb[0].mxu0 }
 0x1e6   : > { %v1014_v40 = vadd.f32 %v5123_v36, %v1013_v38  ;;  %v5409_v41 = vpop.f32.mrb[1].mxu0 }
 0x1e7   : > { %v1163_v42 = vpop.f32.mrb[0].mxu1  ;;  %v1016_v43 = vpop.f32.mrb[2].mxu0 }
 0x1e8   : > { %v1164_v44 = vadd.f32 %v1163_v42, %v1042_v37  ;;  %v1017_v45 = vadd.f32 %v5123_v36, %v1016_v43  ;;  %v1165_v46 = vpop.f32.mrb[1].mxu1  ;;  %v5410_v47 = vpop.f32.mrb[3].mxu0 }
 0x1e9   : > { %v6840_v48 = vadd.f32 %v1165_v46, %v1046_v39  ;;  %v1167_v49 = vpop.f32.mrb[2].mxu1 }
 0x1ea   : > { %v1171_v50 = vpack.c.bf16 %v1164_v44, %v1164_v44  ;;  %v1170_v51 = vpack.c.bf16 %v1017_v45, %v1014_v40  ;;  %v1168_v52 = vpop.f32.mrb[3].mxu1 }
 0x1eb   : > { %v6887_v9 = vpack.c.bf16 %v6840_v48, %v6840_v48 }
 0x1ec   : > { %1276 = vrot.lane.b32.xlu1 %v1171_v50, %s6418_s26  ;;  %1225 = vrot.lane.b32.xlu0 %v1171_v50, %s6419_s2  ;;  %v1178_v53 = vsel %vm1173_vm1, %v1171_v50, 0 }
 0x1ed   : > { %5412 = vmatpush3.bf16.xpose.msra.mxu1 %v1178_v53  ;;  %8288 = vst [vmem:[#allocation30_spill] sm:$0xff] %v6887_v9  ;;  %v2237_v12 = vsel %vm2235_vm2, %v6887_v9, 0 }
 0x1ee   : > { %5417 = vmatprep.subr.bf16.mxu1 %v8178_v0 }
 0x1f0   : > { %1274 = vrot.lane.b32.xlu1 %v1170_v51, %s6418_s26  ;;  %1222 = vrot.lane.b32.xlu0 %v1170_v51, %s6419_s2 }
 0x1f4   : > { %1378 = vrot.lane.b32.xlu1 %v1171_v50, %s6420_s30  ;;  %1327 = vrot.lane.b32.xlu0 %v1171_v50, %s6421_s3 }
 0x1f5   : > { %5414 = vmatmul.mubr.msk.bf16.vlgmr.msra.gmra.mrb[4].mxu1 %vm1173_vm1, %v1170_v51 }
 0x1f6   : > { %5419 = vmatprep.mubr.msk.bf16.mxu1 %vm6416_vm0, %v8178_v0 }
 0x1f8   : > { %1429 = vrot.lane.b32.xlu1 %v1171_v50, %s6422_s1  ;;  %1325 = vrot.lane.b32.xlu0 %v1170_v51, %s6421_s3 }
 0x1fc   : > { %1480 = vrot.lane.b32.xlu1 %v1171_v50, %s6423_s5  ;;  %1376 = vrot.lane.b32.xlu0 %v1170_v51, %s6420_s30 }
 0x200   : > { %1531 = vrot.lane.b32.xlu1 %v1171_v50, %s6424_s21  ;;  %1427 = vrot.lane.b32.xlu0 %v1170_v51, %s6422_s1 }
 0x204   : > { %1529 = vrot.lane.b32.xlu1 %v1170_v51, %s6424_s21  ;;  %1478 = vrot.lane.b32.xlu0 %v1170_v51, %s6423_s5 }
 0x222   : > { %875 = vxpose.xlu0.b32.start.end [1/1] (short) (narrow) %v874_v54, 16 }
 0x25e   : > { %v1277_v55 = vpop.permute.xlu1 %1276  ;;  %v1226_v56 = vpop.permute.xlu0 %1225 }
 0x25f   : > { %v1231_v57 = vsel %vm1173_vm1, %v1226_v56, 0  ;;  %v1282_v62 = vsel %vm1173_vm1, %v1277_v55, 0 }
 0x260   : > { %5418 = vmatpush3.bf16.xpose.msra.mxu1 %v1231_v57 }
 0x261   : > { %5423 = vmatprep.subr.bf16.mxu1 %v8178_v0 }
 0x262   : > { %v1275_v58 = vpop.permute.xlu1 %1274  ;;  %v1223_v59 = vpop.permute.xlu0 %1222 }
 0x266   : > { %v1379_v60 = vpop.permute.xlu1 %1378  ;;  %v1328_v61 = vpop.permute.xlu0 %1327 }
 0x267   : > { %v1384_v63 = vsel %vm1173_vm1, %v1379_v60, 0  ;;  %5420 = vmatmul.mubr.msk.bf16.vlgmr.msra.gmra.mrb[8].mxu1 %vm1173_vm1, %v1223_v59  ;;  %v1333_v6 = vsel %vm1173_vm1, %v1328_v61, 0 }
 0x268   : > { %5424 = vmatpush3.bf16.xpose.msra.mxu1 %v1282_v62  ;;  %5436 = vmatpush3.bf16.xpose.msra.mxu0 %v1384_v63 }
 0x269   : > { %5425 = vmatprep.mubr.msk.bf16.mxu1 %vm6416_vm0, %v8178_v0  ;;  %5429 = vmatprep.subr.bf16.mxu1 %v8178_v0 }
 0x26a   : > { %v1430_v2 = vpop.permute.xlu1 %1429  ;;  %v1326_v3 = vpop.permute.xlu0 %1325  ;;  %5447 = vmatprep.subr.bf16.mxu0 %v8178_v0 }
 0x26b   : > { %v1435_v11 = vsel %vm1173_vm1, %v1430_v2, 0 }
 0x26e   : > { %v1481_v4 = vpop.permute.xlu1 %1480  ;;  %v1377_v5 = vpop.permute.xlu0 %1376 }
 0x26f   : > { %v1486_v7 = vsel %vm1173_vm1, %v1481_v4, 0  ;;  %5426 = vmatmul.mubr.msk.bf16.vlgmr.msra.gmra.mrb[12].mxu1 %vm1173_vm1, %v1275_v58  ;;  %5438 = vmatmul.mubr.msk.bf16.vlgmr.msra.gmra.mrb[4].mxu0 %vm1173_vm1, %v1377_v5 }
 0x270   : > { %5430 = vmatpush3.bf16.xpose.msra.mxu1 %v1333_v6  ;;  %5448 = vmatpush3.bf16.xpose.msra.mxu0 %v1486_v7 }
 0x271   : > { %5449 = vmatprep.mubr.msk.bf16.mxu0 %vm6416_vm0, %v8178_v0  ;;  %5431 = vmatprep.mubr.msk.bf16.mxu1 %vm6416_vm0, %v8178_v0 }
 0x272   : > { %v1428_v8 = vpop.permute.xlu0 %1427  ;;  %5441 = vmatprep.subr.bf16.mxu1 %v8178_v0  ;;  %5459 = vmatprep.subr.bf16.mxu0 %v8178_v0  ;;  %v1532_v13 = vpop.permute.xlu1 %1531 }
 0x273   : > { %v1537_v14 = vsel %vm1173_vm1, %v1532_v13, 0 }
 0x276   : > { %v1479_v10 = vpop.permute.xlu0 %1478  ;;  %v1530_v15 = vpop.permute.xlu1 %1529 }
 0x277   : > { %5432 = vmatmul.mubr.msk.bf16.vlgmr.msra.gmra.mrb[16].mxu1 %vm1173_vm1, %v1326_v3  ;;  %5450 = vmatmul.mubr.msk.bf16.vlgmr.msra.gmra.mrb[8].mxu0 %vm1173_vm1, %v1479_v10 }
 0x278   : > { %5442 = vmatpush3.bf16.xpose.msra.mxu1 %v1435_v11  ;;  %5460 = vmatpush3.bf16.msra.mxu0 %v2237_v12 }
 0x279   : > { %5443 = vmatprep.mubr.msk.bf16.mxu1 %vm6416_vm0, %v8178_v0  ;;  %5453 = vmatprep.subr.bf16.mxu1 %v8178_v0 }
 0x27a   : > { %5461 = vmatprep.mubr.msk.bf16.mxu0 %vm6416_vm0, %v8178_v0  ;;  %5471 = vmatprep.subr.bf16.mxu0 %v8178_v0 }
 0x27f   : > { %5444 = vmatmul.mubr.msk.bf16.vlgmr.msra.gmra.mrb[20].mxu1 %vm1173_vm1, %v1428_v8 }
 0x280   : > { %5454 = vmatpush3.bf16.xpose.msra.mxu1 %v1537_v14  ;;  %5455 = vmatprep.mubr.msk.bf16.mxu1 %vm6416_vm0, %v8178_v0 }
 0x281   : > { %5465 = vmatprep.subr.bf16.mxu1 %v8178_v0 }
 0x287   : > { %5456 = vmatmul.mubr.msk.bf16.vlgmr.msra.gmra.mrb[24].mxu1 %vm1173_vm1, %v1530_v15 }
 0x288   : > { %5467 = vmatprep.mubr.msk.bf16.mxu1 %vm6416_vm0, %v8178_v0 }
 0x2a2   : > { %v6908_v16 = vpop.trf.xlu0 }
 0x2a3   : > { %1658 = vrot.lane.b32.xlu1 %v6908_v16, %s6425_s8  ;;  %1688 = vrot.lane.b32.xlu0 %v6908_v16, %s6422_s1 }
 0x2a6   : > { %v6914_v17 = vpop.trf.xlu0 }
 0x2a7   : > { %1660 = vrot.lane.b32.xlu1 %v6914_v17, %s6425_s8 }
 0x2ab   : > { %1664 = vrot.lane.b32.xlu1 %v6908_v16, %s6424_s21 }
 0x2af   : > { %1666 = vrot.lane.b32.xlu1 %v6914_v17, %s6424_s21 }
 0x2b3   : > { %1670 = vrot.lane.b32.xlu1 %v6908_v16, %s6426_s4 }
 0x2b7   : > { %1672 = vrot.lane.b32.xlu1 %v6914_v17, %s6426_s4 }
 0x2bb   : > { %1676 = vrot.lane.b32.xlu1 %v6908_v16, %s6423_s5 }
 0x2bf   : > { %1678 = vrot.lane.b32.xlu1 %v6914_v17, %s6423_s5 }
 0x2c3   : > { %1682 = vrot.lane.b32.xlu1 %v6908_v16, %s6427_s25 }
 0x2c7   : > { %1684 = vrot.lane.b32.xlu1 %v6914_v17, %s6427_s25 }
 0x2c8   : > { %v6934_v18 = vpop.f32.mrb[4].mxu1 }
 0x2c9   : > { %v5415_v19 = vpop.f32.mrb[5].mxu1 }
 0x2ca   : > { %v6936_v20 = vpop.f32.mrb[6].mxu1  ;;  %v6979_v19 = vsub.s32 3, %v6824_v32 }
 0x2cb   : > { %v5416_v21 = vpop.f32.mrb[7].mxu1  ;;  %1690 = vrot.lane.b32.xlu1 %v6914_v17, %s6422_s1 }
 0x2cc   : > { %v6982_v21 = vsub.s32 4, %v6824_v32 }
 0x315   : > { %v1659_v53 = vpop.permute.xlu1 %1658  ;;  %v1689_v15 = vpop.permute.xlu0 %1688 }
 0x316   : > { %v1700_v5 = vsel %vm1636_vm3, %v6908_v16, %v1659_v53 }
 0x319   : > { %v1661_v54 = vpop.permute.xlu1 %1660 }
 0x31a   : > { %v1701_v7 = vsel %vm1636_vm3, %v6914_v17, %v1661_v54 }
 0x31d   : > { %v1665_v55 = vpop.permute.xlu1 %1664 }
 0x31e   : > { %v1702_v6 = vsel %vm1173_vm1, %v1700_v5, %v1665_v55 }
 0x321   : > { %v1667_v56 = vpop.permute.xlu1 %1666 }
 0x322   : > { %v1703_v11 = vsel %vm1173_vm1, %v1701_v7, %v1667_v56 }
 0x325   : > { %v1671_v57 = vpop.permute.xlu1 %1670 }
 0x326   : > { %v1704_v8 = vsel %vm1641_vm4, %v1702_v6, %v1671_v57 }
 0x329   : > { %v1673_v58 = vpop.permute.xlu1 %1672 }
 0x32a   : > { %v1705_v13 = vsel %vm1641_vm4, %v1703_v11, %v1673_v58 }
 0x32d   : > { %v1677_v59 = vpop.permute.xlu1 %1676 }
 0x32e   : > { %v1706_v12 = vsel %vm1644_vm5, %v1704_v8, %v1677_v59  ;;  %v1718_v59 = vld [vmem:[%s8141_s9 + $0x20] sm:$0xff] }
 0x32f   : > { %v7135_v1 = vrot.slane %v1718_v59, %v6982_v21 }
 0x331   : > { %v1679_v60 = vpop.permute.xlu1 %1678  ;;  %8314 = vst [vmem:[#allocation56_spill] sm:$0xff] %v7135_v1 }
 0x335   : > { %v1683_v61 = vpop.permute.xlu1 %1682 }
 0x336   : > { %v1708_v14 = vsel %vm1647_vm6, %v1706_v12, %v1683_v61 }
 0x339   : > { %v1685_v62 = vpop.permute.xlu1 %1684 }
 0x33a   : > { %v1267_v22 = vpop.f32.mrb[8].mxu1 }
 0x33b   : > { %1582 = vrot.lane.b32.xlu1 %v1267_v22, %s6425_s8  ;;  %v5421_v23 = vpop.f32.mrb[9].mxu1  ;;  %v6985_v22 = vsub.s32 5, %v6824_v32 }
 0x33c   : > { %v1270_v24 = vpop.f32.mrb[10].mxu1  ;;  %v1707_v23 = vsel %vm1644_vm5, %v1705_v13, %v1679_v60 }
 0x33d   : > { %v5422_v25 = vpop.f32.mrb[11].mxu1  ;;  %v1691_v63 = vpop.permute.xlu1 %1690 }
 0x33e   : > { %v6989_v25 = vsub.s32 6, %v6824_v32 }
 0x342   : > { %v1318_v26 = vpop.f32.mrb[12].mxu1  ;;  %v1420_v27 = vpop.f32.mrb[4].mxu0 }
 0x343   : > { %v5427_v28 = vpop.f32.mrb[13].mxu1  ;;  %1606 = vrot.lane.b32.xlu1 %v1420_v27, %s6423_s5  ;;  %v5439_v29 = vpop.f32.mrb[5].mxu0  ;;  %v1709_v27 = vsel %vm1647_vm6, %v1707_v23, %v1685_v62  ;;  %v7120_v23 = vrot.slane %v1718_v59, %v6827_v33 }
 0x344   : > { %v1321_v30 = vpop.f32.mrb[14].mxu1  ;;  %v1423_v31 = vpop.f32.mrb[6].mxu0  ;;  %v1717_v28 = vld [vmem:[%s8141_s9 + $0x18] sm:$0xff]  ;;  %v6999_v29 = vsel %vm1650_vm7, %v1708_v14, %v1689_v15  ;;  %v1719_v15 = vld [vmem:[%s8141_s9 + $0x28] sm:$0xff] }
 0x345   : > { %v5428_v34 = vpop.f32.mrb[15].mxu1  ;;  %v5440_v36 = vpop.f32.mrb[7].mxu0  ;;  %8311 = vst [vmem:[#allocation53_spill] sm:$0xff] %v7120_v23  ;;  %v7139_v23 = vrot.slane %v1718_v59, %v6985_v22 }
 0x347   : > { %1584 = vrot.lane.b32.xlu1 %v1270_v24, %s6425_s8  ;;  %8315 = vst [vmem:[#allocation57_spill] sm:$0xff] %v7139_v23 }
 0x34a   : > { %v1369_v37 = vpop.f32.mrb[16].mxu1  ;;  %v1522_v38 = vpop.f32.mrb[8].mxu0 }
 0x34b   : > { %v5433_v39 = vpop.f32.mrb[17].mxu1  ;;  %1608 = vrot.lane.b32.xlu1 %v1423_v31, %s6423_s5  ;;  %1622 = vrot.lane.b32.xlu0 %v1522_v38, %s6422_s1  ;;  %v5451_v40 = vpop.f32.mrb[9].mxu0 }
 0x34c   : > { %v1372_v41 = vpop.f32.mrb[18].mxu1  ;;  %v1525_v42 = vpop.f32.mrb[10].mxu0  ;;  %v1714_v40 = vld [vmem:[%s8141_s9] sm:$0xff] }
 0x34d   : > { %v5434_v43 = vpop.f32.mrb[19].mxu1  ;;  %v5452_v44 = vpop.f32.mrb[11].mxu0  ;;  %v7061_v53 = vrot.slane %v1714_v40, %v6827_v33  ;;  %v7064_v54 = vrot.slane %v1714_v40, %v6833_v35  ;;  %v7070_v56 = vrot.slane %v1714_v40, %v6979_v19  ;;  %v7073_v57 = vrot.slane %v1714_v40, %v6982_v21 }
 0x34e   : > { %v7034_v44 = vrot.slane %v1717_v28, %v6827_v33  ;;  %v7076_v58 = vrot.slane %v1714_v40, %v6985_v22  ;;  %v7084_v62 = vrot.slane %v1714_v40, %v6989_v25 }
 0x34f   : > { %1590 = vrot.lane.b32.xlu1 %v1318_v26, %s6424_s21  ;;  %1598 = vrot.lane.b32.xlu0 %v1369_v37, %s6426_s4  ;;  %v6992_v26 = vsub.s32 7, %v6824_v32 }
 0x350   : > { %8299 = vst [vmem:[#allocation41_spill] sm:$0xff] %v7034_v44 }
 0x352   : > { %v1471_v45 = vpop.f32.mrb[20].mxu1 }
 0x353   : > { %v5445_v46 = vpop.f32.mrb[21].mxu1  ;;  %1592 = vrot.lane.b32.xlu1 %v1321_v30, %s6424_s21  ;;  %v7002_v30 = vsel %vm1650_vm7, %v1709_v27, %v1691_v63  ;;  %v7087_v63 = vrot.slane %v1714_v40, %v6992_v26  ;;  %v7123_v27 = vrot.slane %v1718_v59, %v6833_v35 }
 0x354   : > { %v1474_v47 = vpop.f32.mrb[22].mxu1  ;;  %8290 = vst [vmem:[#allocation32_spill] sm:$0xff] %v7002_v30 }
 0x355   : > { %v5446_v48 = vpop.f32.mrb[23].mxu1  ;;  %8312 = vst [vmem:[#allocation54_spill] sm:$0xff] %v7123_v27  ;;  %v7142_v27 = vrot.slane %v1718_v59, %v6989_v25 }
 0x356   : > { %v7046_v48 = vrot.slane %v1717_v28, %v6982_v21 }
 0x357   : > { %1624 = vrot.lane.b32.xlu1 %v1525_v42, %s6422_s1  ;;  %8316 = vst [vmem:[#allocation58_spill] sm:$0xff] %v7142_v27 }
 0x358   : > { %8303 = vst [vmem:[#allocation45_spill] sm:$0xff] %v7046_v48 }
 0x35a   : > { %v1573_v49 = vpop.f32.mrb[24].mxu1 }
 0x35b   : > { %v5457_v50 = vpop.f32.mrb[25].mxu1  ;;  %1630 = vrot.lane.b32.xlu0 %v1573_v49, %s6428_s24  ;;  %1600 = vrot.lane.b32.xlu1 %v1372_v41, %s6426_s4  ;;  %v7049_v49 = vrot.slane %v1717_v28, %v6985_v22  ;;  %s8401_s4 = sld [smem:[#allocation92_spill]] }
 0x35c   : > { %v1576_v51 = vpop.f32.mrb[26].mxu1  ;;  %v1715_v50 = vld [vmem:[%s8141_s9 + $0x8] sm:$0xff] }
 0x35d   : > { %v5458_v52 = vpop.f32.mrb[27].mxu1  ;;  %8304 = vst [vmem:[#allocation46_spill] sm:$0xff] %v7049_v49  ;;  %v7090_v5 = vrot.slane %v1715_v50, %v6827_v33  ;;  %v7093_v6 = vrot.slane %v1715_v50, %v6833_v35  ;;  %v7099_v8 = vrot.slane %v1715_v50, %v6979_v19  ;;  %v7102_v11 = vrot.slane %v1715_v50, %v6982_v21 }
 0x35e   : > { %v7058_v52 = vrot.slane %v1717_v28, %v6992_v26  ;;  %v7105_v12 = vrot.slane %v1715_v50, %v6985_v22  ;;  %v7108_v13 = vrot.slane %v1715_v50, %v6989_v25  ;;  %v7111_v14 = vrot.slane %v1715_v50, %v6992_v26 }
 0x35f   : > { %1694 = vrot.lane.b32.xlu0 %v6908_v16, %s6428_s24  ;;  %1614 = vrot.lane.b32.xlu1 %v1471_v45, %s6427_s25  ;;  %v1716_v16 = vld [vmem:[%s8141_s9 + $0x10] sm:$0xff]  ;;  %v7037_v45 = vrot.slane %v1717_v28, %v6833_v35  ;;  %8307 = vst [vmem:[#allocation49_spill] sm:$0xff] %v7102_v11 }
 0x360   : > { %v7007_v34 = vrot.slane %v1716_v16, %v6827_v33  ;;  %v7016_v37 = vrot.slane %v1716_v16, %v6979_v19  ;;  %v7019_v38 = vrot.slane %v1716_v16, %v6982_v21  ;;  %v7022_v39 = vrot.slane %v1716_v16, %v6985_v22  ;;  %8306 = vst [vmem:[#allocation48_spill] sm:$0xff] %v7058_v52 }
 0x361   : > { %v7028_v42 = vrot.slane %v1716_v16, %v6989_v25  ;;  %v7031_v43 = vrot.slane %v1716_v16, %v6992_v26  ;;  %8300 = vst [vmem:[#allocation42_spill] sm:$0xff] %v7037_v45  ;;  %8308 = vst [vmem:[#allocation50_spill] sm:$0xff] %v7105_v12 }
 0x362   : > { %8291 = vst [vmem:[#allocation33_spill] sm:$0xff] %v7007_v34  ;;  %8294 = vst [vmem:[#allocation36_spill] sm:$0xff] %v7016_v37 }
 0x363   : > { %1616 = vrot.lane.b32.xlu1 %v1474_v47, %s6427_s25  ;;  %8295 = vst [vmem:[#allocation37_spill] sm:$0xff] %v7019_v38  ;;  %8296 = vst [vmem:[#allocation38_spill] sm:$0xff] %v7022_v39  ;;  %v7043_v47 = vrot.slane %v1717_v28, %v6979_v19  ;;  %s8408_s25 = sld [smem:[#allocation21_spill]] }
 0x364   : > { %8297 = vst [vmem:[#allocation39_spill] sm:$0xff] %v7028_v42  ;;  %8298 = vst [vmem:[#allocation40_spill] sm:$0xff] %v7031_v43 }
 0x365   : > { %8302 = vst [vmem:[#allocation44_spill] sm:$0xff] %v7043_v47  ;;  %8309 = vst [vmem:[#allocation51_spill] sm:$0xff] %v7108_v13 }
 0x366   : > { %8310 = vst [vmem:[#allocation52_spill] sm:$0xff] %v7111_v14 }
 0x367   : > { %1632 = vrot.lane.b32.xlu1 %v1576_v51, %s6428_s24  ;;  %v7055_v51 = vrot.slane %v1717_v28, %v6989_v25 }
 0x369   : > { %8305 = vst [vmem:[#allocation47_spill] sm:$0xff] %v7055_v51 }
 0x36b   : > { %1696 = vrot.lane.b32.xlu1 %v6914_v17, %s6428_s24  ;;  %v6976_v17 = vsub.s32 2, %v6824_v32  ;;  %v7010_v32 = vrot.slane %v1716_v16, %v6833_v35  ;;  %s854_s24 = sand.u32 1, %s8408_s25  }
 0x36d   : > { %8289 = vst [vmem:[#allocation31_spill] sm:$0xff] %v6976_v17  ;;  %8292 = vst [vmem:[#allocation34_spill] sm:$0xff] %v7010_v32  ;;  %v7013_v36 = vrot.slane %v1716_v16, %v6976_v17  ;;  %v7040_v46 = vrot.slane %v1717_v28, %v6976_v17  ;;  %v7067_v55 = vrot.slane %v1714_v40, %v6976_v17  ;;  %v1720_v16 = vld [vmem:[%s8141_s9 + $0x30] sm:$0xff] }
 0x36e   : > { %v7096_v7 = vrot.slane %v1715_v50, %v6976_v17  ;;  %v7129_v40 = vrot.slane %v1718_v59, %v6976_v17  ;;  %v7132_v50 = vrot.slane %v1718_v59, %v6979_v19  ;;  %v7154_v1 = vrot.slane %v1720_v16, %v6976_v17 }
 0x36f   : > { %8293 = vst [vmem:[#allocation35_spill] sm:$0xff] %v7013_v36  ;;  %8301 = vst [vmem:[#allocation43_spill] sm:$0xff] %v7040_v46  ;;  %v7163_v27 = vrot.slane %v1720_v16, %v6982_v21  ;;  %v7186_v23 = vrot.slane %v1720_v16, %v6992_v26 }
 0x370   : > { %8313 = vst [vmem:[#allocation55_spill] sm:$0xff] %v7132_v50  ;;  %v7151_v50 = vrot.slane %v1720_v16, %v6833_v35  ;;  %8320 = vst [vmem:[#allocation62_spill] sm:$0xff] %v7154_v1 }
 0x371   : > { %8323 = vst [vmem:[#allocation65_spill] sm:$0xff] %v7163_v27  ;;  %v7182_v27 = vrot.slane %v1720_v16, %v6989_v25  ;;  %8328 = vst [vmem:[#allocation70_spill] sm:$0xff] %v7186_v23 }
 0x372   : > { %8319 = vst [vmem:[#allocation61_spill] sm:$0xff] %v7151_v50 }
 0x373   : > { %8327 = vst [vmem:[#allocation69_spill] sm:$0xff] %v7182_v27  ;;  %v7199_v27 = vrot.slane %v1719_v15, %v6989_v25 }
 0x375   : > { %8332 = vst [vmem:[#allocation74_spill] sm:$0xff] %v7199_v27 }
 0x3ad   : > { %v6954_v2 = vpop.permute.xlu1 %1582 }
 0x3ae   : > { %v1637_v28 = vsel %vm1636_vm3, %v6934_v18, %v6954_v2  ;;  %v7145_v18 = vrot.slane %v1718_v59, %v6992_v26  ;;  %v7148_v2 = vrot.slane %v1720_v16, %v6827_v33  ;;  %v7166_v59 = vrot.slane %v1719_v15, %v6833_v35 }
 0x3b0   : > { %8317 = vst [vmem:[#allocation59_spill] sm:$0xff] %v7145_v18  ;;  %8318 = vst [vmem:[#allocation60_spill] sm:$0xff] %v7148_v2  ;;  %v7169_v2 = vrot.slane %v1719_v15, %v6976_v17 }
 0x3b1   : > { %8324 = vst [vmem:[#allocation66_spill] sm:$0xff] %v7166_v59 }
 0x3b2   : > { %8325 = vst [vmem:[#allocation67_spill] sm:$0xff] %v7169_v2 }
 0x3b5   : > { %v6956_v3 = vpop.permute.xlu1 %1606 }
 0x3b9   : > { %v6958_v4 = vpop.permute.xlu1 %1584 }
 0x3ba   : > { %v1638_v50 = vsel %vm1636_vm3, %v6936_v20, %v6958_v4  ;;  %v7189_v20 = vrot.slane %v1719_v15, %v6979_v19 }
 0x3bc   : > { %8329 = vst [vmem:[#allocation71_spill] sm:$0xff] %v7189_v20 }
 0x3bd   : > { %v6966_v10 = vpop.permute.xlu1 %1608  ;;  %v7004_v31 = vpop.permute.xlu0 %1622 }
 0x3c1   : > { %v1591_v24 = vpop.permute.xlu1 %1590  ;;  %v1599_v60 = vpop.permute.xlu0 %1598 }
 0x3c2   : > { %v1639_v0 = vsel %vm1173_vm1, %v1637_v28, %v1591_v24  ;;  %v7157_v24 = vrot.slane %v1719_v15, %v6827_v33  ;;  %v7160_v28 = vrot.slane %v1720_v16, %v6979_v19 }
 0x3c3   : > { %v1642_v1 = vsel %vm1641_vm4, %v1639_v0, %v1599_v60  ;;  %v7192_v0 = vrot.slane %v1719_v15, %v6982_v21  ;;  %v7196_v60 = vrot.slane %v1719_v15, %v6985_v22 }
 0x3c4   : > { %8321 = vst [vmem:[#allocation63_spill] sm:$0xff] %v7157_v24  ;;  %8322 = vst [vmem:[#allocation64_spill] sm:$0xff] %v7160_v28  ;;  %v1721_v24 = vld [vmem:[%s8141_s9 + $0x38] sm:$0xff]  ;;  %v7179_v28 = vrot.slane %v1720_v16, %v6985_v22 }
 0x3c5   : > { %v1593_v41 = vpop.permute.xlu1 %1592  ;;  %8330 = vst [vmem:[#allocation72_spill] sm:$0xff] %v7192_v0  ;;  %8331 = vst [vmem:[#allocation73_spill] sm:$0xff] %v7196_v60  ;;  %v7209_v23 = vrot.slane %v1721_v24, %v6827_v33 }
 0x3c6   : > { %8326 = vst [vmem:[#allocation68_spill] sm:$0xff] %v7179_v28  ;;  %v1640_v59 = vsel %vm1173_vm1, %v1638_v50, %v1593_v41  ;;  %v7202_v41 = vrot.slane %v1719_v15, %v6992_v26  ;;  %v1645_v50 = vsel %vm1644_vm5, %v1642_v1, %v6956_v3  ;;  %v7216_v28 = vrot.slane %v1721_v24, %v6976_v17 }
 0x3c7   : > { %8334 = vst [vmem:[#allocation76_spill] sm:$0xff] %v7209_v23  ;;  %v7219_v15 = vrot.slane %v1721_v24, %v6979_v19 }
 0x3c8   : > { %8333 = vst [vmem:[#allocation75_spill] sm:$0xff] %v7202_v41  ;;  %8336 = vst [vmem:[#allocation78_spill] sm:$0xff] %v7216_v28  ;;  %v7222_v41 = vrot.slane %v1721_v24, %v6982_v21 }
 0x3c9   : > { %v7081_v61 = vpop.permute.xlu1 %1624  ;;  %8337 = vst [vmem:[#allocation79_spill] sm:$0xff] %v7219_v15 }
 0x3ca   : > { %8338 = vst [vmem:[#allocation80_spill] sm:$0xff] %v7222_v41 }
 0x3cd   : > { %v1631_v9 = vpop.permute.xlu0 %1630  ;;  %v1601_v30 = vpop.permute.xlu1 %1600 }
 0x3ce   : > { %v1643_v4 = vsel %vm1641_vm4, %v1640_v59, %v1601_v30  ;;  %v7212_v30 = vrot.slane %v1721_v24, %v6833_v35  ;;  %vm2937_vm4 = vcmask 785408  }
 0x3cf   : > { %v1646_v1 = vsel %vm1644_vm5, %v1643_v4, %v6966_v10 }
 0x3d0   : > { %8335 = vst [vmem:[#allocation77_spill] sm:$0xff] %v7212_v30 }
 0x3d1   : > { %v1695_v18 = vpop.permute.xlu0 %1694  ;;  %v1615_v2 = vpop.permute.xlu1 %1614 }
 0x3d2   : > { %v1712_v16 = vsel %vm1653_vm8, %v6999_v29, %v1695_v18  ;;  %v1648_v59 = vsel %vm1647_vm6, %v1645_v50, %v1615_v2  ;;  %v7227_v29 = vrot.slane %v1721_v24, %v6985_v22  ;;  %v7230_v18 = vrot.slane %v1721_v24, %v6989_v25 }
 0x3d3   : > { %v7233_v2 = vrot.slane %v1721_v24, %v6992_v26  ;;  %v1733_v50 = vmul.f32 %v7007_v34, %v1712_v16  ;;  %v1763_v19 = vmul.f32 %v7010_v32, %v1712_v16  ;;  %v1793_v21 = vmul.f32 %v7013_v36, %v1712_v16 }
 0x3d4   : > { %8339 = vst [vmem:[#allocation81_spill] sm:$0xff] %v7227_v29  ;;  %8340 = vst [vmem:[#allocation82_spill] sm:$0xff] %v7230_v18  ;;  %v1823_v35 = vmul.f32 %v7016_v37, %v1712_v16  ;;  %v1853_v10 = vmul.f32 %v7019_v38, %v1712_v16  ;;  %v1883_v4 = vmul.f32 %v7022_v39, %v1712_v16 }
 0x3d5   : > { %v1617_v3 = vpop.permute.xlu1 %1616  ;;  %8341 = vst [vmem:[#allocation83_spill] sm:$0xff] %v7233_v2  ;;  %v1913_v22 = vmul.f32 %v7028_v42, %v1712_v16  ;;  %v1651_v25 = vsel %vm1650_vm7, %v1648_v59, %v7004_v31  ;;  %v1943_v26 = vmul.f32 %v7031_v43, %v1712_v16  ;;  %v1973_v24 = vmul.f32 %v7034_v44, %v1712_v16 }
 0x3d6   : > { %v1654_v17 = vsel %vm1653_vm8, %v1651_v25, %v1631_v9  ;;  %v1649_v33 = vsel %vm1647_vm6, %v1646_v1, %v1617_v3  ;;  %v2003_v2 = vmul.f32 %v7037_v45, %v1712_v16  ;;  %v2033_v18 = vmul.f32 %v7040_v46, %v1712_v16 }
 0x3d7   : > { %v2063_v29 = vmul.f32 %v7043_v47, %v1712_v16  ;;  %v1727_v41 = vmul.f32 %v7061_v53, %v1654_v17  ;;  %v2093_v42 = vmul.f32 %v7046_v48, %v1712_v16  ;;  %v1757_v31 = vmul.f32 %v7064_v54, %v1654_v17 }
 0x3d8   : > { %v1787_v59 = vmul.f32 %v7067_v55, %v1654_v17  ;;  %v1817_v44 = vmul.f32 %v7070_v56, %v1654_v17  ;;  %v2123_v9 = vmul.f32 %v7049_v49, %v1712_v16  ;;  %v2153_v1 = vmul.f32 %v7055_v51, %v1712_v16 }
 0x3d9   : > { %v2183_v3 = vmul.f32 %v7058_v52, %v1712_v16  ;;  %v1652_v25 = vsel %vm1650_vm7, %v1649_v33, %v7081_v61  ;;  %v1847_v47 = vmul.f32 %v7073_v57, %v1654_v17  ;;  %v1877_v46 = vmul.f32 %v7076_v58, %v1654_v17  ;;  %v1633_v61 = vpop.permute.xlu1 %1632 }
 0x3da   : > { %v1907_v48 = vmul.f32 %v7084_v62, %v1654_v17  ;;  %v1937_v45 = vmul.f32 %v7087_v63, %v1654_v17  ;;  %v1735_v43 = vadd.f32 %v1733_v50, %v1727_v41  ;;  %v1967_v15 = vmul.f32 %v7090_v5, %v1654_v17 }
 0x3db   : > { %v1997_v49 = vmul.f32 %v7093_v6, %v1654_v17  ;;  %v2027_v51 = vmul.f32 %v7096_v7, %v1654_v17  ;;  %v1765_v39 = vadd.f32 %v1763_v19, %v1757_v31  ;;  %v1795_v16 = vadd.f32 %v1793_v21, %v1787_v59  ;;  %v8342_v21 = vld [vmem:[#allocation53_spill] sm:$0xff]  ;;  %v8343_v59 = vld [vmem:[#allocation54_spill] sm:$0xff] }
 0x3dc   : > { %v1825_v52 = vadd.f32 %v1823_v35, %v1817_v44  ;;  %v2057_v33 = vmul.f32 %v7099_v8, %v1654_v17  ;;  %v2087_v38 = vmul.f32 %v7102_v11, %v1654_v17  ;;  %v2117_v37 = vmul.f32 %v7105_v12, %v1654_v17 }
 0x3dd   : > { %v2147_v36 = vmul.f32 %v7108_v13, %v1654_v17  ;;  %v2177_v41 = vmul.f32 %v7111_v14, %v1654_v17  ;;  %v1855_v50 = vadd.f32 %v1853_v10, %v1847_v47  ;;  %v1885_v32 = vadd.f32 %v1883_v4, %v1877_v46  ;;  %v8349_v10 = vld [vmem:[#allocation60_spill] sm:$0xff]  ;;  %v8350_v4 = vld [vmem:[#allocation61_spill] sm:$0xff] }
 0x3de   : > { %v1915_v34 = vadd.f32 %v1913_v22, %v1907_v48  ;;  %v1945_v28 = vadd.f32 %v1943_v26, %v1937_v45  ;;  %v1975_v30 = vadd.f32 %v1973_v24, %v1967_v15  ;;  %v2005_v23 = vadd.f32 %v2003_v2, %v1997_v49  ;;  %v8352_v24 = vld [vmem:[#allocation63_spill] sm:$0xff] }
 0x3df   : > { %v2035_v19 = vadd.f32 %v2033_v18, %v2027_v51  ;;  %v7274_v35 = vsel %vm1653_vm8, %v1652_v25, %v1633_v61  ;;  %v2065_v44 = vadd.f32 %v2063_v29, %v2057_v33  ;;  %v1741_v31 = vadd.f32 %v8342_v21, %v1735_v43  ;;  %v8347_v29 = vld [vmem:[#allocation58_spill] sm:$0xff]  ;;  %v8348_v18 = vld [vmem:[#allocation59_spill] sm:$0xff]  ;;  %v8354_v25 = vld [vmem:[#allocation64_spill] sm:$0xff] }
 0x3e0   : > { %v1771_v11 = vadd.f32 %v8343_v59, %v1765_v39  ;;  %v1801_v12 = vadd.f32 %v7129_v40, %v1795_v16  ;;  %v2095_v13 = vadd.f32 %v2093_v42, %v2087_v38  ;;  %v2125_v27 = vadd.f32 %v2123_v9, %v2117_v37 }
 0x3e1   : > { %v2155_v17 = vadd.f32 %v2153_v1, %v2147_v36  ;;  %v2185_v47 = vadd.f32 %v2183_v3, %v2177_v41  ;;  %v7281_v45 = vmul.f32 %v7061_v53, %v7274_v35  ;;  %v7285_v46 = vmul.f32 %v7064_v54, %v7274_v35  ;;  %v8344_v53 = vld [vmem:[#allocation55_spill] sm:$0xff]  ;;  %v8353_v1 = vld [vmem:[#allocation66_spill] sm:$0xff] }
 0x3e2   : > { %v7289_v48 = vmul.f32 %v7067_v55, %v7274_v35  ;;  %v7293_v39 = vmul.f32 %v7070_v56, %v7274_v35  ;;  %v7297_v36 = vmul.f32 %v7073_v57, %v7274_v35  ;;  %v7301_v37 = vmul.f32 %v7076_v58, %v7274_v35  ;;  %v8345_v55 = vld [vmem:[#allocation56_spill] sm:$0xff]  ;;  %v8346_v57 = vld [vmem:[#allocation57_spill] sm:$0xff] }
 0x3e3   : > { %v7305_v38 = vmul.f32 %v7084_v62, %v7274_v35  ;;  %v7309_v42 = vmul.f32 %v7087_v63, %v7274_v35  ;;  %v1743_v43 = vmax.f32 %v1741_v31, 0.0  ;;  %v1773_v49 = vmax.f32 %v1771_v11, 0.0  ;;  %v8355_v31 = vld [vmem:[#allocation67_spill] sm:$0xff] }
 0x3e4   : > { %v1803_v51 = vmax.f32 %v1801_v12, 0.0  ;;  %v1831_v54 = vadd.f32 %v8344_v53, %v1825_v52  ;;  %v1861_v56 = vadd.f32 %v8345_v55, %v1855_v50  ;;  %v1891_v15 = vadd.f32 %v8346_v57, %v1885_v32  ;;  %v8351_v12 = vld [vmem:[#allocation62_spill] sm:$0xff] }
 0x3e5   : > { %v1921_v58 = vadd.f32 %v8347_v29, %v1915_v34  ;;  %v1951_v2 = vadd.f32 %v8348_v18, %v1945_v28  ;;  %v7318_v62 = vmul.f32 %v7090_v5, %v7274_v35  ;;  %v1749_v63 = vmul.f32 %v8349_v10, %v1743_v43 }
 0x3e6   : > { %v1779_v22 = vmul.f32 %v8350_v4, %v1773_v49  ;;  %v1833_v11 = vmax.f32 %v1831_v54, 0.0  ;;  %v7324_v52 = vmul.f32 %v7093_v6, %v7274_v35  ;;  %v7328_v32 = vmul.f32 %v7096_v7, %v7274_v35  ;;  %v8356_v54 = vld [vmem:[#allocation74_spill] sm:$0xff] }
 0x3e7   : > { %v7332_v34 = vmul.f32 %v7099_v8, %v7274_v35  ;;  %v1809_v5 = vmul.f32 %v8351_v12, %v1803_v51  ;;  %v1863_v26 = vmax.f32 %v1861_v56, 0.0  ;;  %v1981_v9 = vadd.f32 %v8352_v24, %v1975_v30  ;;  %v8357_v56 = vld [vmem:[#allocation49_spill] sm:$0xff] }
 0x3e8   : > { %v1781_v28 = vadd.f32 %v1779_v22, %v1749_v63  ;;  %v2011_v3 = vadd.f32 %v8353_v1, %v2005_v23  ;;  %v1839_v16 = vmul.f32 %v8354_v25, %v1833_v11  ;;  %v1893_v6 = vmax.f32 %v1891_v15, 0.0  ;;  %v1697_v23 = vpop.permute.xlu1 %1696  ;;  %v8359_v11 = vld [vmem:[#allocation68_spill] sm:$0xff] }
 0x3e9   : > { %v1923_v33 = vmax.f32 %v1921_v58, 0.0  ;;  %v1953_v61 = vmax.f32 %v1951_v2, 0.0  ;;  %v1983_v7 = vmax.f32 %v1981_v9, 0.0  ;;  %v2041_v43 = vadd.f32 %v8355_v31, %v2035_v19  ;;  %v8358_v2 = vld [vmem:[#allocation65_spill] sm:$0xff]  ;;  %v8362_v9 = vld [vmem:[#allocation76_spill] sm:$0xff] }
 0x3ea   : > { %v1811_v41 = vadd.f32 %v1809_v5, %v1781_v28  ;;  %v2013_v50 = vmax.f32 %v2011_v3, 0.0  ;;  %v2071_v8 = vadd.f32 %v7189_v20, %v2065_v44  ;;  %v2101_v49 = vadd.f32 %v7192_v0, %v2095_v13  ;;  %v8360_v5 = vld [vmem:[#allocation69_spill] sm:$0xff]  ;;  %v8361_v28 = vld [vmem:[#allocation70_spill] sm:$0xff]  ;;  %v8364_v0 = vld [vmem:[#allocation32_spill] sm:$0xff] }
 0x3eb   : > { %v2131_v51 = vadd.f32 %v7196_v60, %v2125_v27  ;;  %v7343_v30 = vadd.f32 %v8356_v54, %v2155_v17  ;;  %v7347_v15 = vmul.f32 %v8357_v56, %v7274_v35  ;;  %v1869_v63 = vmul.f32 %v8358_v2, %v1863_v26  ;;  %v8363_v17 = vld [vmem:[#allocation77_spill] sm:$0xff] }
 0x3ec   : > { %v1841_v58 = vadd.f32 %v1839_v16, %v1811_v41  ;;  %v2043_v22 = vmax.f32 %v2041_v43, 0.0  ;;  %v1899_v19 = vmul.f32 %v8359_v11, %v1893_v6  ;;  %v1929_v44 = vmul.f32 %v8360_v5, %v1923_v33  ;;  %v8365_v16 = vld [vmem:[#allocation78_spill] sm:$0xff]  ;;  %v8366_v33 = vld [vmem:[#allocation75_spill] sm:$0xff] }
 0x3ed   : > { %v1959_v13 = vmul.f32 %v8361_v28, %v1953_v61  ;;  %v1989_v27 = vmul.f32 %v8362_v9, %v1983_v7  ;;  %v2019_v54 = vmul.f32 %v8363_v17, %v2013_v50  ;;  %v2073_v60 = vmax.f32 %v2071_v8, 0.0  ;;  %v8367_v61 = vld [vmem:[#allocation33_spill] sm:$0xff]  ;;  %v8368_v50 = vld [vmem:[#allocation34_spill] sm:$0xff] }
 0x3ee   : > { %v1871_v3 = vadd.f32 %v1869_v63, %v1841_v58  ;;  %v7357_v56 = vsel %vm1653_vm8, %v8364_v0, %v1697_v23  ;;  %v2049_v41 = vmul.f32 %v8365_v16, %v2043_v22  ;;  %v2103_v26 = vmax.f32 %v2101_v49, 0.0  ;;  %v8369_v58 = vld [vmem:[#allocation35_spill] sm:$0xff]  ;;  %v8370_v23 = vld [vmem:[#allocation36_spill] sm:$0xff]  ;;  %v8371_v49 = vld [vmem:[#allocation37_spill] sm:$0xff] }
 0x3ef   : > { %v2133_v43 = vmax.f32 %v2131_v51, 0.0  ;;  %v2163_v6 = vmax.f32 %v7343_v30, 0.0  ;;  %v7362_v14 = vadd.f32 %v8366_v33, %v2185_v47  ;;  %v1734_v7 = vmul.f32 %v8367_v61, %v7357_v56  ;;  %v8372_v30 = vld [vmem:[#allocation38_spill] sm:$0xff] }
 0x3f0   : > { %v1901_v20 = vadd.f32 %v1899_v19, %v1871_v3  ;;  %v1764_v8 = vmul.f32 %v8368_v50, %v7357_v56  ;;  %v1794_v0 = vmul.f32 %v8369_v58, %v7357_v56  ;;  %v1824_v63 = vmul.f32 %v8370_v23, %v7357_v56  ;;  %v8373_v19 = vld [vmem:[#allocation79_spill] sm:$0xff] }
 0x3f1   : > { %v1854_v51 = vmul.f32 %v8371_v49, %v7357_v56  ;;  %v1884_v22 = vmul.f32 %v8372_v30, %v7357_v56  ;;  %v2079_v3 = vmul.f32 %v8373_v19, %v2073_v60  ;;  %v1736_v61 = vadd.f32 %v1734_v7, %v7281_v45 }
 0x3f2   : > { %v1931_v47 = vadd.f32 %v1929_v44, %v1901_v20  ;;  %v1766_v33 = vadd.f32 %v1764_v8, %v7285_v46  ;;  %v1796_v50 = vadd.f32 %v1794_v0, %v7289_v48  ;;  %v1826_v58 = vadd.f32 %v1824_v63, %v7293_v39  ;;  %v8374_v20 = vld [vmem:[#allocation39_spill] sm:$0xff]  ;;  %v8376_v8 = vld [vmem:[#allocation81_spill] sm:$0xff] }
 0x3f3   : > { %v1856_v16 = vadd.f32 %v1854_v51, %v7297_v36  ;;  %v1886_v23 = vadd.f32 %v1884_v22, %v7301_v37  ;;  %v1742_v49 = vadd.f32 %v8342_v21, %v1736_v61  ;;  %v1914_v60 = vmul.f32 %v8374_v20, %v7357_v56 }
 0x3f4   : > { %v1961_v17 = vadd.f32 %v1959_v13, %v1931_v47  ;;  %v1772_v30 = vadd.f32 %v8343_v59, %v1766_v33  ;;  %v1802_v45 = vadd.f32 %v7129_v40, %v1796_v50  ;;  %v1832_v46 = vadd.f32 %v8344_v53, %v1826_v58  ;;  %v8375_v13 = vld [vmem:[#allocation80_spill] sm:$0xff] }
 0x3f5   : > { %v1862_v48 = vadd.f32 %v8345_v55, %v1856_v16  ;;  %v1892_v39 = vadd.f32 %v8346_v57, %v1886_v23  ;;  %v1744_v36 = vmax.f32 %v1742_v49, 0.0  ;;  %v1916_v37 = vadd.f32 %v1914_v60, %v7305_v38 }
 0x3f6   : > { %v1991_v44 = vadd.f32 %v1989_v27, %v1961_v17  ;;  %v1774_v7 = vmax.f32 %v1772_v30, 0.0  ;;  %v2109_v21 = vmul.f32 %v8375_v13, %v2103_v26  ;;  %v2139_v59 = vmul.f32 %v8376_v8, %v2133_v43  ;;  %v8377_v43 = vld [vmem:[#allocation40_spill] sm:$0xff] }
 0x3f7   : > { %v1804_v33 = vmax.f32 %v1802_v45, 0.0  ;;  %v1834_v0 = vmax.f32 %v1832_v46, 0.0  ;;  %v1750_v40 = vmul.f32 %v8349_v10, %v1744_v36  ;;  %v1864_v51 = vmax.f32 %v1862_v48, 0.0  ;;  %v8382_v48 = vld [vmem:[#allocation45_spill] sm:$0xff] }
 0x3f8   : > { %v2021_v63 = vadd.f32 %v2019_v54, %v1991_v44  ;;  %v1780_v53 = vmul.f32 %v8350_v4, %v1774_v7  ;;  %v2193_v55 = vmax.f32 %v7362_v14, 0.0  ;;  %v1894_v27 = vmax.f32 %v1892_v39, 0.0  ;;  %v8378_v54 = vld [vmem:[#allocation41_spill] sm:$0xff]  ;;  %v8379_v4 = vld [vmem:[#allocation42_spill] sm:$0xff]  ;;  %v8380_v14 = vld [vmem:[#allocation43_spill] sm:$0xff] }
 0x3f9   : > { %v1810_v57 = vmul.f32 %v8351_v12, %v1804_v33  ;;  %v1922_v17 = vadd.f32 %v8347_v29, %v1916_v37  ;;  %v1840_v26 = vmul.f32 %v8354_v25, %v1834_v0  ;;  %v1944_v22 = vmul.f32 %v8377_v43, %v7357_v56  ;;  %v8381_v12 = vld [vmem:[#allocation44_spill] sm:$0xff]  ;;  %v8383_v39 = vld [vmem:[#allocation82_spill] sm:$0xff] }
 0x3fa   : > { %v2051_v38 = vadd.f32 %v2049_v41, %v2021_v63  ;;  %v1782_v16 = vadd.f32 %v1780_v53, %v1750_v40  ;;  %v1974_v10 = vmul.f32 %v8378_v54, %v7357_v56  ;;  %v2004_v47 = vmul.f32 %v8379_v4, %v7357_v56  ;;  %v8384_v37 = vld [vmem:[#allocation50_spill] sm:$0xff]  ;;  %v8392_v54 = vld [vmem:[#allocation48_spill] sm:$0xff] }
 0x3fb   : > { %v2034_v61 = vmul.f32 %v8380_v14, %v7357_v56  ;;  %v2064_v50 = vmul.f32 %v8381_v12, %v7357_v56  ;;  %v1870_v58 = vmul.f32 %v8358_v2, %v1864_v51  ;;  %v1946_v25 = vadd.f32 %v1944_v22, %v7309_v42  ;;  %v5156_v51 = vld [vmem:[%s8141_s9 + $0x40] ss:$0 sm:$0xff]  ;;  %v8393_v12 = vld [vmem:[#allocation77_spill] sm:$0xff] }
 0x3fc   : > { %v2081_v29 = vadd.f32 %v2079_v3, %v2051_v38  ;;  %v1812_v41 = vadd.f32 %v1810_v57, %v1782_v16  ;;  %v1924_v23 = vmax.f32 %v1922_v17, 0.0  ;;  %v1976_v49 = vadd.f32 %v1974_v10, %v7318_v62  ;;  %v8388_v57 = vld [vmem:[#allocation71_spill] sm:$0xff] }
 0x3fd   : > { %v2006_v30 = vadd.f32 %v2004_v47, %v7324_v52  ;;  %v2036_v20 = vadd.f32 %v2034_v61, %v7328_v32  ;;  %v1952_v46 = vadd.f32 %v8348_v18, %v1946_v25  ;;  %v2094_v3 = vmul.f32 %v8382_v48, %v7357_v56  ;;  %v8385_v18 = vld [vmem:[#allocation83_spill] sm:$0xff] }
 0x3fe   : > { %v2111_v60 = vadd.f32 %v2109_v21, %v2081_v29  ;;  %v1842_v45 = vadd.f32 %v1840_v26, %v1812_v41  ;;  %v2169_v44 = vmul.f32 %v8383_v39, %v2163_v6  ;;  %v1982_v2 = vadd.f32 %v8352_v24, %v1976_v49  ;;  %v8390_v26 = vld [vmem:[#allocation72_spill] sm:$0xff]  ;;  %v8391_v22 = vld [vmem:[#allocation47_spill] sm:$0xff] }
 0x3ff   : > { %v2012_v42 = vadd.f32 %v8353_v1, %v2006_v30  ;;  %v2066_v62 = vadd.f32 %v2064_v50, %v7332_v34  ;;  %v1900_v32 = vmul.f32 %v8359_v11, %v1894_v27  ;;  %v1954_v7 = vmax.f32 %v1952_v46, 0.0  ;;  %v8386_v34 = vld [vmem:[#allocation51_spill] sm:$0xff]  ;;  %v8387_v11 = vld [vmem:[#allocation52_spill] sm:$0xff]  ;;  %v8395_v30 = vld [vmem:[#allocation78_spill] sm:$0xff] }
 0x400   : > { %v2141_v36 = vadd.f32 %v2139_v59, %v2111_v60  ;;  %v1872_v52 = vadd.f32 %v1870_v58, %v1842_v45  ;;  %v2118_v21 = vmul.f32 %v8384_v37, %v7274_v35  ;;  %v2199_v33 = vmul.f32 %v8385_v18, %v2193_v55  ;;  %v8394_v58 = vld [vmem:[#allocation73_spill] sm:$0xff]  ;;  %v8396_v45 = vld [vmem:[#allocation74_spill] sm:$0xff] }
 0x401   : > { %v2042_v0 = vadd.f32 %v8355_v31, %v2036_v20  ;;  %v2096_v6 = vadd.f32 %v2094_v3, %v7347_v15  ;;  %v1930_v1 = vmul.f32 %v8360_v5, %v1924_v23  ;;  %v1984_v40 = vmax.f32 %v1982_v2, 0.0  ;;  %v8389_v5 = vld [vmem:[#allocation46_spill] sm:$0xff] }
 0x402   : > { %v2171_v63 = vadd.f32 %v2169_v44, %v2141_v36  ;;  %v1902_v24 = vadd.f32 %v1900_v32, %v1872_v52  ;;  %v2148_v59 = vmul.f32 %v8386_v34, %v7274_v35  ;;  %v2178_v53 = vmul.f32 %v8387_v11, %v7274_v35  ;;  %v8397_v44 = vld [vmem:[#allocation75_spill] sm:$0xff] }
 0x403   : > { %v2014_v55 = vmax.f32 %v2012_v42, 0.0  ;;  %v2072_v31 = vadd.f32 %v8388_v57, %v2066_v62  ;;  %v1960_v17 = vmul.f32 %v8361_v28, %v1954_v7  ;;  %v2124_v38 = vmul.f32 %v8389_v5, %v7357_v56 }
 0x404   : > { %v2201_v27 = vadd.f32 %v2199_v33, %v2171_v63  ;;  %v1932_v15 = vadd.f32 %v1930_v1, %v1902_v24  ;;  %v2044_v16 = vmax.f32 %v2042_v0, 0.0  ;;  %v2102_v43 = vadd.f32 %v8390_v26, %v2096_v6 }
 0x405   : > { %v2154_v35 = vmul.f32 %v8391_v22, %v7357_v56  ;;  %v2184_v10 = vmul.f32 %v8392_v54, %v7357_v56  ;;  %v1990_v14 = vmul.f32 %v8362_v9, %v1984_v40  ;;  %v2126_v61 = vadd.f32 %v2124_v38, %v2118_v21 }
 0x406   : > { %v7445_v4 = vadd.f32 %v5156_v51, %v2201_v27  ;;  %v1962_v47 = vadd.f32 %v1960_v17, %v1932_v15  ;;  %v2020_v28 = vmul.f32 %v8393_v12, %v2014_v55  ;;  %v2074_v50 = vmax.f32 %v2072_v31, 0.0 }
 0x407   : > { %v2156_v29 = vadd.f32 %v2154_v35, %v2148_v59  ;;  %v2132_v25 = vadd.f32 %v8394_v58, %v2126_v61  ;;  %v2186_v23 = vadd.f32 %v2184_v10, %v2178_v53  ;;  %v2050_v20 = vmul.f32 %v8395_v30, %v2044_v16 }
 0x408   : > { %v1992_v41 = vadd.f32 %v1990_v14, %v1962_v47  ;;  %v2281_v49 = vsel %vm2280_vm9, %v7445_v4, -inf  ;;  %v2104_v60 = vmax.f32 %v2102_v43, 0.0  ;;  %v2080_v46 = vmul.f32 %v8373_v19, %v2074_v50 }
 0x409   : > { %2282 = vmax.xlane.f32.xlu0 %v2281_v49  ;;  %v2162_v9 = vadd.f32 %v8396_v45, %v2156_v29  ;;  %v2134_v3 = vmax.f32 %v2132_v25, 0.0  ;;  %v2192_v2 = vadd.f32 %v8397_v44, %v2186_v23  ;;  %v2366_v42 = vsel %vm2365_vm10, %v7445_v4, -inf }
 0x40a   : > { %v2022_v56 = vadd.f32 %v2020_v28, %v1992_v41  ;;  %v2110_v36 = vmul.f32 %v8375_v13, %v2104_v60  ;;  %v2450_v1 = vsel %vm2449_vm11, %v7445_v4, -inf  ;;  %v2618_v34 = vsel %vm2617_vm13, %v7445_v4, -inf }
 0x40b   : > { %v2164_v52 = vmax.f32 %v2162_v9, 0.0  ;;  %v2140_v7 = vmul.f32 %v8376_v8, %v2134_v3  ;;  %v2194_v37 = vmax.f32 %v2192_v2, 0.0  ;;  %v2702_v11 = vsel %vm2701_vm14, %v7445_v4, -inf }
 0x40c   : > { %v2052_v48 = vadd.f32 %v2050_v20, %v2022_v56  ;;  %vm2940_vm6 = vcmask 916480  }
 0x40d   : > { %2367 = vmax.xlane.f32.xlu0 %v2366_v42  ;;  %v2170_v33 = vmul.f32 %v8383_v39, %v2164_v52  ;;  %v2200_v0 = vmul.f32 %v8385_v18, %v2194_v37  ;;  %v2534_v18 = vsel %vm2533_vm12, %v7445_v4, -inf }
 0x40e   : > { %v2082_v62 = vadd.f32 %v2080_v46, %v2052_v48 }
 0x410   : > { %v2112_v32 = vadd.f32 %v2110_v36, %v2082_v62 }
 0x412   : > { %v2142_v21 = vadd.f32 %v2140_v7, %v2112_v32 }
 0x414   : > { %v2172_v19 = vadd.f32 %v2170_v33, %v2142_v21 }
 0x416   : > { %v2202_v6 = vadd.f32 %v2200_v0, %v2172_v19 }
 0x418   : > { %v7462_v63 = vadd.f32 %v5156_v51, %v2202_v6  ;;  %v2786_v51 = vsel %vm2785_vm15, %v7445_v4, -inf }
 0x41a   : > { %v2369_v24 = vsel %vm2365_vm10, %v7462_v63, -inf  ;;  %v2284_v13 = vsel %vm2280_vm9, %v7462_v63, -inf  ;;  %v2453_v8 = vsel %vm2449_vm11, %v7462_v63, -inf  ;;  %v2537_v39 = vsel %vm2533_vm12, %v7462_v63, -inf }
 0x41b   : > { %2370 = vmax.xlane.f32.xlu0 %v2369_v24  ;;  %2285 = vmax.xlane.f32.xlu1 %v2284_v13  ;;  %v2621_v40 = vsel %vm2617_vm13, %v7462_v63, -inf  ;;  %v2705_v59 = vsel %vm2701_vm14, %v7462_v63, -inf  ;;  %v2789_v53 = vsel %vm2785_vm15, %v7462_v63, -inf }
 0x41f   : > { %2454 = vmax.xlane.f32.xlu0 %v2453_v8  ;;  %2451 = vmax.xlane.f32.xlu1 %v2450_v1 }
 0x423   : > { %2538 = vmax.xlane.f32.xlu0 %v2537_v39  ;;  %2535 = vmax.xlane.f32.xlu1 %v2534_v18 }
 0x427   : > { %2622 = vmax.xlane.f32.xlu0 %v2621_v40  ;;  %2619 = vmax.xlane.f32.xlu1 %v2618_v34  ;;  %v2209_v40 = vsel %vm1636_vm3, %v7445_v4, -inf  ;;  %v2212_v34 = vsel %vm1636_vm3, %v7462_v63, -inf }
 0x42b   : > { %2706 = vmax.xlane.f32.xlu0 %v2705_v59  ;;  %2703 = vmax.xlane.f32.xlu1 %v2702_v11 }
 0x42f   : > { %2790 = vmax.xlane.f32.xlu0 %v2789_v53  ;;  %2787 = vmax.xlane.f32.xlu1 %v2786_v51 }
 0x496   : > { %v2283_v55 = vpop.xlane.xlu0 %2282 }
 0x497   : > { %v2287_v57 = vsub.f32 %v7445_v4, %v2283_v55 }
 0x499   : > { %v2289_v31 = vmul.f32 1.442695, %v2287_v57 }
 0x49a   : > { %v2368_v27 = vpop.xlane.xlu0 %2367 }
 0x49b   : > { %5986 = vpow2.f32 %v2289_v31  ;;  %v2372_v15 = vsub.f32 %v7445_v4, %v2368_v27 }
 0x49d   : > { %v2374_v17 = vmul.f32 1.442695, %v2372_v15 }
 0x49f   : > { %5988 = vpow2.f32 %v2374_v17 }
 0x4a5   : > { %v7480_v5 = vpop.eup %5986 }
 0x4a6   : > { %2295 = vrot.lane.b32.xlu1 %v7480_v5, %s6429_s28 }
 0x4a8   : > { %v2371_v38 = vpop.xlane.xlu0 %2370  ;;  %v2286_v16 = vpop.xlane.xlu1 %2285 }
 0x4a9   : > { %v7484_v26 = vpop.eup %5988  ;;  %v2373_v43 = vsub.f32 %v7462_v63, %v2371_v38  ;;  %v2288_v30 = vsub.f32 %v7462_v63, %v2286_v16 }
 0x4aa   : > { %2380 = vrot.lane.b32.xlu1 %v7484_v26, %s6419_s2 }
 0x4ab   : > { %v2376_v22 = vmul.f32 1.442695, %v2373_v43  ;;  %v2291_v3 = vmul.f32 1.442695, %v2288_v30 }
 0x4ac   : > { %v2455_v35 = vpop.xlane.xlu0 %2454  ;;  %v2452_v54 = vpop.xlane.xlu1 %2451 }
 0x4ad   : > { %5990 = vpow2.f32 %v2376_v22  ;;  %v2457_v10 = vsub.f32 %v7462_v63, %v2455_v35  ;;  %v2456_v47 = vsub.f32 %v7445_v4, %v2452_v54 }
 0x4af   : > { %v2460_v14 = vmul.f32 1.442695, %v2457_v10  ;;  %v2458_v61 = vmul.f32 1.442695, %v2456_v47 }
 0x4b0   : > { %v2539_v12 = vpop.xlane.xlu0 %2538  ;;  %v2536_v28 = vpop.xlane.xlu1 %2535 }
 0x4b1   : > { %5992 = vpow2.f32 %v2460_v14  ;;  %v2541_v50 = vsub.f32 %v7462_v63, %v2539_v12  ;;  %v2540_v29 = vsub.f32 %v7445_v4, %v2536_v28 }
 0x4b2   : > { %5994 = vpow2.f32 %v2458_v61 }
 0x4b3   : > { %v2544_v41 = vmul.f32 1.442695, %v2541_v50  ;;  %v2542_v58 = vmul.f32 1.442695, %v2540_v29 }
 0x4b4   : > { %v2623_v25 = vpop.xlane.xlu0 %2622  ;;  %v2620_v23 = vpop.xlane.xlu1 %2619 }
 0x4b5   : > { %5996 = vpow2.f32 %v2544_v41  ;;  %v2625_v49 = vsub.f32 %v7462_v63, %v2623_v25  ;;  %v2624_v56 = vsub.f32 %v7445_v4, %v2620_v23 }
 0x4b6   : > { %5998 = vpow2.f32 %v2542_v58 }
 0x4b7   : > { %v7496_v20 = vpop.eup %5990  ;;  %v2628_v60 = vmul.f32 1.442695, %v2625_v49  ;;  %v2626_v45 = vmul.f32 1.442695, %v2624_v56 }
 0x4b8   : > { %v2707_v9 = vpop.xlane.xlu0 %2706  ;;  %2382 = vrot.lane.b32.xlu1 %v7496_v20, %s6419_s2  ;;  %v2704_v46 = vpop.xlane.xlu1 %2703 }
 0x4b9   : > { %6000 = vpow2.f32 %v2628_v60  ;;  %v2709_v48 = vsub.f32 %v7462_v63, %v2707_v9  ;;  %v2708_v44 = vsub.f32 %v7445_v4, %v2704_v46 }
 0x4ba   : > { %6002 = vpow2.f32 %v2626_v45 }
 0x4bb   : > { %v7502_v2 = vpop.eup %5992  ;;  %v2712_v42 = vmul.f32 1.442695, %v2709_v48  ;;  %v2710_v7 = vmul.f32 1.442695, %v2708_v44 }
 0x4bc   : > { %v7504_v62 = vpop.eup %5994  ;;  %v2791_v36 = vpop.xlane.xlu0 %2790  ;;  %2466 = vrot.lane.b32.xlu1 %v7502_v2, %s6430_s19 }
 0x4bd   : > { %v2788_v52 = vpop.xlane.xlu1 %2787  ;;  %6004 = vpow2.f32 %v2712_v42  ;;  %v2793_v32 = vsub.f32 %v7462_v63, %v2791_v36  ;;  %2464 = vrot.lane.b32.xlu0 %v7504_v62, %s6430_s19 }
 0x4be   : > { %6006 = vpow2.f32 %v2291_v3  ;;  %v2792_v37 = vsub.f32 %v7445_v4, %v2788_v52 }
 0x4bf   : > { %v7512_v21 = vpop.eup %5996  ;;  %v2796_v33 = vmul.f32 1.442695, %v2793_v32 }
 0x4c0   : > { %v7514_v19 = vpop.eup %5998  ;;  %2550 = vrot.lane.b32.xlu1 %v7512_v21, %s6418_s26  ;;  %v2794_v0 = vmul.f32 1.442695, %v2792_v37 }
 0x4c1   : > { %6008 = vpow2.f32 %v2796_v33  ;;  %2548 = vrot.lane.b32.xlu0 %v7514_v19, %s6418_s26 }
 0x4c2   : > { %6010 = vpow2.f32 %v2710_v7 }
 0x4c3   : > { %v7520_v6 = vpop.eup %6000  ;;  %6012 = vpow2.f32 %v2794_v0 }
 0x4c4   : > { %v7522_v24 = vpop.eup %6002  ;;  %2634 = vrot.lane.b32.xlu1 %v7520_v6, %s6431_s0 }
 0x4c5   : > { %2632 = vrot.lane.b32.xlu0 %v7522_v24, %s6431_s0 }
 0x4c7   : > { %v7528_v13 = vpop.eup %6004 }
 0x4c8   : > { %v7530_v8 = vpop.eup %6006  ;;  %2718 = vrot.lane.b32.xlu1 %v7528_v13, %s6421_s3 }
 0x4c9   : > { %2297 = vrot.lane.b32.xlu0 %v7530_v8, %s6429_s28 }
 0x4cb   : > { %v7536_v1 = vpop.eup %6008 }
 0x4cc   : > { %v7538_v39 = vpop.eup %6010  ;;  %2802 = vrot.lane.b32.xlu1 %v7536_v1, %s6432_s27 }
 0x4cd   : > { %2716 = vrot.lane.b32.xlu0 %v7538_v39, %s6421_s3  ;;  %v7544_v18 = vpop.eup %6012 }
 0x4d1   : > { %2800 = vrot.lane.b32.xlu0 %v7544_v18, %s6432_s27 }
 0x4f0   : > { %2210 = vmax.xlane.f32.xlu0 %v2209_v40  ;;  %2213 = vmax.xlane.f32.xlu1 %v2212_v34 }
 0x518   : > { %v2296_v59 = vpop.permute.xlu1 %2295 }
 0x519   : > { %v2301_v11 = vsel %vm1636_vm3, %v2296_v59, 0.0 }
 0x51a   : > { %2302 = vadd.xlane.f32.xlu0 %v2301_v11 }
 0x51c   : > { %v2381_v53 = vpop.permute.xlu1 %2380 }
 0x51d   : > { %v2386_v51 = vsel %vm1636_vm3, %v2381_v53, 0.0 }
 0x51e   : > { %2387 = vadd.xlane.f32.xlu1 %v2386_v51 }
 0x52a   : > { %v2383_v31 = vpop.permute.xlu1 %2382 }
 0x52b   : > { %v2389_v10 = vsel %vm1636_vm3, %v2383_v31, 0.0 }
 0x52e   : > { %v2467_v16 = vpop.permute.xlu1 %2466 }
 0x52f   : > { %v2465_v55 = vpop.permute.xlu0 %2464  ;;  %v2473_v61 = vsel %vm1636_vm3, %v2467_v16, 0.0 }
 0x530   : > { %v2470_v57 = vsel %vm1636_vm3, %v2465_v55, 0.0 }
 0x531   : > { %2471 = vadd.xlane.f32.xlu1 %v2470_v57 }
 0x532   : > { %v2551_v35 = vpop.permute.xlu1 %2550 }
 0x533   : > { %v2549_v27 = vpop.permute.xlu0 %2548  ;;  %v2557_v50 = vsel %vm1636_vm3, %v2551_v35, 0.0 }
 0x534   : > { %v2554_v15 = vsel %vm1636_vm3, %v2549_v27, 0.0 }
 0x535   : > { %2555 = vadd.xlane.f32.xlu1 %v2554_v15 }
 0x536   : > { %v2635_v28 = vpop.permute.xlu1 %2634 }
 0x537   : > { %v2633_v17 = vpop.permute.xlu0 %2632  ;;  %v2641_v41 = vsel %vm1636_vm3, %v2635_v28, 0.0 }
 0x538   : > { %v2638_v38 = vsel %vm1636_vm3, %v2633_v17, 0.0 }
 0x539   : > { %2639 = vadd.xlane.f32.xlu1 %v2638_v38 }
 0x53a   : > { %v2719_v29 = vpop.permute.xlu1 %2718 }
 0x53b   : > { %v2298_v43 = vpop.permute.xlu0 %2297  ;;  %v2725_v58 = vsel %vm1636_vm3, %v2719_v29, 0.0 }
 0x53c   : > { %v2304_v22 = vsel %vm1636_vm3, %v2298_v43, 0.0 }
 0x53d   : > { %2305 = vadd.xlane.f32.xlu0 %v2304_v22 }
 0x53e   : > { %v2803_v25 = vpop.permute.xlu1 %2802 }
 0x53f   : > { %v2717_v54 = vpop.permute.xlu0 %2716  ;;  %v2809_v23 = vsel %vm1636_vm3, %v2803_v25, 0.0 }
 0x540   : > { %v2722_v47 = vsel %vm1636_vm3, %v2717_v54, 0.0 }
 0x541   : > { %2390 = vadd.xlane.f32.xlu0 %v2389_v10  ;;  %2723 = vadd.xlane.f32.xlu1 %v2722_v47 }
 0x543   : > { %v2801_v14 = vpop.permute.xlu0 %2800 }
 0x544   : > { %v2806_v12 = vsel %vm1636_vm3, %v2801_v14, 0.0 }
 0x545   : > { %2474 = vadd.xlane.f32.xlu0 %v2473_v61  ;;  %2807 = vadd.xlane.f32.xlu1 %v2806_v12 }
 0x549   : > { %2558 = vadd.xlane.f32.xlu0 %v2557_v50 }
 0x54d   : > { %2642 = vadd.xlane.f32.xlu0 %v2641_v41 }
 0x551   : > { %2726 = vadd.xlane.f32.xlu0 %v2725_v58 }
 0x555   : > { %2810 = vadd.xlane.f32.xlu0 %v2809_v23 }
 0x57d   : > { %v2211_v49 = vpop.xlane.xlu0 %2210  ;;  %v2214_v56 = vpop.xlane.xlu1 %2213 }
 0x57e   : > { %v2215_v30 = vsub.f32 %v7445_v4, %v2211_v49  ;;  %v2216_v60 = vsub.f32 %v7462_v63, %v2214_v56  ;;  %v8398_v4 = vld [vmem:[#allocation30_spill] sm:$0xff] }
 0x580   : > { %v2217_v45 = vmul.f32 1.442695, %v2215_v30  ;;  %v2219_v9 = vmul.f32 1.442695, %v2216_v60  ;;  %v8399_v30 = vmov 0.0  }
 0x582   : > { %6014 = vpow2.f32 %v2217_v45 }
 0x583   : > { %6016 = vpow2.f32 %v2219_v9 }
 0x58c   : > { %v7568_v46 = vpop.eup %6014 }
 0x58d   : > { %v7570_v48 = vpop.eup %6016  ;;  %v2221_v3 = vsel %vm1636_vm3, %v7568_v46, 0.0 }
 0x58e   : > { %2222 = vadd.xlane.f32.xlu1 %v2221_v3  ;;  %v2224_v44 = vsel %vm1636_vm3, %v7570_v48, 0.0 }
 0x58f   : > { %2225 = vadd.xlane.f32.xlu0 %v2224_v44 }
 0x59f   : > { %2316 = vrot.lane.b32.xlu1 %v8398_v4, %s6419_s2 }
 0x5a3   : > { %2400 = vrot.lane.b32.xlu1 %v8398_v4, %s6418_s26 }
 0x5a7   : > { %2484 = vrot.lane.b32.xlu1 %v8398_v4, %s6421_s3  ;;  %v2303_v42 = vpop.xlane.xlu0 %2302 }
 0x5a8   : > { %6018 = vrcp.f32 %v2303_v42 }
 0x5ab   : > { %v2388_v63 = vpop.xlane.xlu1 %2387 }
 0x5b2   : > { %v6019_v33 = vpop.eup %6018 }
 0x5b3   : > { %v2309_v59 = vmul.f32 %v6019_v33, %v7480_v5 }
 0x5be   : > { %v2472_v36 = vpop.xlane.xlu1 %2471 }
 0x5c2   : > { %v2556_v32 = vpop.xlane.xlu1 %2555 }
 0x5c6   : > { %v2640_v0 = vpop.xlane.xlu1 %2639 }
 0x5ca   : > { %v2306_v52 = vpop.xlane.xlu0 %2305 }
 0x5cb   : > { %6020 = vrcp.f32 %v2306_v52 }
 0x5cc   : > { %6022 = vrcp.f32 %v2388_v63 }
 0x5ce   : > { %v2391_v7 = vpop.xlane.xlu0 %2390  ;;  %v2724_v51 = vpop.xlane.xlu1 %2723 }
 0x5cf   : > { %6024 = vrcp.f32 %v2391_v7 }
 0x5d0   : > { %6026 = vrcp.f32 %v2472_v36 }
 0x5d2   : > { %v2475_v37 = vpop.xlane.xlu0 %2474  ;;  %v2808_v5 = vpop.xlane.xlu1 %2807 }
 0x5d3   : > { %6028 = vrcp.f32 %v2475_v37 }
 0x5d4   : > { %6030 = vrcp.f32 %v2556_v32 }
 0x5d5   : > { %v6021_v40 = vpop.eup %6020 }
 0x5d6   : > { %v2559_v34 = vpop.xlane.xlu0 %2558  ;;  %v2310_v11 = vmul.f32 %v6021_v40, %v7530_v8  ;;  %v6023_v53 = vpop.eup %6022 }
 0x5d7   : > { %6032 = vrcp.f32 %v2559_v34  ;;  %v2394_v27 = vmul.f32 %v6023_v53, %v7484_v26 }
 0x5d8   : > { %v2311_v55 = vpack.c.bf16 %v2310_v11, %v2309_v59  ;;  %6034 = vrcp.f32 %v2640_v0 }
 0x5d9   : > { %v6025_v57 = vpop.eup %6024 }
 0x5da   : > { %v2643_v31 = vpop.xlane.xlu0 %2642  ;;  %2313 = vrot.lane.b32.xlu0 %v2311_v55, %s6429_s28  ;;  %v2395_v15 = vmul.f32 %v6025_v57, %v7496_v20  ;;  %v6027_v17 = vpop.eup %6026  ;;  %v5898_v55 = vld [vmem:[#allocation7] sm:$0xff]   ;;  %s5118_s28 = sshll.u32 %s854_s24, 4 }
 0x5db   : > { %6036 = vrcp.f32 %v2643_v31  ;;  %v2478_v43 = vmul.f32 %v6027_v17, %v7504_v62  ;;  %v5899_v17 = vld [vmem:[#allocation7 + $0x8] sm:$0xff]  }
 0x5dc   : > { %v2396_v38 = vpack.c.bf16 %v2395_v15, %v2394_v27  ;;  %6038 = vrcp.f32 %v2724_v51  ;;  %v8400_v51 = vmov 0  }
 0x5dd   : > { %v6029_v16 = vpop.eup %6028 }
 0x5de   : > { %v2727_v8 = vpop.xlane.xlu0 %2726  ;;  %2398 = vrot.lane.b32.xlu0 %v2396_v38, %s6419_s2  ;;  %v2479_v22 = vmul.f32 %v6029_v16, %v7502_v2  ;;  %v6031_v35 = vpop.eup %6030  ;;  %v5900_v38 = vld [vmem:[#allocation7 + $0x10] sm:$0xff]  }
 0x5df   : > { %6040 = vrcp.f32 %v2727_v8  ;;  %v2562_v20 = vmul.f32 %v6031_v35, %v7514_v19 }
 0x5e0   : > { %v2480_v54 = vpack.c.bf16 %v2479_v22, %v2478_v43  ;;  %6042 = vrcp.f32 %v2808_v5  ;;  %v5901_v43 = vld [vmem:[#allocation7 + $0x18] sm:$0xff]  }
 0x5e1   : > { %v6033_v10 = vpop.eup %6032 }
 0x5e2   : > { %v2811_v26 = vpop.xlane.xlu0 %2810  ;;  %2568 = vrot.lane.b32.xlu0 %v8398_v4, %s6420_s30  ;;  %2482 = vrot.lane.b32.xlu1 %v2480_v54, %s6430_s19  ;;  %v2563_v47 = vmul.f32 %v6033_v10, %v7512_v21  ;;  %v6035_v14 = vpop.eup %6034 }
 0x5e3   : > { %6044 = vrcp.f32 %v2811_v26  ;;  %v2646_v2 = vmul.f32 %v6035_v14, %v7522_v24 }
 0x5e4   : > { %v2564_v62 = vpack.c.bf16 %v2563_v47, %v2562_v20  ;;  %v5902_v20 = vld [vmem:[#allocation7 + $0x20] sm:$0xff]  }
 0x5e5   : > { %v6037_v61 = vpop.eup %6036 }
 0x5e6   : > { %2652 = vrot.lane.b32.xlu1 %v8398_v4, %s6422_s1  ;;  %2566 = vrot.lane.b32.xlu0 %v2564_v62, %s6418_s26  ;;  %v2647_v12 = vmul.f32 %v6037_v61, %v7520_v6  ;;  %v6039_v28 = vpop.eup %6038 }
 0x5e7   : > { %v2730_v21 = vmul.f32 %v6039_v28, %v7538_v39 }
 0x5e8   : > { %v2648_v50 = vpack.c.bf16 %v2647_v12, %v2646_v2  ;;  %v5903_v12 = vld [vmem:[#allocation7 + $0x28] sm:$0xff]  }
 0x5e9   : > { %v6041_v29 = vpop.eup %6040 }
 0x5ea   : > { %2736 = vrot.lane.b32.xlu0 %v8398_v4, %s6423_s5  ;;  %2650 = vrot.lane.b32.xlu1 %v2648_v50, %s6431_s0  ;;  %v2731_v19 = vmul.f32 %v6041_v29, %v7528_v13  ;;  %v6043_v41 = vpop.eup %6042 }
 0x5eb   : > { %v2814_v6 = vmul.f32 %v6043_v41, %v7544_v18  ;;  %v5904_v41 = vld [vmem:[#allocation7 + $0x30] sm:$0xff]  }
 0x5ec   : > { %v2732_v58 = vpack.c.bf16 %v2731_v19, %v2730_v21 }
 0x5ed   : > { %v6045_v25 = vpop.eup %6044 }
 0x5ee   : > { %2820 = vrot.lane.b32.xlu1 %v8398_v4, %s6424_s21  ;;  %2734 = vrot.lane.b32.xlu0 %v2732_v58, %s6421_s3  ;;  %v2815_v24 = vmul.f32 %v6045_v25, %v7536_v1 }
 0x5f0   : > { %v2816_v23 = vpack.c.bf16 %v2815_v24, %v2814_v6 }
 0x5f2   : > { %2818 = vrot.lane.b32.xlu1 %v2816_v23, %s6432_s27  ;;  %s8411_s27 = sld [smem:[#allocation98_spill]] }
 0x61b   : > { %v2223_v49 = vpop.xlane.xlu1 %2222 }
 0x61c   : > { %6046 = vrcp.f32 %v2223_v49  ;;  %v2226_v39 = vpop.xlane.xlu0 %2225 }
 0x61d   : > { %6048 = vrcp.f32 %v2226_v39 }
 0x61f   : > { %v2317_v13 = vpop.permute.xlu1 %2316 }
 0x620   : > { %v2322_v56 = vsel %vm2235_vm2, %v2317_v13, 0  ;;  %v5905_v13 = vld [vmem:[#allocation7 + $0x38] sm:$0xff]  }
 0x621   : > { %5466 = vmatpush3.bf16.msra.mxu1 %v2322_v56 }
 0x622   : > { %5477 = vmatprep.subr.bf16.mxu1 %v8399_v30 }
 0x623   : > { %v2401_v1 = vpop.permute.xlu1 %2400 }
 0x624   : > { %v2406_v44 = vsel %vm2235_vm2, %v2401_v1, 0 }
 0x626   : > { %v6047_v60 = vpop.eup %6046 }
 0x627   : > { %v6049_v45 = vpop.eup %6048  ;;  %v2229_v9 = vmul.f32 %v6047_v60, %v7568_v46  ;;  %v2485_v4 = vpop.permute.xlu1 %2484 }
 0x628   : > { %v2230_v18 = vmul.f32 %v6049_v45, %v7570_v48  ;;  %v2490_v42 = vsel %vm2235_vm2, %v2485_v4, 0 }
 0x62a   : > { %v2231_v3 = vpack.c.bf16 %v2230_v18, %v2229_v9 }
 0x62c   : > { %5462 = vmatmul.mubr.msk.bf16.vlgmr.msra.gmra.mrb[12].mxu0 %vm1636_vm3, %v2231_v3 }
 0x62d   : > { %5472 = vmatpush3.bf16.msra.mxu0 %v2406_v44  ;;  %5473 = vmatprep.mubr.msk.bf16.mxu0 %vm6416_vm0, %v8399_v30 }
 0x62e   : > { %5483 = vmatprep.subr.bf16.mxu0 %v8399_v30 }
 0x64c   : > { %v2314_v63 = vpop.permute.xlu0 %2313 }
 0x64d   : > { %5468 = vmatmul.mubr.msk.bf16.vlgmr.msra.gmra.mrb[28].mxu1 %vm1636_vm3, %v2314_v63 }
 0x64e   : > { %5478 = vmatpush3.bf16.msra.mxu1 %v2490_v42  ;;  %5479 = vmatprep.mubr.msk.bf16.mxu1 %vm6416_vm0, %v8399_v30 }
 0x64f   : > { %5489 = vmatprep.subr.bf16.mxu1 %v8399_v30 }
 0x650   : > { %v2399_v46 = vpop.permute.xlu0 %2398 }
 0x651   : > { %5474 = vmatmul.mubr.msk.bf16.vlgmr.msra.gmra.mrb[16].mxu0 %vm1636_vm3, %v2399_v46 }
 0x652   : > { %5485 = vmatprep.mubr.msk.bf16.mxu0 %vm6416_vm0, %v8399_v30 }
 0x654   : > { %v2569_v48 = vpop.permute.xlu0 %2568  ;;  %v2483_v36 = vpop.permute.xlu1 %2482 }
 0x655   : > { %v2574_v52 = vsel %vm2235_vm2, %v2569_v48, 0  ;;  %5480 = vmatmul.mubr.msk.bf16.vlgmr.msra.gmra.mrb[32].mxu1 %vm1636_vm3, %v2483_v36 }
 0x656   : > { %5484 = vmatpush3.bf16.msra.mxu0 %v2574_v52  ;;  %5491 = vmatprep.mubr.msk.bf16.mxu1 %vm6416_vm0, %v8399_v30 }
 0x657   : > { %5495 = vmatprep.subr.bf16.mxu0 %v8399_v30 }
 0x658   : > { %v2567_v32 = vpop.permute.xlu0 %2566  ;;  %v2653_v7 = vpop.permute.xlu1 %2652 }
 0x659   : > { %v2658_v37 = vsel %vm2235_vm2, %v2653_v7, 0  ;;  %5486 = vmatmul.mubr.msk.bf16.vlgmr.msra.gmra.mrb[20].mxu0 %vm1636_vm3, %v2567_v32 }
 0x65a   : > { %5490 = vmatpush3.bf16.msra.mxu1 %v2658_v37  ;;  %5497 = vmatprep.mubr.msk.bf16.mxu0 %vm6416_vm0, %v8399_v30 }
 0x65b   : > { %5501 = vmatprep.subr.bf16.mxu1 %v8399_v30 }
 0x65c   : > { %v2737_v33 = vpop.permute.xlu0 %2736  ;;  %v2651_v0 = vpop.permute.xlu1 %2650 }
 0x65d   : > { %v2742_v40 = vsel %vm2235_vm2, %v2737_v33, 0  ;;  %5492 = vmatmul.mubr.msk.bf16.vlgmr.msra.gmra.mrb[36].mxu1 %vm1636_vm3, %v2651_v0 }
 0x65e   : > { %5496 = vmatpush3.bf16.msra.mxu0 %v2742_v40  ;;  %5503 = vmatprep.mubr.msk.bf16.mxu1 %vm6416_vm0, %v8399_v30 }
 0x65f   : > { %5507 = vmatprep.subr.bf16.mxu0 %v8399_v30 }
 0x660   : > { %v2735_v34 = vpop.permute.xlu0 %2734  ;;  %v2821_v59 = vpop.permute.xlu1 %2820 }
 0x661   : > { %v2826_v11 = vsel %vm2235_vm2, %v2821_v59, 0  ;;  %5498 = vmatmul.mubr.msk.bf16.vlgmr.msra.gmra.mrb[24].mxu0 %vm1636_vm3, %v2735_v34  ;;  %vm2931_vm2 = vcmask 523264  }
 0x662   : > { %5502 = vmatpush3.bf16.msra.mxu1 %v2826_v11  ;;  %5523 = vmatprep.mubr.msk.bf16.mxu0 %vm6416_vm0, %v8399_v30 }
 0x663   : > { %5508 = vmatpush3.bf16.msra.mxu0 %v5898_v55 }
 0x664   : > { %v2819_v53 = vpop.permute.xlu1 %2818  ;;  %5509 = vmatprep.subr.bf16.mxu0 %v8399_v30 }
 0x665   : > { %5504 = vmatmul.mubr.msk.bf16.vlgmr.msra.gmra.mrb[40].mxu1 %vm1636_vm3, %v2819_v53  ;;  %vm2934_vm3 = vcmask 654336  }
 0x666   : > { %3309 = vmatprep.mubr.bf16.mxu1 %v8400_v51 }
 0x667   : > { %5510 = vmatpush3.bf16.msra.mxu0 %v5899_v17 }
 0x668   : > { %5511 = vmatprep.subr.bf16.mxu0 %v8399_v30 }
 0x66b   : > { %5512 = vmatpush3.bf16.msra.mxu0 %v5900_v38 }
 0x66c   : > { %5513 = vmatprep.subr.bf16.mxu0 %v8399_v30 }
 0x66f   : > { %5514 = vmatpush3.bf16.msra.mxu0 %v5901_v43 }
 0x670   : > { %5515 = vmatprep.subr.bf16.mxu0 %v8399_v30 }
 0x673   : > { %5516 = vmatpush3.bf16.msra.mxu0 %v5902_v20 }
 0x674   : > { %5517 = vmatprep.subr.bf16.mxu0 %v8399_v30 }
 0x677   : > { %5518 = vmatpush3.bf16.msra.mxu0 %v5903_v12 }
 0x678   : > { %5519 = vmatprep.subr.bf16.mxu0 %v8399_v30 }
 0x67b   : > { %5520 = vmatpush3.bf16.msra.mxu0 %v5904_v41 }
 0x67c   : > { %5521 = vmatprep.subr.bf16.mxu0 %v8399_v30 }
 0x67f   : > { %5522 = vmatpush3.bf16.msra.mxu0 %v5905_v13  ;;  %v5913_v13 = vld [vmem:[%s8144_s12 + $0x20] ss:$12 sps:$4 sm:$0xff]  }
 0x680   : > { %5527 = vmatprep.subr.bf16.mxu0 %v8399_v30 }
 0x6ff   : > { %v7650_v57 = vpop.f32.mrb[12].mxu0 }
 0x700   : > { %v5463_v31 = vpop.f32.mrb[13].mxu0 }
 0x701   : > { %v7652_v27 = vpop.f32.mrb[14].mxu0 }
 0x702   : > { %v5464_v15 = vpop.f32.mrb[15].mxu0 }
 0x720   : > { %v2358_v16 = vpop.f32.mrb[28].mxu1 }
 0x721   : > { %v5469_v5 = vpop.f32.mrb[29].mxu1 }
 0x722   : > { %v2361_v8 = vpop.f32.mrb[30].mxu1 }
 0x723   : > { %v5796_v22 = vpack.i.bf16 %v2361_v8, %v2358_v16  ;;  %v5470_v35 = vpop.f32.mrb[31].mxu1 }
 0x724   : > { %v2442_v54 = vpop.f32.mrb[16].mxu0 }
 0x725   : > { %5797 = vrot.lane.b32.xlu0 %v5796_v22, %s6424_s21  ;;  %v5475_v10 = vpop.f32.mrb[17].mxu0 }
 0x726   : > { %v2445_v26 = vpop.f32.mrb[18].mxu0 }
 0x727   : > { %v5801_v47 = vpack.i.bf16 %v2445_v26, %v2442_v54  ;;  %v5476_v14 = vpop.f32.mrb[19].mxu0 }
 0x728   : > { %v2526_v62 = vpop.f32.mrb[32].mxu1 }
 0x729   : > { %v5481_v61 = vpop.f32.mrb[33].mxu1  ;;  %5802 = vrot.lane.b32.xlu1 %v5801_v47, %s6423_s5 }
 0x72a   : > { %v2529_v2 = vpop.f32.mrb[34].mxu1 }
 0x72b   : > { %v5806_v28 = vpack.i.bf16 %v2529_v2, %v2526_v62  ;;  %v5482_v50 = vpop.f32.mrb[35].mxu1  ;;  %v5165_v2 = vld [vmem:[%s8401_s4] ss:$0 sm:$0xff]  ;;  %s8407_s4 = sld [smem:[#allocation95_spill]] }
 0x72c   : > { %v2610_v29 = vpop.f32.mrb[20].mxu0 }
 0x72d   : > { %5807 = vrot.lane.b32.xlu0 %v5806_v28, %s6422_s1  ;;  %v5487_v21 = vpop.f32.mrb[21].mxu0 }
 0x72e   : > { %v2613_v19 = vpop.f32.mrb[22].mxu0  ;;  %v6126_v21 = vld [vmem:[%s6807_s14] sm:$0xff] }
 0x72f   : > { %v5811_v58 = vpack.i.bf16 %v2613_v19, %v2610_v29  ;;  %v5488_v25 = vpop.f32.mrb[23].mxu0 }
 0x730   : > { %v2694_v6 = vpop.f32.mrb[36].mxu1  ;;  %v6127_v25 = vld [vmem:[%s6807_s14 + $0x8] sm:$0xff]  ;;  %s8090_s14 = scalar_lea.sflag [#allocation4], %s854_s24 }
 0x731   : > { %v5493_v24 = vpop.f32.mrb[37].mxu1  ;;  %5812 = vrot.lane.b32.xlu1 %v5811_v58, %s6420_s30 }
 0x732   : > { %v2697_v23 = vpop.f32.mrb[38].mxu1  ;;  %v5906_v24 = vld [vmem:[%s8144_s12] ss:$12 sps:$4 sm:$0xff]  }
 0x733   : > { %v5816_v49 = vpack.i.bf16 %v2697_v23, %v2694_v6  ;;  %v5494_v39 = vpop.f32.mrb[39].mxu1  ;;  %v5908_v23 = vld [vmem:[%s8144_s12 + $0x4] ss:$12 sps:$4 sm:$0xff]  }
 0x734   : > { %v2778_v56 = vpop.f32.mrb[24].mxu0  ;;  %v5912_v39 = vld [vmem:[%s8144_s12 + $0x1c] ss:$12 sps:$4 sm:$0xff]   ;;  %3277 = vmatprep.subr.bf16.mxu1 %v5908_v23 }
 0x735   : > { %5817 = vrot.lane.b32.xlu0 %v5816_v49, %s6421_s3  ;;  %v5499_v60 = vpop.f32.mrb[25].mxu0  ;;  %v5909_v49 = vld [vmem:[%s8144_s12 + $0x8] ss:$12 sps:$4 sm:$0xff]   ;;  %3278 = vmatpush1.bf16.msra.mxu1 %v5906_v24 }
 0x736   : > { %v2781_v45 = vpop.f32.mrb[26].mxu0  ;;  %3279 = vmatprep.subr.bf16.mxu1 %v5912_v39 }
 0x737   : > { %v5821_v9 = vpack.i.bf16 %v2781_v45, %v2778_v56  ;;  %v5500_v18 = vpop.f32.mrb[27].mxu0  ;;  %v5910_v56 = vld [vmem:[%s8144_s12 + $0x18] ss:$12 sps:$4 sm:$0xff]  }
 0x738   : > { %v2862_v1 = vpop.f32.mrb[40].mxu1 }
 0x739   : > { %v5505_v3 = vpop.f32.mrb[41].mxu1  ;;  %5822 = vrot.lane.b32.xlu1 %v5821_v9, %s6418_s26  ;;  %3280 = vmatpush1.bf16.msra.mxu1 %v5910_v56 }
 0x73a   : > { %v2865_v44 = vpop.f32.mrb[42].mxu1 }
 0x73b   : > { %v5826_v4 = vpack.i.bf16 %v2865_v44, %v2862_v1  ;;  %v5506_v63 = vpop.f32.mrb[43].mxu1 }
 0x73c   : > { %v5914_v63 = vld [vmem:[%s8144_s12 + $0x30] ss:$12 sps:$4 sm:$0xff]  }
 0x73d   : > { %5827 = vrot.lane.b32.xlu0 %v5826_v4, %s6419_s2 }
 0x797   : > { %v5798_v42 = vpop.permute.xlu0 %5797 }
 0x798   : > { %v5800_v52 = vunpack.i.h.bf16 %v5798_v42  ;;  %v5799_v32 = vunpack.i.l.bf16 %v5798_v42  ;;  %v5916_v42 = vld [vmem:[%s8144_s12 + $0x34] ss:$12 sps:$4 sm:$0xff]  }
 0x799   : > { %3281 = vmatprep.subr.bf16.mxu1 %v5916_v42 }
 0x79a   : > { %v2925_v53 = vsel %vm1173_vm1, %v7650_v57, %v5799_v32  ;;  %v2926_v55 = vsel %vm1173_vm1, %v7652_v27, %v5800_v52  ;;  %3282 = vmatpush1.bf16.msra.mxu1 %v5914_v63  ;;  %v5921_v52 = vld [vmem:[%s8144_s12 + $0x50] ss:$12 sps:$4 sm:$0xff]  }
 0x79b   : > { %v5803_v46 = vpop.permute.xlu1 %5802  ;;  %v5924_v32 = vld [vmem:[%s8144_s12 + $0x64] ss:$12 sps:$4 sm:$0xff]  }
 0x79c   : > { %v5805_v7 = vunpack.i.h.bf16 %v5803_v46  ;;  %v5804_v37 = vunpack.i.l.bf16 %v5803_v46  ;;  %v5917_v46 = vld [vmem:[%s8144_s12 + $0x38] ss:$12 sps:$4 sm:$0xff]  }
 0x79e   : > { %v2928_v17 = vsel %vm1644_vm5, %v2926_v55, %v5805_v7  ;;  %v2927_v38 = vsel %vm1644_vm5, %v2925_v53, %v5804_v37  ;;  %v5922_v7 = vld [vmem:[%s8144_s12 + $0x60] ss:$12 sps:$4 sm:$0xff]   ;;  %v5925_v37 = vld [vmem:[%s8144_s12 + $0x68] ss:$12 sps:$4 sm:$0xff]  }
 0x79f   : > { %v5808_v48 = vpop.permute.xlu0 %5807  ;;  %v5936_v53 = vld [vmem:[%s8144_s12 + $0xac] ss:$12 sps:$4 sm:$0xff]   ;;  %v5934_v55 = vld [vmem:[%s8144_s12 + $0xa8] ss:$12 sps:$4 sm:$0xff]  }
 0x7a0   : > { %v5810_v0 = vunpack.i.h.bf16 %v5808_v48  ;;  %v5809_v40 = vunpack.i.l.bf16 %v5808_v48  ;;  %v5920_v48 = vld [vmem:[%s8144_s12 + $0x4c] ss:$12 sps:$4 sm:$0xff]  }
 0x7a1   : > { %3283 = vmatprep.subr.bf16.mxu1 %v5920_v48 }
 0x7a2   : > { %v2929_v8 = vsel %vm1650_vm7, %v2927_v38, %v5809_v40  ;;  %v2930_v43 = vsel %vm1650_vm7, %v2928_v17, %v5810_v0  ;;  %v5926_v0 = vld [vmem:[%s8144_s12 + $0x78] ss:$12 sps:$4 sm:$0xff]   ;;  %v5929_v40 = vld [vmem:[%s8144_s12 + $0x80] ss:$12 sps:$4 sm:$0xff]  }
 0x7a3   : > { %v5813_v36 = vpop.permute.xlu1 %5812 }
 0x7a4   : > { %v5815_v34 = vunpack.i.h.bf16 %v5813_v36  ;;  %v5814_v59 = vunpack.i.l.bf16 %v5813_v36  ;;  %v5918_v36 = vld [vmem:[%s8144_s12 + $0x48] ss:$12 sps:$4 sm:$0xff]  }
 0x7a5   : > { %3284 = vmatpush1.bf16.msra.mxu1 %v5918_v36 }
 0x7a6   : > { %v2933_v22 = vsel %vm2931_vm2, %v2930_v43, %v5815_v34  ;;  %v2932_v57 = vsel %vm2931_vm2, %v2929_v8, %v5814_v59  ;;  %3285 = vmatprep.subr.bf16.mxu1 %v5924_v32  ;;  %v5932_v34 = vld [vmem:[%s8144_s12 + $0x94] ss:$12 sps:$4 sm:$0xff]   ;;  %v5930_v59 = vld [vmem:[%s8144_s12 + $0x90] ss:$12 sps:$4 sm:$0xff]  }
 0x7a7   : > { %v5818_v33 = vpop.permute.xlu0 %5817 }
 0x7a8   : > { %v5820_v31 = vunpack.i.h.bf16 %v5818_v33  ;;  %v5819_v15 = vunpack.i.l.bf16 %v5818_v33  ;;  %v5928_v33 = vld [vmem:[%s8144_s12 + $0x7c] ss:$12 sps:$4 sm:$0xff]  }
 0x7a9   : > { %3286 = vmatpush1.bf16.msra.mxu1 %v5922_v7 }
 0x7aa   : > { %v2935_v27 = vsel %vm2934_vm3, %v2932_v57, %v5819_v15  ;;  %v2936_v54 = vsel %vm2934_vm3, %v2933_v22, %v5820_v31  ;;  %3287 = vmatprep.subr.bf16.mxu1 %v5928_v33  ;;  %v5937_v31 = vld [vmem:[%s8144_s12 + $0xb0] ss:$12 sps:$4 sm:$0xff]   ;;  %v5174_v22 = vld [vmem:[%s8142_s10] ss:$0 sm:$0xff] }
 0x7ab   : > { %v5823_v11 = vpop.permute.xlu1 %5822 }
 0x7ac   : > { %v5825_v16 = vunpack.i.h.bf16 %v5823_v11  ;;  %v5824_v5 = vunpack.i.l.bf16 %v5823_v11  ;;  %v5933_v11 = vld [vmem:[%s8144_s12 + $0x98] ss:$12 sps:$4 sm:$0xff]  }
 0x7ad   : > { %3288 = vmatpush1.bf16.msra.mxu1 %v5926_v0 }
 0x7ae   : > { %v2939_v20 = vsel %vm2937_vm4, %v2936_v54, %v5825_v16  ;;  %v2938_v47 = vsel %vm2937_vm4, %v2935_v27, %v5824_v5  ;;  %3289 = vmatprep.subr.bf16.mxu1 %v5932_v34 }
 0x7af   : > { %v5828_v35 = vpop.permute.xlu0 %5827 }
 0x7b0   : > { %v5830_v10 = vunpack.i.h.bf16 %v5828_v35  ;;  %v5829_v26 = vunpack.i.l.bf16 %v5828_v35 }
 0x7b1   : > { %3290 = vmatpush1.bf16.msra.mxu1 %v5930_v59 }
 0x7b2   : > { %v2941_v14 = vsel %vm2940_vm6, %v2938_v47, %v5829_v26  ;;  %v2942_v62 = vsel %vm2940_vm6, %v2939_v20, %v5830_v10  ;;  %3291 = vmatprep.subr.bf16.mxu1 %v5936_v53  ;;  %v5175_v10 = vld [vmem:[%s8143_s11] ss:$0 sm:$0xff] }
 0x7b3   : > { %v2943_v61 = vpack.c.bf16 %v2942_v62, %v2941_v14  ;;  %v3132_v62 = vld [vmem:[%s8145_s13] sm:$0x7] }
 0x7b5   : > { %5524 = vmatmul.mubr.bf16.vlgmr.msra.gmra.mrb[28].mxu0 %v2943_v61  ;;  %3292 = vmatpush1.bf16.msra.mxu1 %v5934_v55  ;;  %v8402_v61 = vld [vmem:[#allocation28_spill] sm:$0xff] }
 0x7b6   : > { %5543 = vmatprep.mubr.msk.bf16.mxu0 %vm6416_vm0, %v8399_v30  ;;  %5528 = vmatpush3.bf16.msra.mxu0 %v5909_v49 }
 0x7b7   : > { %5529 = vmatprep.subr.bf16.mxu0 %v8399_v30  ;;  %5547 = vmatprep.subr.bf16.mxu1 %v8399_v30 }
 0x7ba   : > { %5530 = vmatpush3.bf16.msra.mxu0 %v5913_v13 }
 0x7bb   : > { %5531 = vmatprep.subr.bf16.mxu0 %v8399_v30 }
 0x7be   : > { %5532 = vmatpush3.bf16.msra.mxu0 %v5917_v46 }
 0x7bf   : > { %5533 = vmatprep.subr.bf16.mxu0 %v8399_v30 }
 0x7c2   : > { %5534 = vmatpush3.bf16.msra.mxu0 %v5921_v52 }
 0x7c3   : > { %5535 = vmatprep.subr.bf16.mxu0 %v8399_v30 }
 0x7c6   : > { %5536 = vmatpush3.bf16.msra.mxu0 %v5925_v37 }
 0x7c7   : > { %5537 = vmatprep.subr.bf16.mxu0 %v8399_v30 }
 0x7ca   : > { %5538 = vmatpush3.bf16.msra.mxu0 %v5929_v40 }
 0x7cb   : > { %5539 = vmatprep.subr.bf16.mxu0 %v8399_v30 }
 0x7ce   : > { %5540 = vmatpush3.bf16.msra.mxu0 %v5933_v11 }
 0x7cf   : > { %5541 = vmatprep.subr.bf16.mxu0 %v8399_v30 }
 0x7d2   : > { %5542 = vmatpush3.bf16.msra.mxu0 %v5937_v31 }
 0x7d3   : > { %5571 = vmatprep.subr.bf16.mxu0 %v8399_v30 }
 0x888   : > { %v3049_v12 = vpop.f32.mrb[28].mxu0 }
 0x889   : > { %v3050_v28 = vadd.f32 %v5165_v2, %v3049_v12  ;;  %v5525_v50 = vpop.f32.mrb[29].mxu0  ;;  %v8403_v12 = vld [vmem:[#allocation31_spill] sm:$0xff] }
 0x88a   : > { %v3052_v29 = vpop.f32.mrb[30].mxu0 }
 0x88b   : > { %v3056_v19 = vadd.f32 %v6126_v21, %v3050_v28  ;;  %v3053_v41 = vadd.f32 %v5165_v2, %v3052_v29  ;;  %v5526_v58 = vpop.f32.mrb[31].mxu0  ;;  %v3137_v2 = vrot.slane %v3132_v62, %v8402_v61  ;;  %v3145_v28 = vrot.slane %v3132_v62, %v8403_v12  ;;  %v8404_v21 = vld [vmem:[#allocation29_spill] sm:$0xff] }
 0x88d   : > { %3060 = vadd.xlane.f32.xlu1 %v3056_v19  ;;  %v3057_v6 = vadd.f32 %v6127_v25, %v3053_v41 }
 0x88f   : > { %3062 = vadd.xlane.f32.xlu0 %v3057_v6 }
 0x91a   : > { %v3061_v60 = vpop.xlane.xlu1 %3060 }
 0x91b   : > { %v3065_v45 = vmul.f32 0.0078125, %v3061_v60 }
 0x91c   : > { %v3063_v9 = vpop.xlane.xlu0 %3062 }
 0x91d   : > { %v3067_v18 = vsub.f32 %v3056_v19, %v3065_v45  ;;  %v3066_v1 = vmul.f32 0.0078125, %v3063_v9  ;;  %v3141_v19 = vrot.slane %v3132_v62, %v8404_v21 }
 0x91f   : > { %v3068_v3 = vsub.f32 %v3057_v6, %v3066_v1  ;;  %v3069_v44 = vmul.f32 %v3067_v18, %v3067_v18 }
 0x921   : > { %3071 = vadd.xlane.f32.xlu0 %v3069_v44  ;;  %v3070_v4 = vmul.f32 %v3068_v3, %v3068_v3 }
 0x923   : > { %3073 = vadd.xlane.f32.xlu1 %v3070_v4 }
 0x9ae   : > { %v3072_v15 = vpop.xlane.xlu0 %3071 }
 0x9af   : > { %v3075_v17 = vmul.f32 0.0078125, %v3072_v15 }
 0x9b0   : > { %v3074_v38 = vpop.xlane.xlu1 %3073 }
 0x9b1   : > { %v3077_v16 = vadd.f32 1e-05, %v3075_v17  ;;  %v3076_v5 = vmul.f32 0.0078125, %v3074_v38 }
 0x9b3   : > { %6050 = vrsqrt.f32 %v3077_v16  ;;  %v3078_v8 = vadd.f32 1e-05, %v3076_v5 }
 0x9b5   : > { %6052 = vrsqrt.f32 %v3078_v8 }
 0x9bd   : > { %v6051_v43 = vpop.eup %6050 }
 0x9be   : > { %v3081_v57 = vmul.f32 %v6051_v43, %v3067_v18 }
 0x9bf   : > { %v6053_v35 = vpop.eup %6052 }
 0x9c0   : > { %v3082_v27 = vmul.f32 %v6053_v35, %v3068_v3  ;;  %v3089_v54 = vmul.f32 %v5174_v22, %v3081_v57 }
 0x9c2   : > { %v3090_v26 = vmul.f32 %v5174_v22, %v3082_v27  ;;  %v7778_v20 = vadd.f32 %v5175_v10, %v3089_v54 }
 0x9c4   : > { %v7780_v47 = vadd.f32 %v5175_v10, %v3090_v26 }
 0x9c6   : > { %v3099_v14 = vpack.c.bf16 %v7780_v47, %v7778_v20 }
 0x9c8   : > { %3310 = vmatmul.mubr.bf16.vlgmr.msra.gmra.mrb[44].mxu1 %v3099_v14  ;;  %5544 = vmatmul.mubr.bf16.vlgmr.msra.gmra.mrb[32].mxu0 %v3099_v14 }
 0x9c9   : > { %5549 = vmatprep.mubr.msk.bf16.mxu1 %vm6416_vm0, %v8399_v30  ;;  %5573 = vmatprep.mubr.msk.bf16.mxu0 %vm6416_vm0, %v8399_v30 }
 0xa9b   : > { %v3311_v50 = vpop.f32.mrb[44].mxu1  ;;  %v3354_v29 = vpop.f32.mrb[32].mxu0 }
 0xa9c   : > { %v3313_v41 = vpop.f32.mrb[45].mxu1  ;;  %v5545_v58 = vpop.f32.mrb[33].mxu0  ;;  %v3312_v24 = vadd.f32 %v3311_v50, %v3137_v2  ;;  %v3355_v23 = vadd.f32 %v3354_v29, %v3145_v28 }
 0xa9d   : > { %v3315_v25 = vpop.f32.mrb[46].mxu1  ;;  %v3357_v6 = vpop.f32.mrb[34].mxu0  ;;  %v3314_v60 = vadd.f32 %v3313_v41, %v3141_v19 }
 0xa9e   : > { %v3316_v49 = vadd.f32 %v3315_v25, %v3137_v2  ;;  %v3358_v39 = vadd.f32 %v3357_v6, %v3145_v28  ;;  %v3317_v13 = vpop.f32.mrb[47].mxu1  ;;  %v5546_v56 = vpop.f32.mrb[35].mxu0 }
 0xa9f   : > { %v3318_v45 = vadd.f32 %v3317_v13, %v3141_v19 }
 0xaa0   : > { %v3361_v9 = vpack.c.bf16 %v3316_v49, %v3312_v24  ;;  %v7794_v18 = vpack.c.bf16 %v3358_v39, %v3355_v23 }
 0xaa1   : > { %v3362_v1 = vpack.c.bf16 %v3318_v45, %v3314_v60 }
 0xaa3   : > { %v3368_v3 = vsel %vm1173_vm1, %v3362_v1, 0 }
 0xaa4   : > { %5548 = vmatpush3.bf16.xpose.msra.mxu1 %v3368_v3 }
 0xaa5   : > { %5553 = vmatprep.subr.bf16.mxu1 %v8399_v30 }
 0xaab   : > { %5550 = vmatmul.mubr.msk.bf16.vlgmr.msra.gmra.mrb[48].mxu1 %vm1173_vm1, %v3361_v9 }
 0xaac   : > { %5554 = vmatpush3.bf16.msra.mxu1 %v7794_v18  ;;  %5555 = vmatprep.mubr.msk.bf16.mxu1 %vm6416_vm0, %v8399_v30 }
 0xaad   : > { %5559 = vmatprep.subr.bf16.mxu1 %v8399_v30 }
 0xb7e   : > { %v3404_v44 = vpop.f32.mrb[48].mxu1 }
 0xb7f   : > { %v5551_v4 = vpop.f32.mrb[49].mxu1  ;;  %v3411_v63 = vsel %vm1173_vm1, %v3404_v44, -inf }
 0xb80   : > { %3412 = vmax.xlane.f32.xlu0 %v3411_v63  ;;  %v3407_v42 = vpop.f32.mrb[50].mxu1 }
 0xb81   : > { %v5552_v46 = vpop.f32.mrb[51].mxu1  ;;  %v3414_v48 = vsel %vm1173_vm1, %v3407_v42, -inf }
 0xb82   : > { %3415 = vmax.xlane.f32.xlu1 %v3414_v48 }
 0xc0d   : > { %v3413_v36 = vpop.xlane.xlu0 %3412 }
 0xc0e   : > { %v3417_v52 = vsub.f32 %v3404_v44, %v3413_v36 }
 0xc0f   : > { %v3416_v32 = vpop.xlane.xlu1 %3415 }
 0xc10   : > { %v3419_v7 = vmul.f32 1.442695, %v3417_v52  ;;  %v3418_v37 = vsub.f32 %v3407_v42, %v3416_v32 }
 0xc12   : > { %6054 = vpow2.f32 %v3419_v7  ;;  %v3421_v33 = vmul.f32 1.442695, %v3418_v37 }
 0xc14   : > { %6056 = vpow2.f32 %v3421_v33 }
 0xc1c   : > { %v6055_v0 = vpop.eup %6054 }
 0xc1d   : > { %v3423_v40 = vsel %vm1173_vm1, %v6055_v0, 0.0 }
 0xc1e   : > { %v6057_v34 = vpop.eup %6056  ;;  %3424 = vadd.xlane.f32.xlu0 %v3423_v40 }
 0xc1f   : > { %v3426_v59 = vsel %vm1173_vm1, %v6057_v34, 0.0 }
 0xc20   : > { %3427 = vadd.xlane.f32.xlu1 %v3426_v59 }
 0xc31   : > { %3479 = vrot.lane.b32.xlu1 %v3361_v9, %s6419_s2 }
 0xc34   : > { %3482 = vrot.lane.b32.xlu0 %v3362_v1, %s6419_s2 }
 0xc35   : > { %3604 = vrot.lane.b32.xlu1 %v3362_v1, %s6418_s26 }
 0xc38   : > { %3602 = vrot.lane.b32.xlu0 %v3361_v9, %s6418_s26 }
 0xc39   : > { %3725 = vrot.lane.b32.xlu1 %v3362_v1, %s6421_s3 }
 0xc3c   : > { %3723 = vrot.lane.b32.xlu0 %v3361_v9, %s6421_s3 }
 0xc3d   : > { %3846 = vrot.lane.b32.xlu1 %v3362_v1, %s6420_s30 }
 0xc40   : > { %3844 = vrot.lane.b32.xlu0 %v3361_v9, %s6420_s30 }
 0xc41   : > { %3967 = vrot.lane.b32.xlu1 %v3362_v1, %s6422_s1 }
 0xc44   : > { %3965 = vrot.lane.b32.xlu0 %v3361_v9, %s6422_s1 }
 0xc45   : > { %4088 = vrot.lane.b32.xlu1 %v3362_v1, %s6423_s5 }
 0xc48   : > { %4086 = vrot.lane.b32.xlu0 %v3361_v9, %s6423_s5 }
 0xc49   : > { %4209 = vrot.lane.b32.xlu1 %v3362_v1, %s6424_s21 }
 0xc4c   : > { %4207 = vrot.lane.b32.xlu0 %v3361_v9, %s6424_s21 }
 0xcab   : > { %v3425_v11 = vpop.xlane.xlu0 %3424 }
 0xcac   : > { %6058 = vrcp.f32 %v3425_v11 }
 0xcad   : > { %v3428_v53 = vpop.xlane.xlu1 %3427 }
 0xcae   : > { %6060 = vrcp.f32 %v3428_v53 }
 0xcaf   : > { %v3483_v38 = vpop.permute.xlu0 %3482 }
 0xcb0   : > { %v3488_v57 = vsel %vm1173_vm1, %v3483_v38, 0 }
 0xcb1   : > { %v3480_v55 = vpop.permute.xlu1 %3479 }
 0xcb3   : > { %v3603_v35 = vpop.permute.xlu0 %3602 }
 0xcb5   : > { %v3605_v31 = vpop.permute.xlu1 %3604 }
 0xcb6   : > { %v6059_v15 = vpop.eup %6058  ;;  %v3610_v17 = vsel %vm1173_vm1, %v3605_v31, 0 }
 0xcb7   : > { %5572 = vmatpush3.bf16.xpose.msra.mxu0 %v3610_v17  ;;  %v3431_v5 = vmul.f32 %v6059_v15, %v6055_v0  ;;  %v3724_v10 = vpop.permute.xlu0 %3723 }
 0xcb8   : > { %v6061_v16 = vpop.eup %6060  ;;  %5583 = vmatprep.subr.bf16.mxu0 %v8399_v30 }
 0xcb9   : > { %v3432_v8 = vmul.f32 %v6061_v16, %v6057_v34  ;;  %v3726_v43 = vpop.permute.xlu1 %3725 }
 0xcba   : > { %v3731_v27 = vsel %vm1173_vm1, %v3726_v43, 0 }
 0xcbb   : > { %v3433_v22 = vpack.c.bf16 %v3432_v8, %v3431_v5  ;;  %v3845_v62 = vpop.permute.xlu0 %3844 }
 0xcbd   : > { %5556 = vmatmul.mubr.msk.bf16.vlgmr.msra.gmra.mrb[52].mxu1 %vm1173_vm1, %v3433_v22  ;;  %v3847_v54 = vpop.permute.xlu1 %3846 }
 0xcbe   : > { %5560 = vmatpush3.bf16.xpose.msra.mxu1 %v3488_v57  ;;  %5574 = vmatmul.mubr.msk.bf16.vlgmr.msra.gmra.mrb[36].mxu0 %vm1173_vm1, %v3603_v35  ;;  %v3852_v26 = vsel %vm1173_vm1, %v3847_v54, 0 }
 0xcbf   : > { %5584 = vmatpush3.bf16.xpose.msra.mxu0 %v3731_v27  ;;  %5561 = vmatprep.mubr.msk.bf16.mxu1 %vm6416_vm0, %v8399_v30  ;;  %v3966_v28 = vpop.permute.xlu0 %3965 }
 0xcc0   : > { %5585 = vmatprep.mubr.msk.bf16.mxu0 %vm6416_vm0, %v8399_v30  ;;  %5595 = vmatprep.subr.bf16.mxu0 %v8399_v30 }
 0xcc1   : > { %5565 = vmatprep.subr.bf16.mxu1 %v8399_v30  ;;  %v3968_v14 = vpop.permute.xlu1 %3967 }
 0xcc2   : > { %v3973_v2 = vsel %vm1173_vm1, %v3968_v14, 0 }
 0xcc3   : > { %v4087_v19 = vpop.permute.xlu0 %4086 }
 0xcc5   : > { %5562 = vmatmul.mubr.msk.bf16.vlgmr.msra.gmra.mrb[56].mxu1 %vm1173_vm1, %v3480_v55  ;;  %v4089_v12 = vpop.permute.xlu1 %4088 }
 0xcc6   : > { %5586 = vmatmul.mubr.msk.bf16.vlgmr.msra.gmra.mrb[40].mxu0 %vm1173_vm1, %v3724_v10  ;;  %5567 = vmatprep.mubr.msk.bf16.mxu1 %vm6416_vm0, %v8399_v30  ;;  %v4094_v50 = vsel %vm1173_vm1, %v4089_v12, 0 }
 0xcc7   : > { %5596 = vmatpush3.bf16.xpose.msra.mxu0 %v3852_v26  ;;  %5597 = vmatprep.mubr.msk.bf16.mxu0 %vm6416_vm0, %v8399_v30  ;;  %v4208_v58 = vpop.permute.xlu0 %4207 }
 0xcc8   : > { %5607 = vmatprep.subr.bf16.mxu0 %v8399_v30 }
 0xcc9   : > { %v4210_v29 = vpop.permute.xlu1 %4209 }
 0xcca   : > { %v4215_v41 = vsel %vm1173_vm1, %v4210_v29, 0 }
 0xcce   : > { %5598 = vmatmul.mubr.msk.bf16.vlgmr.msra.gmra.mrb[44].mxu0 %vm1173_vm1, %v3845_v62 }
 0xccf   : > { %5608 = vmatpush3.bf16.xpose.msra.mxu0 %v3973_v2  ;;  %5609 = vmatprep.mubr.msk.bf16.mxu0 %vm6416_vm0, %v8399_v30 }
 0xcd0   : > { %5619 = vmatprep.subr.bf16.mxu0 %v8399_v30 }
 0xcd6   : > { %5610 = vmatmul.mubr.msk.bf16.vlgmr.msra.gmra.mrb[48].mxu0 %vm1173_vm1, %v3966_v28 }
 0xcd7   : > { %5620 = vmatpush3.bf16.xpose.msra.mxu0 %v4094_v50  ;;  %5621 = vmatprep.mubr.msk.bf16.mxu0 %vm6416_vm0, %v8399_v30 }
 0xcd8   : > { %5631 = vmatprep.subr.bf16.mxu0 %v8399_v30 }
 0xcde   : > { %5622 = vmatmul.mubr.msk.bf16.vlgmr.msra.gmra.mrb[52].mxu0 %vm1173_vm1, %v4087_v19 }
 0xcdf   : > { %5632 = vmatpush3.bf16.xpose.msra.mxu0 %v4215_v41  ;;  %5633 = vmatprep.mubr.msk.bf16.mxu0 %vm6416_vm0, %v8399_v30 }
 0xce0   : > { %5643 = vmatprep.subr.bf16.mxu0 %v8399_v30 }
 0xce6   : > { %5634 = vmatmul.mubr.msk.bf16.vlgmr.msra.gmra.mrb[56].mxu0 %vm1173_vm1, %v4208_v58 }
 0xce7   : > { %5659 = vmatprep.mubr.msk.bf16.mxu0 %vm6416_vm0, %v8399_v30 }
 0xd90   : > { %v7859_v25 = vpop.f32.mrb[52].mxu1 }
 0xd91   : > { %v5557_v6 = vpop.f32.mrb[53].mxu1  ;;  %v7861_v24 = vpop.f32.mrb[36].mxu0 }
 0xd92   : > { %v7863_v23 = vpop.f32.mrb[54].mxu1  ;;  %v5575_v49 = vpop.f32.mrb[37].mxu0  ;;  %v3653_v36 = vsel %vm1173_vm1, %v7861_v24, -inf }
 0xd93   : > { %v5558_v39 = vpop.f32.mrb[55].mxu1  ;;  %v3649_v13 = vpop.f32.mrb[38].mxu0 }
 0xd94   : > { %v5576_v56 = vpop.f32.mrb[39].mxu0  ;;  %v3656_v48 = vsel %vm1173_vm1, %v3649_v13, -inf }
 0xd98   : > { %v7865_v60 = vpop.f32.mrb[56].mxu1 }
 0xd99   : > { %v5563_v45 = vpop.f32.mrb[57].mxu1  ;;  %v7867_v9 = vpop.f32.mrb[40].mxu0  ;;  %v3531_v1 = vsel %vm1173_vm1, %v7865_v60, -inf }
 0xd9a   : > { %3532 = vmax.xlane.f32.xlu1 %v3531_v1  ;;  %v7871_v3 = vpop.f32.mrb[58].mxu1  ;;  %v5587_v44 = vpop.f32.mrb[41].mxu0  ;;  %v3774_v33 = vsel %vm1173_vm1, %v7867_v9, -inf }
 0xd9b   : > { %v5564_v4 = vpop.f32.mrb[59].mxu1  ;;  %v3770_v63 = vpop.f32.mrb[42].mxu0  ;;  %v3534_v42 = vsel %vm1173_vm1, %v7871_v3, -inf }
 0xd9c   : > { %3535 = vmax.xlane.f32.xlu0 %v3534_v42  ;;  %v5588_v46 = vpop.f32.mrb[43].mxu0  ;;  %v3777_v32 = vsel %vm1173_vm1, %v3770_v63, -inf }
 0xd9e   : > { %3657 = vmax.xlane.f32.xlu1 %v3656_v48 }
 0xda0   : > { %3654 = vmax.xlane.f32.xlu0 %v3653_v36 }
 0xda1   : > { %v3888_v52 = vpop.f32.mrb[44].mxu0 }
 0xda2   : > { %3778 = vmax.xlane.f32.xlu1 %v3777_v32  ;;  %v5599_v7 = vpop.f32.mrb[45].mxu0  ;;  %v3895_v34 = vsel %vm1173_vm1, %v3888_v52, -inf }
 0xda3   : > { %v3891_v37 = vpop.f32.mrb[46].mxu0 }
 0xda4   : > { %3775 = vmax.xlane.f32.xlu0 %v3774_v33  ;;  %v5600_v0 = vpop.f32.mrb[47].mxu0  ;;  %v3898_v40 = vsel %vm1173_vm1, %v3891_v37, -inf }
 0xda6   : > { %3899 = vmax.xlane.f32.xlu1 %v3898_v40 }
 0xda8   : > { %3896 = vmax.xlane.f32.xlu0 %v3895_v34 }
 0xda9   : > { %v4009_v59 = vpop.f32.mrb[48].mxu0 }
 0xdaa   : > { %v5611_v11 = vpop.f32.mrb[49].mxu0  ;;  %v4016_v53 = vsel %vm1173_vm1, %v4009_v59, -inf }
 0xdab   : > { %v4012_v55 = vpop.f32.mrb[50].mxu0 }
 0xdac   : > { %4017 = vmax.xlane.f32.xlu0 %v4016_v53  ;;  %v5612_v31 = vpop.f32.mrb[51].mxu0  ;;  %v4019_v15 = vsel %vm1173_vm1, %v4012_v55, -inf }
 0xdad   : > { %4020 = vmax.xlane.f32.xlu1 %v4019_v15 }
 0xdb1   : > { %v7885_v17 = vpop.f32.mrb[52].mxu0 }
 0xdb2   : > { %v5623_v38 = vpop.f32.mrb[53].mxu0  ;;  %v4137_v16 = vsel %vm1173_vm1, %v7885_v17, -inf }
 0xdb3   : > { %4138 = vmax.xlane.f32.xlu0 %v4137_v16  ;;  %v7889_v5 = vpop.f32.mrb[54].mxu0 }
 0xdb4   : > { %v5624_v8 = vpop.f32.mrb[55].mxu0  ;;  %v4140_v43 = vsel %vm1173_vm1, %v7889_v5, -inf }
 0xdb5   : > { %4141 = vmax.xlane.f32.xlu1 %v4140_v43 }
 0xdb9   : > { %v7893_v22 = vpop.f32.mrb[56].mxu0 }
 0xdba   : > { %v5635_v57 = vpop.f32.mrb[57].mxu0  ;;  %v4258_v35 = vsel %vm1173_vm1, %v7893_v22, -inf }
 0xdbb   : > { %4259 = vmax.xlane.f32.xlu0 %v4258_v35  ;;  %v7897_v27 = vpop.f32.mrb[58].mxu0 }
 0xdbc   : > { %v5636_v54 = vpop.f32.mrb[59].mxu0  ;;  %v4261_v10 = vsel %vm1173_vm1, %v7897_v27, -inf }
 0xdbd   : > { %4262 = vmax.xlane.f32.xlu1 %v4261_v10 }
 0xe27   : > { %v3533_v26 = vpop.xlane.xlu1 %3532 }
 0xe28   : > { %v3537_v56 = vsub.f32 %v7865_v60, %v3533_v26 }
 0xe29   : > { %v3536_v14 = vpop.xlane.xlu0 %3535 }
 0xe2a   : > { %v3538_v7 = vsub.f32 %v7871_v3, %v3536_v14 }
 0xe2b   : > { %v3658_v62 = vpop.xlane.xlu1 %3657 }
 0xe2c   : > { %v3660_v2 = vsub.f32 %v3649_v13, %v3658_v62 }
 0xe2d   : > { %v3655_v12 = vpop.xlane.xlu0 %3654 }
 0xe2e   : > { %v3663_v28 = vmul.f32 1.442695, %v3660_v2  ;;  %v3659_v50 = vsub.f32 %v7861_v24, %v3655_v12  ;;  %v3539_v24 = vmul.f32 1.442695, %v3537_v56 }
 0xe2f   : > { %v3779_v29 = vpop.xlane.xlu1 %3778 }
 0xe30   : > { %6062 = vpow2.f32 %v3663_v28  ;;  %v3661_v19 = vmul.f32 1.442695, %v3659_v50  ;;  %v3781_v41 = vsub.f32 %v3770_v63, %v3779_v29 }
 0xe31   : > { %v3776_v58 = vpop.xlane.xlu0 %3775 }
 0xe32   : > { %6064 = vpow2.f32 %v3661_v19  ;;  %v3784_v6 = vmul.f32 1.442695, %v3781_v41  ;;  %v3780_v49 = vsub.f32 %v7867_v9, %v3776_v58 }
 0xe33   : > { %v3900_v39 = vpop.xlane.xlu1 %3899 }
 0xe34   : > { %6066 = vpow2.f32 %v3784_v6  ;;  %v3782_v45 = vmul.f32 1.442695, %v3780_v49  ;;  %v3902_v1 = vsub.f32 %v3891_v37, %v3900_v39 }
 0xe35   : > { %v3897_v13 = vpop.xlane.xlu0 %3896 }
 0xe36   : > { %6068 = vpow2.f32 %v3782_v45  ;;  %v3905_v44 = vmul.f32 1.442695, %v3902_v1  ;;  %v3901_v4 = vsub.f32 %v3888_v52, %v3897_v13 }
 0xe38   : > { %6070 = vpow2.f32 %v3905_v44  ;;  %v3903_v42 = vmul.f32 1.442695, %v3901_v4 }
 0xe39   : > { %v4018_v46 = vpop.xlane.xlu0 %4017 }
 0xe3a   : > { %v7904_v63 = vpop.eup %6062  ;;  %6072 = vpow2.f32 %v3903_v42  ;;  %v4022_v48 = vsub.f32 %v4009_v59, %v4018_v46  ;;  %v4021_v36 = vpop.xlane.xlu1 %4020  ;;  %v3541_v59 = vmul.f32 1.442695, %v3538_v7 }
 0xe3b   : > { %v4023_v9 = vsub.f32 %v4012_v55, %v4021_v36  ;;  %v3668_v60 = vsel %vm1173_vm1, %v7904_v63, 0.0  ;;  %6074 = vpow2.f32 %v3539_v24 }
 0xe3c   : > { %v7908_v32 = vpop.eup %6064  ;;  %v4024_v37 = vmul.f32 1.442695, %v4022_v48  ;;  %3669 = vadd.xlane.f32.xlu1 %v3668_v60 }
 0xe3d   : > { %v4026_v52 = vmul.f32 1.442695, %v4023_v9  ;;  %v3665_v33 = vsel %vm1173_vm1, %v7908_v32, 0.0 }
 0xe3e   : > { %v7913_v0 = vpop.eup %6066  ;;  %6076 = vpow2.f32 %v4024_v37  ;;  %3666 = vadd.xlane.f32.xlu0 %v3665_v33 }
 0xe3f   : > { %v3789_v40 = vsel %vm1173_vm1, %v7913_v0, 0.0  ;;  %6078 = vpow2.f32 %v4026_v52 }
 0xe40   : > { %v7917_v34 = vpop.eup %6068  ;;  %3790 = vadd.xlane.f32.xlu1 %v3789_v40  ;;  %6080 = vpow2.f32 %v3541_v59  ;;  %v4139_v10 = vpop.xlane.xlu0 %4138 }
 0xe41   : > { %v3786_v3 = vsel %vm1173_vm1, %v7917_v34, 0.0  ;;  %v4143_v26 = vsub.f32 %v7885_v17, %v4139_v10 }
 0xe42   : > { %v7921_v11 = vpop.eup %6070  ;;  %3787 = vadd.xlane.f32.xlu0 %v3786_v3  ;;  %v4142_v62 = vpop.xlane.xlu1 %4141 }
 0xe43   : > { %v3910_v53 = vsel %vm1173_vm1, %v7921_v11, 0.0  ;;  %v4145_v14 = vmul.f32 1.442695, %v4143_v26  ;;  %v4144_v2 = vsub.f32 %v7889_v5, %v4142_v62 }
 0xe44   : > { %v7925_v55 = vpop.eup %6072  ;;  %3911 = vadd.xlane.f32.xlu1 %v3910_v53 }
 0xe45   : > { %v3907_v31 = vsel %vm1173_vm1, %v7925_v55, 0.0  ;;  %v7929_v15 = vpop.eup %6074  ;;  %6082 = vpow2.f32 %v4145_v14  ;;  %v4147_v28 = vmul.f32 1.442695, %v4144_v2 }
 0xe46   : > { %3908 = vadd.xlane.f32.xlu0 %v3907_v31  ;;  %v3543_v16 = vsel %vm1173_vm1, %v7929_v15, 0.0 }
 0xe47   : > { %6084 = vpow2.f32 %v4147_v28 }
 0xe48   : > { %v7931_v38 = vpop.eup %6076  ;;  %v4260_v12 = vpop.xlane.xlu0 %4259 }
 0xe49   : > { %v4028_v8 = vsel %vm1173_vm1, %v7931_v38, 0.0  ;;  %v7937_v43 = vpop.eup %6078  ;;  %v4264_v50 = vsub.f32 %v7893_v22, %v4260_v12 }
 0xe4a   : > { %3544 = vadd.xlane.f32.xlu0 %v3543_v16  ;;  %4029 = vadd.xlane.f32.xlu1 %v4028_v8  ;;  %v4031_v57 = vsel %vm1173_vm1, %v7937_v43, 0.0  ;;  %v7941_v35 = vpop.eup %6080  ;;  %v4263_v29 = vpop.xlane.xlu1 %4262 }
 0xe4b   : > { %v3546_v54 = vsel %vm1173_vm1, %v7941_v35, 0.0  ;;  %v4266_v19 = vmul.f32 1.442695, %v4264_v50  ;;  %v4265_v41 = vsub.f32 %v7897_v27, %v4263_v29 }
 0xe4d   : > { %6086 = vpow2.f32 %v4266_v19  ;;  %v4268_v6 = vmul.f32 1.442695, %v4265_v41 }
 0xe4e   : > { %4032 = vadd.xlane.f32.xlu1 %v4031_v57 }
 0xe4f   : > { %v7953_v58 = vpop.eup %6082  ;;  %6088 = vpow2.f32 %v4268_v6 }
 0xe50   : > { %v4149_v17 = vsel %vm1173_vm1, %v7953_v58, 0.0 }
 0xe51   : > { %v7957_v49 = vpop.eup %6084 }
 0xe52   : > { %3547 = vadd.xlane.f32.xlu1 %v3546_v54  ;;  %v4152_v5 = vsel %vm1173_vm1, %v7957_v49, 0.0 }
 0xe57   : > { %v7961_v22 = vpop.eup %6086 }
 0xe58   : > { %v4270_v27 = vsel %vm1173_vm1, %v7961_v22, 0.0 }
 0xe59   : > { %v7965_v39 = vpop.eup %6088 }
 0xe5a   : > { %v4273_v56 = vsel %vm1173_vm1, %v7965_v39, 0.0 }
 0xe60   : > { %3555 = vrot.lane.b32.xlu0 %v7794_v18, %s6419_s2 }
 0xe63   : > { %3676 = vrot.lane.b32.xlu1 %v7794_v18, %s6418_s26 }
 0xe7f   : > { %4150 = vadd.xlane.f32.xlu0 %v4149_v17 }
 0xe87   : > { %4153 = vadd.xlane.f32.xlu1 %v4152_v5 }
 0xe8b   : > { %4271 = vadd.xlane.f32.xlu1 %v4270_v27 }
 0xe8f   : > { %4274 = vadd.xlane.f32.xlu1 %v4273_v56 }
 0xe95   : > { %3797 = vrot.lane.b32.xlu0 %v7794_v18, %s6421_s3 }
 0xe99   : > { %4039 = vrot.lane.b32.xlu0 %v7794_v18, %s6422_s1 }
 0xe9d   : > { %4160 = vrot.lane.b32.xlu0 %v7794_v18, %s6423_s5 }
 0xea0   : > { %3918 = vrot.lane.b32.xlu1 %v7794_v18, %s6420_s30 }
 0xea1   : > { %4281 = vrot.lane.b32.xlu0 %v7794_v18, %s6424_s21 }
 0xec9   : > { %v3670_v45 = vpop.xlane.xlu1 %3669 }
 0xecb   : > { %v3667_v1 = vpop.xlane.xlu0 %3666 }
 0xecd   : > { %v3791_v13 = vpop.xlane.xlu1 %3790 }
 0xecf   : > { %v3788_v44 = vpop.xlane.xlu0 %3787 }
 0xed1   : > { %v3912_v4 = vpop.xlane.xlu1 %3911 }
 0xed2   : > { %6090 = vrcp.f32 %v3912_v4 }
 0xed3   : > { %v3909_v24 = vpop.xlane.xlu0 %3908 }
 0xed4   : > { %6092 = vrcp.f32 %v3909_v24 }
 0xed7   : > { %v3545_v42 = vpop.xlane.xlu0 %3544  ;;  %v4030_v46 = vpop.xlane.xlu1 %4029 }
 0xed8   : > { %6094 = vrcp.f32 %v4030_v46 }
 0xedb   : > { %v3556_v48 = vpop.permute.xlu0 %3555  ;;  %v4033_v36 = vpop.xlane.xlu1 %4032 }
 0xedc   : > { %v6091_v9 = vpop.eup %6090  ;;  %6096 = vrcp.f32 %v4033_v36  ;;  %5566 = vmatpush3.bf16.msra.mxu1 %v3556_v48 }
 0xedd   : > { %5577 = vmatprep.subr.bf16.mxu1 %v8399_v30  ;;  %6098 = vrcp.f32 %v3545_v42  ;;  %v3916_v18 = vmul.f32 %v6091_v9, %v7921_v11 }
 0xede   : > { %v6093_v60 = vpop.eup %6092 }
 0xedf   : > { %v3915_v7 = vmul.f32 %v6093_v60, %v7925_v55  ;;  %v3548_v37 = vpop.xlane.xlu1 %3547 }
 0xee0   : > { %6100 = vrcp.f32 %v3548_v37 }
 0xee1   : > { %v3917_v52 = vpack.c.bf16 %v3916_v18, %v3915_v7  ;;  %6102 = vrcp.f32 %v3667_v1 }
 0xee2   : > { %v6095_v33 = vpop.eup %6094  ;;  %6104 = vrcp.f32 %v3670_v45 }
 0xee3   : > { %v4036_v59 = vmul.f32 %v6095_v33, %v7931_v38  ;;  %v3677_v54 = vpop.permute.xlu1 %3676  ;;  %6106 = vrcp.f32 %v3788_v44  ;;  %v5940_v33 = vld [vmem:[#allocation8 + $0x10] sm:$0xff]  }
 0xee4   : > { %6108 = vrcp.f32 %v3791_v13 }
 0xee6   : > { %v6097_v40 = vpop.eup %6096 }
 0xee7   : > { %v4037_v3 = vmul.f32 %v6097_v40, %v7937_v43  ;;  %v6099_v53 = vpop.eup %6098 }
 0xee8   : > { %v3551_v8 = vmul.f32 %v6099_v53, %v7929_v15  ;;  %v5941_v53 = vld [vmem:[#allocation8 + $0x18] sm:$0xff]  }
 0xee9   : > { %v4038_v31 = vpack.c.bf16 %v4037_v3, %v4036_v59 }
 0xeea   : > { %v6101_v16 = vpop.eup %6100 }
 0xeeb   : > { %v3552_v11 = vmul.f32 %v6101_v16, %v7941_v35  ;;  %v6103_v55 = vpop.eup %6102 }
 0xeec   : > { %v6105_v10 = vpop.eup %6104  ;;  %v3673_v38 = vmul.f32 %v6103_v55, %v7908_v32 }
 0xeed   : > { %v3553_v57 = vpack.c.bf16 %v3552_v11, %v3551_v8  ;;  %v3674_v43 = vmul.f32 %v6105_v10, %v7904_v63  ;;  %v6107_v15 = vpop.eup %6106  ;;  %v5942_v8 = vld [vmem:[#allocation8 + $0x20] sm:$0xff]  }
 0xeee   : > { %v6109_v14 = vpop.eup %6108  ;;  %v3794_v62 = vmul.f32 %v6107_v15, %v7917_v34 }
 0xeef   : > { %5568 = vmatmul.mubr.msk.bf16.vlgmr.msra.gmra.mrb[60].mxu1 %vm1173_vm1, %v3553_v57  ;;  %v3675_v26 = vpack.c.bf16 %v3674_v43, %v3673_v38  ;;  %v3795_v2 = vmul.f32 %v6109_v14, %v7913_v0  ;;  %v5944_v43 = vld [vmem:[#allocation8 + $0x30] sm:$0xff]  }
 0xef0   : > { %5578 = vmatpush3.bf16.msra.mxu1 %v3677_v54  ;;  %5579 = vmatprep.mubr.msk.bf16.mxu1 %vm6416_vm0, %v8399_v30  ;;  %v5943_v54 = vld [vmem:[#allocation8 + $0x28] sm:$0xff]  }
 0xef1   : > { %5589 = vmatprep.subr.bf16.mxu1 %v8399_v30  ;;  %v3796_v12 = vpack.c.bf16 %v3795_v2, %v3794_v62  ;;  %v5945_v2 = vld [vmem:[#allocation8 + $0x38] sm:$0xff]  }
 0xef7   : > { %5580 = vmatmul.mubr.msk.bf16.vlgmr.msra.gmra.mrb[64].mxu1 %vm1173_vm1, %v3675_v26 }
 0xef8   : > { %5591 = vmatprep.mubr.msk.bf16.mxu1 %vm6416_vm0, %v8399_v30 }
 0xf0c   : > { %v4151_v35 = vpop.xlane.xlu0 %4150 }
 0xf10   : > { %v3798_v32 = vpop.permute.xlu0 %3797 }
 0xf11   : > { %5590 = vmatpush3.bf16.msra.mxu1 %v3798_v32 }
 0xf12   : > { %5601 = vmatprep.subr.bf16.mxu1 %v8399_v30 }
 0xf14   : > { %5592 = vmatmul.mubr.msk.bf16.vlgmr.msra.gmra.mrb[68].mxu1 %vm1173_vm1, %v3796_v12  ;;  %v4154_v63 = vpop.xlane.xlu1 %4153  ;;  %v4040_v0 = vpop.permute.xlu0 %4039 }
 0xf15   : > { %5603 = vmatprep.mubr.msk.bf16.mxu1 %vm6416_vm0, %v8399_v30  ;;  %6110 = vrcp.f32 %v4154_v63 }
 0xf16   : > { %6112 = vrcp.f32 %v4151_v35 }
 0xf18   : > { %v4272_v28 = vpop.xlane.xlu1 %4271  ;;  %v4161_v19 = vpop.permute.xlu0 %4160 }
 0xf1c   : > { %v4275_v50 = vpop.xlane.xlu1 %4274  ;;  %v4282_v56 = vpop.permute.xlu0 %4281 }
 0xf1d   : > { %6114 = vrcp.f32 %v4275_v50 }
 0xf1e   : > { %6116 = vrcp.f32 %v4272_v28 }
 0xf1f   : > { %v6111_v34 = vpop.eup %6110 }
 0xf20   : > { %v3919_v29 = vpop.permute.xlu1 %3918  ;;  %v6113_v41 = vpop.eup %6112  ;;  %v4158_v6 = vmul.f32 %v6111_v34, %v7957_v49 }
 0xf21   : > { %5602 = vmatpush3.bf16.msra.mxu1 %v3919_v29  ;;  %v4157_v17 = vmul.f32 %v6113_v41, %v7953_v58 }
 0xf22   : > { %5613 = vmatprep.subr.bf16.mxu1 %v8399_v30 }
 0xf23   : > { %v4159_v5 = vpack.c.bf16 %v4158_v6, %v4157_v17 }
 0xf24   : > { %5604 = vmatmul.mubr.msk.bf16.vlgmr.msra.gmra.mrb[72].mxu1 %vm1173_vm1, %v3917_v52  ;;  %v5939_v52 = vld [vmem:[#allocation8 + $0x8] sm:$0xff]  }
 0xf25   : > { %5614 = vmatpush3.bf16.msra.mxu1 %v4040_v0  ;;  %5615 = vmatprep.mubr.msk.bf16.mxu1 %vm6416_vm0, %v8399_v30 }
 0xf26   : > { %5625 = vmatprep.subr.bf16.mxu1 %v8399_v30 }
 0xf27   : > { %v6115_v27 = vpop.eup %6114 }
 0xf28   : > { %v6117_v45 = vpop.eup %6116  ;;  %v4279_v1 = vmul.f32 %v6115_v27, %v7965_v39 }
 0xf29   : > { %v4278_v13 = vmul.f32 %v6117_v45, %v7961_v22  ;;  %v5938_v22 = vld [vmem:[#allocation8] sm:$0xff]  }
 0xf2a   : > { %5644 = vmatpush3.bf16.msra.mxu0 %v5938_v22 }
 0xf2b   : > { %v4280_v44 = vpack.c.bf16 %v4279_v1, %v4278_v13  ;;  %5645 = vmatprep.subr.bf16.mxu0 %v8399_v30 }
 0xf2c   : > { %5616 = vmatmul.mubr.msk.bf16.vlgmr.msra.gmra.mrb[76].mxu1 %vm1173_vm1, %v4038_v31 }
 0xf2d   : > { %5626 = vmatpush3.bf16.msra.mxu1 %v4161_v19  ;;  %5627 = vmatprep.mubr.msk.bf16.mxu1 %vm6416_vm0, %v8399_v30 }
 0xf2e   : > { %5637 = vmatprep.subr.bf16.mxu1 %v8399_v30  ;;  %5646 = vmatpush3.bf16.msra.mxu0 %v5939_v52 }
 0xf2f   : > { %5647 = vmatprep.subr.bf16.mxu0 %v8399_v30 }
 0xf32   : > { %5648 = vmatpush3.bf16.msra.mxu0 %v5940_v33 }
 0xf33   : > { %5649 = vmatprep.subr.bf16.mxu0 %v8399_v30 }
 0xf34   : > { %5628 = vmatmul.mubr.msk.bf16.vlgmr.msra.gmra.mrb[80].mxu1 %vm1173_vm1, %v4159_v5 }
 0xf35   : > { %5638 = vmatpush3.bf16.msra.mxu1 %v4282_v56  ;;  %5639 = vmatprep.mubr.msk.bf16.mxu1 %vm6416_vm0, %v8399_v30 }
 0xf36   : > { %5650 = vmatpush3.bf16.msra.mxu0 %v5941_v53 }
 0xf37   : > { %5651 = vmatprep.subr.bf16.mxu0 %v8399_v30 }
 0xf3a   : > { %5652 = vmatpush3.bf16.msra.mxu0 %v5942_v8 }
 0xf3b   : > { %5653 = vmatprep.subr.bf16.mxu0 %v8399_v30 }
 0xf3c   : > { %5640 = vmatmul.mubr.msk.bf16.vlgmr.msra.gmra.mrb[84].mxu1 %vm1173_vm1, %v4280_v44 }
 0xf3d   : > { %4694 = vmatprep.mubr.bf16.mxu1 %v8400_v51 }
 0xf3e   : > { %5654 = vmatpush3.bf16.msra.mxu0 %v5943_v54  ;;  %v5946_v54 = vld [vmem:[#allocation10] ss:$8 sps:$4 sm:$0xff]  }
 0xf3f   : > { %5655 = vmatprep.subr.bf16.mxu0 %v8399_v30 }
 0xf42   : > { %5656 = vmatpush3.bf16.msra.mxu0 %v5944_v43  ;;  %v5949_v43 = vld [vmem:[#allocation10 + $0x10] ss:$8 sps:$4 sm:$0xff]  }
 0xf43   : > { %5657 = vmatprep.subr.bf16.mxu0 %v8399_v30 }
 0xf46   : > { %5658 = vmatpush3.bf16.msra.mxu0 %v5945_v2 }
 0xfc2   : > { %v3595_v58 = vpop.f32.mrb[60].mxu1 }
 0xfc3   : > { %v5569_v49 = vpop.f32.mrb[61].mxu1 }
 0xfc4   : > { %v3598_v4 = vpop.f32.mrb[62].mxu1 }
 0xfc5   : > { %v5831_v24 = vpack.i.bf16 %v3598_v4, %v3595_v58  ;;  %v5570_v42 = vpop.f32.mrb[63].mxu1 }
 0xfc7   : > { %5832 = vrot.lane.b32.xlu0 %v5831_v24, %s6424_s21  ;;  %s8405_s21 = sld [smem:[#allocation96_spill]] }
 0xfca   : > { %v3716_v46 = vpop.f32.mrb[64].mxu1 }
 0xfcb   : > { %v5581_v48 = vpop.f32.mrb[65].mxu1 }
 0xfcc   : > { %v3719_v36 = vpop.f32.mrb[66].mxu1 }
 0xfcd   : > { %v5836_v9 = vpack.i.bf16 %v3719_v36, %v3716_v46  ;;  %v5582_v60 = vpop.f32.mrb[67].mxu1 }
 0xfcf   : > { %5837 = vrot.lane.b32.xlu1 %v5836_v9, %s6423_s5 }
 0xfe7   : > { %v3837_v39 = vpop.f32.mrb[68].mxu1 }
 0xfe8   : > { %v5593_v51 = vpop.f32.mrb[69].mxu1 }
 0xfe9   : > { %v3840_v18 = vpop.f32.mrb[70].mxu1 }
 0xfea   : > { %v5841_v7 = vpack.i.bf16 %v3840_v18, %v3837_v39  ;;  %v5594_v37 = vpop.f32.mrb[71].mxu1 }
 0xfec   : > { %5842 = vrot.lane.b32.xlu0 %v5841_v7, %s6422_s1  ;;  %s856_s1 = scalar_lea.vmem [#allocation14], %s5118_s28 }
 0xfed   : > { %s4945_s5 = sshll.u32 %s856_s1, 4  ;;  %s8088_s5 = int_to_ptr.vmem [resolvable:$true] %s4945_s5 }
 0xff7   : > { %v3958_v40 = vpop.f32.mrb[72].mxu1 }
 0xff8   : > { %v5605_v59 = vpop.f32.mrb[73].mxu1 }
 0xff9   : > { %v3961_v3 = vpop.f32.mrb[74].mxu1  ;;  %v5216_v59 = vld [vmem:[%s8147_s15] ss:$0 sm:$0xff] }
 0xffa   : > { %v5846_v31 = vpack.i.bf16 %v3961_v3, %v3958_v40  ;;  %v5606_v16 = vpop.f32.mrb[75].mxu1 }
 0xffc   : > { %5847 = vrot.lane.b32.xlu1 %v5846_v31, %s6420_s30  ;;  %s8410_s30 = sld [smem:[#allocation26_spill]] }
 0xfff   : > { %v4079_v11 = vpop.f32.mrb[76].mxu1 }
0x1000   : > { %v5617_v57 = vpop.f32.mrb[77].mxu1 }
0x1001   : > { %v4082_v55 = vpop.f32.mrb[78].mxu1 }
0x1002   : > { %v5851_v10 = vpack.i.bf16 %v4082_v55, %v4079_v11  ;;  %v5618_v38 = vpop.f32.mrb[79].mxu1  ;;  %p8413_p7 = scmp.ne.s32.totalorder %s8410_s30, 0 }
0x1003   : > { %v5951_v38 = vld [vmem:[#allocation10 + $0x14] ss:$8 sps:$4 sm:$0xff]  }
0x1004   : > { %5852 = vrot.lane.b32.xlu0 %v5851_v10, %s6421_s3  ;;  %v5948_v10 = vld [vmem:[#allocation10 + $0x4] ss:$8 sps:$4 sm:$0xff]   ;;  %s5268_s3 = sshll.u32 %s6581_s6, 8  ;;  %s6324_s6 = scalar_lea.vmem %s8088_s5, 256 }
0x1005   : > { %4662 = vmatprep.subr.bf16.mxu1 %v5948_v10  ;;  %s8086_s7 = scalar_lea.hbm %s8411_s27, %s5268_s3  ;;  %p6325_p4 = scmp.ne.s32.totalorder %s8088_s5, %s6324_s6 }
0x1006   : > { %4663 = vmatpush1.bf16.msra.mxu1 %v5946_v54 }
0x1007   : > { %v4200_v26 = vpop.f32.mrb[80].mxu1  ;;  %4664 = vmatprep.subr.bf16.mxu1 %v5951_v38  ;;  %p6326_p8 = pnand %p6325_p4, %p8413_p7 }
0x1008   : > { %v5629_v15 = vpop.f32.mrb[81].mxu1 }
0x1009   : > { %v4203_v35 = vpop.f32.mrb[82].mxu1  ;;  %p6327_p11 = pneg %p6326_p8 }
0x100a   : > { %v5856_v14 = vpack.i.bf16 %v4203_v35, %v4200_v26  ;;  %v5630_v62 = vpop.f32.mrb[83].mxu1  ;;  %4665 = vmatpush1.bf16.msra.mxu1 %v5949_v43 }
0x100c   : > { %5857 = vrot.lane.b32.xlu1 %v5856_v14, %s6418_s26 }
0x100f   : > { %v4321_v32 = vpop.f32.mrb[84].mxu1 }
0x1010   : > { %v5641_v12 = vpop.f32.mrb[85].mxu1 }
0x1011   : > { %v4324_v63 = vpop.f32.mrb[86].mxu1  ;;  %v5954_v12 = vld [vmem:[#allocation10 + $0x24] ss:$8 sps:$4 sm:$0xff]  }
0x1012   : > { %v5861_v28 = vpack.i.bf16 %v4324_v63, %v4321_v32  ;;  %v5642_v50 = vpop.f32.mrb[87].mxu1  ;;  %v5952_v32 = vld [vmem:[#allocation10 + $0x20] ss:$8 sps:$4 sm:$0xff]   ;;  %4666 = vmatprep.subr.bf16.mxu1 %v5954_v12  ;;  %v5957_v63 = vld [vmem:[#allocation10 + $0x34] ss:$8 sps:$4 sm:$0xff]  }
0x1013   : > { %4667 = vmatpush1.bf16.msra.mxu1 %v5952_v32  ;;  %v5960_v50 = vld [vmem:[#allocation10 + $0x44] ss:$8 sps:$4 sm:$0xff]  }
0x1014   : > { %5862 = vrot.lane.b32.xlu0 %v5861_v28, %s6419_s2  ;;  %v5955_v28 = vld [vmem:[#allocation10 + $0x30] ss:$8 sps:$4 sm:$0xff]   ;;  %4668 = vmatprep.subr.bf16.mxu1 %v5957_v63  ;;  %s8409_s2 = sld [smem:[#allocation97_spill]] }
0x1017   : > { %4669 = vmatpush1.bf16.msra.mxu1 %v5955_v28 }
0x1018   : > { %4670 = vmatprep.subr.bf16.mxu1 %v5960_v50 }
0x1039   : > { %v5833_v29 = vpop.permute.xlu0 %5832 }
0x103a   : > { %v5835_v41 = vunpack.i.h.bf16 %v5833_v29  ;;  %v5834_v30 = vunpack.i.l.bf16 %v5833_v29  ;;  %v5958_v29 = vld [vmem:[#allocation10 + $0x40] ss:$8 sps:$4 sm:$0xff]  }
0x103b   : > { %4671 = vmatpush1.bf16.msra.mxu1 %v5958_v29 }
0x103c   : > { %v4385_v44 = vsel %vm1173_vm1, %v7863_v23, %v5835_v41  ;;  %v4384_v58 = vsel %vm1173_vm1, %v7859_v25, %v5834_v30  ;;  %v5972_v41 = vld [vmem:[#allocation11 + $0x48] sm:$0xff]   ;;  %v5961_v30 = vld [vmem:[#allocation10 + $0x50] ss:$8 sps:$4 sm:$0xff]  }
0x1041   : > { %v5838_v0 = vpop.permute.xlu1 %5837 }
0x1042   : > { %v5840_v6 = vunpack.i.h.bf16 %v5838_v0  ;;  %v5839_v17 = vunpack.i.l.bf16 %v5838_v0  ;;  %v5963_v0 = vld [vmem:[#allocation10 + $0x54] ss:$8 sps:$4 sm:$0xff]  }
0x1043   : > { %4672 = vmatprep.subr.bf16.mxu1 %v5963_v0 }
0x1044   : > { %v4387_v24 = vsel %vm1644_vm5, %v4385_v44, %v5840_v6  ;;  %v4386_v42 = vsel %vm1644_vm5, %v4384_v58, %v5839_v17  ;;  %v5966_v6 = vld [vmem:[#allocation10 + $0x64] ss:$8 sps:$4 sm:$0xff]   ;;  %4673 = vmatpush1.bf16.msra.mxu1 %v5961_v30  ;;  %v5977_v44 = vld [vmem:[#allocation11 + $0x18] sm:$0xff]  }
0x1045   : > { %v5973_v17 = vld [vmem:[#allocation11 + $0x8] sm:$0xff]   ;;  %4674 = vmatprep.subr.bf16.mxu1 %v5966_v6  ;;  %v5978_v58 = vld [vmem:[#allocation11 + $0x60] sm:$0xff]  }
0x105e   : > { %v5843_v34 = vpop.permute.xlu0 %5842 }
0x105f   : > { %v5845_v27 = vunpack.i.h.bf16 %v5843_v34  ;;  %v5844_v56 = vunpack.i.l.bf16 %v5843_v34  ;;  %v5970_v34 = vld [vmem:[#allocation11 + $0x40] sm:$0xff]  }
0x1060   : > { %5369 = vmatprep.subr.bf16.mxu0 %v5970_v34 }
0x1061   : > { %v4388_v36 = vsel %vm1650_vm7, %v4386_v42, %v5844_v56  ;;  %v4389_v9 = vsel %vm1650_vm7, %v4387_v24, %v5845_v27  ;;  %v5964_v27 = vld [vmem:[#allocation10 + $0x60] ss:$8 sps:$4 sm:$0xff]   ;;  %v5969_v56 = vld [vmem:[#allocation10 + $0x74] ss:$8 sps:$4 sm:$0xff]  }
0x1062   : > { %4675 = vmatpush1.bf16.msra.mxu1 %v5964_v27 }
0x1063   : > { %4676 = vmatprep.subr.bf16.mxu1 %v5969_v56 }
0x106e   : > { %v5848_v19 = vpop.permute.xlu1 %5847 }
0x106f   : > { %v5850_v1 = vunpack.i.h.bf16 %v5848_v19  ;;  %v5849_v13 = vunpack.i.l.bf16 %v5848_v19  ;;  %v5971_v19 = vld [vmem:[#allocation11] sm:$0xff]  }
0x1071   : > { %v4390_v60 = vsel %vm2931_vm2, %v4388_v36, %v5849_v13  ;;  %v4391_v22 = vsel %vm2931_vm2, %v4389_v9, %v5850_v1  ;;  %v5976_v1 = vld [vmem:[#allocation11 + $0x58] sm:$0xff]  }
0x1072   : > { %v5967_v13 = vld [vmem:[#allocation10 + $0x70] ss:$8 sps:$4 sm:$0xff]  }
0x1073   : > { %4677 = vmatpush1.bf16.msra.mxu1 %v5967_v13 }
0x1076   : > { %v5853_v5 = vpop.permute.xlu0 %5852 }
0x1077   : > { %v5855_v49 = vunpack.i.h.bf16 %v5853_v5  ;;  %v5854_v4 = vunpack.i.l.bf16 %v5853_v5  ;;  %v5974_v5 = vld [vmem:[#allocation11 + $0x50] sm:$0xff]  }
0x1079   : > { %v4392_v39 = vsel %vm2934_vm3, %v4390_v60, %v5854_v4  ;;  %v4393_v25 = vsel %vm2934_vm3, %v4391_v22, %v5855_v49  ;;  %v5979_v49 = vld [vmem:[#allocation11 + $0x20] sm:$0xff]   ;;  %v5980_v4 = vld [vmem:[#allocation11 + $0x68] sm:$0xff]  }
0x107a   : > { %v5225_v22 = vld [vmem:[%s8152_s20] ss:$0 sm:$0xff] }
0x107e   : > { %v5858_v45 = vpop.permute.xlu1 %5857 }
0x107f   : > { %v5860_v46 = vunpack.i.h.bf16 %v5858_v45  ;;  %v5859_v48 = vunpack.i.l.bf16 %v5858_v45  ;;  %v5975_v45 = vld [vmem:[#allocation11 + $0x10] sm:$0xff]  }
0x1081   : > { %v4394_v7 = vsel %vm2937_vm4, %v4392_v39, %v5859_v48  ;;  %v4395_v37 = vsel %vm2937_vm4, %v4393_v25, %v5860_v46 }
0x1086   : > { %v5863_v23 = vpop.permute.xlu0 %5862 }
0x1087   : > { %v5865_v51 = vunpack.i.h.bf16 %v5863_v23  ;;  %v5864_v18 = vunpack.i.l.bf16 %v5863_v23 }
0x1089   : > { %v4396_v52 = vsel %vm2940_vm6, %v4394_v7, %v5864_v18  ;;  %v4397_v33 = vsel %vm2940_vm6, %v4395_v37, %v5865_v51  ;;  %v5226_v18 = vld [vmem:[%s8405_s21] ss:$0 sm:$0xff] }
0x108a   : > { %v4398_v40 = vpack.c.bf16 %v4397_v33, %v4396_v52 }
0x108c   : > { %5660 = vmatmul.mubr.bf16.vlgmr.msra.gmra.mrb[60].mxu0 %v4398_v40  ;;  %v5981_v40 = vld [vmem:[#allocation11 + $0x28] sm:$0xff]  }
0x108d   : > { %5370 = vmatpush3.bf16.msra.mxu0 %v5971_v19 }
0x108e   : > { %5371 = vmatprep.subr.bf16.mxu0 %v5972_v41 }
0x1091   : > { %5372 = vmatpush3.bf16.msra.mxu0 %v5973_v17 }
0x1092   : > { %5373 = vmatprep.subr.bf16.mxu0 %v5974_v5 }
0x1095   : > { %5374 = vmatpush3.bf16.msra.mxu0 %v5975_v45 }
0x1096   : > { %5375 = vmatprep.subr.bf16.mxu0 %v5976_v1 }
0x1099   : > { %5376 = vmatpush3.bf16.msra.mxu0 %v5977_v44 }
0x109a   : > { %5377 = vmatprep.subr.bf16.mxu0 %v5978_v58 }
0x109d   : > { %5378 = vmatpush3.bf16.msra.mxu0 %v5979_v49 }
0x109e   : > { %5379 = vmatprep.subr.bf16.mxu0 %v5980_v4 }
0x10a1   : > { %5380 = vmatpush3.bf16.msra.mxu0 %v5981_v40 }
0x115f   : > { %v4504_v3 = vpop.f32.mrb[60].mxu0 }
0x1160   : > { %v4505_v53 = vadd.f32 %v5216_v59, %v4504_v3  ;;  %v5661_v31 = vpop.f32.mrb[61].mxu0  ;;  %v5983_v3 = vld [vmem:[#allocation11 + $0x30] sm:$0xff]  }
0x1161   : > { %v4507_v16 = vpop.f32.mrb[62].mxu0  ;;  %v5985_v31 = vld [vmem:[#allocation11 + $0x38] sm:$0xff]  }
0x1162   : > { %v4511_v8 = vadd.f32 %v4505_v53, %v7778_v20  ;;  %v4508_v11 = vadd.f32 %v5216_v59, %v4507_v16  ;;  %v5662_v57 = vpop.f32.mrb[63].mxu0  ;;  %v5982_v59 = vld [vmem:[#allocation11 + $0x70] sm:$0xff]   ;;  %v5984_v53 = vld [vmem:[#allocation11 + $0x78] sm:$0xff]   ;;  %v4570_v16 = vld [vmem:[%s8406_s17] sm:$0x3]  ;;  %s8412_s17 = smov %s8411_s27 }
0x1163   : > { %5381 = vmatprep.subr.bf16.mxu0 %v5982_v59 }
0x1164   : > { %v4512_v55 = vadd.f32 %v4508_v11, %v7780_v47  ;;  %4515 = vadd.xlane.f32.xlu1 %v4511_v8  ;;  %5382 = vmatpush3.bf16.msra.mxu0 %v5983_v3  ;;  %v4579_v11 = vrot.slane %v4570_v16, %v8404_v21 }
0x1165   : > { %5383 = vmatprep.subr.bf16.mxu0 %v5984_v53 }
0x1166   : > { %4517 = vadd.xlane.f32.xlu0 %v4512_v55 }
0x1168   : > { %5384 = vmatpush3.bf16.msra.mxu0 %v5985_v31 }
0x11f1   : > { %v4516_v26 = vpop.xlane.xlu1 %4515 }
0x11f2   : > { %v4519_v15 = vmul.f32 0.0078125, %v4516_v26 }
0x11f3   : > { %v4518_v35 = vpop.xlane.xlu0 %4517 }
0x11f4   : > { %v8054_v14 = vsub.f32 %v4511_v8, %v4519_v15  ;;  %v4520_v20 = vmul.f32 0.0078125, %v4518_v35  ;;  %v4575_v8 = vrot.slane %v4570_v16, %v8402_v61  ;;  %v5243_v61 = vld [vmem:[%s8407_s4] ss:$0 sm:$0xff]  ;;  %s6433_s4 = smov [#allocation14]  }
0x11f5   : > { %s6328_s25 = sshll.u32 %s6433_s4, 4  ;;  %s6329_s25 = int_to_ptr.vmem [resolvable:$false] %s6328_s25 }
0x11f6   : > { %v8056_v62 = vsub.f32 %v4512_v55, %v4520_v20  ;;  %v4523_v47 = vmul.f32 %v8054_v14, %v8054_v14  ;;  %s6330_s28 = scalar_lea.vmem %s6329_s25, 512  ;;  %p6331_p5 = scmp.lt.s32.totalorder %s8088_s5, %s6329_s25 }
0x11f7   : > { %p6332_p6 = scmp.lt.s32.totalorder %s6330_s28, %s6324_s6 }
0x11f8   : > { %4525 = vadd.xlane.f32.xlu0 %v4523_v47  ;;  %v4524_v2 = vmul.f32 %v8056_v62, %v8056_v62 }
0x11f9   : > { %p6333_p0 = por %p6332_p6, %p6331_p5 }
0x11fa   : > { %4527 = vadd.xlane.f32.xlu1 %v4524_v2 }
0x11fb   : > { %p6334_p9 = pnand %p6333_p0, %p6327_p11 }
0x1285   : > { %v4526_v24 = vpop.xlane.xlu0 %4525 }
0x1286   : > { %v4529_v42 = vmul.f32 0.0078125, %v4526_v24 }
0x1287   : > { %v4528_v46 = vpop.xlane.xlu1 %4527 }
0x1288   : > { %v4531_v48 = vadd.f32 1e-05, %v4529_v42  ;;  %v4530_v36 = vmul.f32 0.0078125, %v4528_v46  ;;  %v5260_v42 = vld [vmem:[%s8409_s2] ss:$0 sm:$0xff] }
0x128a   : > { %6118 = vrsqrt.f32 %v4531_v48  ;;  %v4532_v9 = vadd.f32 1e-05, %v4530_v36  ;;  %v5261_v36 = vld [vmem:[#allocation13] ss:$0 sm:$0xff] }
0x128c   : > { %6120 = vrsqrt.f32 %v4532_v9 }
0x1294   : > { %v6119_v60 = vpop.eup %6118 }
0x1295   : > { %v4535_v23 = vmul.f32 %v6119_v60, %v8054_v14 }
0x1296   : > { %v6121_v39 = vpop.eup %6120 }
0x1297   : > { %v4536_v25 = vmul.f32 %v6121_v39, %v8056_v62  ;;  %v4543_v51 = vmul.f32 %v5225_v22, %v4535_v23 }
0x1299   : > { %v4544_v7 = vmul.f32 %v5225_v22, %v4536_v25  ;;  %v4551_v37 = vadd.f32 %v5226_v18, %v4543_v51 }
0x129b   : > { %v4552_v52 = vadd.f32 %v5226_v18, %v4544_v7 }
0x129d   : > { %v4553_v33 = vpack.c.bf16 %v4552_v52, %v4551_v37 }
0x129f   : > { %4695 = vmatmul.mubr.bf16.vlgmr.msra.gmra.mrb[88].mxu1 %v4553_v33 }
0x1372   : > { %v4696_v57 = vpop.f32.mrb[88].mxu1 }
0x1373   : > { %v4697_v55 = vadd.f32 %v4696_v57, %v4575_v8  ;;  %v4698_v54 = vpop.f32.mrb[89].mxu1 }
0x1374   : > { %v4699_v10 = vadd.f32 %v4698_v54, %v4579_v11  ;;  %v4700_v38 = vpop.f32.mrb[90].mxu1 }
0x1375   : > { %v4701_v43 = vadd.f32 %v4700_v38, %v4575_v8  ;;  %v4702_v26 = vpop.f32.mrb[91].mxu1  ;;  %v4705_v35 = vmax.f32 %v4697_v55, 0.0 }
0x1376   : > { %v4703_v15 = vadd.f32 %v4702_v26, %v4579_v11  ;;  %v4706_v20 = vmax.f32 %v4699_v10, 0.0 }
0x1377   : > { %v4707_v14 = vmax.f32 %v4701_v43, 0.0 }
0x1378   : > { %v4708_v62 = vmax.f32 %v4703_v15, 0.0 }
0x1379   : > { %v4709_v47 = vpack.c.bf16 %v4707_v14, %v4705_v35 }
0x137a   : > { %v4710_v2 = vpack.c.bf16 %v4708_v62, %v4706_v20 }
0x137c   : > { %4878 = vmatprep.mubr.bf16.mxu0 %v4710_v2 }
0x137d   : > { %4879 = vmatmul.mubr.bf16.vlgmr.msra.gmra.mrb[64].mxu0 %v4709_v47 }
0x1450   : > { %v5385_v32 = vpop.f32.mrb[64].mxu0 }
0x1451   : > { %v5386_v21 = vpop.f32.mrb[65].mxu0 }
0x1452   : > { %v5387_v12 = vadd.f32 %v5386_v21, %v5385_v32  ;;  %v5388_v63 = vpop.f32.mrb[66].mxu0 }
0x1453   : > { %v5389_v28 = vpop.f32.mrb[67].mxu0 }
0x1454   : > { %v4881_v50 = vadd.f32 %v5387_v12, %v5243_v61  ;;  %v5390_v29 = vadd.f32 %v5389_v28, %v5388_v63 }
0x1456   : > { %v4884_v0 = vadd.f32 %v5390_v29, %v5243_v61  ;;  %v4887_v34 = vadd.f32 %v4881_v50, %v4551_v37 }
0x1458   : > { %4891 = vadd.xlane.f32.xlu0 %v4887_v34  ;;  %v4888_v19 = vadd.f32 %v4884_v0, %v4552_v52 }
0x145a   : > { %4893 = vadd.xlane.f32.xlu1 %v4888_v19 }
0x14e5   : > { %v4892_v41 = vpop.xlane.xlu0 %4891 }
0x14e6   : > { %v4895_v30 = vmul.f32 0.0078125, %v4892_v41 }
0x14e7   : > { %v4894_v6 = vpop.xlane.xlu1 %4893 }
0x14e8   : > { %v4897_v17 = vsub.f32 %v4887_v34, %v4895_v30  ;;  %v4896_v5 = vmul.f32 0.0078125, %v4894_v6 }
0x14ea   : > { %v4898_v27 = vsub.f32 %v4888_v19, %v4896_v5  ;;  %v4899_v56 = vmul.f32 %v4897_v17, %v4897_v17 }
0x14ec   : > { %4901 = vadd.xlane.f32.xlu0 %v4899_v56  ;;  %v4900_v45 = vmul.f32 %v4898_v27, %v4898_v27 }
0x14ee   : > { %4903 = vadd.xlane.f32.xlu1 %v4900_v45 }
0x1579   : > { %v4902_v1 = vpop.xlane.xlu0 %4901 }
0x157a   : > { %v4905_v13 = vmul.f32 0.0078125, %v4902_v1 }
0x157b   : > { %v4904_v44 = vpop.xlane.xlu1 %4903 }
0x157c   : > { %v4907_v58 = vadd.f32 1e-05, %v4905_v13  ;;  %v4906_v49 = vmul.f32 0.0078125, %v4904_v44 }
0x157e   : > { %6122 = vrsqrt.f32 %v4907_v58  ;;  %v4908_v4 = vadd.f32 1e-05, %v4906_v49 }
0x1580   : > { %6124 = vrsqrt.f32 %v4908_v4 }
0x1588   : > { %v6123_v24 = vpop.eup %6122 }
0x1589   : > { %v4911_v46 = vmul.f32 %v6123_v24, %v4897_v17 }
0x158a   : > { %v6125_v48 = vpop.eup %6124 }
0x158b   : > { %v4919_v9 = vmul.f32 %v5260_v42, %v4911_v46  ;;  %v4912_v60 = vmul.f32 %v6125_v48, %v4898_v27 }
0x158d   : > { %v4927_v22 = vadd.f32 %v5261_v36, %v4919_v9  ;;  %v4920_v23 = vmul.f32 %v5260_v42, %v4912_v60 }
0x158f   : > { %v4928_v39 = vadd.f32 %v5261_v36, %v4920_v23  ;;  %4929 = vst [vmem:[%s856_s1] sm:$0xff] %v4927_v22 }
0x1591   : > { %4930 = vst [vmem:[%s856_s1 + $0x8] sm:$0xff] %v4928_v39 }
0x1592   : > { %6337 = shalt.err (!%p6334_p9)
}
0x1593   : > { %s6338_s24 = scalar_lea.hbm %s8086_s7, 256  ;;  %s6342_s2 = scalar_lea.hbm %s8412_s17, 512 }
0x1594   : > { %p6339_p10 = scmp.ne.s32.totalorder %s8086_s7, %s6338_s24  ;;  %p6343_p1 = scmp.lt.u32.totalorder %s8086_s7, %s8412_s17 }
0x1595   : > { %p6344_p2 = scmp.lt.u32.totalorder %s6342_s2, %s6338_s24  ;;  %p6346_p4 = scmp.lt.u32.totalorder %s6338_s24, %s8086_s7 }
0x1596   : > { %p6340_p13 = pnand %p6339_p10, %p8413_p7 }
0x1597   : > { %p6345_p3 = por %p6344_p2, %p6343_p1 }
0x1598   : > { %p6341_p12 = pneg %p6340_p13 }
0x1599   : > { %p6347_p8 = por %p6346_p4, %p6345_p3 }
0x159b   : > { %p6348_p11 = pnand %p6347_p8, %p6341_p12 }
0x159d   : > { %6351 = shalt.err (!%p6348_p11)
}
0x159e   : > { %s6434_s21 = smov 128  }
0x159f   : > { %5691 = dma.vmem_to_hbm [thread:$0]  (%p8413_p7), %s8088_s5, 256, %s8086_s7, %s8090_s14, %s6434_s21, %s6434_s21, %s6425_s8  }
0x15a0 PF: > { %s8414_s0 = sld [smem:[#allocation23_spill]]  ;;  %s8415_s27 = sld [smem:[#allocation20_spill]] }
0x15a1   : > { %s8416_s6 = sld [smem:[#allocation27_spill]] }
0x15a6   : > { %p5733_p5 = scmp.ge.s32.totalorder %s8414_s0, 2  ;;  %s4960_s4 = sand.u32 1, %s8415_s27  }
0x15a7   : > { %p8417_p6 = scmp.ne.s32.totalorder %s8416_s6, 0  ;;  %s4961_s25 = scalar_lea.sflag [#allocation4], %s4960_s4 }
0x15a9   : > { %p5716_p0 = pnand %p5733_p5, %p8417_p6 }
0x15ab   : > { %6385 = dma.done.wait (!%p5716_p0), %s4961_s25, 256  }
0x15ac   : > { %6387 = vsyncadd (!%p5716_p0), %s4961_s25, 4294967040  ;;  %s8418_s28 = sld [smem:[#allocation24_spill]]  ;;  %s8419_s5 = sld [smem:[#allocation21_spill]] }
0x15ad   : > { %s8420_s26 = sld [smem:[#allocation22_spill]]  ;;  %s8421_s27 = sld [smem:[#allocation25_spill]] }
0x15b2   : > { %p38_p9 = scmp.ge.s32.totalorder %s8418_s28, 4  }
0x15b4   :  { %40 = sbr.rel (!%p38_p9) target bundleno = 23 (0x17), region = 186 }
0x15bb   :  { %4966 = vsyncpa [#allocation3], 1 }
0x15bc   :  { %4968 = vsyncpa [#allocation3 + $0x1], 1 }
0x15bd   :  { %4969 = vsyncpa [#allocation6], 1 }
0x15be   :  { %4970 = vsyncpa [#allocation9], 1 }
0x15bf   :  { %4971 = vsyncpa [#allocation12], 1 }
0x15c0   :  { %4972 = vsyncpa [#allocation4], 1 }
0x15c1   :  { %4974 = vsyncpa [#allocation4 + $0x1], 1 }

</bundles_post_ra>
